<compile_context>
chip_gen: v6e
topology: v6e:2x2x1
jax: 0.10.0
libtpu: 0.0.40
codegen_flags: <defaults>
</compile_context>

<pallas_src>
import math
from functools import partial

import jax
import jax.numpy as jnp
from jax import lax
from jax.experimental import pallas as pl
from jax.experimental.pallas import tpu as pltpu

D_MODEL = 512
N_HEAD = 4
HEAD_DIM = D_MODEL // N_HEAD          # 128 == one vreg lane width
VMEM = pltpu.MemorySpace.VMEM


# --------------------------------------------------------------------------- helpers
def _ln(x, g, b):
    mean = jnp.mean(x, axis=-1, keepdims=True)
    var = jnp.mean(jnp.square(x - mean), axis=-1, keepdims=True)
    return (x - mean) * lax.rsqrt(var + 1e-5) * g + b


# --------------------------------------------------------------------------- kernels
def stem_kernel(p_ref, wc_ref, csc_ref, csh_ref, wp_ref, bp_ref, g_ref, b_ref, pe_ref, o_ref):
    """conv+BN+ReLU (block-diag matmul) -> projection -> ReLU -> LN -> + positional encoding."""
    # conv3x3 as a single MXU matmul: (B*S, S*9) @ (S*9, S*32) -> (B*S, S*32), lane-dense.
    feat = jnp.dot(p_ref[...].astype(jnp.bfloat16), wc_ref[...],
                   preferred_element_type=jnp.float32)
    # folded conv bias + eval-mode BatchNorm, then ReLU
    feat = jnp.maximum(feat * csc_ref[...] + csh_ref[...], 0.0)
    # input_projection -> ReLU -> LayerNorm
    h = jnp.dot(feat.astype(jnp.bfloat16), wp_ref[...],
                preferred_element_type=jnp.float32) + bp_ref[...]
    h = jnp.maximum(h, 0.0)
    h = _ln(h, g_ref[...], b_ref[...])
    # PositionalEncoding: x + pe ; dropout(p=0.1) is identity in eval mode
    o_ref[...] = h + pe_ref[...]


def branch_kernel(src_ref,
                  wqkv_ref, bqkv_ref, wo_ref, bo_ref,
                  n1g_ref, n1b_ref, ff1w_ref, ff1b_ref, ff2w_ref, ff2b_ref,
                  n2g_ref, n2b_ref, nfg_ref, nfb_ref,
                  hw1_ref, hb1_ref, hlng_ref, hlnb_ref,
                  hw2_ref, hb2_ref, hw3_ref, hb3_ref,
                  o_ref, *, B, S):
    """One fused (transformer encoder layer + head) branch; grid step g picks branch 1 or 2."""
    x = src_ref[...]                                                   # (B*S, D) f32, VMEM-resident

    # ---- multi-head self-attention --------------------------------------------------
    qkv = jnp.dot(x.astype(jnp.bfloat16), wqkv_ref[...],
                  preferred_element_type=jnp.float32) + bqkv_ref[...]  # (B*S, 3D)
    scale = 1.0 / math.sqrt(HEAD_DIM)
    batch_rows = []
    for b in range(B):                                                 # static, B=2
        r0 = b * S
        heads = []
        for h in range(N_HEAD):                                        # static, 4 heads
            lo = h * HEAD_DIM
            q = qkv[r0:r0 + S, lo:lo + HEAD_DIM] * scale
            k = qkv[r0:r0 + S, D_MODEL + lo:D_MODEL + lo + HEAD_DIM]
            v = qkv[r0:r0 + S, 2 * D_MODEL + lo:2 * D_MODEL + lo + HEAD_DIM]
            # q @ k^T without an explicit XLU transpose (contract last dims)
            s = lax.dot_general(q, k, (((1,), (1,)), ((), ())),
                                preferred_element_type=jnp.float32)    # (S, S)
            s = s - jnp.max(s, axis=-1, keepdims=True)
            p = jnp.exp(s)
            p = p * pl.reciprocal(jnp.sum(p, axis=-1, keepdims=True), approx=True)
            heads.append(jnp.dot(p, v, preferred_element_type=jnp.float32))
        batch_rows.append(jnp.concatenate(heads, axis=1))              # (S, D)
    attn = jnp.concatenate(batch_rows, axis=0)                         # (B*S, D), single value

    attn = jnp.dot(attn.astype(jnp.bfloat16), wo_ref[...],
                   preferred_element_type=jnp.float32) + bo_ref[...]   # out_proj
    h1 = _ln(x + attn, n1g_ref[...], n1b_ref[...])                     # add & norm (dropout=id)

    # ---- feed-forward ---------------------------------------------------------------
    ff = jnp.dot(h1.astype(jnp.bfloat16), ff1w_ref[...],
                 preferred_element_type=jnp.float32) + ff1b_ref[...]
    ff = jnp.maximum(ff, 0.0)
    ff = jnp.dot(ff.astype(jnp.bfloat16), ff2w_ref[...],
                 preferred_element_type=jnp.float32) + ff2b_ref[...]
    h2 = _ln(h1 + ff, n2g_ref[...], n2b_ref[...])
    e = _ln(h2, nfg_ref[...], nfb_ref[...])                            # norm_final

    # ---- head (fc1 -> LN -> ReLU -> fc2 -> ReLU -> fc3 -> ReLU) ----------------------
    y = jnp.dot(e.astype(jnp.bfloat16), hw1_ref[...],
                preferred_element_type=jnp.float32) + hb1_ref[...]
    y = jnp.maximum(_ln(y, hlng_ref[...], hlnb_ref[...]), 0.0)
    y = jnp.dot(y.astype(jnp.bfloat16), hw2_ref[...],
                preferred_element_type=jnp.float32) + hb2_ref[...]     # (B*S, S//2)
    y = jnp.maximum(y, 0.0)
    # TODO(synk): final-layer ReLU kept from the previous version; confirm vs the PyTorch head.
    y = jnp.dot(y.astype(jnp.bfloat16), hw3_ref[...],
                preferred_element_type=jnp.float32) + hb3_ref[...]     # (B*S, 1)
    o_ref[...] = jnp.maximum(y, 0.0)


# --------------------------------------------------------------------------- wrappers
def run_stem(patches, sp):
    M = patches.shape[0]
    args = (patches, sp["conv_wbd"], sp["conv_scale"], sp["conv_shift"],
            sp["proj_w"], sp["proj_b"], sp["ln1_g"], sp["ln1_b"], sp["pe"])
    return pl.pallas_call(
        stem_kernel,
        out_shape=jax.ShapeDtypeStruct((M, D_MODEL), jnp.float32),
        in_specs=[pl.BlockSpec(memory_space=VMEM)] * len(args),
        out_specs=pl.BlockSpec(memory_space=VMEM),
    )(*args)


BRANCH_ORDER = ("wqkv", "bqkv", "wo", "bo", "n1_g", "n1_b", "ff1_w", "ff1_b",
                "ff2_w", "ff2_b", "n2_g", "n2_b", "nf_g", "nf_b",
                "hw1", "hb1", "hln_g", "hln_b", "hw2", "hb2", "hw3", "hb3")


def run_branches(src, bp, B, S):
    args = [bp[name] for name in BRANCH_ORDER]                      # each stacked (2, d0, d1)
    in_specs = [pl.BlockSpec((B * S, D_MODEL), lambda g: (0, 0))]   # src shared by both branches
    for a in args:
        d0, d1 = a.shape[1], a.shape[2]
        in_specs.append(pl.BlockSpec((None, d0, d1), lambda g: (g, 0, 0)))
    return pl.pallas_call(
        partial(branch_kernel, B=B, S=S),
        out_shape=jax.ShapeDtypeStruct((2, B * S, 1), jnp.float32),
        grid=(2,),
        in_specs=in_specs,
        out_specs=pl.BlockSpec((None, B * S, 1), lambda g: (g, 0, 0)),
        compiler_params=pltpu.CompilerParams(
            # Two branches are independent -> megacore-parallel on v7x, no-op on v5e/v6e.
            dimension_semantics=("parallel",),
            # Explicit headroom above v5e's 16 MiB scoped-VMEM default (weights ~3.5 MiB bf16 / branch).
            vmem_limit_bytes=32 * 1024 * 1024,
        ),
    )(src, *args)


# --------------------------------------------------------------------------- params
def positional_encoding(S, d):
    position = jnp.arange(S, dtype=jnp.float32)[:, None]
    div_term = jnp.exp(jnp.arange(0, d, 2, dtype=jnp.float32) * (-math.log(10000.0) / d))
    pe = jnp.zeros((S, d), jnp.float32)
    pe = pe.at[:, 0::2].set(jnp.sin(position * div_term))
    pe = pe.at[:, 1::2].set(jnp.cos(position * div_term))
    return pe                                                       # (S, d)


def init_params(key, S):
    keys = iter(jax.random.split(key, 64))

    def nrm(shape, scale=0.05):
        return (scale * jax.random.normal(next(keys), shape)).astype(jnp.float32)

    p = {}
    # Conv2d(1, 32, 3): stored as (ky*kx, 32); conv_w[ky*3+kx, c] == PyTorch weight[c, 0, ky, kx].
    p["conv_w"] = nrm((9, 32))
    p["conv_b"] = nrm((32,), 0.02)
    p["bn_gamma"] = 1.0 + nrm((32,), 0.01)
    p["bn_beta"] = nrm((32,), 0.01)
    p["bn_mean"] = jnp.zeros((32,), jnp.float32)        # eval-mode running stats
    p["bn_var"] = jnp.ones((32,), jnp.float32)

    p["proj_w"] = nrm((S * 32, D_MODEL))                # input_projection
    p["proj_b"] = nrm((D_MODEL,), 0.02)
    p["ln1_g"] = 1.0 + nrm((D_MODEL,), 0.01)
    p["ln1_b"] = nrm((D_MODEL,), 0.01)

    for i in (1, 2):
        p[f"enc{i}"] = {
            "wqkv": nrm((D_MODEL, 3 * D_MODEL)), "bqkv": nrm((3 * D_MODEL,), 0.02),
            "wo": nrm((D_MODEL, D_MODEL)), "bo": nrm((D_MODEL,), 0.02),
            "n1_g": 1.0 + nrm((D_MODEL,), 0.01), "n1_b": nrm((D_MODEL,), 0.01),
            "ff1_w": nrm((D_MODEL, D_MODEL)), "ff1_b": nrm((D_MODEL,), 0.02),
            "ff2_w": nrm((D_MODEL, D_MODEL)), "ff2_b": nrm((D_MODEL,), 0.02),
            "n2_g": 1.0 + nrm((D_MODEL,), 0.01), "n2_b": nrm((D_MODEL,), 0.01),
            "nf_g": 1.0 + nrm((D_MODEL,), 0.01), "nf_b": nrm((D_MODEL,), 0.01),
        }
        p[f"head{i}"] = {
            "w1": nrm((D_MODEL, D_MODEL)), "b1": nrm((D_MODEL,), 0.02),
            "ln_g": 1.0 + nrm((D_MODEL,), 0.01), "ln_b": nrm((D_MODEL,), 0.01),
            "w2": nrm((D_MODEL, S // 2)), "b2": nrm((S // 2,), 0.02),
            "w3": nrm((S // 2, 1)), "b3": nrm((1,), 0.02),
        }
    return p


def pack_params(p, S, B):
    """One-time preprocessing: fold BN, block-diag conv weight, tile PE, stack the two branches,
    cast all matmul weights to bf16 (MXU-native); biases / LN params stay f32."""
    scale = p["bn_gamma"] / jnp.sqrt(p["bn_var"] + 1e-5)
    shift = p["bn_beta"] - p["bn_mean"] * scale
    stem = {
        # (S*9, S*32) block-diagonal conv weight: feat[:, j*32+c] = sum_k patches[:, j*9+k] * conv_w[k, c]
        "conv_wbd": jnp.kron(jnp.eye(S, dtype=jnp.float32), p["conv_w"]).astype(jnp.bfloat16),
        "conv_scale": jnp.tile(scale, S)[None, :],                       # (1, S*32)
        "conv_shift": jnp.tile(p["conv_b"] * scale + shift, S)[None, :],
        "proj_w": p["proj_w"].astype(jnp.bfloat16),
        "proj_b": p["proj_b"][None, :],
        "ln1_g": p["ln1_g"][None, :],
        "ln1_b": p["ln1_b"][None, :],
        "pe": jnp.tile(positional_encoding(S, D_MODEL), (B, 1)),         # (B*S, D)
    }

    def stack(group, key, weight):
        s = jnp.stack([p[f"{group}1"][key], p[f"{group}2"][key]], axis=0)
        return s.astype(jnp.bfloat16) if weight else s[:, None, :]

    branch = {
        "wqkv": stack("enc", "wqkv", True), "bqkv": stack("enc", "bqkv", False),
        "wo": stack("enc", "wo", True), "bo": stack("enc", "bo", False),
        "n1_g": stack("enc", "n1_g", False), "n1_b": stack("enc", "n1_b", False),
        "ff1_w": stack("enc", "ff1_w", True), "ff1_b": stack("enc", "ff1_b", False),
        "ff2_w": stack("enc", "ff2_w", True), "ff2_b": stack("enc", "ff2_b", False),
        "n2_g": stack("enc", "n2_g", False), "n2_b": stack("enc", "n2_b", False),
        "nf_g": stack("enc", "nf_g", False), "nf_b": stack("enc", "nf_b", False),
        "hw1": stack("head", "w1", True), "hb1": stack("head", "b1", False),
        "hln_g": stack("head", "ln_g", False), "hln_b": stack("head", "ln_b", False),
        "hw2": stack("head", "w2", True), "hb2": stack("head", "b2", False),
        "hw3": stack("head", "w3", True), "hb3": stack("head", "b3", False),
    }
    return stem, branch


# --------------------------------------------------------------------------- forward
def forward(x, stem_p, branch_p, B, S):
    # im2col in plain XLA (tiny, (B*S, S*9)); column j*9 + (ky*3+kx) = xpad[b, i+ky, j+kx],
    # matching the block-diagonal conv weight and PyTorch's permute(0,2,3,1).reshape(B,S,-1).
    xp = jnp.pad(x[:, 0], ((0, 0), (1, 1), (1, 1)))
    patches = jnp.stack(
        [xp[:, dy:dy + S, dx:dx + S] for dy in range(3) for dx in range(3)], axis=-1
    ).reshape(B * S, S * 9)

    src = run_stem(patches, stem_p)                 # (B*S, D): conv+proj+LN+PE, one kernel
    out = run_branches(src, branch_p, B, S)         # (2, B*S, 1): enc+head per branch, one kernel
    return out[0].reshape(B, S, 1), out[1].reshape(B, S, 1)


# --------------------------------------------------------------------------- main
if __name__ == "__main__":
    S = 16          # max_seq_len; input is the (S x S) self-similarity map, 1 channel
    B = 2
    key = jax.random.PRNGKey(0)
    k_in, k_par = jax.random.split(key)
    x = jax.random.normal(k_in, (B, 1, S, S), dtype=jnp.float32)
    params = init_params(k_par, S)
    stem_p, branch_p = pack_params(params, S, B)

    fwd = jax.jit(partial(forward, B=B, S=S))
    y1, y2 = fwd(x, stem_p, branch_p)
    jax.block_until_ready((y1, y2))
    assert y1.shape == (B, S, 1) and y2.shape == (B, S, 1)
    assert y1.dtype == jnp.float32 and y2.dtype == jnp.float32
    print("KERNEL_OK")
</pallas_src>

<mosaic_0001>
module attributes {stable_mosaic.version = 11 : i64} {
  func.func @branch_kernel(%arg0: i32, %arg1: memref<32x512xf32, #tpu.memory_space<vmem>>, %arg2: memref<1x512x1536xbf16, #tpu.memory_space<vmem>>, %arg3: memref<1x1x1536xf32, #tpu.memory_space<vmem>>, %arg4: memref<1x512x512xbf16, #tpu.memory_space<vmem>>, %arg5: memref<1x1x512xf32, #tpu.memory_space<vmem>>, %arg6: memref<1x1x512xf32, #tpu.memory_space<vmem>>, %arg7: memref<1x1x512xf32, #tpu.memory_space<vmem>>, %arg8: memref<1x512x512xbf16, #tpu.memory_space<vmem>>, %arg9: memref<1x1x512xf32, #tpu.memory_space<vmem>>, %arg10: memref<1x512x512xbf16, #tpu.memory_space<vmem>>, %arg11: memref<1x1x512xf32, #tpu.memory_space<vmem>>, %arg12: memref<1x1x512xf32, #tpu.memory_space<vmem>>, %arg13: memref<1x1x512xf32, #tpu.memory_space<vmem>>, %arg14: memref<1x1x512xf32, #tpu.memory_space<vmem>>, %arg15: memref<1x1x512xf32, #tpu.memory_space<vmem>>, %arg16: memref<1x512x512xbf16, #tpu.memory_space<vmem>>, %arg17: memref<1x1x512xf32, #tpu.memory_space<vmem>>, %arg18: memref<1x1x512xf32, #tpu.memory_space<vmem>>, %arg19: memref<1x1x512xf32, #tpu.memory_space<vmem>>, %arg20: memref<1x512x8xbf16, #tpu.memory_space<vmem>>, %arg21: memref<1x1x8xf32, #tpu.memory_space<vmem>>, %arg22: memref<1x8x1xbf16, #tpu.memory_space<vmem>>, %arg23: memref<1x1x1xf32, #tpu.memory_space<vmem>>, %arg24: memref<1x32x1xf32, #tpu.memory_space<vmem>>) attributes {dimension_semantics = [#tpu.dimension_semantics<parallel>], iteration_bounds = array<i64: 2>, scalar_prefetch = 0 : i64, scratch_operands = 0 : i64, tpu.core_type = #tpu.core_type<tc>, window_params = [{pipeline_mode = #tpu.pipeline_mode<synchronous>, transform_indices = @transform_0, window_bounds = array<i64: 32, 512>}, {transform_indices = @transform_1, window_bounds = array<i64: 1, 512, 1536>}, {transform_indices = @transform_2, window_bounds = array<i64: 1, 1, 1536>}, {transform_indices = @transform_3, window_bounds = array<i64: 1, 512, 512>}, {transform_indices = @transform_4, window_bounds = array<i64: 1, 1, 512>}, {transform_indices = @transform_5, window_bounds = array<i64: 1, 1, 512>}, {transform_indices = @transform_6, window_bounds = array<i64: 1, 1, 512>}, {transform_indices = @transform_7, window_bounds = array<i64: 1, 512, 512>}, {transform_indices = @transform_8, window_bounds = array<i64: 1, 1, 512>}, {transform_indices = @transform_9, window_bounds = array<i64: 1, 512, 512>}, {transform_indices = @transform_10, window_bounds = array<i64: 1, 1, 512>}, {transform_indices = @transform_11, window_bounds = array<i64: 1, 1, 512>}, {transform_indices = @transform_12, window_bounds = array<i64: 1, 1, 512>}, {transform_indices = @transform_13, window_bounds = array<i64: 1, 1, 512>}, {transform_indices = @transform_14, window_bounds = array<i64: 1, 1, 512>}, {transform_indices = @transform_15, window_bounds = array<i64: 1, 512, 512>}, {transform_indices = @transform_16, window_bounds = array<i64: 1, 1, 512>}, {transform_indices = @transform_17, window_bounds = array<i64: 1, 1, 512>}, {transform_indices = @transform_18, window_bounds = array<i64: 1, 1, 512>}, {transform_indices = @transform_19, window_bounds = array<i64: 1, 512, 8>}, {transform_indices = @transform_20, window_bounds = array<i64: 1, 1, 8>}, {transform_indices = @transform_21, window_bounds = array<i64: 1, 8, 1>}, {transform_indices = @transform_22, window_bounds = array<i64: 1, 1, 1>}, {transform_indices = @transform_23, window_bounds = array<i64: 1, 32, 1>}]} {
    %c0 = arith.constant 0 : index
    %c0_0 = arith.constant 0 : index
    %0 = vector.load %arg1[%c0, %c0_0] : memref<32x512xf32, #tpu.memory_space<vmem>>, vector<32x512xf32>
    %1 = arith.truncf %0 : vector<32x512xf32> to vector<32x512xbf16>
    %c0_1 = arith.constant 0 : index
    %c0_2 = arith.constant 0 : index
    %c0_3 = arith.constant 0 : index
    %2 = vector.load %arg2[%c0_1, %c0_2, %c0_3] : memref<1x512x1536xbf16, #tpu.memory_space<vmem>>, vector<1x512x1536xbf16>
    %3 = vector.shape_cast %2 : vector<1x512x1536xbf16> to vector<512x1536xbf16>
    %cst = arith.constant dense<0.000000e+00> : vector<32x1536xf32>
    %4 = tpu.matmul %1, %3, %cst {dimension_numbers = #tpu.dot_dimension_numbers<[1], [0], [0], [1], [0, 0, 1, 1], [], []>} : vector<32x512xbf16>, vector<512x1536xbf16>, vector<32x1536xf32> -> vector<32x1536xf32>
    %c0_4 = arith.constant 0 : index
    %c0_5 = arith.constant 0 : index
    %c0_6 = arith.constant 0 : index
    %5 = vector.load %arg3[%c0_4, %c0_5, %c0_6] : memref<1x1x1536xf32, #tpu.memory_space<vmem>>, vector<1x1x1536xf32>
    %6 = vector.shape_cast %5 : vector<1x1x1536xf32> to vector<1x1536xf32>
    %7 = vector.broadcast %6 : vector<1x1536xf32> to vector<32x1536xf32>
    %8 = arith.addf %4, %7 : vector<32x1536xf32>
    %9 = vector.extract_strided_slice %8 {offsets = [0, 0], sizes = [16, 128], strides = [1, 1]} : vector<32x1536xf32> to vector<16x128xf32>
    %cst_7 = arith.constant 0.0883883461 : f32
    %10 = vector.broadcast %cst_7 : f32 to vector<16x128xf32>
    %11 = arith.mulf %9, %10 : vector<16x128xf32>
    %12 = vector.extract_strided_slice %8 {offsets = [0, 512], sizes = [16, 128], strides = [1, 1]} : vector<32x1536xf32> to vector<16x128xf32>
    %13 = vector.extract_strided_slice %8 {offsets = [0, 1024], sizes = [16, 128], strides = [1, 1]} : vector<32x1536xf32> to vector<16x128xf32>
    %cst_8 = arith.constant dense<0.000000e+00> : vector<16x16xf32>
    %14 = tpu.matmul %11, %12, %cst_8 {dimension_numbers = #tpu.dot_dimension_numbers<[1], [1], [0], [0], [0, 0, 1, 0], [], []>} : vector<16x128xf32>, vector<16x128xf32>, vector<16x16xf32> -> vector<16x16xf32>
    %cst_9 = arith.constant dense<0xFF800000> : vector<16xf32>
    %15 = vector.multi_reduction <maximumf>, %14, %cst_9 [1] : vector<16x16xf32> to vector<16xf32>
    %16 = vector.shape_cast %15 : vector<16xf32> to vector<16x1xf32>
    %17 = vector.broadcast %16 : vector<16x1xf32> to vector<16x16xf32>
    %18 = arith.subf %14, %17 : vector<16x16xf32>
    %19 = math.exp %18 : vector<16x16xf32>
    %cst_10 = arith.constant dense<0.000000e+00> : vector<16xf32>
    %20 = vector.multi_reduction <add>, %19, %cst_10 [1] : vector<16x16xf32> to vector<16xf32>
    %21 = vector.shape_cast %20 : vector<16xf32> to vector<16x1xf32>
    %22 = tpu.reciprocal %21 {approx = true} : vector<16x1xf32> -> vector<16x1xf32>
    %23 = vector.broadcast %22 : vector<16x1xf32> to vector<16x16xf32>
    %24 = arith.mulf %19, %23 : vector<16x16xf32>
    %cst_11 = arith.constant dense<0.000000e+00> : vector<16x128xf32>
    %25 = tpu.matmul %24, %13, %cst_11 {dimension_numbers = #tpu.dot_dimension_numbers<[1], [0], [0], [1], [0, 0, 1, 1], [], []>} : vector<16x16xf32>, vector<16x128xf32>, vector<16x128xf32> -> vector<16x128xf32>
    %26 = vector.extract_strided_slice %8 {offsets = [0, 128], sizes = [16, 128], strides = [1, 1]} : vector<32x1536xf32> to vector<16x128xf32>
    %cst_12 = arith.constant 0.0883883461 : f32
    %27 = vector.broadcast %cst_12 : f32 to vector<16x128xf32>
    %28 = arith.mulf %26, %27 : vector<16x128xf32>
    %29 = vector.extract_strided_slice %8 {offsets = [0, 640], sizes = [16, 128], strides = [1, 1]} : vector<32x1536xf32> to vector<16x128xf32>
    %30 = vector.extract_strided_slice %8 {offsets = [0, 1152], sizes = [16, 128], strides = [1, 1]} : vector<32x1536xf32> to vector<16x128xf32>
    %cst_13 = arith.constant dense<0.000000e+00> : vector<16x16xf32>
    %31 = tpu.matmul %28, %29, %cst_13 {dimension_numbers = #tpu.dot_dimension_numbers<[1], [1], [0], [0], [0, 0, 1, 0], [], []>} : vector<16x128xf32>, vector<16x128xf32>, vector<16x16xf32> -> vector<16x16xf32>
    %cst_14 = arith.constant dense<0xFF800000> : vector<16xf32>
    %32 = vector.multi_reduction <maximumf>, %31, %cst_14 [1] : vector<16x16xf32> to vector<16xf32>
    %33 = vector.shape_cast %32 : vector<16xf32> to vector<16x1xf32>
    %34 = vector.broadcast %33 : vector<16x1xf32> to vector<16x16xf32>
    %35 = arith.subf %31, %34 : vector<16x16xf32>
    %36 = math.exp %35 : vector<16x16xf32>
    %cst_15 = arith.constant dense<0.000000e+00> : vector<16xf32>
    %37 = vector.multi_reduction <add>, %36, %cst_15 [1] : vector<16x16xf32> to vector<16xf32>
    %38 = vector.shape_cast %37 : vector<16xf32> to vector<16x1xf32>
    %39 = tpu.reciprocal %38 {approx = true} : vector<16x1xf32> -> vector<16x1xf32>
    %40 = vector.broadcast %39 : vector<16x1xf32> to vector<16x16xf32>
    %41 = arith.mulf %36, %40 : vector<16x16xf32>
    %cst_16 = arith.constant dense<0.000000e+00> : vector<16x128xf32>
    %42 = tpu.matmul %41, %30, %cst_16 {dimension_numbers = #tpu.dot_dimension_numbers<[1], [0], [0], [1], [0, 0, 1, 1], [], []>} : vector<16x16xf32>, vector<16x128xf32>, vector<16x128xf32> -> vector<16x128xf32>
    %43 = vector.extract_strided_slice %8 {offsets = [0, 256], sizes = [16, 128], strides = [1, 1]} : vector<32x1536xf32> to vector<16x128xf32>
    %cst_17 = arith.constant 0.0883883461 : f32
    %44 = vector.broadcast %cst_17 : f32 to vector<16x128xf32>
    %45 = arith.mulf %43, %44 : vector<16x128xf32>
    %46 = vector.extract_strided_slice %8 {offsets = [0, 768], sizes = [16, 128], strides = [1, 1]} : vector<32x1536xf32> to vector<16x128xf32>
    %47 = vector.extract_strided_slice %8 {offsets = [0, 1280], sizes = [16, 128], strides = [1, 1]} : vector<32x1536xf32> to vector<16x128xf32>
    %cst_18 = arith.constant dense<0.000000e+00> : vector<16x16xf32>
    %48 = tpu.matmul %45, %46, %cst_18 {dimension_numbers = #tpu.dot_dimension_numbers<[1], [1], [0], [0], [0, 0, 1, 0], [], []>} : vector<16x128xf32>, vector<16x128xf32>, vector<16x16xf32> -> vector<16x16xf32>
    %cst_19 = arith.constant dense<0xFF800000> : vector<16xf32>
    %49 = vector.multi_reduction <maximumf>, %48, %cst_19 [1] : vector<16x16xf32> to vector<16xf32>
    %50 = vector.shape_cast %49 : vector<16xf32> to vector<16x1xf32>
    %51 = vector.broadcast %50 : vector<16x1xf32> to vector<16x16xf32>
    %52 = arith.subf %48, %51 : vector<16x16xf32>
    %53 = math.exp %52 : vector<16x16xf32>
    %cst_20 = arith.constant dense<0.000000e+00> : vector<16xf32>
    %54 = vector.multi_reduction <add>, %53, %cst_20 [1] : vector<16x16xf32> to vector<16xf32>
    %55 = vector.shape_cast %54 : vector<16xf32> to vector<16x1xf32>
    %56 = tpu.reciprocal %55 {approx = true} : vector<16x1xf32> -> vector<16x1xf32>
    %57 = vector.broadcast %56 : vector<16x1xf32> to vector<16x16xf32>
    %58 = arith.mulf %53, %57 : vector<16x16xf32>
    %cst_21 = arith.constant dense<0.000000e+00> : vector<16x128xf32>
    %59 = tpu.matmul %58, %47, %cst_21 {dimension_numbers = #tpu.dot_dimension_numbers<[1], [0], [0], [1], [0, 0, 1, 1], [], []>} : vector<16x16xf32>, vector<16x128xf32>, vector<16x128xf32> -> vector<16x128xf32>
    %60 = vector.extract_strided_slice %8 {offsets = [0, 384], sizes = [16, 128], strides = [1, 1]} : vector<32x1536xf32> to vector<16x128xf32>
    %cst_22 = arith.constant 0.0883883461 : f32
    %61 = vector.broadcast %cst_22 : f32 to vector<16x128xf32>
    %62 = arith.mulf %60, %61 : vector<16x128xf32>
    %63 = vector.extract_strided_slice %8 {offsets = [0, 896], sizes = [16, 128], strides = [1, 1]} : vector<32x1536xf32> to vector<16x128xf32>
    %64 = vector.extract_strided_slice %8 {offsets = [0, 1408], sizes = [16, 128], strides = [1, 1]} : vector<32x1536xf32> to vector<16x128xf32>
    %cst_23 = arith.constant dense<0.000000e+00> : vector<16x16xf32>
    %65 = tpu.matmul %62, %63, %cst_23 {dimension_numbers = #tpu.dot_dimension_numbers<[1], [1], [0], [0], [0, 0, 1, 0], [], []>} : vector<16x128xf32>, vector<16x128xf32>, vector<16x16xf32> -> vector<16x16xf32>
    %cst_24 = arith.constant dense<0xFF800000> : vector<16xf32>
    %66 = vector.multi_reduction <maximumf>, %65, %cst_24 [1] : vector<16x16xf32> to vector<16xf32>
    %67 = vector.shape_cast %66 : vector<16xf32> to vector<16x1xf32>
    %68 = vector.broadcast %67 : vector<16x1xf32> to vector<16x16xf32>
    %69 = arith.subf %65, %68 : vector<16x16xf32>
    %70 = math.exp %69 : vector<16x16xf32>
    %cst_25 = arith.constant dense<0.000000e+00> : vector<16xf32>
    %71 = vector.multi_reduction <add>, %70, %cst_25 [1] : vector<16x16xf32> to vector<16xf32>
    %72 = vector.shape_cast %71 : vector<16xf32> to vector<16x1xf32>
    %73 = tpu.reciprocal %72 {approx = true} : vector<16x1xf32> -> vector<16x1xf32>
    %74 = vector.broadcast %73 : vector<16x1xf32> to vector<16x16xf32>
    %75 = arith.mulf %70, %74 : vector<16x16xf32>
    %cst_26 = arith.constant dense<0.000000e+00> : vector<16x128xf32>
    %76 = tpu.matmul %75, %64, %cst_26 {dimension_numbers = #tpu.dot_dimension_numbers<[1], [0], [0], [1], [0, 0, 1, 1], [], []>} : vector<16x16xf32>, vector<16x128xf32>, vector<16x128xf32> -> vector<16x128xf32>
    %77 = tpu.concatenate %25, %42, %59, %76 in 1 : vector<16x128xf32>, vector<16x128xf32>, vector<16x128xf32>, vector<16x128xf32> -> vector<16x512xf32>
    %78 = vector.extract_strided_slice %8 {offsets = [16, 0], sizes = [16, 128], strides = [1, 1]} : vector<32x1536xf32> to vector<16x128xf32>
    %cst_27 = arith.constant 0.0883883461 : f32
    %79 = vector.broadcast %cst_27 : f32 to vector<16x128xf32>
    %80 = arith.mulf %78, %79 : vector<16x128xf32>
    %81 = vector.extract_strided_slice %8 {offsets = [16, 512], sizes = [16, 128], strides = [1, 1]} : vector<32x1536xf32> to vector<16x128xf32>
    %82 = vector.extract_strided_slice %8 {offsets = [16, 1024], sizes = [16, 128], strides = [1, 1]} : vector<32x1536xf32> to vector<16x128xf32>
    %cst_28 = arith.constant dense<0.000000e+00> : vector<16x16xf32>
    %83 = tpu.matmul %80, %81, %cst_28 {dimension_numbers = #tpu.dot_dimension_numbers<[1], [1], [0], [0], [0, 0, 1, 0], [], []>} : vector<16x128xf32>, vector<16x128xf32>, vector<16x16xf32> -> vector<16x16xf32>
    %cst_29 = arith.constant dense<0xFF800000> : vector<16xf32>
    %84 = vector.multi_reduction <maximumf>, %83, %cst_29 [1] : vector<16x16xf32> to vector<16xf32>
    %85 = vector.shape_cast %84 : vector<16xf32> to vector<16x1xf32>
    %86 = vector.broadcast %85 : vector<16x1xf32> to vector<16x16xf32>
    %87 = arith.subf %83, %86 : vector<16x16xf32>
    %88 = math.exp %87 : vector<16x16xf32>
    %cst_30 = arith.constant dense<0.000000e+00> : vector<16xf32>
    %89 = vector.multi_reduction <add>, %88, %cst_30 [1] : vector<16x16xf32> to vector<16xf32>
    %90 = vector.shape_cast %89 : vector<16xf32> to vector<16x1xf32>
    %91 = tpu.reciprocal %90 {approx = true} : vector<16x1xf32> -> vector<16x1xf32>
    %92 = vector.broadcast %91 : vector<16x1xf32> to vector<16x16xf32>
    %93 = arith.mulf %88, %92 : vector<16x16xf32>
    %cst_31 = arith.constant dense<0.000000e+00> : vector<16x128xf32>
    %94 = tpu.matmul %93, %82, %cst_31 {dimension_numbers = #tpu.dot_dimension_numbers<[1], [0], [0], [1], [0, 0, 1, 1], [], []>} : vector<16x16xf32>, vector<16x128xf32>, vector<16x128xf32> -> vector<16x128xf32>
    %95 = vector.extract_strided_slice %8 {offsets = [16, 128], sizes = [16, 128], strides = [1, 1]} : vector<32x1536xf32> to vector<16x128xf32>
    %cst_32 = arith.constant 0.0883883461 : f32
    %96 = vector.broadcast %cst_32 : f32 to vector<16x128xf32>
    %97 = arith.mulf %95, %96 : vector<16x128xf32>
    %98 = vector.extract_strided_slice %8 {offsets = [16, 640], sizes = [16, 128], strides = [1, 1]} : vector<32x1536xf32> to vector<16x128xf32>
    %99 = vector.extract_strided_slice %8 {offsets = [16, 1152], sizes = [16, 128], strides = [1, 1]} : vector<32x1536xf32> to vector<16x128xf32>
    %cst_33 = arith.constant dense<0.000000e+00> : vector<16x16xf32>
    %100 = tpu.matmul %97, %98, %cst_33 {dimension_numbers = #tpu.dot_dimension_numbers<[1], [1], [0], [0], [0, 0, 1, 0], [], []>} : vector<16x128xf32>, vector<16x128xf32>, vector<16x16xf32> -> vector<16x16xf32>
    %cst_34 = arith.constant dense<0xFF800000> : vector<16xf32>
    %101 = vector.multi_reduction <maximumf>, %100, %cst_34 [1] : vector<16x16xf32> to vector<16xf32>
    %102 = vector.shape_cast %101 : vector<16xf32> to vector<16x1xf32>
    %103 = vector.broadcast %102 : vector<16x1xf32> to vector<16x16xf32>
    %104 = arith.subf %100, %103 : vector<16x16xf32>
    %105 = math.exp %104 : vector<16x16xf32>
    %cst_35 = arith.constant dense<0.000000e+00> : vector<16xf32>
    %106 = vector.multi_reduction <add>, %105, %cst_35 [1] : vector<16x16xf32> to vector<16xf32>
    %107 = vector.shape_cast %106 : vector<16xf32> to vector<16x1xf32>
    %108 = tpu.reciprocal %107 {approx = true} : vector<16x1xf32> -> vector<16x1xf32>
    %109 = vector.broadcast %108 : vector<16x1xf32> to vector<16x16xf32>
    %110 = arith.mulf %105, %109 : vector<16x16xf32>
    %cst_36 = arith.constant dense<0.000000e+00> : vector<16x128xf32>
    %111 = tpu.matmul %110, %99, %cst_36 {dimension_numbers = #tpu.dot_dimension_numbers<[1], [0], [0], [1], [0, 0, 1, 1], [], []>} : vector<16x16xf32>, vector<16x128xf32>, vector<16x128xf32> -> vector<16x128xf32>
    %112 = vector.extract_strided_slice %8 {offsets = [16, 256], sizes = [16, 128], strides = [1, 1]} : vector<32x1536xf32> to vector<16x128xf32>
    %cst_37 = arith.constant 0.0883883461 : f32
    %113 = vector.broadcast %cst_37 : f32 to vector<16x128xf32>
    %114 = arith.mulf %112, %113 : vector<16x128xf32>
    %115 = vector.extract_strided_slice %8 {offsets = [16, 768], sizes = [16, 128], strides = [1, 1]} : vector<32x1536xf32> to vector<16x128xf32>
    %116 = vector.extract_strided_slice %8 {offsets = [16, 1280], sizes = [16, 128], strides = [1, 1]} : vector<32x1536xf32> to vector<16x128xf32>
    %cst_38 = arith.constant dense<0.000000e+00> : vector<16x16xf32>
    %117 = tpu.matmul %114, %115, %cst_38 {dimension_numbers = #tpu.dot_dimension_numbers<[1], [1], [0], [0], [0, 0, 1, 0], [], []>} : vector<16x128xf32>, vector<16x128xf32>, vector<16x16xf32> -> vector<16x16xf32>
    %cst_39 = arith.constant dense<0xFF800000> : vector<16xf32>
    %118 = vector.multi_reduction <maximumf>, %117, %cst_39 [1] : vector<16x16xf32> to vector<16xf32>
    %119 = vector.shape_cast %118 : vector<16xf32> to vector<16x1xf32>
    %120 = vector.broadcast %119 : vector<16x1xf32> to vector<16x16xf32>
    %121 = arith.subf %117, %120 : vector<16x16xf32>
    %122 = math.exp %121 : vector<16x16xf32>
    %cst_40 = arith.constant dense<0.000000e+00> : vector<16xf32>
    %123 = vector.multi_reduction <add>, %122, %cst_40 [1] : vector<16x16xf32> to vector<16xf32>
    %124 = vector.shape_cast %123 : vector<16xf32> to vector<16x1xf32>
    %125 = tpu.reciprocal %124 {approx = true} : vector<16x1xf32> -> vector<16x1xf32>
    %126 = vector.broadcast %125 : vector<16x1xf32> to vector<16x16xf32>
    %127 = arith.mulf %122, %126 : vector<16x16xf32>
    %cst_41 = arith.constant dense<0.000000e+00> : vector<16x128xf32>
    %128 = tpu.matmul %127, %116, %cst_41 {dimension_numbers = #tpu.dot_dimension_numbers<[1], [0], [0], [1], [0, 0, 1, 1], [], []>} : vector<16x16xf32>, vector<16x128xf32>, vector<16x128xf32> -> vector<16x128xf32>
    %129 = vector.extract_strided_slice %8 {offsets = [16, 384], sizes = [16, 128], strides = [1, 1]} : vector<32x1536xf32> to vector<16x128xf32>
    %cst_42 = arith.constant 0.0883883461 : f32
    %130 = vector.broadcast %cst_42 : f32 to vector<16x128xf32>
    %131 = arith.mulf %129, %130 : vector<16x128xf32>
    %132 = vector.extract_strided_slice %8 {offsets = [16, 896], sizes = [16, 128], strides = [1, 1]} : vector<32x1536xf32> to vector<16x128xf32>
    %133 = vector.extract_strided_slice %8 {offsets = [16, 1408], sizes = [16, 128], strides = [1, 1]} : vector<32x1536xf32> to vector<16x128xf32>
    %cst_43 = arith.constant dense<0.000000e+00> : vector<16x16xf32>
    %134 = tpu.matmul %131, %132, %cst_43 {dimension_numbers = #tpu.dot_dimension_numbers<[1], [1], [0], [0], [0, 0, 1, 0], [], []>} : vector<16x128xf32>, vector<16x128xf32>, vector<16x16xf32> -> vector<16x16xf32>
    %cst_44 = arith.constant dense<0xFF800000> : vector<16xf32>
    %135 = vector.multi_reduction <maximumf>, %134, %cst_44 [1] : vector<16x16xf32> to vector<16xf32>
    %136 = vector.shape_cast %135 : vector<16xf32> to vector<16x1xf32>
    %137 = vector.broadcast %136 : vector<16x1xf32> to vector<16x16xf32>
    %138 = arith.subf %134, %137 : vector<16x16xf32>
    %139 = math.exp %138 : vector<16x16xf32>
    %cst_45 = arith.constant dense<0.000000e+00> : vector<16xf32>
    %140 = vector.multi_reduction <add>, %139, %cst_45 [1] : vector<16x16xf32> to vector<16xf32>
    %141 = vector.shape_cast %140 : vector<16xf32> to vector<16x1xf32>
    %142 = tpu.reciprocal %141 {approx = true} : vector<16x1xf32> -> vector<16x1xf32>
    %143 = vector.broadcast %142 : vector<16x1xf32> to vector<16x16xf32>
    %144 = arith.mulf %139, %143 : vector<16x16xf32>
    %cst_46 = arith.constant dense<0.000000e+00> : vector<16x128xf32>
    %145 = tpu.matmul %144, %133, %cst_46 {dimension_numbers = #tpu.dot_dimension_numbers<[1], [0], [0], [1], [0, 0, 1, 1], [], []>} : vector<16x16xf32>, vector<16x128xf32>, vector<16x128xf32> -> vector<16x128xf32>
    %146 = tpu.concatenate %94, %111, %128, %145 in 1 : vector<16x128xf32>, vector<16x128xf32>, vector<16x128xf32>, vector<16x128xf32> -> vector<16x512xf32>
    %147 = tpu.concatenate %77, %146 in 0 : vector<16x512xf32>, vector<16x512xf32> -> vector<32x512xf32>
    %148 = arith.truncf %147 : vector<32x512xf32> to vector<32x512xbf16>
    %c0_47 = arith.constant 0 : index
    %c0_48 = arith.constant 0 : index
    %c0_49 = arith.constant 0 : index
    %149 = vector.load %arg4[%c0_47, %c0_48, %c0_49] : memref<1x512x512xbf16, #tpu.memory_space<vmem>>, vector<1x512x512xbf16>
    %150 = vector.shape_cast %149 : vector<1x512x512xbf16> to vector<512x512xbf16>
    %cst_50 = arith.constant dense<0.000000e+00> : vector<32x512xf32>
    %151 = tpu.matmul %148, %150, %cst_50 {dimension_numbers = #tpu.dot_dimension_numbers<[1], [0], [0], [1], [0, 0, 1, 1], [], []>} : vector<32x512xbf16>, vector<512x512xbf16>, vector<32x512xf32> -> vector<32x512xf32>
    %c0_51 = arith.constant 0 : index
    %c0_52 = arith.constant 0 : index
    %c0_53 = arith.constant 0 : index
    %152 = vector.load %arg5[%c0_51, %c0_52, %c0_53] : memref<1x1x512xf32, #tpu.memory_space<vmem>>, vector<1x1x512xf32>
    %153 = vector.shape_cast %152 : vector<1x1x512xf32> to vector<1x512xf32>
    %154 = vector.broadcast %153 : vector<1x512xf32> to vector<32x512xf32>
    %155 = arith.addf %151, %154 : vector<32x512xf32>
    %156 = arith.addf %0, %155 : vector<32x512xf32>
    %c0_54 = arith.constant 0 : index
    %c0_55 = arith.constant 0 : index
    %c0_56 = arith.constant 0 : index
    %157 = vector.load %arg6[%c0_54, %c0_55, %c0_56] : memref<1x1x512xf32, #tpu.memory_space<vmem>>, vector<1x1x512xf32>
    %158 = vector.shape_cast %157 : vector<1x1x512xf32> to vector<1x512xf32>
    %c0_57 = arith.constant 0 : index
    %c0_58 = arith.constant 0 : index
    %c0_59 = arith.constant 0 : index
    %159 = vector.load %arg7[%c0_57, %c0_58, %c0_59] : memref<1x1x512xf32, #tpu.memory_space<vmem>>, vector<1x1x512xf32>
    %160 = vector.shape_cast %159 : vector<1x1x512xf32> to vector<1x512xf32>
    %cst_60 = arith.constant dense<0.000000e+00> : vector<32xf32>
    %161 = vector.multi_reduction <add>, %156, %cst_60 [1] : vector<32x512xf32> to vector<32xf32>
    %162 = vector.shape_cast %161 : vector<32xf32> to vector<32x1xf32>
    %cst_61 = arith.constant 5.120000e+02 : f32
    %163 = vector.broadcast %cst_61 : f32 to vector<32x1xf32>
    %164 = arith.divf %162, %163 : vector<32x1xf32>
    %165 = vector.broadcast %164 : vector<32x1xf32> to vector<32x512xf32>
    %166 = arith.subf %156, %165 : vector<32x512xf32>
    %167 = arith.mulf %166, %166 : vector<32x512xf32>
    %cst_62 = arith.constant dense<0.000000e+00> : vector<32xf32>
    %168 = vector.multi_reduction <add>, %167, %cst_62 [1] : vector<32x512xf32> to vector<32xf32>
    %169 = vector.shape_cast %168 : vector<32xf32> to vector<32x1xf32>
    %cst_63 = arith.constant 5.120000e+02 : f32
    %170 = vector.broadcast %cst_63 : f32 to vector<32x1xf32>
    %171 = arith.divf %169, %170 : vector<32x1xf32>
    %172 = vector.broadcast %164 : vector<32x1xf32> to vector<32x512xf32>
    %173 = arith.subf %156, %172 : vector<32x512xf32>
    %cst_64 = arith.constant 9.99999974E-6 : f32
    %174 = vector.broadcast %cst_64 : f32 to vector<32x1xf32>
    %175 = arith.addf %171, %174 : vector<32x1xf32>
    %176 = math.rsqrt %175 : vector<32x1xf32>
    %177 = vector.broadcast %176 : vector<32x1xf32> to vector<32x512xf32>
    %178 = arith.mulf %173, %177 : vector<32x512xf32>
    %179 = vector.broadcast %158 : vector<1x512xf32> to vector<32x512xf32>
    %180 = arith.mulf %178, %179 : vector<32x512xf32>
    %181 = vector.broadcast %160 : vector<1x512xf32> to vector<32x512xf32>
    %182 = arith.addf %180, %181 : vector<32x512xf32>
    %183 = arith.truncf %182 : vector<32x512xf32> to vector<32x512xbf16>
    %c0_65 = arith.constant 0 : index
    %c0_66 = arith.constant 0 : index
    %c0_67 = arith.constant 0 : index
    %184 = vector.load %arg8[%c0_65, %c0_66, %c0_67] : memref<1x512x512xbf16, #tpu.memory_space<vmem>>, vector<1x512x512xbf16>
    %185 = vector.shape_cast %184 : vector<1x512x512xbf16> to vector<512x512xbf16>
    %cst_68 = arith.constant dense<0.000000e+00> : vector<32x512xf32>
    %186 = tpu.matmul %183, %185, %cst_68 {dimension_numbers = #tpu.dot_dimension_numbers<[1], [0], [0], [1], [0, 0, 1, 1], [], []>} : vector<32x512xbf16>, vector<512x512xbf16>, vector<32x512xf32> -> vector<32x512xf32>
    %c0_69 = arith.constant 0 : index
    %c0_70 = arith.constant 0 : index
    %c0_71 = arith.constant 0 : index
    %187 = vector.load %arg9[%c0_69, %c0_70, %c0_71] : memref<1x1x512xf32, #tpu.memory_space<vmem>>, vector<1x1x512xf32>
    %188 = vector.shape_cast %187 : vector<1x1x512xf32> to vector<1x512xf32>
    %189 = vector.broadcast %188 : vector<1x512xf32> to vector<32x512xf32>
    %190 = arith.addf %186, %189 : vector<32x512xf32>
    %cst_72 = arith.constant 0.000000e+00 : f32
    %191 = vector.broadcast %cst_72 : f32 to vector<32x512xf32>
    %192 = arith.maximumf %190, %191 : vector<32x512xf32>
    %193 = arith.truncf %192 : vector<32x512xf32> to vector<32x512xbf16>
    %c0_73 = arith.constant 0 : index
    %c0_74 = arith.constant 0 : index
    %c0_75 = arith.constant 0 : index
    %194 = vector.load %arg10[%c0_73, %c0_74, %c0_75] : memref<1x512x512xbf16, #tpu.memory_space<vmem>>, vector<1x512x512xbf16>
    %195 = vector.shape_cast %194 : vector<1x512x512xbf16> to vector<512x512xbf16>
    %cst_76 = arith.constant dense<0.000000e+00> : vector<32x512xf32>
    %196 = tpu.matmul %193, %195, %cst_76 {dimension_numbers = #tpu.dot_dimension_numbers<[1], [0], [0], [1], [0, 0, 1, 1], [], []>} : vector<32x512xbf16>, vector<512x512xbf16>, vector<32x512xf32> -> vector<32x512xf32>
    %c0_77 = arith.constant 0 : index
    %c0_78 = arith.constant 0 : index
    %c0_79 = arith.constant 0 : index
    %197 = vector.load %arg11[%c0_77, %c0_78, %c0_79] : memref<1x1x512xf32, #tpu.memory_space<vmem>>, vector<1x1x512xf32>
    %198 = vector.shape_cast %197 : vector<1x1x512xf32> to vector<1x512xf32>
    %199 = vector.broadcast %198 : vector<1x512xf32> to vector<32x512xf32>
    %200 = arith.addf %196, %199 : vector<32x512xf32>
    %201 = arith.addf %182, %200 : vector<32x512xf32>
    %c0_80 = arith.constant 0 : index
    %c0_81 = arith.constant 0 : index
    %c0_82 = arith.constant 0 : index
    %202 = vector.load %arg12[%c0_80, %c0_81, %c0_82] : memref<1x1x512xf32, #tpu.memory_space<vmem>>, vector<1x1x512xf32>
    %203 = vector.shape_cast %202 : vector<1x1x512xf32> to vector<1x512xf32>
    %c0_83 = arith.constant 0 : index
    %c0_84 = arith.constant 0 : index
    %c0_85 = arith.constant 0 : index
    %204 = vector.load %arg13[%c0_83, %c0_84, %c0_85] : memref<1x1x512xf32, #tpu.memory_space<vmem>>, vector<1x1x512xf32>
    %205 = vector.shape_cast %204 : vector<1x1x512xf32> to vector<1x512xf32>
    %cst_86 = arith.constant dense<0.000000e+00> : vector<32xf32>
    %206 = vector.multi_reduction <add>, %201, %cst_86 [1] : vector<32x512xf32> to vector<32xf32>
    %207 = vector.shape_cast %206 : vector<32xf32> to vector<32x1xf32>
    %cst_87 = arith.constant 5.120000e+02 : f32
    %208 = vector.broadcast %cst_87 : f32 to vector<32x1xf32>
    %209 = arith.divf %207, %208 : vector<32x1xf32>
    %210 = vector.broadcast %209 : vector<32x1xf32> to vector<32x512xf32>
    %211 = arith.subf %201, %210 : vector<32x512xf32>
    %212 = arith.mulf %211, %211 : vector<32x512xf32>
    %cst_88 = arith.constant dense<0.000000e+00> : vector<32xf32>
    %213 = vector.multi_reduction <add>, %212, %cst_88 [1] : vector<32x512xf32> to vector<32xf32>
    %214 = vector.shape_cast %213 : vector<32xf32> to vector<32x1xf32>
    %cst_89 = arith.constant 5.120000e+02 : f32
    %215 = vector.broadcast %cst_89 : f32 to vector<32x1xf32>
    %216 = arith.divf %214, %215 : vector<32x1xf32>
    %217 = vector.broadcast %209 : vector<32x1xf32> to vector<32x512xf32>
    %218 = arith.subf %201, %217 : vector<32x512xf32>
    %cst_90 = arith.constant 9.99999974E-6 : f32
    %219 = vector.broadcast %cst_90 : f32 to vector<32x1xf32>
    %220 = arith.addf %216, %219 : vector<32x1xf32>
    %221 = math.rsqrt %220 : vector<32x1xf32>
    %222 = vector.broadcast %221 : vector<32x1xf32> to vector<32x512xf32>
    %223 = arith.mulf %218, %222 : vector<32x512xf32>
    %224 = vector.broadcast %203 : vector<1x512xf32> to vector<32x512xf32>
    %225 = arith.mulf %223, %224 : vector<32x512xf32>
    %226 = vector.broadcast %205 : vector<1x512xf32> to vector<32x512xf32>
    %227 = arith.addf %225, %226 : vector<32x512xf32>
    %c0_91 = arith.constant 0 : index
    %c0_92 = arith.constant 0 : index
    %c0_93 = arith.constant 0 : index
    %228 = vector.load %arg14[%c0_91, %c0_92, %c0_93] : memref<1x1x512xf32, #tpu.memory_space<vmem>>, vector<1x1x512xf32>
    %229 = vector.shape_cast %228 : vector<1x1x512xf32> to vector<1x512xf32>
    %c0_94 = arith.constant 0 : index
    %c0_95 = arith.constant 0 : index
    %c0_96 = arith.constant 0 : index
    %230 = vector.load %arg15[%c0_94, %c0_95, %c0_96] : memref<1x1x512xf32, #tpu.memory_space<vmem>>, vector<1x1x512xf32>
    %231 = vector.shape_cast %230 : vector<1x1x512xf32> to vector<1x512xf32>
    %cst_97 = arith.constant dense<0.000000e+00> : vector<32xf32>
    %232 = vector.multi_reduction <add>, %227, %cst_97 [1] : vector<32x512xf32> to vector<32xf32>
    %233 = vector.shape_cast %232 : vector<32xf32> to vector<32x1xf32>
    %cst_98 = arith.constant 5.120000e+02 : f32
    %234 = vector.broadcast %cst_98 : f32 to vector<32x1xf32>
    %235 = arith.divf %233, %234 : vector<32x1xf32>
    %236 = vector.broadcast %235 : vector<32x1xf32> to vector<32x512xf32>
    %237 = arith.subf %227, %236 : vector<32x512xf32>
    %238 = arith.mulf %237, %237 : vector<32x512xf32>
    %cst_99 = arith.constant dense<0.000000e+00> : vector<32xf32>
    %239 = vector.multi_reduction <add>, %238, %cst_99 [1] : vector<32x512xf32> to vector<32xf32>
    %240 = vector.shape_cast %239 : vector<32xf32> to vector<32x1xf32>
    %cst_100 = arith.constant 5.120000e+02 : f32
    %241 = vector.broadcast %cst_100 : f32 to vector<32x1xf32>
    %242 = arith.divf %240, %241 : vector<32x1xf32>
    %243 = vector.broadcast %235 : vector<32x1xf32> to vector<32x512xf32>
    %244 = arith.subf %227, %243 : vector<32x512xf32>
    %cst_101 = arith.constant 9.99999974E-6 : f32
    %245 = vector.broadcast %cst_101 : f32 to vector<32x1xf32>
    %246 = arith.addf %242, %245 : vector<32x1xf32>
    %247 = math.rsqrt %246 : vector<32x1xf32>
    %248 = vector.broadcast %247 : vector<32x1xf32> to vector<32x512xf32>
    %249 = arith.mulf %244, %248 : vector<32x512xf32>
    %250 = vector.broadcast %229 : vector<1x512xf32> to vector<32x512xf32>
    %251 = arith.mulf %249, %250 : vector<32x512xf32>
    %252 = vector.broadcast %231 : vector<1x512xf32> to vector<32x512xf32>
    %253 = arith.addf %251, %252 : vector<32x512xf32>
    %254 = arith.truncf %253 : vector<32x512xf32> to vector<32x512xbf16>
    %c0_102 = arith.constant 0 : index
    %c0_103 = arith.constant 0 : index
    %c0_104 = arith.constant 0 : index
    %255 = vector.load %arg16[%c0_102, %c0_103, %c0_104] : memref<1x512x512xbf16, #tpu.memory_space<vmem>>, vector<1x512x512xbf16>
    %256 = vector.shape_cast %255 : vector<1x512x512xbf16> to vector<512x512xbf16>
    %cst_105 = arith.constant dense<0.000000e+00> : vector<32x512xf32>
    %257 = tpu.matmul %254, %256, %cst_105 {dimension_numbers = #tpu.dot_dimension_numbers<[1], [0], [0], [1], [0, 0, 1, 1], [], []>} : vector<32x512xbf16>, vector<512x512xbf16>, vector<32x512xf32> -> vector<32x512xf32>
    %c0_106 = arith.constant 0 : index
    %c0_107 = arith.constant 0 : index
    %c0_108 = arith.constant 0 : index
    %258 = vector.load %arg17[%c0_106, %c0_107, %c0_108] : memref<1x1x512xf32, #tpu.memory_space<vmem>>, vector<1x1x512xf32>
    %259 = vector.shape_cast %258 : vector<1x1x512xf32> to vector<1x512xf32>
    %260 = vector.broadcast %259 : vector<1x512xf32> to vector<32x512xf32>
    %261 = arith.addf %257, %260 : vector<32x512xf32>
    %c0_109 = arith.constant 0 : index
    %c0_110 = arith.constant 0 : index
    %c0_111 = arith.constant 0 : index
    %262 = vector.load %arg18[%c0_109, %c0_110, %c0_111] : memref<1x1x512xf32, #tpu.memory_space<vmem>>, vector<1x1x512xf32>
    %263 = vector.shape_cast %262 : vector<1x1x512xf32> to vector<1x512xf32>
    %c0_112 = arith.constant 0 : index
    %c0_113 = arith.constant 0 : index
    %c0_114 = arith.constant 0 : index
    %264 = vector.load %arg19[%c0_112, %c0_113, %c0_114] : memref<1x1x512xf32, #tpu.memory_space<vmem>>, vector<1x1x512xf32>
    %265 = vector.shape_cast %264 : vector<1x1x512xf32> to vector<1x512xf32>
    %cst_115 = arith.constant dense<0.000000e+00> : vector<32xf32>
    %266 = vector.multi_reduction <add>, %261, %cst_115 [1] : vector<32x512xf32> to vector<32xf32>
    %267 = vector.shape_cast %266 : vector<32xf32> to vector<32x1xf32>
    %cst_116 = arith.constant 5.120000e+02 : f32
    %268 = vector.broadcast %cst_116 : f32 to vector<32x1xf32>
    %269 = arith.divf %267, %268 : vector<32x1xf32>
    %270 = vector.broadcast %269 : vector<32x1xf32> to vector<32x512xf32>
    %271 = arith.subf %261, %270 : vector<32x512xf32>
    %272 = arith.mulf %271, %271 : vector<32x512xf32>
    %cst_117 = arith.constant dense<0.000000e+00> : vector<32xf32>
    %273 = vector.multi_reduction <add>, %272, %cst_117 [1] : vector<32x512xf32> to vector<32xf32>
    %274 = vector.shape_cast %273 : vector<32xf32> to vector<32x1xf32>
    %cst_118 = arith.constant 5.120000e+02 : f32
    %275 = vector.broadcast %cst_118 : f32 to vector<32x1xf32>
    %276 = arith.divf %274, %275 : vector<32x1xf32>
    %277 = vector.broadcast %269 : vector<32x1xf32> to vector<32x512xf32>
    %278 = arith.subf %261, %277 : vector<32x512xf32>
    %cst_119 = arith.constant 9.99999974E-6 : f32
    %279 = vector.broadcast %cst_119 : f32 to vector<32x1xf32>
    %280 = arith.addf %276, %279 : vector<32x1xf32>
    %281 = math.rsqrt %280 : vector<32x1xf32>
    %282 = vector.broadcast %281 : vector<32x1xf32> to vector<32x512xf32>
    %283 = arith.mulf %278, %282 : vector<32x512xf32>
    %284 = vector.broadcast %263 : vector<1x512xf32> to vector<32x512xf32>
    %285 = arith.mulf %283, %284 : vector<32x512xf32>
    %286 = vector.broadcast %265 : vector<1x512xf32> to vector<32x512xf32>
    %287 = arith.addf %285, %286 : vector<32x512xf32>
    %cst_120 = arith.constant 0.000000e+00 : f32
    %288 = vector.broadcast %cst_120 : f32 to vector<32x512xf32>
    %289 = arith.maximumf %287, %288 : vector<32x512xf32>
    %290 = arith.truncf %289 : vector<32x512xf32> to vector<32x512xbf16>
    %c0_121 = arith.constant 0 : index
    %c0_122 = arith.constant 0 : index
    %c0_123 = arith.constant 0 : index
    %291 = vector.load %arg20[%c0_121, %c0_122, %c0_123] : memref<1x512x8xbf16, #tpu.memory_space<vmem>>, vector<1x512x8xbf16>
    %292 = vector.shape_cast %291 : vector<1x512x8xbf16> to vector<512x8xbf16>
    %cst_124 = arith.constant dense<0.000000e+00> : vector<32x8xf32>
    %293 = tpu.matmul %290, %292, %cst_124 {dimension_numbers = #tpu.dot_dimension_numbers<[1], [0], [0], [1], [0, 0, 1, 1], [], []>} : vector<32x512xbf16>, vector<512x8xbf16>, vector<32x8xf32> -> vector<32x8xf32>
    %c0_125 = arith.constant 0 : index
    %c0_126 = arith.constant 0 : index
    %c0_127 = arith.constant 0 : index
    %294 = vector.load %arg21[%c0_125, %c0_126, %c0_127] : memref<1x1x8xf32, #tpu.memory_space<vmem>>, vector<1x1x8xf32>
    %295 = vector.shape_cast %294 : vector<1x1x8xf32> to vector<1x8xf32>
    %296 = vector.broadcast %295 : vector<1x8xf32> to vector<32x8xf32>
    %297 = arith.addf %293, %296 : vector<32x8xf32>
    %cst_128 = arith.constant 0.000000e+00 : f32
    %298 = vector.broadcast %cst_128 : f32 to vector<32x8xf32>
    %299 = arith.maximumf %297, %298 : vector<32x8xf32>
    %300 = arith.truncf %299 : vector<32x8xf32> to vector<32x8xbf16>
    %c0_129 = arith.constant 0 : index
    %c0_130 = arith.constant 0 : index
    %c0_131 = arith.constant 0 : index
    %301 = vector.load %arg22[%c0_129, %c0_130, %c0_131] : memref<1x8x1xbf16, #tpu.memory_space<vmem>>, vector<1x8x1xbf16>
    %302 = vector.shape_cast %301 : vector<1x8x1xbf16> to vector<8x1xbf16>
    %cst_132 = arith.constant dense<0.000000e+00> : vector<32x1xf32>
    %303 = tpu.matmul %300, %302, %cst_132 {dimension_numbers = #tpu.dot_dimension_numbers<[1], [0], [0], [1], [0, 0, 1, 1], [], []>} : vector<32x8xbf16>, vector<8x1xbf16>, vector<32x1xf32> -> vector<32x1xf32>
    %c0_133 = arith.constant 0 : index
    %c0_134 = arith.constant 0 : index
    %c0_135 = arith.constant 0 : index
    %304 = vector.load %arg23[%c0_133, %c0_134, %c0_135] : memref<1x1x1xf32, #tpu.memory_space<vmem>>, vector<1x1x1xf32>
    %305 = vector.shape_cast %304 : vector<1x1x1xf32> to vector<1x1xf32>
    %306 = vector.broadcast %305 : vector<1x1xf32> to vector<32x1xf32>
    %307 = arith.addf %303, %306 : vector<32x1xf32>
    %cst_136 = arith.constant 0.000000e+00 : f32
    %308 = vector.broadcast %cst_136 : f32 to vector<32x1xf32>
    %309 = arith.maximumf %307, %308 : vector<32x1xf32>
    %c0_137 = arith.constant 0 : index
    %c0_138 = arith.constant 0 : index
    %c0_139 = arith.constant 0 : index
    %310 = vector.load %arg24[%c0_137, %c0_138, %c0_139] : memref<1x32x1xf32, #tpu.memory_space<vmem>>, vector<1x32x1xf32>
    %311 = vector.shape_cast %310 : vector<1x32x1xf32> to vector<32x1xf32>
    %312 = vector.shape_cast %309 : vector<32x1xf32> to vector<1x32x1xf32>
    tpu.vector_store %arg24[%c0_137, %c0_138, %c0_139], %312 {strides = array<i32>} : memref<1x32x1xf32, #tpu.memory_space<vmem>>, vector<1x32x1xf32>,
    return
  }
  func.func @transform_0(%arg0: i32) -> (i32, i32) {
    %c0_i32 = arith.constant 0 : i32
    %c0_i32_0 = arith.constant 0 : i32
    %c0_i32_1 = arith.constant 0 : i32
    return %c0_i32, %c0_i32_0 : i32, i32
  }
  func.func @transform_1(%arg0: i32) -> (i32, i32, i32) {
    %c0_i32 = arith.constant 0 : i32
    %c0_i32_0 = arith.constant 0 : i32
    %c0_i32_1 = arith.constant 0 : i32
    return %arg0, %c0_i32, %c0_i32_0 : i32, i32, i32
  }
  func.func @transform_2(%arg0: i32) -> (i32, i32, i32) {
    %c0_i32 = arith.constant 0 : i32
    %c0_i32_0 = arith.constant 0 : i32
    %c0_i32_1 = arith.constant 0 : i32
    return %arg0, %c0_i32, %c0_i32_0 : i32, i32, i32
  }
  func.func @transform_3(%arg0: i32) -> (i32, i32, i32) {
    %c0_i32 = arith.constant 0 : i32
    %c0_i32_0 = arith.constant 0 : i32
    %c0_i32_1 = arith.constant 0 : i32
    return %arg0, %c0_i32, %c0_i32_0 : i32, i32, i32
  }
  func.func @transform_4(%arg0: i32) -> (i32, i32, i32) {
    %c0_i32 = arith.constant 0 : i32
    %c0_i32_0 = arith.constant 0 : i32
    %c0_i32_1 = arith.constant 0 : i32
    return %arg0, %c0_i32, %c0_i32_0 : i32, i32, i32
  }
  func.func @transform_5(%arg0: i32) -> (i32, i32, i32) {
    %c0_i32 = arith.constant 0 : i32
    %c0_i32_0 = arith.constant 0 : i32
    %c0_i32_1 = arith.constant 0 : i32
    return %arg0, %c0_i32, %c0_i32_0 : i32, i32, i32
  }
  func.func @transform_6(%arg0: i32) -> (i32, i32, i32) {
    %c0_i32 = arith.constant 0 : i32
    %c0_i32_0 = arith.constant 0 : i32
    %c0_i32_1 = arith.constant 0 : i32
    return %arg0, %c0_i32, %c0_i32_0 : i32, i32, i32
  }
  func.func @transform_7(%arg0: i32) -> (i32, i32, i32) {
    %c0_i32 = arith.constant 0 : i32
    %c0_i32_0 = arith.constant 0 : i32
    %c0_i32_1 = arith.constant 0 : i32
    return %arg0, %c0_i32, %c0_i32_0 : i32, i32, i32
  }
  func.func @transform_8(%arg0: i32) -> (i32, i32, i32) {
    %c0_i32 = arith.constant 0 : i32
    %c0_i32_0 = arith.constant 0 : i32
    %c0_i32_1 = arith.constant 0 : i32
    return %arg0, %c0_i32, %c0_i32_0 : i32, i32, i32
  }
  func.func @transform_9(%arg0: i32) -> (i32, i32, i32) {
    %c0_i32 = arith.constant 0 : i32
    %c0_i32_0 = arith.constant 0 : i32
    %c0_i32_1 = arith.constant 0 : i32
    return %arg0, %c0_i32, %c0_i32_0 : i32, i32, i32
  }
  func.func @transform_10(%arg0: i32) -> (i32, i32, i32) {
    %c0_i32 = arith.constant 0 : i32
    %c0_i32_0 = arith.constant 0 : i32
    %c0_i32_1 = arith.constant 0 : i32
    return %arg0, %c0_i32, %c0_i32_0 : i32, i32, i32
  }
  func.func @transform_11(%arg0: i32) -> (i32, i32, i32) {
    %c0_i32 = arith.constant 0 : i32
    %c0_i32_0 = arith.constant 0 : i32
    %c0_i32_1 = arith.constant 0 : i32
    return %arg0, %c0_i32, %c0_i32_0 : i32, i32, i32
  }
  func.func @transform_12(%arg0: i32) -> (i32, i32, i32) {
    %c0_i32 = arith.constant 0 : i32
    %c0_i32_0 = arith.constant 0 : i32
    %c0_i32_1 = arith.constant 0 : i32
    return %arg0, %c0_i32, %c0_i32_0 : i32, i32, i32
  }
  func.func @transform_13(%arg0: i32) -> (i32, i32, i32) {
    %c0_i32 = arith.constant 0 : i32
    %c0_i32_0 = arith.constant 0 : i32
    %c0_i32_1 = arith.constant 0 : i32
    return %arg0, %c0_i32, %c0_i32_0 : i32, i32, i32
  }
  func.func @transform_14(%arg0: i32) -> (i32, i32, i32) {
    %c0_i32 = arith.constant 0 : i32
    %c0_i32_0 = arith.constant 0 : i32
    %c0_i32_1 = arith.constant 0 : i32
    return %arg0, %c0_i32, %c0_i32_0 : i32, i32, i32
  }
  func.func @transform_15(%arg0: i32) -> (i32, i32, i32) {
    %c0_i32 = arith.constant 0 : i32
    %c0_i32_0 = arith.constant 0 : i32
    %c0_i32_1 = arith.constant 0 : i32
    return %arg0, %c0_i32, %c0_i32_0 : i32, i32, i32
  }
  func.func @transform_16(%arg0: i32) -> (i32, i32, i32) {
    %c0_i32 = arith.constant 0 : i32
    %c0_i32_0 = arith.constant 0 : i32
    %c0_i32_1 = arith.constant 0 : i32
    return %arg0, %c0_i32, %c0_i32_0 : i32, i32, i32
  }
  func.func @transform_17(%arg0: i32) -> (i32, i32, i32) {
    %c0_i32 = arith.constant 0 : i32
    %c0_i32_0 = arith.constant 0 : i32
    %c0_i32_1 = arith.constant 0 : i32
    return %arg0, %c0_i32, %c0_i32_0 : i32, i32, i32
  }
  func.func @transform_18(%arg0: i32) -> (i32, i32, i32) {
    %c0_i32 = arith.constant 0 : i32
    %c0_i32_0 = arith.constant 0 : i32
    %c0_i32_1 = arith.constant 0 : i32
    return %arg0, %c0_i32, %c0_i32_0 : i32, i32, i32
  }
  func.func @transform_19(%arg0: i32) -> (i32, i32, i32) {
    %c0_i32 = arith.constant 0 : i32
    %c0_i32_0 = arith.constant 0 : i32
    %c0_i32_1 = arith.constant 0 : i32
    return %arg0, %c0_i32, %c0_i32_0 : i32, i32, i32
  }
  func.func @transform_20(%arg0: i32) -> (i32, i32, i32) {
    %c0_i32 = arith.constant 0 : i32
    %c0_i32_0 = arith.constant 0 : i32
    %c0_i32_1 = arith.constant 0 : i32
    return %arg0, %c0_i32, %c0_i32_0 : i32, i32, i32
  }
  func.func @transform_21(%arg0: i32) -> (i32, i32, i32) {
    %c0_i32 = arith.constant 0 : i32
    %c0_i32_0 = arith.constant 0 : i32
    %c0_i32_1 = arith.constant 0 : i32
    return %arg0, %c0_i32, %c0_i32_0 : i32, i32, i32
  }
  func.func @transform_22(%arg0: i32) -> (i32, i32, i32) {
    %c0_i32 = arith.constant 0 : i32
    %c0_i32_0 = arith.constant 0 : i32
    %c0_i32_1 = arith.constant 0 : i32
    return %arg0, %c0_i32, %c0_i32_0 : i32, i32, i32
  }
  func.func @transform_23(%arg0: i32) -> (i32, i32, i32) {
    %c0_i32 = arith.constant 0 : i32
    %c0_i32_0 = arith.constant 0 : i32
    %c0_i32_1 = arith.constant 0 : i32
    return %arg0, %c0_i32, %c0_i32_0 : i32, i32, i32
  }
}

module attributes {stable_mosaic.version = 11 : i64} {
  func.func @stem_kernel(%arg0: memref<32x144xf32, #tpu.memory_space<vmem>>, %arg1: memref<144x512xbf16, #tpu.memory_space<vmem>>, %arg2: memref<1x512xf32, #tpu.memory_space<vmem>>, %arg3: memref<1x512xf32, #tpu.memory_space<vmem>>, %arg4: memref<512x512xbf16, #tpu.memory_space<vmem>>, %arg5: memref<1x512xf32, #tpu.memory_space<vmem>>, %arg6: memref<1x512xf32, #tpu.memory_space<vmem>>, %arg7: memref<1x512xf32, #tpu.memory_space<vmem>>, %arg8: memref<32x512xf32, #tpu.memory_space<vmem>>, %arg9: memref<32x512xf32, #tpu.memory_space<vmem>>) attributes {dimension_semantics = [], scalar_prefetch = 0 : i64, scratch_operands = 0 : i64, tpu.core_type = #tpu.core_type<tc>} {
    %c0 = arith.constant 0 : index
    %c0_0 = arith.constant 0 : index
    %0 = vector.load %arg0[%c0, %c0_0] : memref<32x144xf32, #tpu.memory_space<vmem>>, vector<32x144xf32>
    %1 = arith.truncf %0 : vector<32x144xf32> to vector<32x144xbf16>
    %c0_1 = arith.constant 0 : index
    %c0_2 = arith.constant 0 : index
    %2 = vector.load %arg1[%c0_1, %c0_2] : memref<144x512xbf16, #tpu.memory_space<vmem>>, vector<144x512xbf16>
    %cst = arith.constant dense<0.000000e+00> : vector<32x512xf32>
    %3 = tpu.matmul %1, %2, %cst {dimension_numbers = #tpu.dot_dimension_numbers<[1], [0], [0], [1], [0, 0, 1, 1], [], []>} : vector<32x144xbf16>, vector<144x512xbf16>, vector<32x512xf32> -> vector<32x512xf32>
    %c0_3 = arith.constant 0 : index
    %c0_4 = arith.constant 0 : index
    %4 = vector.load %arg2[%c0_3, %c0_4] : memref<1x512xf32, #tpu.memory_space<vmem>>, vector<1x512xf32>
    %5 = vector.broadcast %4 : vector<1x512xf32> to vector<32x512xf32>
    %6 = arith.mulf %3, %5 : vector<32x512xf32>
    %c0_5 = arith.constant 0 : index
    %c0_6 = arith.constant 0 : index
    %7 = vector.load %arg3[%c0_5, %c0_6] : memref<1x512xf32, #tpu.memory_space<vmem>>, vector<1x512xf32>
    %8 = vector.broadcast %7 : vector<1x512xf32> to vector<32x512xf32>
    %9 = arith.addf %6, %8 : vector<32x512xf32>
    %cst_7 = arith.constant 0.000000e+00 : f32
    %10 = vector.broadcast %cst_7 : f32 to vector<32x512xf32>
    %11 = arith.maximumf %9, %10 : vector<32x512xf32>
    %12 = arith.truncf %11 : vector<32x512xf32> to vector<32x512xbf16>
    %c0_8 = arith.constant 0 : index
    %c0_9 = arith.constant 0 : index
    %13 = vector.load %arg4[%c0_8, %c0_9] : memref<512x512xbf16, #tpu.memory_space<vmem>>, vector<512x512xbf16>
    %cst_10 = arith.constant dense<0.000000e+00> : vector<32x512xf32>
    %14 = tpu.matmul %12, %13, %cst_10 {dimension_numbers = #tpu.dot_dimension_numbers<[1], [0], [0], [1], [0, 0, 1, 1], [], []>} : vector<32x512xbf16>, vector<512x512xbf16>, vector<32x512xf32> -> vector<32x512xf32>
    %c0_11 = arith.constant 0 : index
    %c0_12 = arith.constant 0 : index
    %15 = vector.load %arg5[%c0_11, %c0_12] : memref<1x512xf32, #tpu.memory_space<vmem>>, vector<1x512xf32>
    %16 = vector.broadcast %15 : vector<1x512xf32> to vector<32x512xf32>
    %17 = arith.addf %14, %16 : vector<32x512xf32>
    %cst_13 = arith.constant 0.000000e+00 : f32
    %18 = vector.broadcast %cst_13 : f32 to vector<32x512xf32>
    %19 = arith.maximumf %17, %18 : vector<32x512xf32>
    %c0_14 = arith.constant 0 : index
    %c0_15 = arith.constant 0 : index
    %20 = vector.load %arg6[%c0_14, %c0_15] : memref<1x512xf32, #tpu.memory_space<vmem>>, vector<1x512xf32>
    %c0_16 = arith.constant 0 : index
    %c0_17 = arith.constant 0 : index
    %21 = vector.load %arg7[%c0_16, %c0_17] : memref<1x512xf32, #tpu.memory_space<vmem>>, vector<1x512xf32>
    %cst_18 = arith.constant dense<0.000000e+00> : vector<32xf32>
    %22 = vector.multi_reduction <add>, %19, %cst_18 [1] : vector<32x512xf32> to vector<32xf32>
    %23 = vector.shape_cast %22 : vector<32xf32> to vector<32x1xf32>
    %cst_19 = arith.constant 5.120000e+02 : f32
    %24 = vector.broadcast %cst_19 : f32 to vector<32x1xf32>
    %25 = arith.divf %23, %24 : vector<32x1xf32>
    %26 = vector.broadcast %25 : vector<32x1xf32> to vector<32x512xf32>
    %27 = arith.subf %19, %26 : vector<32x512xf32>
    %28 = arith.mulf %27, %27 : vector<32x512xf32>
    %cst_20 = arith.constant dense<0.000000e+00> : vector<32xf32>
    %29 = vector.multi_reduction <add>, %28, %cst_20 [1] : vector<32x512xf32> to vector<32xf32>
    %30 = vector.shape_cast %29 : vector<32xf32> to vector<32x1xf32>
    %cst_21 = arith.constant 5.120000e+02 : f32
    %31 = vector.broadcast %cst_21 : f32 to vector<32x1xf32>
    %32 = arith.divf %30, %31 : vector<32x1xf32>
    %33 = vector.broadcast %25 : vector<32x1xf32> to vector<32x512xf32>
    %34 = arith.subf %19, %33 : vector<32x512xf32>
    %cst_22 = arith.constant 9.99999974E-6 : f32
    %35 = vector.broadcast %cst_22 : f32 to vector<32x1xf32>
    %36 = arith.addf %32, %35 : vector<32x1xf32>
    %37 = math.rsqrt %36 : vector<32x1xf32>
    %38 = vector.broadcast %37 : vector<32x1xf32> to vector<32x512xf32>
    %39 = arith.mulf %34, %38 : vector<32x512xf32>
    %40 = vector.broadcast %20 : vector<1x512xf32> to vector<32x512xf32>
    %41 = arith.mulf %39, %40 : vector<32x512xf32>
    %42 = vector.broadcast %21 : vector<1x512xf32> to vector<32x512xf32>
    %43 = arith.addf %41, %42 : vector<32x512xf32>
    %c0_23 = arith.constant 0 : index
    %c0_24 = arith.constant 0 : index
    %44 = vector.load %arg8[%c0_23, %c0_24] : memref<32x512xf32, #tpu.memory_space<vmem>>, vector<32x512xf32>
    %45 = arith.addf %43, %44 : vector<32x512xf32>
    %c0_25 = arith.constant 0 : index
    %c0_26 = arith.constant 0 : index
    %46 = vector.load %arg9[%c0_25, %c0_26] : memref<32x512xf32, #tpu.memory_space<vmem>>, vector<32x512xf32>
    tpu.vector_store %arg9[%c0_25, %c0_26], %45 {strides = array<i32>} : memref<32x512xf32, #tpu.memory_space<vmem>>, vector<32x512xf32>,
    return
  }
}

</mosaic_0001>

<bundles_post_ra>
// kernel: squeeze.5
= control target key start
LH: loop header
LB: loop body
LE: loop exit
PB: predicated region body
PF: predicated region fallthrough
CT: control target
= control target key end

     0   :  { %s77_s0 = inlined_call_operand.vmem [shape: f32[32], index: 0, kind: input, shape index: {}]   ;;  %s78_s1 = inlined_call_operand.hbm [shape: f32[2,16,1], index: 1, kind: output, shape index: {}]  }
   0x1   :  { %v6_v0 = vld [vmem:[%s77_s0] sm:$0x1] }
   0x2   :  { %2 = vsyncpa [#allocation1], 0  ;;  %7 = vst [vmem:[#allocation3] sm:$0x1] %v6_v0  ;;  %vm9_vm0 = vcmask 130048   ;;  %s59_s0 = smov 112  }
   0x3   :  { %s60_s8 = smov [#allocation0]  }
   0x4   :  { %s29_s9 = sshll.u32 %s60_s8, 4  ;;  %s30_s9 = int_to_ptr.vmem [resolvable:$true] %s29_s9 }
   0x5   :  { %s37_s10 = scalar_lea.vmem %s30_s9, 32  ;;  %p42_p1 = scmp.lt.s32.totalorder %s30_s9, %s30_s9 }
   0x6   :  { %p38_p0 = scmp.ne.s32.totalorder %s30_s9, %s37_s10  ;;  %p43_p2 = scmp.lt.s32.totalorder %s37_s10, %s37_s10 }
   0x8   :  { %p44_p3 = por %p43_p2, %p42_p1 }
   0x9   :  { %v11_v1 = vld [vmem:[#allocation3] sm:$0x1]  }
   0xa   :  { %v8_v2 = vld [vmem:[#allocation3] sm:$0x1]   ;;  %12 = vrot.lane.b32.xlu0 %v11_v1, %s59_s0  ;;  %p45_p4 = pnand %p44_p3, %p38_p0 }
   0xb   :  { %10 = vst.msk [vmem:[#allocation2] sm:$0x1] %vm9_vm0, %v8_v2  }
  0x7c   :  { %v13_v3 = vpop.permute.xlu0 %12  }
  0x7d   :  { %16 = vst.msk [vmem:[#allocation2 + $0x1] sm:$0x1] %vm9_vm0, %v13_v3  }
  0x84   :  { %v21_v4 = vld [vmem:[#allocation2] sm:$0x3] }
  0x85   :  { %24 = vst [vmem:[#allocation0] sm:$0x3] %v21_v4 }
  0x86   :  { %48 = shalt.err (!%p45_p4)
}
  0x87   :  { %32 = dma.vmem_to_hbm [thread:$0]  %s30_s9, 32, %s78_s1, [#allocation1]  }
  0x88   :  { %57 = dma.done.wait [#allocation1], 32  }
  0x89   :  { %58 = vsyncadd [#allocation1], 4294967264 }
  0x8a   :  { %34 = vsyncpa [#allocation1], 1 }

// kernel: forward.2
= control target key start
LH: loop header
LB: loop body
LE: loop exit
PB: predicated region body
PF: predicated region fallthrough
CT: control target
= control target key end

     0   :  { %14 = vsyncpa [#allocation3], 0  ;;  %s2850_s0 = inlined_call_operand.vmem [shape: f32[32,144], index: 0, kind: input, shape index: {}]   ;;  %s2851_s1 = inlined_call_operand.hbm [shape: bf16[144,512], index: 1, kind: input, shape index: {}]   ;;  %s2852_s2 = inlined_call_operand.hbm [shape: f32[1,512], index: 2, kind: input, shape index: {}]   ;;  %s2853_s3 = inlined_call_operand.hbm [shape: f32[1,512], index: 3, kind: input, shape index: {}]   ;;  %s2854_s4 = inlined_call_operand.hbm [shape: bf16[512,512], index: 4, kind: input, shape index: {}]   ;;  %s2855_s5 = inlined_call_operand.hbm [shape: f32[1,512], index: 5, kind: input, shape index: {}]   ;;  %s2856_s6 = inlined_call_operand.hbm [shape: f32[1,512], index: 6, kind: input, shape index: {}]   ;;  %s2857_s7 = inlined_call_operand.hbm [shape: f32[1,512], index: 7, kind: input, shape index: {}]   ;;  %s2858_s8 = inlined_call_operand.hbm [shape: f32[32,512], index: 8, kind: input, shape index: {}]   ;;  %s2859_s9 = inlined_call_operand.vmem [shape: f32[32,512], index: 9, kind: output, shape index: {}]  }
   0x1   :  { %15 = vsyncpa [#allocation5], 0 }
   0x2   :  { %16 = vsyncpa [#allocation8], 0 }
   0x3   :  { %17 = vsyncpa [#allocation11], 0 }
   0x4   :  { %18 = vsyncpa [#allocation14], 0  ;;  %s2433_s30 = smov [#allocation4]  }
   0x5   :  { %s39_s10 = sshll.u32 %s2433_s30, 4  ;;  %s40_s10 = int_to_ptr.vmem [resolvable:$true] %s39_s10 }
   0x6   :  { %s2271_s11 = scalar_lea.vmem %s40_s10, 64  ;;  %p2276_p1 = scmp.lt.s32.totalorder %s40_s10, %s40_s10 }
   0x7   :  { %p2272_p0 = scmp.ne.s32.totalorder %s40_s10, %s2271_s11  ;;  %p2277_p2 = scmp.lt.s32.totalorder %s2271_s11, %s2271_s11 }
   0x9   :  { %p2278_p3 = por %p2277_p2, %p2276_p1 }
   0xb   :  { %p2279_p4 = pnand %p2278_p3, %p2272_p0 }
   0xd   :  { %2282 = shalt.err (!%p2279_p4)
}
   0xe   :  { %42 = dma.hbm_to_vmem [thread:$0]  %s2852_s2, 64, %s40_s10, [#allocation5]  }
   0xf   :  { %s2434_s14 = smov [#allocation7]   ;;  %s2435_s16 = smov [#allocation10]  }
  0x10   :  { %s58_s15 = sshll.u32 %s2434_s14, 4  ;;  %s81_s17 = sshll.u32 %s2435_s16, 4  ;;  %s59_s15 = int_to_ptr.vmem [resolvable:$true] %s58_s15  ;;  %s82_s17 = int_to_ptr.vmem [resolvable:$true] %s81_s17 }
  0x11   :  { %s2291_s18 = scalar_lea.vmem %s59_s15, 16384  ;;  %p2296_p6 = scmp.lt.s32.totalorder %s59_s15, %s59_s15 }
  0x12   :  { %p2292_p5 = scmp.ne.s32.totalorder %s59_s15, %s2291_s18  ;;  %p2297_p7 = scmp.lt.s32.totalorder %s2291_s18, %s2291_s18 }
  0x14   :  { %p2298_p8 = por %p2297_p7, %p2296_p6 }
  0x16   :  { %p2299_p9 = pnand %p2298_p8, %p2292_p5 }
  0x18   :  { %2302 = shalt.err (!%p2299_p9)
}
  0x19   :  { %s2436_s19 = smov 256   ;;  %s2437_s20 = smov 16  }
  0x1a   :  { %64 = dma.hbm_to_vmem [thread:$0]  %s2854_s4, 16384, %s59_s15, [#allocation8], %s2436_s19, %s2436_s19, %s2437_s20  }
  0x1b   :  { %s2311_s2 = scalar_lea.vmem %s82_s17, 64  ;;  %p2316_p11 = scmp.lt.s32.totalorder %s82_s17, %s82_s17 }
  0x1c   :  { %p2312_p10 = scmp.ne.s32.totalorder %s82_s17, %s2311_s2  ;;  %p2317_p12 = scmp.lt.s32.totalorder %s2311_s2, %s2311_s2 }
  0x1e   :  { %p2318_p13 = por %p2317_p12, %p2316_p11 }
  0x20   :  { %p2319_p0 = pnand %p2318_p13, %p2312_p10 }
  0x22   :  { %2322 = shalt.err (!%p2319_p0)
}
  0x23   :  { %84 = dma.hbm_to_vmem [thread:$0]  %s2856_s6, 64, %s82_s17, [#allocation11]  }
  0x24   :  { %s2438_s25 = smov [#allocation2]   ;;  %s2439_s27 = smov [#allocation6]  }
  0x25   :  { %s26_s26 = sshll.u32 %s2438_s25, 4  ;;  %s49_s28 = sshll.u32 %s2439_s27, 4  ;;  %s27_s26 = int_to_ptr.vmem [resolvable:$true] %s26_s26  ;;  %s50_s28 = int_to_ptr.vmem [resolvable:$true] %s49_s28 }
  0x26   :  { %s2331_s29 = scalar_lea.vmem %s27_s26, 4608  ;;  %p2336_p2 = scmp.lt.s32.totalorder %s27_s26, %s27_s26 }
  0x27   :  { %p2332_p1 = scmp.ne.s32.totalorder %s27_s26, %s2331_s29  ;;  %p2337_p3 = scmp.lt.s32.totalorder %s2331_s29, %s2331_s29 }
  0x29   :  { %p2338_p4 = por %p2337_p3, %p2336_p2 }
  0x2b   :  { %p2339_p5 = pnand %p2338_p4, %p2332_p1 }
  0x2d   :  { %2342 = shalt.err (!%p2339_p5)
}
  0x2e   :  { %32 = dma.hbm_to_vmem [thread:$0]  %s2851_s1, 4608, %s27_s26, [#allocation3], %s2436_s19, %s2436_s19, %s2437_s20  }
  0x2f   :  { %s2351_s10 = scalar_lea.vmem %s50_s28, 64  ;;  %p2356_p7 = scmp.lt.s32.totalorder %s50_s28, %s50_s28 }
  0x30   :  { %p2352_p6 = scmp.ne.s32.totalorder %s50_s28, %s2351_s10  ;;  %p2357_p8 = scmp.lt.s32.totalorder %s2351_s10, %s2351_s10 }
  0x32   :  { %p2358_p9 = por %p2357_p8, %p2356_p7 }
  0x34   :  { %p2359_p10 = pnand %p2358_p9, %p2352_p6 }
  0x36   :  { %2362 = shalt.err (!%p2359_p10)
}
  0x37   :  { %52 = dma.hbm_to_vmem [thread:$0]  %s2853_s3, 64, %s50_s28, [#allocation5]  }
  0x38   :  { %s2440_s12 = smov [#allocation9]   ;;  %s2441_s14 = smov [#allocation12]  }
  0x39   :  { %s71_s13 = sshll.u32 %s2440_s12, 4  ;;  %s91_s15 = sshll.u32 %s2441_s14, 4  ;;  %s72_s13 = int_to_ptr.vmem [resolvable:$true] %s71_s13  ;;  %s92_s15 = int_to_ptr.vmem [resolvable:$true] %s91_s15 }
  0x3a   :  { %s2371_s16 = scalar_lea.vmem %s72_s13, 64  ;;  %p2376_p12 = scmp.lt.s32.totalorder %s72_s13, %s72_s13 }
  0x3b   :  { %p2372_p11 = scmp.ne.s32.totalorder %s72_s13, %s2371_s16  ;;  %p2377_p13 = scmp.lt.s32.totalorder %s2371_s16, %s2371_s16 }
  0x3d   :  { %p2378_p0 = por %p2377_p13, %p2376_p12 }
  0x3f   :  { %p2379_p1 = pnand %p2378_p0, %p2372_p11 }
  0x41   :  { %2382 = shalt.err (!%p2379_p1)
}
  0x42   :  { %74 = dma.hbm_to_vmem [thread:$0]  %s2855_s5, 64, %s72_s13, [#allocation8]  }
  0x43   :  { %s2391_s18 = scalar_lea.vmem %s92_s15, 64  ;;  %p2396_p3 = scmp.lt.s32.totalorder %s92_s15, %s92_s15 }
  0x44   :  { %p2392_p2 = scmp.ne.s32.totalorder %s92_s15, %s2391_s18  ;;  %p2397_p4 = scmp.lt.s32.totalorder %s2391_s18, %s2391_s18 }
  0x46   :  { %p2398_p5 = por %p2397_p4, %p2396_p3 }
  0x48   :  { %p2399_p6 = pnand %p2398_p5, %p2392_p2 }
  0x4a   :  { %2402 = shalt.err (!%p2399_p6)
}
  0x4b   :  { %94 = dma.hbm_to_vmem [thread:$0]  %s2857_s7, 64, %s92_s15, [#allocation11]  }
  0x4c   :  { %s2442_s20 = smov [#allocation13]  }
  0x4d   :  { %s100_s21 = sshll.u32 %s2442_s20, 4  ;;  %s101_s21 = int_to_ptr.vmem [resolvable:$true] %s100_s21 }
  0x4e   :  { %s2411_s22 = scalar_lea.vmem %s101_s21, 2048  ;;  %p2416_p8 = scmp.lt.s32.totalorder %s101_s21, %s101_s21 }
  0x4f   :  { %p2412_p7 = scmp.ne.s32.totalorder %s101_s21, %s2411_s22  ;;  %p2417_p9 = scmp.lt.s32.totalorder %s2411_s22, %s2411_s22 }
  0x51   :  { %p2418_p10 = por %p2417_p9, %p2416_p8 }
  0x53   :  { %p2419_p11 = pnand %p2418_p10, %p2412_p7 }
  0x55   :  { %2422 = shalt.err (!%p2419_p11)
}
  0x56   :  { %s2443_s5 = smov 512   ;;  %s2444_s2 = smov 32  }
  0x57   :  { %106 = dma.hbm_to_vmem [thread:$0]  %s2858_s8, 2048, %s101_s21, [#allocation14], %s2443_s5, %s2443_s5, %s2444_s2  }
  0x58   :  { %2423 = dma.done.wait [#allocation3], 4608  }
  0x59   :  { %2424 = vsyncadd [#allocation3], 4294962688 }
  0x5a   :  { %2425 = dma.done.wait [#allocation5], 128  }
  0x5b   :  { %2426 = vsyncadd [#allocation5], 4294967168 }
  0x5c   :  { %2427 = dma.done.wait [#allocation8], 16448  }
  0x5d   :  { %2428 = vsyncadd [#allocation8], 4294950848 }
  0x5e   :  { %2429 = dma.done.wait [#allocation11], 128  }
  0x5f   :  { %2430 = vsyncadd [#allocation11], 4294967168 }
  0x60   :  { %2431 = dma.done.wait [#allocation14], 2048  }
  0x61   :  { %2432 = vsyncadd [#allocation14], 4294965248  ;;  %v2009_v0 = vld [vmem:[#allocation2 + $0xe4] ss:$16 sps:$4 sm:$0xff]   ;;  %v2011_v1 = vld [vmem:[#allocation2 + $0xec] ss:$16 sps:$4 sm:$0xff]  }
  0x62   :  { %367 = vmatprep.subr.bf16.mxu0 %v2009_v0  ;;  %v2013_v2 = vld [vmem:[#allocation2 + $0xe0] ss:$16 sps:$4 sm:$0xff]   ;;  %v2014_v3 = vld [vmem:[#allocation2 + $0xe8] ss:$16 sps:$4 sm:$0xff]   ;;  %420 = vmatprep.subr.bf16.mxu1 %v2011_v1  ;;  %v2015_v4 = vld [vmem:[#allocation2 + $0xc4] ss:$16 sps:$4 sm:$0xff]  }
  0x63   :  { %368 = vmatpush1.bf16.msra.mxu0 %v2013_v2  ;;  %421 = vmatpush1.bf16.msra.mxu1 %v2014_v3  ;;  %v2017_v5 = vld [vmem:[#allocation2 + $0xcc] ss:$16 sps:$4 sm:$0xff]   ;;  %v2019_v6 = vld [vmem:[#allocation2 + $0xc0] ss:$16 sps:$4 sm:$0xff]   ;;  %v2020_v7 = vld [vmem:[#allocation2 + $0xc8] ss:$16 sps:$4 sm:$0xff]  }
  0x64   :  { %369 = vmatprep.subr.bf16.mxu0 %v2015_v4  ;;  %422 = vmatprep.subr.bf16.mxu1 %v2017_v5  ;;  %v2021_v8 = vld [vmem:[#allocation2 + $0xa4] ss:$16 sps:$4 sm:$0xff]   ;;  %v2023_v9 = vld [vmem:[#allocation2 + $0xac] ss:$16 sps:$4 sm:$0xff]   ;;  %v2025_v10 = vld [vmem:[#allocation2 + $0xa0] ss:$16 sps:$4 sm:$0xff]  }
  0x65   :  { %v2026_v11 = vld [vmem:[#allocation2 + $0xa8] ss:$16 sps:$4 sm:$0xff]   ;;  %v2027_v12 = vld [vmem:[#allocation2 + $0x84] ss:$16 sps:$4 sm:$0xff]   ;;  %v2029_v13 = vld [vmem:[#allocation2 + $0x8c] ss:$16 sps:$4 sm:$0xff]  }
  0x66   :  { %v2031_v14 = vld [vmem:[#allocation2 + $0x80] ss:$16 sps:$4 sm:$0xff]   ;;  %v2032_v15 = vld [vmem:[#allocation2 + $0x88] ss:$16 sps:$4 sm:$0xff]   ;;  %v2033_v16 = vld [vmem:[#allocation2 + $0x64] ss:$16 sps:$4 sm:$0xff]  }
  0x67   :  { %370 = vmatpush1.bf16.msra.mxu0 %v2019_v6  ;;  %423 = vmatpush1.bf16.msra.mxu1 %v2020_v7  ;;  %v2035_v17 = vld [vmem:[#allocation2 + $0x6c] ss:$16 sps:$4 sm:$0xff]   ;;  %v2037_v18 = vld [vmem:[#allocation2 + $0x60] ss:$16 sps:$4 sm:$0xff]   ;;  %v2038_v19 = vld [vmem:[#allocation2 + $0x68] ss:$16 sps:$4 sm:$0xff]  }
  0x68   :  { %371 = vmatprep.subr.bf16.mxu0 %v2021_v8  ;;  %424 = vmatprep.subr.bf16.mxu1 %v2023_v9  ;;  %v2039_v20 = vld [vmem:[#allocation2 + $0x44] ss:$16 sps:$4 sm:$0xff]   ;;  %v2041_v21 = vld [vmem:[#allocation2 + $0x4c] ss:$16 sps:$4 sm:$0xff]   ;;  %v2043_v22 = vld [vmem:[#allocation2 + $0x40] ss:$16 sps:$4 sm:$0xff]  }
  0x69   :  { %v2044_v23 = vld [vmem:[#allocation2 + $0x48] ss:$16 sps:$4 sm:$0xff]   ;;  %v2045_v24 = vld [vmem:[#allocation2 + $0x24] ss:$16 sps:$4 sm:$0xff]   ;;  %v2047_v25 = vld [vmem:[#allocation2 + $0x2c] ss:$16 sps:$4 sm:$0xff]  }
  0x6a   :  { %v2049_v26 = vld [vmem:[#allocation2 + $0x20] ss:$16 sps:$4 sm:$0xff]   ;;  %v2050_v27 = vld [vmem:[#allocation2 + $0x28] ss:$16 sps:$4 sm:$0xff]   ;;  %vm360_vm0 = vcmask 130048  }
  0x6b   :  { %372 = vmatpush1.bf16.msra.mxu0 %v2025_v10  ;;  %425 = vmatpush1.bf16.msra.mxu1 %v2026_v11  ;;  %v133_v28 = vld [vmem:[%s2850_s0 + $0x8] sm:$0xff]  ;;  %v135_v29 = vld [vmem:[%s2850_s0 + $0x18] sm:$0xff]  ;;  %v2051_v30 = vld [vmem:[#allocation2 + $0x4] ss:$16 sps:$4 sm:$0xff]  }
  0x6c   :  { %373 = vmatprep.subr.bf16.mxu0 %v2027_v12  ;;  %426 = vmatprep.subr.bf16.mxu1 %v2029_v13  ;;  %v2053_v31 = vld [vmem:[#allocation2 + $0xc] ss:$16 sps:$4 sm:$0xff]   ;;  %v141_v32 = vpack.c.bf16 %v135_v29, %v133_v28  ;;  %v2055_v33 = vld [vmem:[#allocation2] ss:$16 sps:$4 sm:$0xff]   ;;  %v2056_v34 = vld [vmem:[#allocation2 + $0x8] ss:$16 sps:$4 sm:$0xff]  }
  0x6d   :  { %v2057_v35 = vld [vmem:[#allocation2 + $0x104] ss:$16 sps:$4 sm:$0xff]   ;;  %v2059_v36 = vld [vmem:[#allocation2 + $0x10c] ss:$16 sps:$4 sm:$0xff]   ;;  %v2061_v37 = vld [vmem:[#allocation2 + $0x100] ss:$16 sps:$4 sm:$0xff]  }
  0x6e   :  { %1865 = vmatprep.mubr.msk.bf16.mxu0 %vm360_vm0, %v141_v32  ;;  %1867 = vmatprep.mubr.msk.bf16.mxu1 %vm360_vm0, %v141_v32  ;;  %v2062_v38 = vld [vmem:[#allocation2 + $0x108] ss:$16 sps:$4 sm:$0xff]   ;;  %v132_v39 = vld [vmem:[%s2850_s0] sm:$0xff]  ;;  %v134_v40 = vld [vmem:[%s2850_s0 + $0x10] sm:$0xff] }
  0x6f   :  { %374 = vmatpush1.bf16.msra.mxu0 %v2031_v14  ;;  %427 = vmatpush1.bf16.msra.mxu1 %v2032_v15  ;;  %v137_v41 = vld [vmem:[%s2850_s0 + $0x28] sm:$0xff]  ;;  %v139_v42 = vld [vmem:[%s2850_s0 + $0x38] sm:$0xff]  ;;  %v140_v45 = vpack.c.bf16 %v134_v40, %v132_v39  ;;  %v136_v51 = vld [vmem:[%s2850_s0 + $0x20] sm:$0xff] }
  0x70   :  { %375 = vmatprep.subr.bf16.mxu0 %v2033_v16  ;;  %428 = vmatprep.subr.bf16.mxu1 %v2035_v17  ;;  %v2065_v43 = vld [vmem:[#allocation7 + $0xe4] ss:$16 sps:$4 sm:$0xff]   ;;  %v143_v46 = vpack.c.bf16 %v139_v42, %v137_v41  ;;  %v2063_v47 = vld [vmem:[#allocation7 + $0xe0] ss:$16 sps:$4 sm:$0xff]   ;;  %v138_v52 = vld [vmem:[%s2850_s0 + $0x30] sm:$0xff] }
  0x71   :  { %v2068_v44 = vld [vmem:[#allocation7 + $0x2e4] ss:$16 sps:$4 sm:$0xff]   ;;  %v2066_v48 = vld [vmem:[#allocation7 + $0x2e0] ss:$16 sps:$4 sm:$0xff]   ;;  %v142_v57 = vpack.c.bf16 %v138_v52, %v136_v51 }
  0x72   :  { %v2071_v49 = vld [vmem:[#allocation7 + $0xc4] ss:$16 sps:$4 sm:$0xff]   ;;  %v2069_v53 = vld [vmem:[#allocation7 + $0xc0] ss:$16 sps:$4 sm:$0xff]  }
  0x73   :  { %376 = vmatpush1.bf16.msra.mxu0 %v2037_v18  ;;  %429 = vmatpush1.bf16.msra.mxu1 %v2038_v19  ;;  %v2074_v50 = vld [vmem:[#allocation7 + $0x2c4] ss:$16 sps:$4 sm:$0xff]   ;;  %v2072_v54 = vld [vmem:[#allocation7 + $0x2c0] ss:$16 sps:$4 sm:$0xff]  }
  0x74   :  { %377 = vmatprep.subr.bf16.mxu0 %v2039_v20  ;;  %430 = vmatprep.subr.bf16.mxu1 %v2041_v21  ;;  %v2077_v55 = vld [vmem:[#allocation7 + $0xa4] ss:$16 sps:$4 sm:$0xff]   ;;  %v2075_v58 = vld [vmem:[#allocation7 + $0xa0] ss:$16 sps:$4 sm:$0xff]  }
  0x75   :  { %v2080_v56 = vld [vmem:[#allocation7 + $0x2a4] ss:$16 sps:$4 sm:$0xff]   ;;  %v2078_v59 = vld [vmem:[#allocation7 + $0x2a0] ss:$16 sps:$4 sm:$0xff]  }
  0x76   :  { %v2083_v60 = vld [vmem:[#allocation7 + $0x84] ss:$16 sps:$4 sm:$0xff]   ;;  %v2081_v62 = vld [vmem:[#allocation7 + $0x80] ss:$16 sps:$4 sm:$0xff]  }
  0x77   :  { %378 = vmatpush1.bf16.msra.mxu0 %v2043_v22  ;;  %431 = vmatpush1.bf16.msra.mxu1 %v2044_v23  ;;  %v2086_v61 = vld [vmem:[#allocation7 + $0x284] ss:$16 sps:$4 sm:$0xff]   ;;  %v2084_v63 = vld [vmem:[#allocation7 + $0x280] ss:$16 sps:$4 sm:$0xff]  }
  0x78   :  { %379 = vmatprep.subr.bf16.mxu0 %v2045_v24  ;;  %432 = vmatprep.subr.bf16.mxu1 %v2047_v25  ;;  %v2089_v0 = vld [vmem:[#allocation7 + $0x64] ss:$16 sps:$4 sm:$0xff]   ;;  %v2087_v2 = vld [vmem:[#allocation7 + $0x60] ss:$16 sps:$4 sm:$0xff]  }
  0x79   :  { %v2092_v1 = vld [vmem:[#allocation7 + $0x264] ss:$16 sps:$4 sm:$0xff]   ;;  %v2090_v3 = vld [vmem:[#allocation7 + $0x260] ss:$16 sps:$4 sm:$0xff]  }
  0x7a   :  { %v2095_v4 = vld [vmem:[#allocation7 + $0x44] ss:$16 sps:$4 sm:$0xff]   ;;  %v2093_v6 = vld [vmem:[#allocation7 + $0x40] ss:$16 sps:$4 sm:$0xff]  }
  0x7b   :  { %380 = vmatpush1.bf16.msra.mxu0 %v2049_v26  ;;  %433 = vmatpush1.bf16.msra.mxu1 %v2050_v27  ;;  %v2098_v5 = vld [vmem:[#allocation7 + $0x244] ss:$16 sps:$4 sm:$0xff]   ;;  %v2096_v7 = vld [vmem:[#allocation7 + $0x240] ss:$16 sps:$4 sm:$0xff]  }
  0x7c   :  { %381 = vmatprep.subr.bf16.mxu0 %v2051_v30  ;;  %434 = vmatprep.subr.bf16.mxu1 %v2053_v31  ;;  %v2101_v8 = vld [vmem:[#allocation7 + $0x24] ss:$16 sps:$4 sm:$0xff]   ;;  %v2099_v10 = vld [vmem:[#allocation7 + $0x20] ss:$16 sps:$4 sm:$0xff]  }
  0x7d   :  { %v2104_v9 = vld [vmem:[#allocation7 + $0x224] ss:$16 sps:$4 sm:$0xff]   ;;  %v2102_v11 = vld [vmem:[#allocation7 + $0x220] ss:$16 sps:$4 sm:$0xff]  }
  0x7e   :  { %v2107_v12 = vld [vmem:[#allocation7 + $0x4] ss:$16 sps:$4 sm:$0xff]   ;;  %v2105_v14 = vld [vmem:[#allocation7] ss:$16 sps:$4 sm:$0xff]  }
  0x7f   :  { %382 = vmatpush1.bf16.msra.mxu0 %v2055_v33  ;;  %435 = vmatpush1.bf16.msra.mxu1 %v2056_v34  ;;  %v2110_v13 = vld [vmem:[#allocation7 + $0x204] ss:$16 sps:$4 sm:$0xff]   ;;  %v2108_v15 = vld [vmem:[#allocation7 + $0x200] ss:$16 sps:$4 sm:$0xff]  }
  0x80   :  { %397 = vmatprep.subr.bf16.mxu0 %v2057_v35  ;;  %450 = vmatprep.subr.bf16.mxu1 %v2059_v36  ;;  %v2113_v16 = vld [vmem:[#allocation7 + $0x1e4] ss:$16 sps:$4 sm:$0xff]   ;;  %v2111_v18 = vld [vmem:[#allocation7 + $0x1e0] ss:$16 sps:$4 sm:$0xff]  }
  0x81   :  { %v2116_v17 = vld [vmem:[#allocation7 + $0x3e4] ss:$16 sps:$4 sm:$0xff]   ;;  %v2114_v19 = vld [vmem:[#allocation7 + $0x3e0] ss:$16 sps:$4 sm:$0xff]  }
  0x82   :  { %v2119_v20 = vld [vmem:[#allocation7 + $0x1c4] ss:$16 sps:$4 sm:$0xff]   ;;  %v2117_v22 = vld [vmem:[#allocation7 + $0x1c0] ss:$16 sps:$4 sm:$0xff]  }
  0x83   :  { %398 = vmatpush2.bf16.msra.mxu0 %v2061_v37  ;;  %451 = vmatpush2.bf16.msra.mxu1 %v2062_v38  ;;  %v2122_v21 = vld [vmem:[#allocation7 + $0x3c4] ss:$16 sps:$4 sm:$0xff]   ;;  %v2120_v23 = vld [vmem:[#allocation7 + $0x3c0] ss:$16 sps:$4 sm:$0xff]  }
  0x84   :  { %1363 = vmatprep.subr.bf16.mxu0 %v2065_v43  ;;  %1416 = vmatprep.subr.bf16.mxu1 %v2068_v44  ;;  %v2125_v24 = vld [vmem:[#allocation7 + $0x1a4] ss:$16 sps:$4 sm:$0xff]   ;;  %v2123_v26 = vld [vmem:[#allocation7 + $0x1a0] ss:$16 sps:$4 sm:$0xff]  }
  0x85   :  { %v2128_v25 = vld [vmem:[#allocation7 + $0x3a4] ss:$16 sps:$4 sm:$0xff]   ;;  %v2126_v27 = vld [vmem:[#allocation7 + $0x3a0] ss:$16 sps:$4 sm:$0xff]  }
  0x86   :  { %400 = vmatmul.mubr.bf16.vlgmr.msra.gmra.mxu0 %v140_v45  ;;  %453 = vmatmul.mubr.bf16.vlgmr.msra.gmra.mxu1 %v140_v45  ;;  %v2131_v28 = vld [vmem:[#allocation7 + $0x184] ss:$16 sps:$4 sm:$0xff]   ;;  %v2129_v30 = vld [vmem:[#allocation7 + $0x180] ss:$16 sps:$4 sm:$0xff]  }
  0x87   :  { %1866 = vmatprep.mubr.msk.bf16.mxu0 %vm360_vm0, %v143_v46  ;;  %1868 = vmatprep.mubr.msk.bf16.mxu1 %vm360_vm0, %v143_v46  ;;  %v2134_v29 = vld [vmem:[#allocation7 + $0x384] ss:$16 sps:$4 sm:$0xff]   ;;  %v2132_v31 = vld [vmem:[#allocation7 + $0x380] ss:$16 sps:$4 sm:$0xff]  }
  0x88   :  { %1364 = vmatpush1.bf16.msra.mxu0 %v2063_v47  ;;  %1417 = vmatpush1.bf16.msra.mxu1 %v2066_v48  ;;  %v2137_v32 = vld [vmem:[#allocation7 + $0x164] ss:$16 sps:$4 sm:$0xff]   ;;  %v2135_v34 = vld [vmem:[#allocation7 + $0x160] ss:$16 sps:$4 sm:$0xff]   ;;  %v2161_v48 = vld [vmem:[#allocation7 + $0xec] ss:$16 sps:$4 sm:$0xff]  }
  0x89   :  { %1365 = vmatprep.subr.bf16.mxu0 %v2071_v49  ;;  %1418 = vmatprep.subr.bf16.mxu1 %v2074_v50  ;;  %v2140_v33 = vld [vmem:[#allocation7 + $0x364] ss:$16 sps:$4 sm:$0xff]   ;;  %v2138_v35 = vld [vmem:[#allocation7 + $0x360] ss:$16 sps:$4 sm:$0xff]   ;;  %v2164_v49 = vld [vmem:[#allocation7 + $0x2ec] ss:$16 sps:$4 sm:$0xff]   ;;  %v475_v50 = vlaneseq }
  0x8a   :  { %v2143_v36 = vld [vmem:[#allocation7 + $0x144] ss:$16 sps:$4 sm:$0xff]   ;;  %v2141_v38 = vld [vmem:[#allocation7 + $0x140] ss:$16 sps:$4 sm:$0xff]  }
  0x8b   :  { %v2146_v37 = vld [vmem:[#allocation7 + $0x344] ss:$16 sps:$4 sm:$0xff]   ;;  %v2144_v39 = vld [vmem:[#allocation7 + $0x340] ss:$16 sps:$4 sm:$0xff]   ;;  %v476_v51 = vshrl.u32 %v475_v50, 7 }
  0x8c   :  { %1366 = vmatpush1.bf16.msra.mxu0 %v2069_v53  ;;  %1419 = vmatpush1.bf16.msra.mxu1 %v2072_v54  ;;  %v2149_v40 = vld [vmem:[#allocation7 + $0x124] ss:$16 sps:$4 sm:$0xff]   ;;  %v2147_v42 = vld [vmem:[#allocation7 + $0x120] ss:$16 sps:$4 sm:$0xff]   ;;  %v473_v54 = vld [vmem:[#allocation4] sm:$0xf] }
  0x8d   :  { %1367 = vmatprep.subr.bf16.mxu0 %v2077_v55  ;;  %1420 = vmatprep.subr.bf16.mxu1 %v2080_v56  ;;  %v2152_v41 = vld [vmem:[#allocation7 + $0x324] ss:$16 sps:$4 sm:$0xff]   ;;  %v2150_v43 = vld [vmem:[#allocation7 + $0x320] ss:$16 sps:$4 sm:$0xff]   ;;  %v2547_v52 = vsub.s32 0, %v476_v51  ;;  %v2549_v53 = vsub.s32 2, %v476_v51 }
  0x8e   :  { %410 = vmatmul.mubr.bf16.gmra.mxu0 %v142_v57  ;;  %463 = vmatmul.mubr.bf16.gmra.mxu1 %v142_v57  ;;  %v2155_v44 = vld [vmem:[#allocation7 + $0x104] ss:$16 sps:$4 sm:$0xff]   ;;  %v2153_v46 = vld [vmem:[#allocation7 + $0x100] ss:$16 sps:$4 sm:$0xff]   ;;  %v2551_v55 = vsub.s32 1, %v476_v51  ;;  %v2553_v56 = vsub.s32 3, %v476_v51 }
  0x8f   :  { %v2158_v45 = vld [vmem:[#allocation7 + $0x304] ss:$16 sps:$4 sm:$0xff]   ;;  %v2156_v47 = vld [vmem:[#allocation7 + $0x300] ss:$16 sps:$4 sm:$0xff]   ;;  %v478_v57 = vrot.slane %v473_v54, %v2547_v52 }
  0x90   :  { %1368 = vmatpush1.bf16.msra.mxu0 %v2075_v58  ;;  %1421 = vmatpush1.bf16.msra.mxu1 %v2078_v59  ;;  %v486_v58 = vrot.slane %v473_v54, %v2549_v53  ;;  %v511_v59 = vld [vmem:[#allocation6] sm:$0xf] }
  0x91   :  { %1369 = vmatprep.subr.bf16.mxu0 %v2083_v60  ;;  %1422 = vmatprep.subr.bf16.mxu1 %v2086_v61  ;;  %v2558_v60 = vrot.slane %v473_v54, %v2551_v55  ;;  %v2561_v61 = vrot.slane %v473_v54, %v2553_v56 }
  0x94   :  { %1370 = vmatpush1.bf16.msra.mxu0 %v2081_v62  ;;  %1423 = vmatpush1.bf16.msra.mxu1 %v2084_v63 }
  0x95   :  { %1371 = vmatprep.subr.bf16.mxu0 %v2089_v0  ;;  %1424 = vmatprep.subr.bf16.mxu1 %v2092_v1  ;;  %v516_v1 = vrot.slane %v511_v59, %v2547_v52 }
  0x98   :  { %1372 = vmatpush1.bf16.msra.mxu0 %v2087_v2  ;;  %1425 = vmatpush1.bf16.msra.mxu1 %v2090_v3  ;;  %v524_v3 = vrot.slane %v511_v59, %v2549_v53 }
  0x99   :  { %1373 = vmatprep.subr.bf16.mxu0 %v2095_v4  ;;  %1426 = vmatprep.subr.bf16.mxu1 %v2098_v5 }
  0x9c   :  { %1374 = vmatpush1.bf16.msra.mxu0 %v2093_v6  ;;  %1427 = vmatpush1.bf16.msra.mxu1 %v2096_v7  ;;  %v2567_v7 = vrot.slane %v511_v59, %v2551_v55 }
  0x9d   :  { %1375 = vmatprep.subr.bf16.mxu0 %v2101_v8  ;;  %1428 = vmatprep.subr.bf16.mxu1 %v2104_v9  ;;  %v2571_v9 = vrot.slane %v511_v59, %v2553_v56 }
  0xa0   :  { %1376 = vmatpush1.bf16.msra.mxu0 %v2099_v10  ;;  %1429 = vmatpush1.bf16.msra.mxu1 %v2102_v11 }
  0xa1   :  { %1377 = vmatprep.subr.bf16.mxu0 %v2107_v12  ;;  %1430 = vmatprep.subr.bf16.mxu1 %v2110_v13 }
  0xa4   :  { %1378 = vmatpush1.bf16.msra.mxu0 %v2105_v14  ;;  %1431 = vmatpush1.bf16.msra.mxu1 %v2108_v15 }
  0xa5   :  { %1379 = vmatprep.subr.bf16.mxu0 %v2113_v16  ;;  %1432 = vmatprep.subr.bf16.mxu1 %v2116_v17 }
  0xa8   :  { %1380 = vmatpush2.bf16.msra.mxu0 %v2111_v18  ;;  %1433 = vmatpush2.bf16.msra.mxu1 %v2114_v19 }
  0xa9   :  { %1381 = vmatprep.subr.bf16.mxu0 %v2119_v20  ;;  %1434 = vmatprep.subr.bf16.mxu1 %v2122_v21 }
  0xac   :  { %1382 = vmatpush2.bf16.msra.mxu0 %v2117_v22  ;;  %1435 = vmatpush2.bf16.msra.mxu1 %v2120_v23 }
  0xad   :  { %1383 = vmatprep.subr.bf16.mxu0 %v2125_v24  ;;  %1436 = vmatprep.subr.bf16.mxu1 %v2128_v25 }
  0xb0   :  { %1384 = vmatpush2.bf16.msra.mxu0 %v2123_v26  ;;  %1437 = vmatpush2.bf16.msra.mxu1 %v2126_v27 }
  0xb1   :  { %1385 = vmatprep.subr.bf16.mxu0 %v2131_v28  ;;  %1438 = vmatprep.subr.bf16.mxu1 %v2134_v29 }
  0xb4   :  { %1386 = vmatpush2.bf16.msra.mxu0 %v2129_v30  ;;  %1439 = vmatpush2.bf16.msra.mxu1 %v2132_v31 }
  0xb5   :  { %1387 = vmatprep.subr.bf16.mxu0 %v2137_v32  ;;  %1440 = vmatprep.subr.bf16.mxu1 %v2140_v33 }
  0xb8   :  { %1388 = vmatpush2.bf16.msra.mxu0 %v2135_v34  ;;  %1441 = vmatpush2.bf16.msra.mxu1 %v2138_v35 }
  0xb9   :  { %1389 = vmatprep.subr.bf16.mxu0 %v2143_v36  ;;  %1442 = vmatprep.subr.bf16.mxu1 %v2146_v37 }
  0xbc   :  { %1390 = vmatpush2.bf16.msra.mxu0 %v2141_v38  ;;  %1443 = vmatpush2.bf16.msra.mxu1 %v2144_v39 }
  0xbd   :  { %1391 = vmatprep.subr.bf16.mxu0 %v2149_v40  ;;  %1444 = vmatprep.subr.bf16.mxu1 %v2152_v41 }
  0xc0   :  { %1392 = vmatpush2.bf16.msra.mxu0 %v2147_v42  ;;  %1445 = vmatpush2.bf16.msra.mxu1 %v2150_v43 }
  0xc1   :  { %1393 = vmatprep.subr.bf16.mxu0 %v2155_v44  ;;  %1446 = vmatprep.subr.bf16.mxu1 %v2158_v45 }
  0xc4   :  { %1394 = vmatpush2.bf16.msra.mxu0 %v2153_v46  ;;  %1447 = vmatpush2.bf16.msra.mxu1 %v2156_v47 }
  0xc5   :  { %1469 = vmatprep.subr.bf16.mxu0 %v2161_v48  ;;  %1522 = vmatprep.subr.bf16.mxu1 %v2164_v49 }
 0x146   :  { %v401_v62 = vpop.f32.mrf.mxu0  ;;  %v454_v63 = vpop.f32.mrf.mxu1 }
 0x147   :  { %v495_v0 = vmul.f32 %v478_v57, %v401_v62  ;;  %v497_v2 = vmul.f32 %v486_v58, %v454_v63 }
 0x148   :  { %v403_v4 = vpop.f32.mrf.mxu0  ;;  %v456_v5 = vpop.f32.mrf.mxu1 }
 0x149   :  { %v496_v6 = vmul.f32 %v2558_v60, %v403_v4  ;;  %v498_v8 = vmul.f32 %v2561_v61, %v456_v5  ;;  %v533_v12 = vadd.f32 %v516_v1, %v495_v0  ;;  %v535_v13 = vadd.f32 %v524_v3, %v497_v2  ;;  %v2159_v0 = vld [vmem:[#allocation7 + $0xe8] ss:$16 sps:$4 sm:$0xff]  }
 0x14a   :  { %v405_v10 = vpop.f32.mrf.mxu0  ;;  %v458_v11 = vpop.f32.mrf.mxu1  ;;  %v2162_v2 = vld [vmem:[#allocation7 + $0x2e8] ss:$16 sps:$4 sm:$0xff]  }
 0x14b   :  { %v499_v14 = vmul.f32 %v478_v57, %v405_v10  ;;  %v501_v15 = vmul.f32 %v486_v58, %v458_v11  ;;  %v534_v18 = vadd.f32 %v2567_v7, %v496_v6  ;;  %v536_v19 = vadd.f32 %v2571_v9, %v498_v8  ;;  %v2167_v10 = vld [vmem:[#allocation7 + $0xcc] ss:$16 sps:$4 sm:$0xff]  }
 0x14c   :  { %v407_v16 = vpop.f32.mrf.mxu0  ;;  %v460_v17 = vpop.f32.mrf.mxu1  ;;  %v549_v30 = vmax.f32 %v533_v12, 0.0  ;;  %v551_v31 = vmax.f32 %v535_v13, 0.0  ;;  %v2170_v11 = vld [vmem:[#allocation7 + $0x2cc] ss:$16 sps:$4 sm:$0xff]  }
 0x14d   :  { %v500_v20 = vmul.f32 %v2558_v60, %v407_v16  ;;  %v502_v21 = vmul.f32 %v2561_v61, %v460_v17  ;;  %v537_v22 = vadd.f32 %v516_v1, %v499_v14  ;;  %v539_v23 = vadd.f32 %v524_v3, %v501_v15 }
 0x14e   :  { %v411_v24 = vpop.f32.mrf.mxu0  ;;  %v464_v25 = vpop.f32.mrf.mxu1  ;;  %v550_v36 = vmax.f32 %v534_v18, 0.0  ;;  %v552_v37 = vmax.f32 %v536_v19, 0.0  ;;  %v2173_v18 = vld [vmem:[#allocation7 + $0xac] ss:$16 sps:$4 sm:$0xff]  }
 0x14f   :  { %v538_v26 = vadd.f32 %v2567_v7, %v500_v20  ;;  %v540_v27 = vadd.f32 %v2571_v9, %v502_v21  ;;  %v503_v28 = vmul.f32 %v478_v57, %v411_v24  ;;  %v505_v29 = vmul.f32 %v486_v58, %v464_v25  ;;  %v2176_v19 = vld [vmem:[#allocation7 + $0x2ac] ss:$16 sps:$4 sm:$0xff]  }
 0x150   :  { %v553_v32 = vmax.f32 %v537_v22, 0.0  ;;  %v555_v33 = vmax.f32 %v539_v23, 0.0  ;;  %v413_v34 = vpop.f32.mrf.mxu0  ;;  %v466_v35 = vpop.f32.mrf.mxu1  ;;  %v2171_v22 = vld [vmem:[#allocation7 + $0xa8] ss:$16 sps:$4 sm:$0xff]   ;;  %v2179_v24 = vld [vmem:[#allocation7 + $0x8c] ss:$16 sps:$4 sm:$0xff]  }
 0x151   :  { %v554_v38 = vmax.f32 %v538_v26, 0.0  ;;  %v556_v39 = vmax.f32 %v540_v27, 0.0  ;;  %v541_v40 = vadd.f32 %v516_v1, %v503_v28  ;;  %v543_v41 = vadd.f32 %v524_v3, %v505_v29  ;;  %v2174_v23 = vld [vmem:[#allocation7 + $0x2a8] ss:$16 sps:$4 sm:$0xff]   ;;  %v2182_v25 = vld [vmem:[#allocation7 + $0x28c] ss:$16 sps:$4 sm:$0xff]  }
 0x152   :  { %v504_v42 = vmul.f32 %v2558_v60, %v413_v34  ;;  %v506_v43 = vmul.f32 %v2561_v61, %v466_v35  ;;  %v415_v44 = vpop.f32.mrf.mxu0  ;;  %v468_v45 = vpop.f32.mrf.mxu1  ;;  %v2581_v46 = vpack.c.bf16 %v553_v32, %v549_v30  ;;  %v2583_v47 = vpack.c.bf16 %v555_v33, %v551_v31  ;;  %v2177_v26 = vld [vmem:[#allocation7 + $0x88] ss:$16 sps:$4 sm:$0xff]   ;;  %v2185_v28 = vld [vmem:[#allocation7 + $0x6c] ss:$16 sps:$4 sm:$0xff]  }
 0x153   :  { %v507_v48 = vmul.f32 %v478_v57, %v415_v44  ;;  %v509_v49 = vmul.f32 %v486_v58, %v468_v45  ;;  %v566_v62 = vpack.c.bf16 %v554_v38, %v550_v36  ;;  %v568_v63 = vpack.c.bf16 %v556_v39, %v552_v37  ;;  %v2180_v27 = vld [vmem:[#allocation7 + $0x288] ss:$16 sps:$4 sm:$0xff]   ;;  %v2188_v29 = vld [vmem:[#allocation7 + $0x26c] ss:$16 sps:$4 sm:$0xff]  }
 0x154   :  { %v542_v50 = vadd.f32 %v2567_v7, %v504_v42  ;;  %v544_v51 = vadd.f32 %v2571_v9, %v506_v43  ;;  %v417_v54 = vpop.f32.mrf.mxu0  ;;  %v470_v59 = vpop.f32.mrf.mxu1  ;;  %v557_v57 = vmax.f32 %v541_v40, 0.0  ;;  %v559_v58 = vmax.f32 %v543_v41, 0.0  ;;  %v2183_v30 = vld [vmem:[#allocation7 + $0x68] ss:$16 sps:$4 sm:$0xff]   ;;  %v2191_v32 = vld [vmem:[#allocation7 + $0x4c] ss:$16 sps:$4 sm:$0xff]  }
 0x155   :  { %v545_v4 = vadd.f32 %v516_v1, %v507_v48  ;;  %v547_v5 = vadd.f32 %v524_v3, %v509_v49  ;;  %v508_v6 = vmul.f32 %v2558_v60, %v417_v54  ;;  %v510_v8 = vmul.f32 %v2561_v61, %v470_v59  ;;  %1395 = vmatprep.mubr.bf16.mxu0 %v566_v62  ;;  %v2165_v60 = vld [vmem:[#allocation7 + $0xc8] ss:$16 sps:$4 sm:$0xff]   ;;  %v2194_v33 = vld [vmem:[#allocation7 + $0x24c] ss:$16 sps:$4 sm:$0xff]  }
 0x156   :  { %v558_v12 = vmax.f32 %v542_v50, 0.0  ;;  %v560_v13 = vmax.f32 %v544_v51, 0.0  ;;  %1448 = vmatprep.mubr.bf16.mxu1 %v568_v63  ;;  %1396 = vmatmul.mubr.bf16.vlgmr.msra.gmra.mxu0 %v2581_v46  ;;  %v2168_v61 = vld [vmem:[#allocation7 + $0x2c8] ss:$16 sps:$4 sm:$0xff]   ;;  %v2197_v36 = vld [vmem:[#allocation7 + $0x2c] ss:$16 sps:$4 sm:$0xff]  }
 0x157   :  { %v561_v14 = vmax.f32 %v545_v4, 0.0  ;;  %v563_v15 = vmax.f32 %v547_v5, 0.0  ;;  %v546_v16 = vadd.f32 %v2567_v7, %v508_v6  ;;  %v548_v17 = vadd.f32 %v2571_v9, %v510_v8  ;;  %1449 = vmatmul.mubr.bf16.vlgmr.msra.gmra.mxu1 %v2583_v47  ;;  %1470 = vmatpush1.bf16.msra.mxu0 %v2159_v0  ;;  %v2186_v31 = vld [vmem:[#allocation7 + $0x268] ss:$16 sps:$4 sm:$0xff]   ;;  %v2200_v37 = vld [vmem:[#allocation7 + $0x22c] ss:$16 sps:$4 sm:$0xff]  }
 0x158   :  { %1523 = vmatpush1.bf16.msra.mxu1 %v2162_v2  ;;  %1471 = vmatprep.subr.bf16.mxu0 %v2167_v10  ;;  %v2189_v34 = vld [vmem:[#allocation7 + $0x48] ss:$16 sps:$4 sm:$0xff]   ;;  %v2203_v40 = vld [vmem:[#allocation7 + $0xc] ss:$16 sps:$4 sm:$0xff]  }
 0x159   :  { %v562_v1 = vmax.f32 %v546_v16, 0.0  ;;  %v564_v3 = vmax.f32 %v548_v17, 0.0  ;;  %1524 = vmatprep.subr.bf16.mxu1 %v2170_v11  ;;  %v2597_v7 = vpack.c.bf16 %v561_v14, %v557_v57  ;;  %v2599_v9 = vpack.c.bf16 %v563_v15, %v559_v58  ;;  %v2192_v35 = vld [vmem:[#allocation7 + $0x248] ss:$16 sps:$4 sm:$0xff]   ;;  %v2206_v41 = vld [vmem:[#allocation7 + $0x20c] ss:$16 sps:$4 sm:$0xff]  }
 0x15a   :  { %v2195_v38 = vld [vmem:[#allocation7 + $0x28] ss:$16 sps:$4 sm:$0xff]   ;;  %v2209_v44 = vld [vmem:[#allocation7 + $0x1ec] ss:$16 sps:$4 sm:$0xff]  }
 0x15b   :  { %v2593_v20 = vpack.c.bf16 %v562_v1, %v558_v12  ;;  %v2595_v21 = vpack.c.bf16 %v564_v3, %v560_v13  ;;  %1472 = vmatpush1.bf16.msra.mxu0 %v2165_v60  ;;  %v2198_v39 = vld [vmem:[#allocation7 + $0x228] ss:$16 sps:$4 sm:$0xff]   ;;  %v2212_v45 = vld [vmem:[#allocation7 + $0x3ec] ss:$16 sps:$4 sm:$0xff]  }
 0x15c   :  { %1525 = vmatpush1.bf16.msra.mxu1 %v2168_v61  ;;  %1473 = vmatprep.subr.bf16.mxu0 %v2173_v18  ;;  %v2201_v42 = vld [vmem:[#allocation7 + $0x8] ss:$16 sps:$4 sm:$0xff]   ;;  %v2215_v50 = vld [vmem:[#allocation7 + $0x1cc] ss:$16 sps:$4 sm:$0xff]  }
 0x15d   :  { %1405 = vmatprep.mubr.bf16.mxu0 %v2593_v20  ;;  %1458 = vmatprep.mubr.bf16.mxu1 %v2595_v21  ;;  %v2204_v43 = vld [vmem:[#allocation7 + $0x208] ss:$16 sps:$4 sm:$0xff]   ;;  %v2218_v51 = vld [vmem:[#allocation7 + $0x3cc] ss:$16 sps:$4 sm:$0xff]  }
 0x15e   :  { %1526 = vmatprep.subr.bf16.mxu1 %v2176_v19  ;;  %1406 = vmatmul.mubr.bf16.gmra.mxu0 %v2597_v7  ;;  %v2207_v48 = vld [vmem:[#allocation7 + $0x1e8] ss:$16 sps:$4 sm:$0xff]   ;;  %v2227_v4 = vld [vmem:[#allocation7 + $0x18c] ss:$16 sps:$4 sm:$0xff]  }
 0x15f   :  { %1459 = vmatmul.mubr.bf16.gmra.mxu1 %v2599_v9  ;;  %1474 = vmatpush1.bf16.msra.mxu0 %v2171_v22  ;;  %v2210_v49 = vld [vmem:[#allocation7 + $0x3e8] ss:$16 sps:$4 sm:$0xff]   ;;  %v2230_v5 = vld [vmem:[#allocation7 + $0x38c] ss:$16 sps:$4 sm:$0xff]  }
 0x160   :  { %1527 = vmatpush1.bf16.msra.mxu1 %v2174_v23  ;;  %1501 = vmatprep.mubr.bf16.mxu0 %v566_v62  ;;  %v2213_v54 = vld [vmem:[#allocation7 + $0x1c8] ss:$16 sps:$4 sm:$0xff]   ;;  %v2221_v62 = vld [vmem:[#allocation7 + $0x1ac] ss:$16 sps:$4 sm:$0xff]  }
 0x161   :  { %1554 = vmatprep.mubr.bf16.mxu1 %v568_v63  ;;  %1475 = vmatprep.subr.bf16.mxu0 %v2179_v24  ;;  %v2216_v59 = vld [vmem:[#allocation7 + $0x3c8] ss:$16 sps:$4 sm:$0xff]   ;;  %v2224_v63 = vld [vmem:[#allocation7 + $0x3ac] ss:$16 sps:$4 sm:$0xff]  }
 0x162   :  { %1528 = vmatprep.subr.bf16.mxu1 %v2182_v25  ;;  %v2219_v0 = vld [vmem:[#allocation7 + $0x1a8] ss:$16 sps:$4 sm:$0xff]   ;;  %v2233_v10 = vld [vmem:[#allocation7 + $0x16c] ss:$16 sps:$4 sm:$0xff]  }
 0x163   :  { %1476 = vmatpush1.bf16.msra.mxu0 %v2177_v26  ;;  %v2222_v2 = vld [vmem:[#allocation7 + $0x3a8] ss:$16 sps:$4 sm:$0xff]   ;;  %v2236_v11 = vld [vmem:[#allocation7 + $0x36c] ss:$16 sps:$4 sm:$0xff]  }
 0x164   :  { %1529 = vmatpush1.bf16.msra.mxu1 %v2180_v27  ;;  %1477 = vmatprep.subr.bf16.mxu0 %v2185_v28  ;;  %v2225_v6 = vld [vmem:[#allocation7 + $0x188] ss:$16 sps:$4 sm:$0xff]   ;;  %v2239_v12 = vld [vmem:[#allocation7 + $0x14c] ss:$16 sps:$4 sm:$0xff]  }
 0x165   :  { %1530 = vmatprep.subr.bf16.mxu1 %v2188_v29  ;;  %v2228_v8 = vld [vmem:[#allocation7 + $0x388] ss:$16 sps:$4 sm:$0xff]   ;;  %v2242_v13 = vld [vmem:[#allocation7 + $0x34c] ss:$16 sps:$4 sm:$0xff]  }
 0x166   :  { %v2231_v57 = vld [vmem:[#allocation7 + $0x168] ss:$16 sps:$4 sm:$0xff]   ;;  %v2245_v16 = vld [vmem:[#allocation7 + $0x12c] ss:$16 sps:$4 sm:$0xff]  }
 0x167   :  { %1478 = vmatpush1.bf16.msra.mxu0 %v2183_v30  ;;  %v2234_v58 = vld [vmem:[#allocation7 + $0x368] ss:$16 sps:$4 sm:$0xff]   ;;  %v2248_v17 = vld [vmem:[#allocation7 + $0x32c] ss:$16 sps:$4 sm:$0xff]  }
 0x168   :  { %1531 = vmatpush1.bf16.msra.mxu1 %v2186_v31  ;;  %1479 = vmatprep.subr.bf16.mxu0 %v2191_v32  ;;  %v2237_v14 = vld [vmem:[#allocation7 + $0x148] ss:$16 sps:$4 sm:$0xff]   ;;  %v2251_v1 = vld [vmem:[#allocation7 + $0x10c] ss:$16 sps:$4 sm:$0xff]   ;;  %v701_v31 = vld [vmem:[#allocation9] sm:$0xf] }
 0x169   :  { %1532 = vmatprep.subr.bf16.mxu1 %v2194_v33  ;;  %v2240_v15 = vld [vmem:[#allocation7 + $0x348] ss:$16 sps:$4 sm:$0xff]   ;;  %v2254_v3 = vld [vmem:[#allocation7 + $0x30c] ss:$16 sps:$4 sm:$0xff]  }
 0x16a   :  { %v2243_v60 = vld [vmem:[#allocation7 + $0x128] ss:$16 sps:$4 sm:$0xff]  }
 0x16b   :  { %1480 = vmatpush1.bf16.msra.mxu0 %v2189_v34  ;;  %v2246_v61 = vld [vmem:[#allocation7 + $0x328] ss:$16 sps:$4 sm:$0xff]  }
 0x16c   :  { %1533 = vmatpush1.bf16.msra.mxu1 %v2192_v35  ;;  %1481 = vmatprep.subr.bf16.mxu0 %v2197_v36  ;;  %v2249_v18 = vld [vmem:[#allocation7 + $0x108] ss:$16 sps:$4 sm:$0xff]  }
 0x16d   :  { %1534 = vmatprep.subr.bf16.mxu1 %v2200_v37  ;;  %v2252_v19 = vld [vmem:[#allocation7 + $0x308] ss:$16 sps:$4 sm:$0xff]  }
 0x16f   :  { %1482 = vmatpush1.bf16.msra.mxu0 %v2195_v38  ;;  %v714_v38 = vrot.slane %v701_v31, %v2549_v53 }
 0x170   :  { %1535 = vmatpush1.bf16.msra.mxu1 %v2198_v39  ;;  %1483 = vmatprep.subr.bf16.mxu0 %v2203_v40 }
 0x171   :  { %1536 = vmatprep.subr.bf16.mxu1 %v2206_v41 }
 0x173   :  { %1484 = vmatpush1.bf16.msra.mxu0 %v2201_v42 }
 0x174   :  { %1537 = vmatpush1.bf16.msra.mxu1 %v2204_v43  ;;  %1485 = vmatprep.subr.bf16.mxu0 %v2209_v44  ;;  %v718_v44 = vrot.slane %v701_v31, %v2553_v56 }
 0x175   :  { %1538 = vmatprep.subr.bf16.mxu1 %v2212_v45 }
 0x177   :  { %1486 = vmatpush2.bf16.msra.mxu0 %v2207_v48 }
 0x178   :  { %1539 = vmatpush2.bf16.msra.mxu1 %v2210_v49  ;;  %1487 = vmatprep.subr.bf16.mxu0 %v2215_v50 }
 0x179   :  { %1540 = vmatprep.subr.bf16.mxu1 %v2218_v51 }
 0x17b   :  { %1488 = vmatpush2.bf16.msra.mxu0 %v2213_v54 }
 0x17c   :  { %1541 = vmatpush2.bf16.msra.mxu1 %v2216_v59  ;;  %1489 = vmatprep.subr.bf16.mxu0 %v2221_v62 }
 0x17d   :  { %1542 = vmatprep.subr.bf16.mxu1 %v2224_v63 }
 0x17f   :  { %1490 = vmatpush2.bf16.msra.mxu0 %v2219_v0 }
 0x180   :  { %1543 = vmatpush2.bf16.msra.mxu1 %v2222_v2  ;;  %1491 = vmatprep.subr.bf16.mxu0 %v2227_v4 }
 0x181   :  { %1544 = vmatprep.subr.bf16.mxu1 %v2230_v5 }
 0x183   :  { %1492 = vmatpush2.bf16.msra.mxu0 %v2225_v6 }
 0x184   :  { %1545 = vmatpush2.bf16.msra.mxu1 %v2228_v8  ;;  %1493 = vmatprep.subr.bf16.mxu0 %v2233_v10 }
 0x185   :  { %1546 = vmatprep.subr.bf16.mxu1 %v2236_v11 }
 0x187   :  { %1494 = vmatpush2.bf16.msra.mxu0 %v2231_v57 }
 0x188   :  { %1547 = vmatpush2.bf16.msra.mxu1 %v2234_v58  ;;  %1495 = vmatprep.subr.bf16.mxu0 %v2239_v12 }
 0x189   :  { %1548 = vmatprep.subr.bf16.mxu1 %v2242_v13 }
 0x18b   :  { %1496 = vmatpush2.bf16.msra.mxu0 %v2237_v14 }
 0x18c   :  { %1549 = vmatpush2.bf16.msra.mxu1 %v2240_v15  ;;  %1497 = vmatprep.subr.bf16.mxu0 %v2245_v16 }
 0x18d   :  { %1550 = vmatprep.subr.bf16.mxu1 %v2248_v17 }
 0x18f   :  { %1498 = vmatpush2.bf16.msra.mxu0 %v2243_v60 }
 0x190   :  { %1551 = vmatpush2.bf16.msra.mxu1 %v2246_v61  ;;  %1499 = vmatprep.subr.bf16.mxu0 %v2251_v1 }
 0x191   :  { %1552 = vmatprep.subr.bf16.mxu1 %v2254_v3 }
 0x193   :  { %1500 = vmatpush2.bf16.msra.mxu0 %v2249_v18 }
 0x194   :  { %1553 = vmatpush2.bf16.msra.mxu1 %v2252_v19 }
 0x196   :  { %1502 = vmatmul.mubr.bf16.vlgmr.msra.gmra.mxu0 %v2581_v46 }
 0x197   :  { %1555 = vmatmul.mubr.bf16.vlgmr.msra.gmra.mxu1 %v2583_v47  ;;  %1511 = vmatprep.mubr.bf16.mxu0 %v2593_v20  ;;  %v710_v47 = vrot.slane %v701_v31, %v2551_v55 }
 0x198   :  { %1564 = vmatprep.mubr.bf16.mxu1 %v2595_v21  ;;  %v706_v21 = vrot.slane %v701_v31, %v2547_v52 }
 0x19e   :  { %1512 = vmatmul.mubr.bf16.gmra.mxu0 %v2597_v7 }
 0x19f   :  { %1565 = vmatmul.mubr.bf16.gmra.mxu1 %v2599_v9 }
 0x216   :  { %v1397_v22 = vpop.f32.mrf.mxu0 }
 0x217   :  { %v1450_v23 = vpop.f32.mrf.mxu1  ;;  %v1398_v35 = vadd.f32 %v1397_v22, %v706_v21 }
 0x218   :  { %v1399_v24 = vpop.f32.mrf.mxu0 }
 0x219   :  { %v1452_v25 = vpop.f32.mrf.mxu1  ;;  %v1400_v7 = vadd.f32 %v1399_v24, %v710_v47  ;;  %v2618_v42 = vadd.f32 %v1450_v23, %v1398_v35 }
 0x21a   :  { %v1401_v26 = vpop.f32.mrf.mxu0 }
 0x21b   :  { %v1454_v27 = vpop.f32.mrf.mxu1  ;;  %v1402_v36 = vadd.f32 %v1401_v26, %v706_v21  ;;  %v2613_v37 = vadd.f32 %v1452_v25, %v1400_v7  ;;  %v1575_v0 = vmax.f32 %v2618_v42, 0.0 }
 0x21c   :  { %v1403_v28 = vpop.f32.mrf.mxu0 }
 0x21d   :  { %v1456_v29 = vpop.f32.mrf.mxu1  ;;  %v1404_v33 = vadd.f32 %v1403_v28, %v710_v47  ;;  %v2620_v43 = vadd.f32 %v1454_v27, %v1402_v36  ;;  %v1576_v51 = vmax.f32 %v2613_v37, 0.0 }
 0x21e   :  { %v1407_v30 = vpop.f32.mrf.mxu0 }
 0x21f   :  { %v1460_v46 = vpop.f32.mrf.mxu1  ;;  %v2616_v39 = vadd.f32 %v1456_v29, %v1404_v33  ;;  %v1408_v45 = vadd.f32 %v1407_v30, %v706_v21  ;;  %v1579_v2 = vmax.f32 %v2620_v43, 0.0  ;;  %v1593_v12 = vadd.f32 %v1576_v51, %v1575_v0 }
 0x220   :  { %v1409_v20 = vpop.f32.mrf.mxu0 }
 0x221   :  { %v1462_v32 = vpop.f32.mrf.mxu1  ;;  %v1410_v48 = vadd.f32 %v1409_v20, %v710_v47  ;;  %v1580_v59 = vmax.f32 %v2616_v39, 0.0  ;;  %v2629_v6 = vadd.f32 %v1460_v46, %v1408_v45 }
 0x222   :  { %v1411_v9 = vpop.f32.mrf.mxu0 }
 0x223   :  { %v1464_v34 = vpop.f32.mrf.mxu1  ;;  %v1412_v8 = vadd.f32 %v1411_v9, %v706_v21  ;;  %v2631_v10 = vadd.f32 %v1462_v32, %v1410_v48  ;;  %v1598_v16 = vadd.f32 %v1580_v59, %v1579_v2  ;;  %v1583_v19 = vmax.f32 %v2629_v6, 0.0 }
 0x224   :  { %v1413_v40 = vpop.f32.mrf.mxu0 }
 0x225   :  { %v1466_v41 = vpop.f32.mrf.mxu1  ;;  %v1414_v11 = vadd.f32 %v1413_v40, %v710_v47  ;;  %v1584_v22 = vmax.f32 %v2631_v10, 0.0  ;;  %v2644_v23 = vadd.f32 %v1464_v34, %v1412_v8 }
 0x227   :  { %v2646_v24 = vadd.f32 %v1466_v41, %v1414_v11  ;;  %v1603_v7 = vadd.f32 %v1584_v22, %v1583_v19  ;;  %v1587_v33 = vmax.f32 %v2644_v23, 0.0 }
 0x229   :  { %v1588_v9 = vmax.f32 %v2646_v24, 0.0 }
 0x256   :  { %v1503_v49 = vpop.f32.mrf.mxu0 }
 0x257   :  { %v1556_v50 = vpop.f32.mrf.mxu1  ;;  %v1504_v54 = vadd.f32 %v1503_v49, %v714_v38 }
 0x258   :  { %v1505_v62 = vpop.f32.mrf.mxu0 }
 0x259   :  { %v1558_v63 = vpop.f32.mrf.mxu1  ;;  %v2627_v4 = vadd.f32 %v1556_v50, %v1504_v54  ;;  %v1506_v5 = vadd.f32 %v1505_v62, %v718_v44 }
 0x25a   :  { %v1507_v57 = vpop.f32.mrf.mxu0 }
 0x25b   :  { %v1560_v58 = vpop.f32.mrf.mxu1  ;;  %v1577_v13 = vmax.f32 %v2627_v4, 0.0  ;;  %v1559_v14 = vadd.f32 %v1558_v63, %v1506_v5  ;;  %v1508_v15 = vadd.f32 %v1507_v57, %v714_v38  ;;  %v1608_v4 = vadd.f32 %v1588_v9, %v1587_v33 }
 0x25c   :  { %v1509_v17 = vpop.f32.mrf.mxu0 }
 0x25d   :  { %v1562_v60 = vpop.f32.mrf.mxu1  ;;  %v1578_v61 = vmax.f32 %v1559_v14, 0.0  ;;  %v1561_v1 = vadd.f32 %v1560_v58, %v1508_v15  ;;  %v1510_v3 = vadd.f32 %v1509_v17, %v718_v44  ;;  %v1594_v18 = vadd.f32 %v1593_v12, %v1577_v13 }
 0x25e   :  { %v1513_v25 = vpop.f32.mrf.mxu0 }
 0x25f   :  { %v1566_v26 = vpop.f32.mrf.mxu1  ;;  %v1581_v27 = vmax.f32 %v1561_v1, 0.0  ;;  %v1563_v28 = vadd.f32 %v1562_v60, %v1510_v3  ;;  %v1514_v29 = vadd.f32 %v1513_v25, %v714_v38  ;;  %v1595_v30 = vadd.f32 %v1594_v18, %v1578_v61 }
 0x260   :  { %v1515_v46 = vpop.f32.mrf.mxu0 }
 0x261   :  { %v1568_v31 = vpop.f32.mrf.mxu1  ;;  %v1599_v47 = vadd.f32 %v1598_v16, %v1581_v27  ;;  %v1582_v20 = vmax.f32 %v1563_v28, 0.0  ;;  %v1567_v32 = vadd.f32 %v1566_v26, %v1514_v29  ;;  %v1516_v21 = vadd.f32 %v1515_v46, %v718_v44  ;;  %1596 = vadd.xlane.f32.xlu0 %v1595_v30 }
 0x262   :  { %v1517_v34 = vpop.f32.mrf.mxu0 }
 0x263   :  { %v1570_v35 = vpop.f32.mrf.mxu1  ;;  %v1585_v36 = vmax.f32 %v1567_v32, 0.0  ;;  %v1569_v40 = vadd.f32 %v1568_v31, %v1516_v21  ;;  %v1518_v41 = vadd.f32 %v1517_v34, %v714_v38  ;;  %v1600_v45 = vadd.f32 %v1599_v47, %v1582_v20 }
 0x264   :  { %v1519_v48 = vpop.f32.mrf.mxu0 }
 0x265   :  { %v1586_v49 = vmax.f32 %v1569_v40, 0.0  ;;  %v1571_v50 = vadd.f32 %v1570_v35, %v1518_v41  ;;  %v1520_v54 = vadd.f32 %v1519_v48, %v718_v44  ;;  %1601 = vadd.xlane.f32.xlu0 %v1600_v45  ;;  %v1604_v62 = vadd.f32 %v1603_v7, %v1585_v36  ;;  %v1572_v63 = vpop.f32.mrf.mxu1 }
 0x267   :  { %v1589_v5 = vmax.f32 %v1571_v50, 0.0  ;;  %v1573_v8 = vadd.f32 %v1572_v63, %v1520_v54  ;;  %v1605_v11 = vadd.f32 %v1604_v62, %v1586_v49 }
 0x269   :  { %v1609_v57 = vadd.f32 %v1608_v4, %v1589_v5  ;;  %v1590_v58 = vmax.f32 %v1573_v8, 0.0  ;;  %1606 = vadd.xlane.f32.xlu1 %v1605_v11 }
 0x26b   :  { %v1610_v12 = vadd.f32 %v1609_v57, %v1590_v58 }
 0x26d   :  { %1611 = vadd.xlane.f32.xlu1 %v1610_v12 }
 0x2ea   :  { %v1597_v14 = vpop.xlane.xlu0 %1596 }
 0x2eb   :  { %v1614_v15 = vmul.f32 0.001953125, %v1597_v14 }
 0x2ed   :  { %v2656_v38 = vsub.f32 %v1575_v0, %v1614_v15  ;;  %v2660_v44 = vsub.f32 %v1576_v51, %v1614_v15  ;;  %v2662_v16 = vsub.f32 %v1577_v13, %v1614_v15  ;;  %v2664_v60 = vsub.f32 %v1578_v61, %v1614_v15 }
 0x2ee   :  { %v1602_v17 = vpop.xlane.xlu0 %1601 }
 0x2ef   :  { %v1615_v1 = vmul.f32 0.001953125, %v1602_v17  ;;  %v1634_v3 = vmul.f32 %v2656_v38, %v2656_v38  ;;  %v1635_v18 = vmul.f32 %v2660_v44, %v2660_v44  ;;  %v1636_v42 = vmul.f32 %v2662_v16, %v2662_v16  ;;  %v1591_v17 = vld [vmem:[#allocation10] sm:$0xf] }
 0x2f0   :  { %v1637_v23 = vmul.f32 %v2664_v60, %v2664_v60 }
 0x2f1   :  { %v2674_v37 = vsub.f32 %v1579_v2, %v1615_v1  ;;  %v2678_v51 = vsub.f32 %v1580_v59, %v1615_v1  ;;  %v1650_v0 = vadd.f32 %v1635_v18, %v1634_v3  ;;  %v2680_v13 = vsub.f32 %v1581_v27, %v1615_v1  ;;  %v1592_v3 = vld [vmem:[#allocation12] sm:$0xf] }
 0x2f2   :  { %v1607_v61 = vpop.xlane.xlu1 %1606  ;;  %v2684_v24 = vsub.f32 %v1582_v20, %v1615_v1 }
 0x2f3   :  { %v1616_v25 = vmul.f32 0.001953125, %v1607_v61  ;;  %v1651_v26 = vadd.f32 %v1650_v0, %v1636_v42  ;;  %v1638_v43 = vmul.f32 %v2674_v37, %v2674_v37  ;;  %v1639_v2 = vmul.f32 %v2678_v51, %v2678_v51 }
 0x2f4   :  { %v1640_v39 = vmul.f32 %v2680_v13, %v2680_v13  ;;  %v1641_v46 = vmul.f32 %v2684_v24, %v2684_v24  ;;  %v2731_v42 = vrot.slane %v1591_v17, %v2547_v52  ;;  %v2734_v0 = vrot.slane %v1591_v17, %v2549_v53 }
 0x2f5   :  { %v2694_v59 = vsub.f32 %v1583_v19, %v1616_v25  ;;  %v2698_v27 = vsub.f32 %v1584_v22, %v1616_v25  ;;  %v1652_v28 = vadd.f32 %v1651_v26, %v1637_v23  ;;  %v1655_v29 = vadd.f32 %v1639_v2, %v1638_v43 }
 0x2f6   :  { %v1612_v30 = vpop.xlane.xlu1 %1611  ;;  %v2702_v31 = vsub.f32 %v1585_v36, %v1616_v25  ;;  %v2704_v47 = vsub.f32 %v1586_v49, %v1616_v25  ;;  %v2737_v61 = vrot.slane %v1591_v17, %v2551_v55  ;;  %v2740_v23 = vrot.slane %v1591_v17, %v2553_v56 }
 0x2f7   :  { %v1617_v20 = vmul.f32 0.001953125, %v1612_v30  ;;  %1653 = vadd.xlane.f32.xlu0 %v1652_v28  ;;  %v1656_v32 = vadd.f32 %v1655_v29, %v1640_v39  ;;  %v1642_v6 = vmul.f32 %v2694_v59, %v2694_v59  ;;  %v1643_v10 = vmul.f32 %v2698_v27, %v2698_v27 }
 0x2f8   :  { %v1644_v19 = vmul.f32 %v2702_v31, %v2702_v31  ;;  %v1645_v35 = vmul.f32 %v2704_v47, %v2704_v47  ;;  %v2743_v26 = vrot.slane %v1592_v3, %v2547_v52  ;;  %v2746_v43 = vrot.slane %v1592_v3, %v2549_v53 }
 0x2f9   :  { %v2712_v22 = vsub.f32 %v1587_v33, %v1617_v20  ;;  %v2714_v21 = vsub.f32 %v1588_v9, %v1617_v20  ;;  %v1657_v7 = vadd.f32 %v1656_v32, %v1641_v46  ;;  %v1660_v34 = vadd.f32 %v1643_v10, %v1642_v6  ;;  %v1774_v10 = vld [vmem:[#allocation13 + $0x10] sm:$0xff] }
 0x2fa   :  { %v2718_v36 = vsub.f32 %v1589_v5, %v1617_v20  ;;  %v2720_v41 = vsub.f32 %v1590_v58, %v1617_v20  ;;  %v2749_v2 = vrot.slane %v1592_v3, %v2551_v55  ;;  %v2752_v39 = vrot.slane %v1592_v3, %v2553_v56  ;;  %v1772_v20 = vld [vmem:[#allocation13] sm:$0xff]  ;;  %v1773_v56 = vld [vmem:[#allocation13 + $0x8] sm:$0xff] }
 0x2fb   :  { %1658 = vadd.xlane.f32.xlu1 %v1657_v7  ;;  %v1661_v40 = vadd.f32 %v1660_v34, %v1644_v19  ;;  %v1646_v45 = vmul.f32 %v2712_v22, %v2712_v22  ;;  %v1647_v33 = vmul.f32 %v2714_v21, %v2714_v21  ;;  %v1775_v19 = vld [vmem:[#allocation13 + $0x18] sm:$0xff] }
 0x2fc   :  { %v1648_v9 = vmul.f32 %v2718_v36, %v2718_v36  ;;  %v1649_v50 = vmul.f32 %v2720_v41, %v2720_v41 }
 0x2fd   :  { %v1662_v48 = vadd.f32 %v1661_v40, %v1645_v35  ;;  %v1665_v49 = vadd.f32 %v1647_v33, %v1646_v45 }
 0x2ff   :  { %1663 = vadd.xlane.f32.xlu0 %v1662_v48  ;;  %v1666_v54 = vadd.f32 %v1665_v49, %v1648_v9 }
 0x301   :  { %v1667_v62 = vadd.f32 %v1666_v54, %v1649_v50  ;;  %v1776_v50 = vld [vmem:[#allocation13 + $0x20] sm:$0xff] }
 0x303   :  { %1668 = vadd.xlane.f32.xlu1 %v1667_v62 }
 0x380   :  { %v1654_v63 = vpop.xlane.xlu0 %1653 }
 0x381   :  { %v1670_v4 = vmul.f32 0.001953125, %v1654_v63 }
 0x383   :  { %v1674_v5 = vadd.f32 1e-05, %v1670_v4 }
 0x384   :  { %v1659_v8 = vpop.xlane.xlu1 %1658 }
 0x385   :  { %2255 = vrsqrt.f32 %v1674_v5  ;;  %v1671_v11 = vmul.f32 0.001953125, %v1659_v8 }
 0x387   :  { %v1675_v57 = vadd.f32 1e-05, %v1671_v11 }
 0x388   :  { %v1664_v58 = vpop.xlane.xlu0 %1663 }
 0x389   :  { %2257 = vrsqrt.f32 %v1675_v57  ;;  %v1672_v12 = vmul.f32 0.001953125, %v1664_v58 }
 0x38b   :  { %v1676_v14 = vadd.f32 1e-05, %v1672_v12 }
 0x38c   :  { %v1669_v15 = vpop.xlane.xlu1 %1668 }
 0x38d   :  { %2259 = vrsqrt.f32 %v1676_v14  ;;  %v1673_v1 = vmul.f32 0.001953125, %v1669_v15  ;;  %v1780_v15 = vld [vmem:[#allocation13 + $0x40] sm:$0xff] }
 0x38f   :  { %v1677_v18 = vadd.f32 1e-05, %v1673_v1 }
 0x391   :  { %2261 = vrsqrt.f32 %v1677_v18 }
 0x392   :  { %v2256_v25 = vpop.eup %2255 }
 0x393   :  { %v1682_v28 = vmul.f32 %v2256_v25, %v2656_v38  ;;  %v1683_v29 = vmul.f32 %v2256_v25, %v2660_v44  ;;  %v1684_v30 = vmul.f32 %v2256_v25, %v2662_v16  ;;  %v1685_v46 = vmul.f32 %v2256_v25, %v2664_v60 }
 0x395   :  { %v1719_v52 = vmul.f32 %v2731_v42, %v1682_v28  ;;  %v1720_v53 = vmul.f32 %v2737_v61, %v1683_v29  ;;  %v1721_v32 = vmul.f32 %v2734_v0, %v1684_v30  ;;  %v1722_v55 = vmul.f32 %v2740_v23, %v1685_v46  ;;  %v1781_v28 = vld [vmem:[#allocation13 + $0x48] sm:$0xff]  ;;  %v1782_v29 = vld [vmem:[#allocation13 + $0x50] sm:$0xff]  ;;  %v1783_v30 = vld [vmem:[#allocation13 + $0x58] sm:$0xff] }
 0x396   :  { %v2258_v6 = vpop.eup %2257 }
 0x397   :  { %v1756_v38 = vadd.f32 %v2743_v26, %v1719_v52  ;;  %v1757_v44 = vadd.f32 %v2749_v2, %v1720_v53  ;;  %v1758_v16 = vadd.f32 %v2746_v43, %v1721_v32  ;;  %v1759_v60 = vadd.f32 %v2752_v39, %v1722_v55 }
 0x398   :  { %v1686_v7 = vmul.f32 %v2258_v6, %v2674_v37  ;;  %v1687_v34 = vmul.f32 %v2258_v6, %v2678_v51  ;;  %v1688_v35 = vmul.f32 %v2258_v6, %v2680_v13  ;;  %v1689_v40 = vmul.f32 %v2258_v6, %v2684_v24  ;;  %v1777_v51 = vld [vmem:[#allocation13 + $0x28] sm:$0xff]  ;;  %v1778_v13 = vld [vmem:[#allocation13 + $0x30] sm:$0xff]  ;;  %v1779_v24 = vld [vmem:[#allocation13 + $0x38] sm:$0xff] }
 0x399   :  { %v1788_v45 = vadd.f32 %v1772_v20, %v1756_v38  ;;  %v1789_v33 = vadd.f32 %v1773_v56, %v1757_v44  ;;  %v1790_v48 = vadd.f32 %v1774_v10, %v1758_v16  ;;  %v1791_v9 = vadd.f32 %v1775_v19, %v1759_v60  ;;  %v1784_v16 = vld [vmem:[#allocation13 + $0x60] sm:$0xff] }
 0x39a   :  { %v2260_v49 = vpop.eup %2259  ;;  %v1723_v54 = vmul.f32 %v2731_v42, %v1686_v7  ;;  %v1724_v62 = vmul.f32 %v2737_v61, %v1687_v34  ;;  %v1725_v63 = vmul.f32 %v2734_v0, %v1688_v35  ;;  %v1726_v37 = vmul.f32 %v2740_v23, %v1689_v40 }
 0x39b   :  { %1804 = vst [vmem:[%s2859_s9] sm:$0xff] %v1788_v45  ;;  %1805 = vst [vmem:[%s2859_s9 + $0x8] sm:$0xff] %v1789_v33  ;;  %v1690_v4 = vmul.f32 %v2260_v49, %v2694_v59  ;;  %v1691_v5 = vmul.f32 %v2260_v49, %v2698_v27  ;;  %v1692_v8 = vmul.f32 %v2260_v49, %v2702_v31 }
 0x39c   :  { %1806 = vst [vmem:[%s2859_s9 + $0x10] sm:$0xff] %v1790_v48  ;;  %1807 = vst [vmem:[%s2859_s9 + $0x18] sm:$0xff] %v1791_v9  ;;  %v1693_v11 = vmul.f32 %v2260_v49, %v2704_v47  ;;  %v1760_v57 = vadd.f32 %v2743_v26, %v1723_v54  ;;  %v1761_v58 = vadd.f32 %v2749_v2, %v1724_v62 }
 0x39d   :  { %v1762_v12 = vadd.f32 %v2746_v43, %v1725_v63  ;;  %v1763_v14 = vadd.f32 %v2752_v39, %v1726_v37  ;;  %v1727_v17 = vmul.f32 %v2731_v42, %v1690_v4  ;;  %v1728_v1 = vmul.f32 %v2737_v61, %v1691_v5 }
 0x39e   :  { %v1729_v59 = vmul.f32 %v2734_v0, %v1692_v8  ;;  %v1730_v27 = vmul.f32 %v2740_v23, %v1693_v11  ;;  %v2262_v31 = vpop.eup %2261  ;;  %v1792_v3 = vadd.f32 %v1776_v50, %v1760_v57  ;;  %v1793_v47 = vadd.f32 %v1777_v51, %v1761_v58 }
 0x39f   :  { %v1794_v18 = vadd.f32 %v1778_v13, %v1762_v12  ;;  %v1795_v25 = vadd.f32 %v1779_v24, %v1763_v14  ;;  %v1764_v46 = vadd.f32 %v2743_v26, %v1727_v17  ;;  %v1765_v20 = vadd.f32 %v2749_v2, %v1728_v1 }
 0x3a0   :  { %v1766_v52 = vadd.f32 %v2746_v43, %v1729_v59  ;;  %v1767_v53 = vadd.f32 %v2752_v39, %v1730_v27  ;;  %1808 = vst [vmem:[%s2859_s9 + $0x20] sm:$0xff] %v1792_v3  ;;  %1809 = vst [vmem:[%s2859_s9 + $0x28] sm:$0xff] %v1793_v47  ;;  %v1694_v32 = vmul.f32 %v2262_v31, %v2712_v22  ;;  %v1785_v22 = vld [vmem:[#allocation13 + $0x68] sm:$0xff] }
 0x3a1   :  { %1810 = vst [vmem:[%s2859_s9 + $0x30] sm:$0xff] %v1794_v18  ;;  %1811 = vst [vmem:[%s2859_s9 + $0x38] sm:$0xff] %v1795_v25  ;;  %v1695_v55 = vmul.f32 %v2262_v31, %v2714_v21  ;;  %v1696_v6 = vmul.f32 %v2262_v31, %v2718_v36  ;;  %v1697_v56 = vmul.f32 %v2262_v31, %v2720_v41  ;;  %v1786_v21 = vld [vmem:[#allocation13 + $0x70] sm:$0xff]  ;;  %v1787_v36 = vld [vmem:[#allocation13 + $0x78] sm:$0xff] }
 0x3a2   :  { %v1796_v10 = vadd.f32 %v1780_v15, %v1764_v46  ;;  %v1797_v19 = vadd.f32 %v1781_v28, %v1765_v20  ;;  %v1798_v38 = vadd.f32 %v1782_v29, %v1766_v52  ;;  %v1799_v44 = vadd.f32 %v1783_v30, %v1767_v53 }
 0x3a3   :  { %v1731_v60 = vmul.f32 %v2731_v42, %v1694_v32  ;;  %v1732_v7 = vmul.f32 %v2737_v61, %v1695_v55  ;;  %v1733_v34 = vmul.f32 %v2734_v0, %v1696_v6  ;;  %v1734_v35 = vmul.f32 %v2740_v23, %v1697_v56 }
 0x3a4   :  { %1812 = vst [vmem:[%s2859_s9 + $0x40] sm:$0xff] %v1796_v10  ;;  %1813 = vst [vmem:[%s2859_s9 + $0x48] sm:$0xff] %v1797_v19 }
 0x3a5   :  { %1814 = vst [vmem:[%s2859_s9 + $0x50] sm:$0xff] %v1798_v38  ;;  %1815 = vst [vmem:[%s2859_s9 + $0x58] sm:$0xff] %v1799_v44  ;;  %v1768_v41 = vadd.f32 %v2743_v26, %v1731_v60  ;;  %v1769_v42 = vadd.f32 %v2749_v2, %v1732_v7  ;;  %v1770_v0 = vadd.f32 %v2746_v43, %v1733_v34 }
 0x3a6   :  { %v1771_v61 = vadd.f32 %v2752_v39, %v1734_v35 }
 0x3a7   :  { %v1800_v23 = vadd.f32 %v1784_v16, %v1768_v41  ;;  %v1801_v40 = vadd.f32 %v1785_v22, %v1769_v42  ;;  %v1802_v45 = vadd.f32 %v1786_v21, %v1770_v0 }
 0x3a8   :  { %v1803_v33 = vadd.f32 %v1787_v36, %v1771_v61 }
 0x3a9   :  { %1816 = vst [vmem:[%s2859_s9 + $0x60] sm:$0xff] %v1800_v23  ;;  %1817 = vst [vmem:[%s2859_s9 + $0x68] sm:$0xff] %v1801_v40 }
 0x3aa   :  { %1818 = vst [vmem:[%s2859_s9 + $0x70] sm:$0xff] %v1802_v45  ;;  %1819 = vst [vmem:[%s2859_s9 + $0x78] sm:$0xff] %v1803_v33 }
 0x3ab   :  { %1824 = vsyncpa [#allocation3], 1 }
 0x3ac   :  { %1825 = vsyncpa [#allocation5], 1 }
 0x3ad   :  { %1826 = vsyncpa [#allocation8], 1 }
 0x3ae   :  { %1827 = vsyncpa [#allocation11], 1 }
 0x3af   :  { %1828 = vsyncpa [#allocation14], 1 }

// kernel: forward.3
= control target key start
LH: loop header
LB: loop body
LE: loop exit
PB: predicated region body
PF: predicated region fallthrough
CT: control target
= control target key end

     0   :  { %s18163_s0 = inlined_call_operand.vmem [shape: f32[32,512], index: 0, kind: input, shape index: {}]   ;;  %s18164_s1 = inlined_call_operand.hbm [shape: bf16[2,512,1536], index: 1, kind: input, shape index: {}]   ;;  %s18165_s2 = inlined_call_operand.hbm [shape: f32[2,1,1536], index: 2, kind: input, shape index: {}]   ;;  %s18166_s3 = inlined_call_operand.hbm [shape: bf16[2,512,512], index: 3, kind: input, shape index: {}]   ;;  %s18167_s4 = inlined_call_operand.hbm [shape: f32[2,1,512], index: 4, kind: input, shape index: {}]   ;;  %s18168_s5 = inlined_call_operand.hbm [shape: f32[2,1,512], index: 5, kind: input, shape index: {}]   ;;  %s18169_s6 = inlined_call_operand.hbm [shape: f32[2,1,512], index: 6, kind: input, shape index: {}]   ;;  %s18170_s7 = inlined_call_operand.hbm [shape: bf16[2,512,512], index: 7, kind: input, shape index: {}]   ;;  %s18171_s8 = inlined_call_operand.hbm [shape: f32[2,1,512], index: 8, kind: input, shape index: {}]   ;;  %s18172_s9 = inlined_call_operand.hbm [shape: bf16[2,512,512], index: 9, kind: input, shape index: {}]   ;;  %s18173_s10 = inlined_call_operand.hbm [shape: f32[2,1,512], index: 10, kind: input, shape index: {}]   ;;  %s18174_s11 = inlined_call_operand.hbm [shape: f32[2,1,512], index: 11, kind: input, shape index: {}]   ;;  %s18175_s12 = inlined_call_operand.hbm [shape: f32[2,1,512], index: 12, kind: input, shape index: {}]   ;;  %s18176_s13 = inlined_call_operand.hbm [shape: f32[2,1,512], index: 13, kind: input, shape index: {}]   ;;  %s18177_s14 = inlined_call_operand.hbm [shape: f32[2,1,512], index: 14, kind: input, shape index: {}]   ;;  %s18178_s15 = inlined_call_operand.hbm [shape: bf16[2,512,512], index: 15, kind: input, shape index: {}]   ;;  %s18179_s16 = inlined_call_operand.hbm [shape: f32[2,1,512], index: 16, kind: input, shape index: {}]   ;;  %s18180_s17 = inlined_call_operand.hbm [shape: f32[2,1,512], index: 17, kind: input, shape index: {}]   ;;  %s18181_s18 = inlined_call_operand.hbm [shape: f32[2,1,512], index: 18, kind: input, shape index: {}]   ;;  %s18182_s19 = inlined_call_operand.vmem [shape: bf16[2,512,8], index: 19, kind: input, shape index: {}]   ;;  %s18183_s20 = inlined_call_operand.hbm [shape: f32[2,1,8], index: 20, kind: input, shape index: {}]   ;;  %s18184_s21 = inlined_call_operand.vmem [shape: bf16[2,8,1], index: 21, kind: input, shape index: {}]   ;;  %s18185_s22 = inlined_call_operand.vmem [shape: f32[2,1,1], index: 22, kind: input, shape index: {}]   ;;  %s18186_s23 = inlined_call_operand.vmem [shape: f32[2,32,1], index: 23, kind: output, shape index: {}]  }
   0x1   :  { %18222 = sst [smem:[#allocation51_spill]] %s18163_s0 }
   0x2   :  { %18223 = sst [smem:[#allocation52_spill]] %s18164_s1 }
   0x3   :  { %18224 = sst [smem:[#allocation53_spill]] %s18165_s2 }
   0x4   :  { %18225 = sst [smem:[#allocation54_spill]] %s18166_s3 }
   0x5   :  { %18226 = sst [smem:[#allocation55_spill]] %s18167_s4 }
   0x6   :  { %18227 = sst [smem:[#allocation56_spill]] %s18168_s5 }
   0x7   :  { %18228 = sst [smem:[#allocation57_spill]] %s18169_s6 }
   0x8   :  { %18229 = sst [smem:[#allocation58_spill]] %s18170_s7 }
   0x9   :  { %18230 = sst [smem:[#allocation59_spill]] %s18171_s8 }
   0xa   :  { %18231 = sst [smem:[#allocation60_spill]] %s18172_s9 }
   0xb   :  { %18232 = sst [smem:[#allocation61_spill]] %s18173_s10 }
   0xc   :  { %18233 = sst [smem:[#allocation62_spill]] %s18175_s12 }
   0xd   :  { %18234 = sst [smem:[#allocation63_spill]] %s18177_s14 }
   0xe   :  { %18235 = sst [smem:[#allocation64_spill]] %s18179_s16 }
   0xf   :  { %18236 = sst [smem:[#allocation65_spill]] %s18181_s18 }
  0x10   :  { %18237 = sst [smem:[#allocation66_spill]] %s18182_s19 }
  0x11   :  { %18238 = sst [smem:[#allocation67_spill]] %s18184_s21 }
  0x12   :  { %18239 = sst [smem:[#allocation68_spill]] %s18185_s22 }
  0x13   :  { %18240 = sst [smem:[#allocation69_spill]] %s18186_s23 }
  0x14   :  { %28 = vsyncpa [#allocation3], 0 }
  0x15   :  { %30 = vsyncpa [#allocation3 + $0x1], 0 }
  0x16   :  { %31 = vsyncpa [#allocation5], 0 }
  0x17   :  { %33 = vsyncpa [#allocation5 + $0x1], 0 }
  0x18   :  { %34 = vsyncpa [#allocation8], 0 }
  0x19   :  { %36 = vsyncpa [#allocation8 + $0x1], 0 }
  0x1a   :  { %37 = vsyncpa [#allocation11], 0 }
  0x1b   :  { %39 = vsyncpa [#allocation11 + $0x1], 0 }
  0x1c   :  { %40 = vsyncpa [#allocation14], 0 }
  0x1d   :  { %42 = vsyncpa [#allocation14 + $0x1], 0 }
  0x1e   :  { %43 = vsyncpa [#allocation17], 0 }
  0x1f   :  { %45 = vsyncpa [#allocation17 + $0x1], 0 }
  0x20   :  { %46 = vsyncpa [#allocation20], 0 }
  0x21   :  { %48 = vsyncpa [#allocation20 + $0x1], 0 }
  0x22   :  { %49 = vsyncpa [#allocation23], 0 }
  0x23   :  { %51 = vsyncpa [#allocation23 + $0x1], 0 }
  0x24   :  { %52 = vsyncpa [#allocation26], 0 }
  0x25   :  { %54 = vsyncpa [#allocation26 + $0x1], 0 }
  0x26   :  { %55 = vsyncpa [#allocation29], 0 }
  0x27   :  { %57 = vsyncpa [#allocation29 + $0x1], 0  ;;  %s15238_s4 = smov 0   ;;  %s15240_s30 = smov 0  }
  0x28   :  { %s15242_s24 = smov 0   ;;  %s15244_s25 = smov 0  }
  0x29 LB: > { %18241 = sst [smem:[#allocation41_spill]] %s15085_s30  ;;  %s15257_s5 = sadd.s32 4294967295, %s15093_s25   ;;  %s15093_s25 = sphi %s15244_s25, %s18305_s25   ;;  %s15089_s24 = sphi %s15242_s24, %s18308_s24   ;;  %s15085_s30 = sphi %s15240_s30, %s18307_s30   ;;  %s15081_s4 = sphi %s15238_s4, %s18306_s4  }
  0x2a   : > { %18242 = sst [smem:[#allocation42_spill]] %s15089_s24  ;;  %s15260_s1 = sadd.s32 1, %s15093_s25  }
  0x2b   : > { %18243 = sst [smem:[#allocation43_spill]] %s15257_s5  ;;  %s88_s26 = ssub.s32 %s15093_s25, %s15260_s1 }
  0x2c   : > { %18244 = sst [smem:[#allocation44_spill]] %s15260_s1  ;;  %s91_s2 = sadd.s32 1, %s15089_s24 }
  0x2d   : > { %p89_p0 = scmp.eq.s32.totalorder %s88_s26, 0  ;;  %p98_p1 = scmp.ne.s32.totalorder %s15089_s24, %s15085_s30 }
  0x2e   : > { %p99_p2 = scmp.eq.s32.totalorder %s15093_s25, 0  ;;  %p104_p3 = scmp.ne.s32.totalorder %s15085_s30, %s15081_s4 }
  0x2f   : > { %s15270_s6 = scalar_select %p89_p0, %s15089_s24, %s91_s2  }
  0x30   : > { %p15272_p4 = por %p99_p2, %p98_p1  ;;  %p105_p5 = scmp.eq.s32.totalorder %s15257_s5, 0 }
  0x31   : > { %18245 = sst [smem:[#allocation45_spill]] %s15270_s6  ;;  %p11676_p7 = scmp.ge.s32.totalorder %s15093_s25, 2 }
  0x32   : > { %p15277_p6 = por %p105_p5, %p104_p3  ;;  %s15283_s28 = sand.u32 (!%p11676_p7), 1, %s15089_s24  }
  0x33   : > { %699 = sbr.rel (%p11676_p7) target bundleno = 551 (0x227), region = 20  ;;  %s15286_s29 = sand.u32 (!%p11676_p7), 1, %s15093_s25  }
  0x34   : > { %s18247_s7 = scalar_select %p15277_p6, 1, 0 }
  0x35   : > { %s12962_s3 = smul.u32 (!%p11676_p7), 12, %s15283_s28  ;;  %s15291_s4 = sshll.u32 (!%p11676_p7), %s15283_s28, 2 }
  0x36   : > { %18248 = sst [smem:[#allocation46_spill]] %s18247_s7  ;;  %s12963_s0 = smul.u32 (!%p11676_p7), 192, %s15093_s25 }
  0x37   : > { %s18249_s6 = sld [smem:[#allocation53_spill]] (!%p11676_p7)  ;;  %s728_s23 = scalar_lea.vmem (!%p11676_p7), [#allocation4], %s12962_s3 }
  0x38   : > { %s736_s24 = sshll.u32 %s728_s23, 4  ;;  %s18204_s22 = scalar_lea.sflag [#allocation5], %s15286_s29  ;;  %s737_s24 = int_to_ptr.vmem [resolvable:$true] %s736_s24 }
  0x3d   : > { %s15296_s1 = scalar_lea.hbm %s18249_s6, %s12963_s0  ;;  %s14533_s7 = scalar_lea.hbm %s18249_s6, 384 }
  0x3e   : > { %s14529_s21 = scalar_lea.hbm %s15296_s1, 192  ;;  %p14534_p11 = scmp.lt.s32.totalorder %s15296_s1, %s18249_s6 }
  0x3f   : > { %p14530_p8 = scmp.ne.s32.totalorder %s15296_s1, %s14529_s21  ;;  %p14535_p12 = scmp.lt.s32.totalorder %s14533_s7, %s14529_s21 }
  0x41   : > { %p14531_p9 = pnand %p14530_p8, %p15272_p4  ;;  %p14536_p13 = por %p14535_p12, %p14534_p11 }
  0x43   : > { %p14532_p10 = pneg %p14531_p9 }
  0x45   : > { %p14537_p0 = pnand %p14536_p13, %p14532_p10 }
  0x47   : > { %14540 = shalt.err (!%p14537_p0)
}
  0x48   : > { %s14541_s23 = scalar_lea.vmem %s737_s24, 192  ;;  %s15095_s3 = smov [#allocation4]  }
  0x49   : > { %p14542_p1 = scmp.ne.s32.totalorder %s737_s24, %s14541_s23  ;;  %s14545_s0 = sshll.u32 %s15095_s3, 4  ;;  %s14546_s0 = int_to_ptr.vmem [resolvable:$false] %s14545_s0 }
  0x4a   : > { %s14547_s2 = scalar_lea.vmem %s14546_s0, 384  ;;  %p14548_p5 = scmp.lt.s32.totalorder %s737_s24, %s14546_s0 }
  0x4b   : > { %p14543_p2 = pnand %p14542_p1, %p15272_p4  ;;  %p14549_p7 = scmp.lt.s32.totalorder %s14547_s2, %s14541_s23 }
  0x4d   : > { %p14544_p3 = pneg %p14543_p2  ;;  %p14550_p8 = por %p14549_p7, %p14548_p5 }
  0x4f   : > { %p14551_p9 = pnand %p14550_p8, %p14544_p3 }
  0x51   : > { %14554 = shalt.err (!%p14551_p9)
}
  0x52   : > { %12967 = dma.hbm_to_vmem [thread:$0]  (%p15272_p4), %s15296_s1, 192, %s737_s24, %s18204_s22  }
  0x53   : > { %s15318_s19 = sshll.u32 %s15093_s25, 6  ;;  %s768_s21 = scalar_lea.vmem [#allocation7], %s15291_s4 }
  0x54   : > { %s776_s30 = sshll.u32 %s768_s21, 4  ;;  %s18250_s26 = sld [smem:[#allocation55_spill]]  ;;  %s777_s30 = int_to_ptr.vmem [resolvable:$true] %s776_s30 }
  0x5a   : > { %s774_s23 = scalar_lea.hbm %s18250_s26, %s15318_s19  ;;  %s14559_s24 = scalar_lea.hbm %s18250_s26, 128 }
  0x5b   : > { %s14555_s0 = scalar_lea.hbm %s774_s23, 64  ;;  %p14560_p13 = scmp.lt.s32.totalorder %s774_s23, %s18250_s26 }
  0x5c   : > { %p14556_p10 = scmp.ne.s32.totalorder %s774_s23, %s14555_s0  ;;  %p14561_p0 = scmp.lt.s32.totalorder %s14559_s24, %s14555_s0 }
  0x5e   : > { %p14557_p11 = pnand %p14556_p10, %p15272_p4  ;;  %p14562_p1 = por %p14561_p0, %p14560_p13 }
  0x60   : > { %p14558_p12 = pneg %p14557_p11 }
  0x62   : > { %p14563_p2 = pnand %p14562_p1, %p14558_p12 }
  0x64   : > { %14566 = shalt.err (!%p14563_p2)
}
  0x65   : > { %s14567_s21 = scalar_lea.vmem %s777_s30, 64  ;;  %s15096_s5 = smov [#allocation7]  }
  0x66   : > { %p14568_p3 = scmp.ne.s32.totalorder %s777_s30, %s14567_s21  ;;  %s14571_s7 = sshll.u32 %s15096_s5, 4  ;;  %s14572_s7 = int_to_ptr.vmem [resolvable:$false] %s14571_s7 }
  0x67   : > { %s14573_s3 = scalar_lea.vmem %s14572_s7, 128  ;;  %p14574_p8 = scmp.lt.s32.totalorder %s777_s30, %s14572_s7 }
  0x68   : > { %p14569_p5 = pnand %p14568_p3, %p15272_p4  ;;  %p14575_p9 = scmp.lt.s32.totalorder %s14573_s3, %s14567_s21 }
  0x6a   : > { %p14570_p7 = pneg %p14569_p5  ;;  %p14576_p10 = por %p14575_p9, %p14574_p8 }
  0x6c   : > { %p14577_p11 = pnand %p14576_p10, %p14570_p7 }
  0x6e   : > { %14580 = shalt.err (!%p14577_p11)
}
  0x6f   : > { %s18251_s22 = scalar_lea.sflag [#allocation8], %s15286_s29  ;;  %s18252_s2 = sld [smem:[#allocation57_spill]] }
  0x70   : > { %12969 = dma.hbm_to_vmem [thread:$0]  (%p15272_p4), %s774_s23, 64, %s777_s30, %s18251_s22  }
  0x71   : > { %s806_s3 = scalar_lea.vmem [#allocation10], %s15291_s4 }
  0x72   : > { %s814_s1 = sshll.u32 %s806_s3, 4  ;;  %s815_s1 = int_to_ptr.vmem [resolvable:$true] %s814_s1 }
  0x75   : > { %s15344_s24 = scalar_lea.hbm %s18252_s2, %s15318_s19  ;;  %s14585_s30 = scalar_lea.hbm %s18252_s2, 128 }
  0x76   : > { %s14581_s5 = scalar_lea.hbm %s15344_s24, 64  ;;  %p14586_p1 = scmp.lt.s32.totalorder %s15344_s24, %s18252_s2 }
  0x77   : > { %p14582_p12 = scmp.ne.s32.totalorder %s15344_s24, %s14581_s5  ;;  %p14587_p2 = scmp.lt.s32.totalorder %s14585_s30, %s14581_s5 }
  0x79   : > { %p14583_p13 = pnand %p14582_p12, %p15272_p4  ;;  %p14588_p3 = por %p14587_p2, %p14586_p1 }
  0x7b   : > { %p14584_p0 = pneg %p14583_p13 }
  0x7d   : > { %p14589_p5 = pnand %p14588_p3, %p14584_p0 }
  0x7f   : > { %14592 = shalt.err (!%p14589_p5)
}
  0x80   : > { %s14593_s6 = scalar_lea.vmem %s815_s1, 64  ;;  %s15097_s0 = smov [#allocation10]  }
  0x81   : > { %p14594_p7 = scmp.ne.s32.totalorder %s815_s1, %s14593_s6  ;;  %s14597_s3 = sshll.u32 %s15097_s0, 4  ;;  %s14598_s3 = int_to_ptr.vmem [resolvable:$false] %s14597_s3 }
  0x82   : > { %s14599_s21 = scalar_lea.vmem %s14598_s3, 128  ;;  %p14600_p10 = scmp.lt.s32.totalorder %s815_s1, %s14598_s3 }
  0x83   : > { %p14595_p8 = pnand %p14594_p7, %p15272_p4  ;;  %p14601_p11 = scmp.lt.s32.totalorder %s14599_s21, %s14593_s6 }
  0x85   : > { %p14596_p9 = pneg %p14595_p8  ;;  %p14602_p12 = por %p14601_p11, %p14600_p10 }
  0x87   : > { %p14603_p13 = pnand %p14602_p12, %p14596_p9 }
  0x89   : > { %14606 = shalt.err (!%p14603_p13)
}
  0x8a   : > { %s18253_s26 = scalar_lea.sflag [#allocation11], %s15286_s29  ;;  %s18254_s8 = sld [smem:[#allocation59_spill]] }
  0x8b   : > { %12971 = dma.hbm_to_vmem [thread:$0]  (%p15272_p4), %s15344_s24, 64, %s815_s1, %s18253_s26  }
  0x8c   : > { %s846_s21 = scalar_lea.vmem [#allocation13], %s15291_s4 }
  0x8d   : > { %s854_s23 = sshll.u32 %s846_s21, 4  ;;  %s855_s23 = int_to_ptr.vmem [resolvable:$true] %s854_s23 }
  0x90   : > { %s15370_s30 = scalar_lea.hbm %s18254_s8, %s15318_s19  ;;  %s14611_s24 = scalar_lea.hbm %s18254_s8, 128 }
  0x91   : > { %s14607_s6 = scalar_lea.hbm %s15370_s30, 64  ;;  %p14612_p3 = scmp.lt.s32.totalorder %s15370_s30, %s18254_s8 }
  0x92   : > { %p14608_p0 = scmp.ne.s32.totalorder %s15370_s30, %s14607_s6  ;;  %p14613_p5 = scmp.lt.s32.totalorder %s14611_s24, %s14607_s6 }
  0x94   : > { %p14609_p1 = pnand %p14608_p0, %p15272_p4  ;;  %p14614_p7 = por %p14613_p5, %p14612_p3 }
  0x96   : > { %p14610_p2 = pneg %p14609_p1 }
  0x98   : > { %p14615_p8 = pnand %p14614_p7, %p14610_p2 }
  0x9a   : > { %14618 = shalt.err (!%p14615_p8)
}
  0x9b   : > { %s14619_s5 = scalar_lea.vmem %s855_s23, 64  ;;  %s15098_s7 = smov [#allocation13]  }
  0x9c   : > { %p14620_p9 = scmp.ne.s32.totalorder %s855_s23, %s14619_s5  ;;  %s14623_s21 = sshll.u32 %s15098_s7, 4  ;;  %s14624_s21 = int_to_ptr.vmem [resolvable:$false] %s14623_s21 }
  0x9d   : > { %s14625_s22 = scalar_lea.vmem %s14624_s21, 128  ;;  %p14626_p12 = scmp.lt.s32.totalorder %s855_s23, %s14624_s21 }
  0x9e   : > { %p14621_p10 = pnand %p14620_p9, %p15272_p4  ;;  %p14627_p13 = scmp.lt.s32.totalorder %s14625_s22, %s14619_s5 }
  0xa0   : > { %p14622_p11 = pneg %p14621_p10  ;;  %p14628_p0 = por %p14627_p13, %p14626_p12 }
  0xa2   : > { %p14629_p1 = pnand %p14628_p0, %p14622_p11 }
  0xa4   : > { %14632 = shalt.err (!%p14629_p1)
}
  0xa5   : > { %s18255_s6 = scalar_lea.sflag [#allocation14], %s15286_s29  ;;  %s18256_s10 = sld [smem:[#allocation61_spill]] }
  0xa6   : > { %12973 = dma.hbm_to_vmem [thread:$0]  (%p15272_p4), %s15370_s30, 64, %s855_s23, %s18255_s6  }
  0xa7   : > { %s886_s22 = scalar_lea.vmem [#allocation16], %s15291_s4 }
  0xa8   : > { %s894_s1 = sshll.u32 %s886_s22, 4  ;;  %s895_s1 = int_to_ptr.vmem [resolvable:$true] %s894_s1 }
  0xab   : > { %s15396_s24 = scalar_lea.hbm %s18256_s10, %s15318_s19  ;;  %s14637_s30 = scalar_lea.hbm %s18256_s10, 128 }
  0xac   : > { %s14633_s5 = scalar_lea.hbm %s15396_s24, 64  ;;  %p14638_p7 = scmp.lt.s32.totalorder %s15396_s24, %s18256_s10 }
  0xad   : > { %p14634_p2 = scmp.ne.s32.totalorder %s15396_s24, %s14633_s5  ;;  %p14639_p8 = scmp.lt.s32.totalorder %s14637_s30, %s14633_s5 }
  0xaf   : > { %p14635_p3 = pnand %p14634_p2, %p15272_p4  ;;  %p14640_p9 = por %p14639_p8, %p14638_p7 }
  0xb1   : > { %p14636_p5 = pneg %p14635_p3 }
  0xb3   : > { %p14641_p10 = pnand %p14640_p9, %p14636_p5 }
  0xb5   : > { %14644 = shalt.err (!%p14641_p10)
}
  0xb6   : > { %s14645_s0 = scalar_lea.vmem %s895_s1, 64  ;;  %s15099_s3 = smov [#allocation16]  }
  0xb7   : > { %p14646_p11 = scmp.ne.s32.totalorder %s895_s1, %s14645_s0  ;;  %s14649_s22 = sshll.u32 %s15099_s3, 4  ;;  %s14650_s22 = int_to_ptr.vmem [resolvable:$false] %s14649_s22 }
  0xb8   : > { %s14651_s26 = scalar_lea.vmem %s14650_s22, 128  ;;  %p14652_p0 = scmp.lt.s32.totalorder %s895_s1, %s14650_s22 }
  0xb9   : > { %p14647_p12 = pnand %p14646_p11, %p15272_p4  ;;  %p14653_p1 = scmp.lt.s32.totalorder %s14651_s26, %s14645_s0 }
  0xbb   : > { %p14648_p13 = pneg %p14647_p12  ;;  %p14654_p2 = por %p14653_p1, %p14652_p0 }
  0xbd   : > { %p14655_p3 = pnand %p14654_p2, %p14648_p13 }
  0xbf   : > { %14658 = shalt.err (!%p14655_p3)
}
  0xc0   : > { %s18257_s5 = scalar_lea.sflag [#allocation17], %s15286_s29  ;;  %s18258_s12 = sld [smem:[#allocation62_spill]] }
  0xc1   : > { %12975 = dma.hbm_to_vmem [thread:$0]  (%p15272_p4), %s15396_s24, 64, %s895_s1, %s18257_s5  }
  0xc2   : > { %s924_s26 = scalar_lea.vmem [#allocation19], %s15291_s4 }
  0xc3   : > { %s932_s23 = sshll.u32 %s924_s26, 4  ;;  %s933_s23 = int_to_ptr.vmem [resolvable:$true] %s932_s23 }
  0xc6   : > { %s15422_s30 = scalar_lea.hbm %s18258_s12, %s15318_s19  ;;  %s14663_s24 = scalar_lea.hbm %s18258_s12, 128 }
  0xc7   : > { %s14659_s0 = scalar_lea.hbm %s15422_s30, 64  ;;  %p14664_p9 = scmp.lt.s32.totalorder %s15422_s30, %s18258_s12 }
  0xc8   : > { %p14660_p5 = scmp.ne.s32.totalorder %s15422_s30, %s14659_s0  ;;  %p14665_p10 = scmp.lt.s32.totalorder %s14663_s24, %s14659_s0 }
  0xca   : > { %p14661_p7 = pnand %p14660_p5, %p15272_p4  ;;  %p14666_p11 = por %p14665_p10, %p14664_p9 }
  0xcc   : > { %p14662_p8 = pneg %p14661_p7 }
  0xce   : > { %p14667_p12 = pnand %p14666_p11, %p14662_p8 }
  0xd0   : > { %14670 = shalt.err (!%p14667_p12)
}
  0xd1   : > { %s14671_s7 = scalar_lea.vmem %s933_s23, 64  ;;  %s15100_s21 = smov [#allocation19]  }
  0xd2   : > { %p14672_p13 = scmp.ne.s32.totalorder %s933_s23, %s14671_s7  ;;  %s14675_s26 = sshll.u32 %s15100_s21, 4  ;;  %s14676_s26 = int_to_ptr.vmem [resolvable:$false] %s14675_s26 }
  0xd3   : > { %s14677_s6 = scalar_lea.vmem %s14676_s26, 128  ;;  %p14678_p2 = scmp.lt.s32.totalorder %s933_s23, %s14676_s26 }
  0xd4   : > { %p14673_p0 = pnand %p14672_p13, %p15272_p4  ;;  %p14679_p3 = scmp.lt.s32.totalorder %s14677_s6, %s14671_s7 }
  0xd6   : > { %p14674_p1 = pneg %p14673_p0  ;;  %p14680_p5 = por %p14679_p3, %p14678_p2 }
  0xd8   : > { %p14681_p7 = pnand %p14680_p5, %p14674_p1 }
  0xda   : > { %14684 = shalt.err (!%p14681_p7)
}
  0xdb   : > { %s18259_s0 = scalar_lea.sflag [#allocation20], %s15286_s29  ;;  %s18260_s14 = sld [smem:[#allocation63_spill]] }
  0xdc   : > { %12977 = dma.hbm_to_vmem [thread:$0]  (%p15272_p4), %s15422_s30, 64, %s933_s23, %s18259_s0  }
  0xdd   : > { %s962_s6 = scalar_lea.vmem [#allocation22], %s15291_s4 }
  0xde   : > { %s970_s1 = sshll.u32 %s962_s6, 4  ;;  %s971_s1 = int_to_ptr.vmem [resolvable:$true] %s970_s1 }
  0xe1   : > { %s15448_s24 = scalar_lea.hbm %s18260_s14, %s15318_s19  ;;  %s14689_s30 = scalar_lea.hbm %s18260_s14, 128 }
  0xe2   : > { %s14685_s7 = scalar_lea.hbm %s15448_s24, 64  ;;  %p14690_p11 = scmp.lt.s32.totalorder %s15448_s24, %s18260_s14 }
  0xe3   : > { %p14686_p8 = scmp.ne.s32.totalorder %s15448_s24, %s14685_s7  ;;  %p14691_p12 = scmp.lt.s32.totalorder %s14689_s30, %s14685_s7 }
  0xe5   : > { %p14687_p9 = pnand %p14686_p8, %p15272_p4  ;;  %p14692_p13 = por %p14691_p12, %p14690_p11 }
  0xe7   : > { %p14688_p10 = pneg %p14687_p9 }
  0xe9   : > { %p14693_p0 = pnand %p14692_p13, %p14688_p10 }
  0xeb   : > { %14696 = shalt.err (!%p14693_p0)
}
  0xec   : > { %s14697_s3 = scalar_lea.vmem %s971_s1, 64  ;;  %s15101_s22 = smov [#allocation22]  }
  0xed   : > { %p14698_p1 = scmp.ne.s32.totalorder %s971_s1, %s14697_s3  ;;  %s14701_s6 = sshll.u32 %s15101_s22, 4  ;;  %s14702_s6 = int_to_ptr.vmem [resolvable:$false] %s14701_s6 }
  0xee   : > { %s14703_s5 = scalar_lea.vmem %s14702_s6, 128  ;;  %p14704_p5 = scmp.lt.s32.totalorder %s971_s1, %s14702_s6 }
  0xef   : > { %p14699_p2 = pnand %p14698_p1, %p15272_p4  ;;  %p14705_p7 = scmp.lt.s32.totalorder %s14703_s5, %s14697_s3 }
  0xf1   : > { %p14700_p3 = pneg %p14699_p2  ;;  %p14706_p8 = por %p14705_p7, %p14704_p5 }
  0xf3   : > { %p14707_p9 = pnand %p14706_p8, %p14700_p3 }
  0xf5   : > { %14710 = shalt.err (!%p14707_p9)
}
  0xf6   : > { %s18261_s7 = scalar_lea.sflag [#allocation23], %s15286_s29  ;;  %s18262_s16 = sld [smem:[#allocation64_spill]] }
  0xf7   : > { %12979 = dma.hbm_to_vmem [thread:$0]  (%p15272_p4), %s15448_s24, 64, %s971_s1, %s18261_s7  }
  0xf8   : > { %s1002_s5 = scalar_lea.vmem [#allocation25], %s15291_s4 }
  0xf9   : > { %s1010_s23 = sshll.u32 %s1002_s5, 4  ;;  %s1011_s23 = int_to_ptr.vmem [resolvable:$true] %s1010_s23 }
  0xfc   : > { %s15474_s30 = scalar_lea.hbm %s18262_s16, %s15318_s19  ;;  %s14715_s24 = scalar_lea.hbm %s18262_s16, 128 }
  0xfd   : > { %s14711_s3 = scalar_lea.hbm %s15474_s30, 64  ;;  %p14716_p13 = scmp.lt.s32.totalorder %s15474_s30, %s18262_s16 }
  0xfe   : > { %p14712_p10 = scmp.ne.s32.totalorder %s15474_s30, %s14711_s3  ;;  %p14717_p0 = scmp.lt.s32.totalorder %s14715_s24, %s14711_s3 }
 0x100   : > { %p14713_p11 = pnand %p14712_p10, %p15272_p4  ;;  %p14718_p1 = por %p14717_p0, %p14716_p13 }
 0x102   : > { %p14714_p12 = pneg %p14713_p11 }
 0x104   : > { %p14719_p2 = pnand %p14718_p1, %p14714_p12 }
 0x106   : > { %14722 = shalt.err (!%p14719_p2)
}
 0x107   : > { %s14723_s21 = scalar_lea.vmem %s1011_s23, 64  ;;  %s15102_s26 = smov [#allocation25]  }
 0x108   : > { %p14724_p3 = scmp.ne.s32.totalorder %s1011_s23, %s14723_s21  ;;  %s14727_s5 = sshll.u32 %s15102_s26, 4  ;;  %s14728_s5 = int_to_ptr.vmem [resolvable:$false] %s14727_s5 }
 0x109   : > { %s14729_s0 = scalar_lea.vmem %s14728_s5, 128  ;;  %p14730_p8 = scmp.lt.s32.totalorder %s1011_s23, %s14728_s5 }
 0x10a   : > { %p14725_p5 = pnand %p14724_p3, %p15272_p4  ;;  %p14731_p9 = scmp.lt.s32.totalorder %s14729_s0, %s14723_s21 }
 0x10c   : > { %p14726_p7 = pneg %p14725_p5  ;;  %p14732_p10 = por %p14731_p9, %p14730_p8 }
 0x10e   : > { %p14733_p11 = pnand %p14732_p10, %p14726_p7 }
 0x110   : > { %14736 = shalt.err (!%p14733_p11)
}
 0x111   : > { %s18263_s3 = scalar_lea.sflag [#allocation26], %s15286_s29  ;;  %s18264_s18 = sld [smem:[#allocation65_spill]] }
 0x112   : > { %12981 = dma.hbm_to_vmem [thread:$0]  (%p15272_p4), %s15474_s30, 64, %s1011_s23, %s18263_s3  }
 0x113   : > { %s1040_s0 = scalar_lea.vmem [#allocation28], %s15291_s4 }
 0x114   : > { %s1048_s1 = sshll.u32 %s1040_s0, 4  ;;  %s1049_s1 = int_to_ptr.vmem [resolvable:$true] %s1048_s1 }
 0x117   : > { %s15500_s24 = scalar_lea.hbm %s18264_s18, %s15318_s19  ;;  %s14741_s30 = scalar_lea.hbm %s18264_s18, 128 }
 0x118   : > { %s14737_s21 = scalar_lea.hbm %s15500_s24, 64  ;;  %p14742_p1 = scmp.lt.s32.totalorder %s15500_s24, %s18264_s18 }
 0x119   : > { %p14738_p12 = scmp.ne.s32.totalorder %s15500_s24, %s14737_s21  ;;  %p14743_p2 = scmp.lt.s32.totalorder %s14741_s30, %s14737_s21 }
 0x11b   : > { %p14739_p13 = pnand %p14738_p12, %p15272_p4  ;;  %p14744_p3 = por %p14743_p2, %p14742_p1 }
 0x11d   : > { %p14740_p0 = pneg %p14739_p13 }
 0x11f   : > { %p14745_p5 = pnand %p14744_p3, %p14740_p0 }
 0x121   : > { %14748 = shalt.err (!%p14745_p5)
}
 0x122   : > { %s14749_s22 = scalar_lea.vmem %s1049_s1, 64  ;;  %s15103_s6 = smov [#allocation28]  }
 0x123   : > { %p14750_p7 = scmp.ne.s32.totalorder %s1049_s1, %s14749_s22  ;;  %s14753_s0 = sshll.u32 %s15103_s6, 4  ;;  %s14754_s0 = int_to_ptr.vmem [resolvable:$false] %s14753_s0 }
 0x124   : > { %s14755_s7 = scalar_lea.vmem %s14754_s0, 128  ;;  %p14756_p10 = scmp.lt.s32.totalorder %s1049_s1, %s14754_s0 }
 0x125   : > { %p14751_p8 = pnand %p14750_p7, %p15272_p4  ;;  %p14757_p11 = scmp.lt.s32.totalorder %s14755_s7, %s14749_s22 }
 0x127   : > { %p14752_p9 = pneg %p14751_p8  ;;  %p14758_p12 = por %p14757_p11, %p14756_p10 }
 0x129   : > { %p14759_p13 = pnand %p14758_p12, %p14752_p9 }
 0x12b   : > { %14762 = shalt.err (!%p14759_p13)
}
 0x12c   : > { %s18265_s21 = scalar_lea.sflag [#allocation29], %s15286_s29  ;;  %s12960_s26 = smul.u32 3072, %s15283_s28 }
 0x12d   : > { %12983 = dma.hbm_to_vmem [thread:$0]  (%p15272_p4), %s15500_s24, 64, %s1049_s1, %s18265_s21  }
 0x12e   : > { %s12961_s5 = smul.u32 49152, %s15093_s25  ;;  %s15525_s30 = sshll.u32 %s15283_s28, 10 }
 0x12f   : > { %s18266_s3 = sld [smem:[#allocation52_spill]]  ;;  %s707_s6 = scalar_lea.vmem [#allocation2], %s12960_s26 }
 0x130   : > { %s714_s0 = sshll.u32 %s707_s6, 4  ;;  %s704_s2 = scalar_lea.sflag [#allocation3], %s15283_s28  ;;  %s15532_s0 = int_to_ptr.vmem [resolvable:$true] %s714_s0 }
 0x135   : > { %s15530_s22 = scalar_lea.hbm %s18266_s3, %s12961_s5  ;;  %s14767_s21 = scalar_lea.hbm %s18266_s3, 98304 }
 0x136   : > { %s14763_s8 = scalar_lea.hbm %s15530_s22, 49152  ;;  %p14768_p3 = scmp.lt.s32.totalorder %s15530_s22, %s18266_s3 }
 0x137   : > { %p14764_p0 = scmp.ne.s32.totalorder %s15530_s22, %s14763_s8  ;;  %p14769_p5 = scmp.lt.s32.totalorder %s14767_s21, %s14763_s8 }
 0x139   : > { %p14765_p1 = pnand %p14764_p0, %p15272_p4  ;;  %p14770_p7 = por %p14769_p5, %p14768_p3 }
 0x13b   : > { %p14766_p2 = pneg %p14765_p1 }
 0x13d   : > { %p14771_p8 = pnand %p14770_p7, %p14766_p2 }
 0x13f   : > { %14774 = shalt.err (!%p14771_p8)
}
 0x140   : > { %s14775_s26 = scalar_lea.vmem %s15532_s0, 49152  ;;  %s15104_s7 = smov [#allocation2]  }
 0x141   : > { %p14776_p9 = scmp.ne.s32.totalorder %s15532_s0, %s14775_s26  ;;  %s14779_s6 = sshll.u32 %s15104_s7, 4  ;;  %s14780_s6 = int_to_ptr.vmem [resolvable:$false] %s14779_s6 }
 0x142   : > { %s14781_s24 = scalar_lea.vmem %s14780_s6, 98304  ;;  %p14782_p12 = scmp.lt.s32.totalorder %s15532_s0, %s14780_s6 }
 0x143   : > { %p14777_p10 = pnand %p14776_p9, %p15272_p4  ;;  %p14783_p13 = scmp.lt.s32.totalorder %s14781_s24, %s14775_s26 }
 0x145   : > { %p14778_p11 = pneg %p14777_p10  ;;  %p14784_p0 = por %p14783_p13, %p14782_p12 }
 0x147   : > { %p14785_p1 = pnand %p14784_p0, %p14778_p11 }
 0x149   : > { %14788 = shalt.err (!%p14785_p1)
}
 0x14a   : > { %s15105_s8 = smov 768   ;;  %s15106_s1 = smov 48  }
 0x14b   : > { %12966 = dma.hbm_to_vmem [thread:$0]  (%p15272_p4), %s15530_s22, 49152, %s15532_s0, %s704_s2, %s15105_s8, %s15105_s8, %s15106_s1  }
 0x14c   : > { %s15558_s21 = sshll.u32 %s15093_s25, 14  ;;  %s747_s23 = scalar_lea.vmem [#allocation6], %s15525_s30 }
 0x14d   : > { %s754_s5 = sshll.u32 %s747_s23, 4  ;;  %s18267_s6 = sld [smem:[#allocation54_spill]]  ;;  %s15567_s5 = int_to_ptr.vmem [resolvable:$true] %s754_s5 }
 0x153   : > { %s15565_s24 = scalar_lea.hbm %s18267_s6, %s15558_s21  ;;  %s14793_s0 = scalar_lea.hbm %s18267_s6, 32768 }
 0x154   : > { %s14789_s3 = scalar_lea.hbm %s15565_s24, 16384  ;;  %p14794_p7 = scmp.lt.s32.totalorder %s15565_s24, %s18267_s6 }
 0x155   : > { %p14790_p2 = scmp.ne.s32.totalorder %s15565_s24, %s14789_s3  ;;  %p14795_p8 = scmp.lt.s32.totalorder %s14793_s0, %s14789_s3 }
 0x157   : > { %p14791_p3 = pnand %p14790_p2, %p15272_p4  ;;  %p14796_p9 = por %p14795_p8, %p14794_p7 }
 0x159   : > { %p14792_p5 = pneg %p14791_p3 }
 0x15b   : > { %p14797_p10 = pnand %p14796_p9, %p14792_p5 }
 0x15d   : > { %14800 = shalt.err (!%p14797_p10)
}
 0x15e   : > { %s14801_s23 = scalar_lea.vmem %s15567_s5, 16384  ;;  %s15107_s26 = smov [#allocation6]  }
 0x15f   : > { %p14802_p11 = scmp.ne.s32.totalorder %s15567_s5, %s14801_s23  ;;  %s14805_s7 = sshll.u32 %s15107_s26, 4  ;;  %s14806_s7 = int_to_ptr.vmem [resolvable:$false] %s14805_s7 }
 0x160   : > { %s14807_s2 = scalar_lea.vmem %s14806_s7, 32768  ;;  %p14808_p0 = scmp.lt.s32.totalorder %s15567_s5, %s14806_s7 }
 0x161   : > { %p14803_p12 = pnand %p14802_p11, %p15272_p4  ;;  %p14809_p1 = scmp.lt.s32.totalorder %s14807_s2, %s14801_s23 }
 0x163   : > { %p14804_p13 = pneg %p14803_p12  ;;  %p14810_p2 = por %p14809_p1, %p14808_p0 }
 0x165   : > { %p14811_p3 = pnand %p14810_p2, %p14804_p13 }
 0x167   : > { %14814 = shalt.err (!%p14811_p3)
}
 0x168   : > { %s18209_s3 = smov 256   ;;  %s18211_s22 = smov 16  }
 0x169   : > { %s18268_s0 = scalar_lea.sflag [#allocation5], %s15286_s29  ;;  %s18269_s23 = sld [smem:[#allocation56_spill]] }
 0x16a   : > { %12968 = dma.hbm_to_vmem [thread:$0]  (%p15272_p4), %s15565_s24, 16384, %s15567_s5, %s18268_s0, %s18209_s3, %s18209_s3, %s18211_s22  }
 0x16b   : > { %s787_s7 = scalar_lea.vmem [#allocation9], %s15291_s4  ;;  %s18270_s12 = sld [smem:[#allocation58_spill]] }
 0x16c   : > { %s795_s2 = sshll.u32 %s787_s7, 4  ;;  %s796_s2 = int_to_ptr.vmem [resolvable:$true] %s795_s2 }
 0x16f   : > { %s15598_s26 = scalar_lea.hbm %s18269_s23, %s15318_s19  ;;  %s14819_s0 = scalar_lea.hbm %s18269_s23, 128 }
 0x170   : > { %s14815_s16 = scalar_lea.hbm %s15598_s26, 64  ;;  %p14820_p9 = scmp.lt.s32.totalorder %s15598_s26, %s18269_s23 }
 0x171   : > { %s15605_s14 = scalar_lea.hbm %s18270_s12, %s15558_s21  ;;  %p14816_p5 = scmp.ne.s32.totalorder %s15598_s26, %s14815_s16 }
 0x172   : > { %p14821_p10 = scmp.lt.s32.totalorder %s14819_s0, %s14815_s16 }
 0x173   : > { %p14817_p7 = pnand %p14816_p5, %p15272_p4 }
 0x174   : > { %p14822_p11 = por %p14821_p10, %p14820_p9 }
 0x175   : > { %p14818_p8 = pneg %p14817_p7 }
 0x177   : > { %p14823_p12 = pnand %p14822_p11, %p14818_p8 }
 0x179   : > { %14826 = shalt.err (!%p14823_p12)
}
 0x17a   : > { %s14827_s10 = scalar_lea.vmem %s796_s2, 64  ;;  %s15110_s6 = smov [#allocation9]  }
 0x17b   : > { %p14828_p13 = scmp.ne.s32.totalorder %s796_s2, %s14827_s10  ;;  %s14831_s7 = sshll.u32 %s15110_s6, 4  ;;  %s14832_s7 = int_to_ptr.vmem [resolvable:$false] %s14831_s7 }
 0x17c   : > { %s14833_s3 = scalar_lea.vmem %s14832_s7, 128  ;;  %p14834_p2 = scmp.lt.s32.totalorder %s796_s2, %s14832_s7 }
 0x17d   : > { %p14829_p0 = pnand %p14828_p13, %p15272_p4  ;;  %p14835_p3 = scmp.lt.s32.totalorder %s14833_s3, %s14827_s10 }
 0x17f   : > { %p14830_p1 = pneg %p14829_p0  ;;  %p14836_p5 = por %p14835_p3, %p14834_p2 }
 0x181   : > { %p14837_p7 = pnand %p14836_p5, %p14830_p1 }
 0x183   : > { %14840 = shalt.err (!%p14837_p7)
}
 0x184   : > { %s18271_s16 = scalar_lea.sflag [#allocation8], %s15286_s29  ;;  %s825_s5 = scalar_lea.vmem [#allocation12], %s15525_s30 }
 0x185   : > { %12970 = dma.hbm_to_vmem [thread:$0]  (%p15272_p4), %s15598_s26, 64, %s796_s2, %s18271_s16  }
 0x186   : > { %s832_s24 = sshll.u32 %s825_s5, 4  ;;  %s18272_s9 = sld [smem:[#allocation60_spill]]  ;;  %s15626_s24 = int_to_ptr.vmem [resolvable:$true] %s832_s24 }
 0x187   : > { %s14841_s1 = scalar_lea.hbm %s15605_s14, 16384  ;;  %s14845_s7 = scalar_lea.hbm %s18270_s12, 32768 }
 0x188   : > { %p14842_p8 = scmp.ne.s32.totalorder %s15605_s14, %s14841_s1  ;;  %p14846_p11 = scmp.lt.s32.totalorder %s15605_s14, %s18270_s12 }
 0x189   : > { %p14847_p12 = scmp.lt.s32.totalorder %s14845_s7, %s14841_s1 }
 0x18a   : > { %p14843_p9 = pnand %p14842_p8, %p15272_p4 }
 0x18b   : > { %p14848_p13 = por %p14847_p12, %p14846_p11 }
 0x18c   : > { %s15632_s8 = scalar_lea.hbm %s18272_s9, %s15558_s21  ;;  %p14844_p10 = pneg %p14843_p9 }
 0x18e   : > { %p14849_p0 = pnand %p14848_p13, %p14844_p10 }
 0x190   : > { %14852 = shalt.err (!%p14849_p0)
}
 0x191   : > { %s14853_s2 = scalar_lea.vmem %s15626_s24, 16384  ;;  %s15111_s16 = smov [#allocation12]  }
 0x192   : > { %p14854_p1 = scmp.ne.s32.totalorder %s15626_s24, %s14853_s2  ;;  %s14857_s5 = sshll.u32 %s15111_s16, 4  ;;  %s14858_s5 = int_to_ptr.vmem [resolvable:$false] %s14857_s5 }
 0x193   : > { %s14859_s3 = scalar_lea.vmem %s14858_s5, 32768  ;;  %p14860_p5 = scmp.lt.s32.totalorder %s15626_s24, %s14858_s5 }
 0x194   : > { %p14855_p2 = pnand %p14854_p1, %p15272_p4  ;;  %p14861_p7 = scmp.lt.s32.totalorder %s14859_s3, %s14853_s2 }
 0x196   : > { %p14856_p3 = pneg %p14855_p2  ;;  %p14862_p8 = por %p14861_p7, %p14860_p5 }
 0x198   : > { %p14863_p9 = pnand %p14862_p8, %p14856_p3 }
 0x19a   : > { %14866 = shalt.err (!%p14863_p9)
}
 0x19b   : > { %s18273_s22 = smov 16   ;;  %s18274_s0 = smov 256  }
 0x19c   : > { %s18275_s1 = scalar_lea.sflag [#allocation11], %s15286_s29  ;;  %s865_s10 = scalar_lea.vmem [#allocation15], %s15525_s30 }
 0x19d   : > { %12972 = dma.hbm_to_vmem [thread:$0]  (%p15272_p4), %s15605_s14, 16384, %s15626_s24, %s18275_s1, %s18274_s0, %s18274_s0, %s18273_s22  }
 0x19e   : > { %s872_s6 = sshll.u32 %s865_s10, 4  ;;  %s15666_s2 = scalar_lea.hbm %s18174_s11, %s15318_s19  ;;  %s15660_s6 = int_to_ptr.vmem [resolvable:$true] %s872_s6 }
 0x19f   : > { %s14867_s16 = scalar_lea.hbm %s15632_s8, 16384  ;;  %s14871_s12 = scalar_lea.hbm %s18272_s9, 32768 }
 0x1a0   : > { %p14868_p10 = scmp.ne.s32.totalorder %s15632_s8, %s14867_s16  ;;  %p14872_p13 = scmp.lt.s32.totalorder %s15632_s8, %s18272_s9 }
 0x1a1   : > { %p14873_p0 = scmp.lt.s32.totalorder %s14871_s12, %s14867_s16 }
 0x1a2   : > { %p14869_p11 = pnand %p14868_p10, %p15272_p4 }
 0x1a3   : > { %p14874_p1 = por %p14873_p0, %p14872_p13 }
 0x1a4   : > { %p14870_p12 = pneg %p14869_p11 }
 0x1a6   : > { %p14875_p2 = pnand %p14874_p1, %p14870_p12 }
 0x1a8   : > { %14878 = shalt.err (!%p14875_p2)
}
 0x1a9   : > { %s14879_s24 = scalar_lea.vmem %s15660_s6, 16384  ;;  %s15112_s1 = smov [#allocation15]  }
 0x1aa   : > { %p14880_p3 = scmp.ne.s32.totalorder %s15660_s6, %s14879_s24  ;;  %s14883_s10 = sshll.u32 %s15112_s1, 4  ;;  %s14884_s10 = int_to_ptr.vmem [resolvable:$false] %s14883_s10 }
 0x1ab   : > { %s14885_s7 = scalar_lea.vmem %s14884_s10, 32768  ;;  %p14886_p8 = scmp.lt.s32.totalorder %s15660_s6, %s14884_s10 }
 0x1ac   : > { %p14881_p5 = pnand %p14880_p3, %p15272_p4  ;;  %p14887_p9 = scmp.lt.s32.totalorder %s14885_s7, %s14879_s24 }
 0x1ae   : > { %p14882_p7 = pneg %p14881_p5  ;;  %p14888_p10 = por %p14887_p9, %p14886_p8 }
 0x1b0   : > { %p14889_p11 = pnand %p14888_p10, %p14882_p7 }
 0x1b2   : > { %14892 = shalt.err (!%p14889_p11)
}
 0x1b3   : > { %s18276_s12 = scalar_lea.sflag [#allocation14], %s15286_s29  ;;  %s905_s18 = scalar_lea.vmem [#allocation18], %s15291_s4 }
 0x1b4   : > { %12974 = dma.hbm_to_vmem [thread:$0]  (%p15272_p4), %s15632_s8, 16384, %s15660_s6, %s18276_s12, %s18274_s0, %s18274_s0, %s18273_s22  }
 0x1b5   : > { %s913_s26 = sshll.u32 %s905_s18, 4  ;;  %s15698_s3 = scalar_lea.hbm %s18176_s13, %s15318_s19  ;;  %s914_s26 = int_to_ptr.vmem [resolvable:$true] %s913_s26 }
 0x1b6   : > { %s14893_s14 = scalar_lea.hbm %s15666_s2, 64  ;;  %s14897_s10 = scalar_lea.hbm %s18174_s11, 128 }
 0x1b7   : > { %p14894_p12 = scmp.ne.s32.totalorder %s15666_s2, %s14893_s14  ;;  %p14898_p1 = scmp.lt.s32.totalorder %s15666_s2, %s18174_s11 }
 0x1b8   : > { %p14899_p2 = scmp.lt.s32.totalorder %s14897_s10, %s14893_s14 }
 0x1b9   : > { %p14895_p13 = pnand %p14894_p12, %p15272_p4 }
 0x1ba   : > { %p14900_p3 = por %p14899_p2, %p14898_p1 }
 0x1bb   : > { %p14896_p0 = pneg %p14895_p13 }
 0x1bd   : > { %p14901_p5 = pnand %p14900_p3, %p14896_p0 }
 0x1bf   : > { %14904 = shalt.err (!%p14901_p5)
}
 0x1c0   : > { %s14905_s8 = scalar_lea.vmem %s914_s26, 64  ;;  %s15113_s6 = smov [#allocation18]  }
 0x1c1   : > { %p14906_p7 = scmp.ne.s32.totalorder %s914_s26, %s14905_s8  ;;  %s14909_s12 = sshll.u32 %s15113_s6, 4  ;;  %s14910_s12 = int_to_ptr.vmem [resolvable:$false] %s14909_s12 }
 0x1c2   : > { %s14911_s18 = scalar_lea.vmem %s14910_s12, 128  ;;  %p14912_p10 = scmp.lt.s32.totalorder %s914_s26, %s14910_s12 }
 0x1c3   : > { %p14907_p8 = pnand %p14906_p7, %p15272_p4  ;;  %p14913_p11 = scmp.lt.s32.totalorder %s14911_s18, %s14905_s8 }
 0x1c5   : > { %p14908_p9 = pneg %p14907_p8  ;;  %p14914_p12 = por %p14913_p11, %p14912_p10 }
 0x1c7   : > { %p14915_p13 = pnand %p14914_p12, %p14908_p9 }
 0x1c9   : > { %14918 = shalt.err (!%p14915_p13)
}
 0x1ca   : > { %s18277_s9 = scalar_lea.sflag [#allocation17], %s15286_s29  ;;  %s943_s16 = scalar_lea.vmem [#allocation21], %s15291_s4 }
 0x1cb   : > { %12976 = dma.hbm_to_vmem [thread:$0]  (%p15272_p4), %s15666_s2, 64, %s914_s26, %s18277_s9  }
 0x1cc   : > { %s951_s5 = sshll.u32 %s943_s16, 4  ;;  %s15723_s1 = scalar_lea.hbm %s18178_s15, %s15558_s21  ;;  %s952_s5 = int_to_ptr.vmem [resolvable:$true] %s951_s5 }
 0x1cd   : > { %s14919_s10 = scalar_lea.hbm %s15698_s3, 64  ;;  %s14923_s6 = scalar_lea.hbm %s18176_s13, 128 }
 0x1ce   : > { %p14920_p0 = scmp.ne.s32.totalorder %s15698_s3, %s14919_s10  ;;  %p14924_p3 = scmp.lt.s32.totalorder %s15698_s3, %s18176_s13 }
 0x1cf   : > { %p14925_p5 = scmp.lt.s32.totalorder %s14923_s6, %s14919_s10 }
 0x1d0   : > { %p14921_p1 = pnand %p14920_p0, %p15272_p4 }
 0x1d1   : > { %p14926_p7 = por %p14925_p5, %p14924_p3 }
 0x1d2   : > { %p14922_p2 = pneg %p14921_p1 }
 0x1d4   : > { %p14927_p8 = pnand %p14926_p7, %p14922_p2 }
 0x1d6   : > { %14930 = shalt.err (!%p14927_p8)
}
 0x1d7   : > { %s14931_s2 = scalar_lea.vmem %s952_s5, 64  ;;  %s15114_s21 = smov [#allocation21]  }
 0x1d8   : > { %p14932_p9 = scmp.ne.s32.totalorder %s952_s5, %s14931_s2  ;;  %s14935_s26 = sshll.u32 %s15114_s21, 4  ;;  %s14936_s26 = int_to_ptr.vmem [resolvable:$false] %s14935_s26 }
 0x1d9   : > { %s14937_s9 = scalar_lea.vmem %s14936_s26, 128  ;;  %p14938_p12 = scmp.lt.s32.totalorder %s952_s5, %s14936_s26 }
 0x1da   : > { %p14933_p10 = pnand %p14932_p9, %p15272_p4  ;;  %p14939_p13 = scmp.lt.s32.totalorder %s14937_s9, %s14931_s2 }
 0x1dc   : > { %p14934_p11 = pneg %p14933_p10  ;;  %p14940_p0 = por %p14939_p13, %p14938_p12 }
 0x1de   : > { %p14941_p1 = pnand %p14940_p0, %p14934_p11 }
 0x1e0   : > { %14944 = shalt.err (!%p14941_p1)
}
 0x1e1   : > { %s18278_s16 = scalar_lea.sflag [#allocation20], %s15286_s29  ;;  %s981_s14 = scalar_lea.vmem [#allocation24], %s15525_s30 }
 0x1e2   : > { %12978 = dma.hbm_to_vmem [thread:$0]  (%p15272_p4), %s15698_s3, 64, %s952_s5, %s18278_s16  }
 0x1e3   : > { %s988_s24 = sshll.u32 %s981_s14, 4  ;;  %s15750_s8 = scalar_lea.hbm %s18180_s17, %s15318_s19  ;;  %s15744_s24 = int_to_ptr.vmem [resolvable:$true] %s988_s24 }
 0x1e4   : > { %s14945_s6 = scalar_lea.hbm %s15723_s1, 16384  ;;  %s14949_s2 = scalar_lea.hbm %s18178_s15, 32768 }
 0x1e5   : > { %p14946_p2 = scmp.ne.s32.totalorder %s15723_s1, %s14945_s6  ;;  %p14950_p7 = scmp.lt.s32.totalorder %s15723_s1, %s18178_s15 }
 0x1e6   : > { %p14951_p8 = scmp.lt.s32.totalorder %s14949_s2, %s14945_s6 }
 0x1e7   : > { %p14947_p3 = pnand %p14946_p2, %p15272_p4 }
 0x1e8   : > { %p14952_p9 = por %p14951_p8, %p14950_p7 }
 0x1e9   : > { %p14948_p5 = pneg %p14947_p3 }
 0x1eb   : > { %p14953_p10 = pnand %p14952_p9, %p14948_p5 }
 0x1ed   : > { %14956 = shalt.err (!%p14953_p10)
}
 0x1ee   : > { %s14957_s19 = scalar_lea.vmem %s15744_s24, 16384  ;;  %s15115_s30 = smov [#allocation24]  }
 0x1ef   : > { %p14958_p11 = scmp.ne.s32.totalorder %s15744_s24, %s14957_s19  ;;  %s14961_s5 = sshll.u32 %s15115_s30, 4  ;;  %s14962_s5 = int_to_ptr.vmem [resolvable:$false] %s14961_s5 }
 0x1f0   : > { %s14963_s26 = scalar_lea.vmem %s14962_s5, 32768  ;;  %p14964_p0 = scmp.lt.s32.totalorder %s15744_s24, %s14962_s5 }
 0x1f1   : > { %p14959_p12 = pnand %p14958_p11, %p15272_p4  ;;  %p14965_p1 = scmp.lt.s32.totalorder %s14963_s26, %s14957_s19 }
 0x1f3   : > { %p14960_p13 = pneg %p14959_p12  ;;  %p14966_p2 = por %p14965_p1, %p14964_p0 }
 0x1f5   : > { %p14967_p3 = pnand %p14966_p2, %p14960_p13 }
 0x1f7   : > { %14970 = shalt.err (!%p14967_p3)
}
 0x1f8   : > { %s18279_s9 = scalar_lea.sflag [#allocation23], %s15286_s29  ;;  %s1021_s16 = scalar_lea.vmem [#allocation27], %s15291_s4 }
 0x1f9   : > { %12980 = dma.hbm_to_vmem [thread:$0]  (%p15272_p4), %s15723_s1, 16384, %s15744_s24, %s18279_s9, %s18274_s0, %s18274_s0, %s18273_s22  }
 0x1fa   : > { %s1029_s14 = sshll.u32 %s1021_s16, 4  ;;  %s11727_s10 = sshll.u32 %s15093_s25, 4  ;;  %s1030_s14 = int_to_ptr.vmem [resolvable:$true] %s1029_s14 }
 0x1fb   : > { %s14971_s7 = scalar_lea.hbm %s15750_s8, 64  ;;  %s14975_s18 = scalar_lea.hbm %s18180_s17, 128 }
 0x1fc   : > { %p14972_p5 = scmp.ne.s32.totalorder %s15750_s8, %s14971_s7  ;;  %p14976_p9 = scmp.lt.s32.totalorder %s15750_s8, %s18180_s17 }
 0x1fd   : > { %p14977_p10 = scmp.lt.s32.totalorder %s14975_s18, %s14971_s7 }
 0x1fe   : > { %p14973_p7 = pnand %p14972_p5, %p15272_p4 }
 0x1ff   : > { %p14978_p11 = por %p14977_p10, %p14976_p9 }
 0x200   : > { %p14974_p8 = pneg %p14973_p7 }
 0x202   : > { %p14979_p12 = pnand %p14978_p11, %p14974_p8 }
 0x204   : > { %14982 = shalt.err (!%p14979_p12)
}
 0x205   : > { %s14983_s4 = scalar_lea.vmem %s1030_s14, 64  ;;  %s15116_s22 = smov [#allocation27]  }
 0x206   : > { %p14984_p13 = scmp.ne.s32.totalorder %s1030_s14, %s14983_s4  ;;  %s14987_s0 = sshll.u32 %s15116_s22, 4  ;;  %s14988_s0 = int_to_ptr.vmem [resolvable:$false] %s14987_s0 }
 0x207   : > { %s14989_s1 = scalar_lea.vmem %s14988_s0, 128  ;;  %p14990_p2 = scmp.lt.s32.totalorder %s1030_s14, %s14988_s0 }
 0x208   : > { %p14985_p0 = pnand %p14984_p13, %p15272_p4  ;;  %p14991_p3 = scmp.lt.s32.totalorder %s14989_s1, %s14983_s4 }
 0x20a   : > { %p14986_p1 = pneg %p14985_p0  ;;  %p14992_p5 = por %p14991_p3, %p14990_p2 }
 0x20c   : > { %p14993_p7 = pnand %p14992_p5, %p14986_p1 }
 0x20e   : > { %14996 = shalt.err (!%p14993_p7)
}
 0x20f   : > { %s18280_s24 = scalar_lea.sflag [#allocation26], %s15286_s29  ;;  %s1071_s30 = scalar_lea.hbm %s18183_s20, %s11727_s10 }
 0x210   : > { %12982 = dma.hbm_to_vmem [thread:$0]  (%p15272_p4), %s15750_s8, 64, %s1030_s14, %s18280_s24  }
 0x211   : > { %s1066_s5 = scalar_lea.vmem [#allocation30], %s15283_s28  ;;  %s14997_s9 = scalar_lea.hbm %s1071_s30, 16 }
 0x212   : > { %s1073_s26 = sshll.u32 %s1066_s5, 4  ;;  %p14998_p8 = scmp.ne.s32.totalorder %s1071_s30, %s14997_s9  ;;  %s1074_s26 = int_to_ptr.vmem [resolvable:$true] %s1073_s26 }
 0x213   : > { %s15001_s6 = scalar_lea.hbm %s18183_s20, 32  ;;  %p15002_p11 = scmp.lt.s32.totalorder %s1071_s30, %s18183_s20 }
 0x214   : > { %p14999_p9 = pnand %p14998_p8, %p15272_p4  ;;  %p15003_p12 = scmp.lt.s32.totalorder %s15001_s6, %s14997_s9 }
 0x216   : > { %p15000_p10 = pneg %p14999_p9  ;;  %p15004_p13 = por %p15003_p12, %p15002_p11 }
 0x218   : > { %p15005_p0 = pnand %p15004_p13, %p15000_p10 }
 0x21a   : > { %15008 = shalt.err (!%p15005_p0)
}
 0x21b   : > { %s15009_s28 = scalar_lea.vmem %s1074_s26, 16  ;;  %s15117_s8 = smov [#allocation30]  }
 0x21c   : > { %p15010_p1 = scmp.ne.s32.totalorder %s1074_s26, %s15009_s28  ;;  %s15013_s14 = sshll.u32 %s15117_s8, 4  ;;  %s15014_s14 = int_to_ptr.vmem [resolvable:$false] %s15013_s14 }
 0x21d   : > { %s15015_s10 = scalar_lea.vmem %s15014_s14, 32  ;;  %p15016_p5 = scmp.lt.s32.totalorder %s1074_s26, %s15014_s14 }
 0x21e   : > { %p15011_p2 = pnand %p15010_p1, %p15272_p4  ;;  %p15017_p7 = scmp.lt.s32.totalorder %s15015_s10, %s15009_s28 }
 0x220   : > { %p15012_p3 = pneg %p15011_p2  ;;  %p15018_p8 = por %p15017_p7, %p15016_p5 }
 0x222   : > { %p15019_p9 = pnand %p15018_p8, %p15012_p3 }
 0x224   : > { %15022 = shalt.err (!%p15019_p9)
}
 0x225   : > { %s18281_s2 = scalar_lea.sflag [#allocation29], %s15286_s29 }
 0x226   : > { %12984 = dma.hbm_to_vmem [thread:$0]  (%p15272_p4), %s1071_s30, 16, %s1074_s26, %s18281_s2  }
 0x227 PF: > { %p11728_p10 = scmp.ge.s32.totalorder %s15093_s25, 1  ;;  %p1091_p11 = scmp.lt.s32.totalorder %s15093_s25, 3 }
 0x229   : > { %p1092_p12 = pnand %p11728_p10, %p1091_p11 }
 0x22b   : > { %1095 = sbr.rel (%p1092_p12) target bundleno = 7526 (0x1d66), region = 112 }
 0x230   : > { %s18282_s21 = sld [smem:[#allocation41_spill]] }
 0x236   : > { %s15818_s22 = sand.u32 1, %s18282_s21  }
 0x237   : > { %s12964_s0 = smul.u32 3072, %s15818_s22  ;;  %s1098_s1 = scalar_lea.sflag [#allocation3], %s15818_s22 }
 0x239   : > { %s15822_s24 = scalar_lea.vmem [#allocation2], %s12964_s0 }
 0x23a   : > { %15040 = dma.done.wait (%p15277_p6), %s1098_s1, 49152  }
 0x23b   : > { %15042 = vsyncadd (%p15277_p6), %s1098_s1, 4294918144  ;;  %s18284_s27 = sld [smem:[#allocation43_spill]]  ;;  %s12965_s29 = smul.u32 12, %s15818_s22 }
 0x23d   : > { %s15833_s19 = scalar_lea.vmem [#allocation4], %s12965_s29 }
 0x241   : > { %s15829_s25 = sand.u32 1, %s18284_s27  }
 0x242   : > { %s1107_s3 = scalar_lea.sflag [#allocation5], %s15829_s25 }
 0x243   : > { %15044 = dma.done.wait (%p15277_p6), %s1107_s3, 16576  }
 0x244   : > { %15046 = vsyncadd (%p15277_p6), %s1107_s3, 4294950720  ;;  %s15840_s30 = sshll.u32 %s15818_s22, 10  ;;  %s15843_s5 = sshll.u32 %s15818_s22, 2 }
 0x245   : > { %s15846_s26 = scalar_lea.vmem [#allocation6], %s15840_s30  ;;  %s1125_s9 = scalar_lea.sflag [#allocation8], %s15829_s25 }
 0x246   : > { %s1128_s16 = scalar_lea.vmem [#allocation7], %s15843_s5 }
 0x247   : > { %15048 = dma.done.wait (%p15277_p6), %s1125_s9, 128  }
 0x248   : > { %15050 = vsyncadd (%p15277_p6), %s1125_s9, 4294967168  ;;  %s1137_s7 = scalar_lea.vmem [#allocation9], %s15843_s5  ;;  %s1143_s6 = scalar_lea.sflag [#allocation11], %s15829_s25 }
 0x249   : > { %s1146_s12 = scalar_lea.vmem [#allocation10], %s15843_s5 }
 0x24a   : > { %15052 = dma.done.wait (%p15277_p6), %s1143_s6, 16448  }
 0x24b   : > { %15054 = vsyncadd (%p15277_p6), %s1143_s6, 4294950848  ;;  %s15862_s18 = scalar_lea.vmem [#allocation12], %s15840_s30  ;;  %s1161_s28 = scalar_lea.sflag [#allocation14], %s15829_s25 }
 0x24c   : > { %s1164_s8 = scalar_lea.vmem [#allocation13], %s15843_s5 }
 0x24d   : > { %15056 = dma.done.wait (%p15277_p6), %s1161_s28, 16448  }
 0x24e   : > { %15058 = vsyncadd (%p15277_p6), %s1161_s28, 4294950848  ;;  %s15871_s14 = scalar_lea.vmem [#allocation15], %s15840_s30  ;;  %s1179_s10 = scalar_lea.sflag [#allocation17], %s15829_s25 }
 0x24f   : > { %s1182_s2 = scalar_lea.vmem [#allocation16], %s15843_s5 }
 0x250   : > { %15060 = dma.done.wait (%p15277_p6), %s1179_s10, 128  }
 0x251   : > { %15062 = vsyncadd (%p15277_p6), %s1179_s10, 4294967168  ;;  %s1191_s21 = scalar_lea.vmem [#allocation18], %s15843_s5  ;;  %s1197_s0 = scalar_lea.sflag [#allocation20], %s15829_s25 }
 0x252   : > { %15064 = dma.done.wait (%p15277_p6), %s1197_s0, 128  }
 0x253   : > { %15066 = vsyncadd (%p15277_p6), %s1197_s0, 4294967168  ;;  %s1215_s3 = scalar_lea.sflag [#allocation23], %s15829_s25 }
 0x254   : > { %15068 = dma.done.wait (%p15277_p6), %s1215_s3, 16448  }
 0x255   : > { %15070 = vsyncadd (%p15277_p6), %s1215_s3, 4294950848  ;;  %s15894_s6 = scalar_lea.vmem [#allocation24], %s15840_s30  ;;  %s1233_s28 = scalar_lea.sflag [#allocation26], %s15829_s25 }
 0x256   : > { %15072 = dma.done.wait (%p15277_p6), %s1233_s28, 128  }
 0x257   : > { %15074 = vsyncadd (%p15277_p6), %s1233_s28, 4294967168  ;;  %s1251_s9 = scalar_lea.sflag [#allocation29], %s15829_s25 }
 0x258   : > { %15076 = dma.done.wait (%p15277_p6), %s1251_s9, 80  }
 0x259   : > { %15078 = vsyncadd (%p15277_p6), %s1251_s9, 4294967216  ;;  %v13040_v0 = vld [vmem:[%s15822_s24 + $0x2a4] ss:$48 sps:$4 sm:$0xff]   ;;  %v13044_v2 = vld [vmem:[%s15822_s24 + $0x2a0] ss:$48 sps:$4 sm:$0xff]   ;;  %s18285_s30 = sld [smem:[#allocation51_spill]] }
 0x25a   : > { %v13042_v1 = vld [vmem:[%s15822_s24 + $0x8a4] ss:$48 sps:$4 sm:$0xff]   ;;  %3836 = vmatprep.subr.bf16.mxu0 %v13040_v0  ;;  %v13045_v3 = vld [vmem:[%s15822_s24 + $0x8a0] ss:$48 sps:$4 sm:$0xff]   ;;  %vm4549_vm0 = vcmask 130048   ;;  %p1426_p4 = scmp.lt.s32.totalorder %s18284_s27, 1 }
 0x25b   : > { %3889 = vmatprep.subr.bf16.mxu1 %v13042_v1  ;;  %v13046_v4 = vld [vmem:[%s15822_s24 + $0x244] ss:$48 sps:$4 sm:$0xff]   ;;  %3837 = vmatpush1.bf16.msra.mxu0 %v13044_v2  ;;  %v13050_v6 = vld [vmem:[%s15822_s24 + $0x240] ss:$48 sps:$4 sm:$0xff]   ;;  %s18300_s1 = scalar_lea.vmem [#allocation27], %s15843_s5  ;;  %s18301_s29 = scalar_lea.vmem [#allocation28], %s15843_s5 }
 0x25c   : > { %3890 = vmatpush1.bf16.msra.mxu1 %v13045_v3  ;;  %v13048_v5 = vld [vmem:[%s15822_s24 + $0x844] ss:$48 sps:$4 sm:$0xff]   ;;  %3838 = vmatprep.subr.bf16.mxu0 %v13046_v4  ;;  %v13051_v7 = vld [vmem:[%s15822_s24 + $0x840] ss:$48 sps:$4 sm:$0xff]   ;;  %s18310_s27 = smov (!%p1426_p4, %s18284_s27), 1  ;;  %s18302_s3 = sld [smem:[#allocation67_spill]] }
 0x25d   : > { %3891 = vmatprep.subr.bf16.mxu1 %v13048_v5  ;;  %v13052_v8 = vld [vmem:[%s15822_s24 + $0x1e4] ss:$48 sps:$4 sm:$0xff]   ;;  %v13056_v10 = vld [vmem:[%s15822_s24 + $0x1e0] ss:$48 sps:$4 sm:$0xff]   ;;  %vm11128_vm1 = vcmask 1043456   ;;  %vm11121_vm2 = vcmask 64512  }
 0x25e   : > { %v13054_v9 = vld [vmem:[%s15822_s24 + $0x7e4] ss:$48 sps:$4 sm:$0xff]   ;;  %v13057_v11 = vld [vmem:[%s15822_s24 + $0x7e0] ss:$48 sps:$4 sm:$0xff]   ;;  %s12717_s25 = sshll.u32 %s18310_s27, 5  ;;  %vm11185_vm3 = vcmask 7168  }
 0x25f   : > { %3839 = vmatpush1.bf16.msra.mxu0 %v13050_v6  ;;  %v13058_v12 = vld [vmem:[%s15822_s24 + $0x184] ss:$48 sps:$4 sm:$0xff]   ;;  %v13062_v14 = vld [vmem:[%s15822_s24 + $0x180] ss:$48 sps:$4 sm:$0xff]   ;;  %s18286_s9 = smov %s18285_s30  ;;  %v1445_v46 = vld [vmem:[%s18285_s30 + $0x8] sm:$0xff] }
 0x260   : > { %3892 = vmatpush1.bf16.msra.mxu1 %v13051_v7  ;;  %3840 = vmatprep.subr.bf16.mxu0 %v13052_v8  ;;  %v13060_v13 = vld [vmem:[%s15822_s24 + $0x784] ss:$48 sps:$4 sm:$0xff]   ;;  %v13063_v15 = vld [vmem:[%s15822_s24 + $0x780] ss:$48 sps:$4 sm:$0xff]   ;;  %v1449_v47 = vld [vmem:[%s18286_s9 + $0x28] sm:$0xff] }
 0x261   : > { %3893 = vmatprep.subr.bf16.mxu1 %v13054_v9  ;;  %v13064_v16 = vld [vmem:[%s15822_s24 + $0x124] ss:$48 sps:$4 sm:$0xff]   ;;  %v13068_v18 = vld [vmem:[%s15822_s24 + $0x120] ss:$48 sps:$4 sm:$0xff]   ;;  %v1447_v48 = vld [vmem:[%s18286_s9 + $0x18] sm:$0xff]  ;;  %v15970_v53 = vpack.c.bf16 %v1449_v47, %v1445_v46 }
 0x262   : > { %v13066_v17 = vld [vmem:[%s15822_s24 + $0x724] ss:$48 sps:$4 sm:$0xff]   ;;  %v13069_v19 = vld [vmem:[%s15822_s24 + $0x720] ss:$48 sps:$4 sm:$0xff]   ;;  %v1451_v49 = vld [vmem:[%s18286_s9 + $0x38] sm:$0xff] }
 0x263   : > { %3841 = vmatpush1.bf16.msra.mxu0 %v13056_v10  ;;  %v13070_v20 = vld [vmem:[%s15822_s24 + $0xc4] ss:$48 sps:$4 sm:$0xff]   ;;  %v13074_v22 = vld [vmem:[%s15822_s24 + $0xc0] ss:$48 sps:$4 sm:$0xff]   ;;  %v15972_v54 = vpack.c.bf16 %v1451_v49, %v1447_v48  ;;  %3868 = vmatprep.mubr.bf16.mxu0 %v15970_v53  ;;  %v13138_v10 = vld [vmem:[%s15822_s24 + $0x2ac] ss:$48 sps:$4 sm:$0xff]  }
 0x264   : > { %3894 = vmatpush1.bf16.msra.mxu1 %v13057_v11  ;;  %3842 = vmatprep.subr.bf16.mxu0 %v13058_v12  ;;  %v13072_v21 = vld [vmem:[%s15822_s24 + $0x6c4] ss:$48 sps:$4 sm:$0xff]   ;;  %v13075_v23 = vld [vmem:[%s15822_s24 + $0x6c0] ss:$48 sps:$4 sm:$0xff]   ;;  %v13141_v11 = vld [vmem:[%s15822_s24 + $0x8ac] ss:$48 sps:$4 sm:$0xff]  }
 0x265   : > { %3895 = vmatprep.subr.bf16.mxu1 %v13060_v13  ;;  %v13076_v24 = vld [vmem:[%s15822_s24 + $0x64] ss:$48 sps:$4 sm:$0xff]   ;;  %v13080_v26 = vld [vmem:[%s15822_s24 + $0x60] ss:$48 sps:$4 sm:$0xff]   ;;  %3921 = vmatprep.mubr.bf16.mxu1 %v15972_v54  ;;  %v13177_v46 = vld [vmem:[%s15822_s24 + $0x66c] ss:$48 sps:$4 sm:$0xff]  }
 0x266   : > { %v13078_v25 = vld [vmem:[%s15822_s24 + $0x664] ss:$48 sps:$4 sm:$0xff]   ;;  %v13081_v27 = vld [vmem:[%s15822_s24 + $0x660] ss:$48 sps:$4 sm:$0xff]  }
 0x267   : > { %3843 = vmatpush1.bf16.msra.mxu0 %v13062_v14  ;;  %v13082_v28 = vld [vmem:[%s15822_s24 + $0x4] ss:$48 sps:$4 sm:$0xff]   ;;  %v13086_v30 = vld [vmem:[%s15822_s24] ss:$48 sps:$4 sm:$0xff]   ;;  %v13136_v14 = vld [vmem:[%s15822_s24 + $0x2a8] ss:$48 sps:$4 sm:$0xff]  }
 0x268   : > { %3896 = vmatpush1.bf16.msra.mxu1 %v13063_v15  ;;  %3844 = vmatprep.subr.bf16.mxu0 %v13064_v16  ;;  %v13084_v29 = vld [vmem:[%s15822_s24 + $0x604] ss:$48 sps:$4 sm:$0xff]   ;;  %v13087_v31 = vld [vmem:[%s15822_s24 + $0x600] ss:$48 sps:$4 sm:$0xff]   ;;  %v13139_v15 = vld [vmem:[%s15822_s24 + $0x8a8] ss:$48 sps:$4 sm:$0xff]  }
 0x269   : > { %3897 = vmatprep.subr.bf16.mxu1 %v13066_v17  ;;  %v13088_v32 = vld [vmem:[%s15822_s24 + $0x5a4] ss:$48 sps:$4 sm:$0xff]   ;;  %v13092_v34 = vld [vmem:[%s15822_s24 + $0x5a0] ss:$48 sps:$4 sm:$0xff]   ;;  %v13144_v16 = vld [vmem:[%s15822_s24 + $0x24c] ss:$48 sps:$4 sm:$0xff]  }
 0x26a   : > { %v13090_v33 = vld [vmem:[%s15822_s24 + $0xba4] ss:$48 sps:$4 sm:$0xff]   ;;  %v13093_v35 = vld [vmem:[%s15822_s24 + $0xba0] ss:$48 sps:$4 sm:$0xff]   ;;  %v13147_v17 = vld [vmem:[%s15822_s24 + $0x84c] ss:$48 sps:$4 sm:$0xff]  }
 0x26b   : > { %3845 = vmatpush1.bf16.msra.mxu0 %v13068_v18  ;;  %v13094_v36 = vld [vmem:[%s15822_s24 + $0x544] ss:$48 sps:$4 sm:$0xff]   ;;  %v13098_v38 = vld [vmem:[%s15822_s24 + $0x540] ss:$48 sps:$4 sm:$0xff]   ;;  %v13142_v18 = vld [vmem:[%s15822_s24 + $0x248] ss:$48 sps:$4 sm:$0xff]  }
 0x26c   : > { %3898 = vmatpush1.bf16.msra.mxu1 %v13069_v19  ;;  %3846 = vmatprep.subr.bf16.mxu0 %v13070_v20  ;;  %v13096_v37 = vld [vmem:[%s15822_s24 + $0xb44] ss:$48 sps:$4 sm:$0xff]   ;;  %v13099_v39 = vld [vmem:[%s15822_s24 + $0xb40] ss:$48 sps:$4 sm:$0xff]   ;;  %v13145_v19 = vld [vmem:[%s15822_s24 + $0x848] ss:$48 sps:$4 sm:$0xff]  }
 0x26d   : > { %3899 = vmatprep.subr.bf16.mxu1 %v13072_v21  ;;  %v13100_v40 = vld [vmem:[%s15822_s24 + $0x4e4] ss:$48 sps:$4 sm:$0xff]   ;;  %v13104_v42 = vld [vmem:[%s15822_s24 + $0x4e0] ss:$48 sps:$4 sm:$0xff]   ;;  %v13150_v20 = vld [vmem:[%s15822_s24 + $0x1ec] ss:$48 sps:$4 sm:$0xff]  }
 0x26e   : > { %v13102_v41 = vld [vmem:[%s15822_s24 + $0xae4] ss:$48 sps:$4 sm:$0xff]   ;;  %v13105_v43 = vld [vmem:[%s15822_s24 + $0xae0] ss:$48 sps:$4 sm:$0xff]   ;;  %v13153_v21 = vld [vmem:[%s15822_s24 + $0x7ec] ss:$48 sps:$4 sm:$0xff]  }
 0x26f   : > { %3847 = vmatpush1.bf16.msra.mxu0 %v13074_v22  ;;  %v13106_v44 = vld [vmem:[%s15822_s24 + $0x484] ss:$48 sps:$4 sm:$0xff]   ;;  %v13110_v50 = vld [vmem:[%s15822_s24 + $0x480] ss:$48 sps:$4 sm:$0xff]   ;;  %v13148_v22 = vld [vmem:[%s15822_s24 + $0x1e8] ss:$48 sps:$4 sm:$0xff]  }
 0x270   : > { %3900 = vmatpush1.bf16.msra.mxu1 %v13075_v23  ;;  %3848 = vmatprep.subr.bf16.mxu0 %v13076_v24  ;;  %v13108_v45 = vld [vmem:[%s15822_s24 + $0xa84] ss:$48 sps:$4 sm:$0xff]   ;;  %v13111_v51 = vld [vmem:[%s15822_s24 + $0xa80] ss:$48 sps:$4 sm:$0xff]   ;;  %v13151_v23 = vld [vmem:[%s15822_s24 + $0x7e8] ss:$48 sps:$4 sm:$0xff]  }
 0x271   : > { %3901 = vmatprep.subr.bf16.mxu1 %v13078_v25  ;;  %v13112_v52 = vld [vmem:[%s15822_s24 + $0x424] ss:$48 sps:$4 sm:$0xff]   ;;  %v13116_v56 = vld [vmem:[%s15822_s24 + $0x420] ss:$48 sps:$4 sm:$0xff]   ;;  %v13156_v24 = vld [vmem:[%s15822_s24 + $0x18c] ss:$48 sps:$4 sm:$0xff]  }
 0x272   : > { %v13114_v55 = vld [vmem:[%s15822_s24 + $0xa24] ss:$48 sps:$4 sm:$0xff]   ;;  %v13117_v57 = vld [vmem:[%s15822_s24 + $0xa20] ss:$48 sps:$4 sm:$0xff]   ;;  %v13159_v25 = vld [vmem:[%s15822_s24 + $0x78c] ss:$48 sps:$4 sm:$0xff]  }
 0x273   : > { %3849 = vmatpush1.bf16.msra.mxu0 %v13080_v26  ;;  %v13118_v58 = vld [vmem:[%s15822_s24 + $0x3c4] ss:$48 sps:$4 sm:$0xff]   ;;  %v13122_v60 = vld [vmem:[%s15822_s24 + $0x3c0] ss:$48 sps:$4 sm:$0xff]   ;;  %v13154_v26 = vld [vmem:[%s15822_s24 + $0x188] ss:$48 sps:$4 sm:$0xff]  }
 0x274   : > { %3902 = vmatpush1.bf16.msra.mxu1 %v13081_v27  ;;  %3850 = vmatprep.subr.bf16.mxu0 %v13082_v28  ;;  %v13120_v59 = vld [vmem:[%s15822_s24 + $0x9c4] ss:$48 sps:$4 sm:$0xff]   ;;  %v13123_v61 = vld [vmem:[%s15822_s24 + $0x9c0] ss:$48 sps:$4 sm:$0xff]   ;;  %v13157_v27 = vld [vmem:[%s15822_s24 + $0x788] ss:$48 sps:$4 sm:$0xff]  }
 0x275   : > { %3903 = vmatprep.subr.bf16.mxu1 %v13084_v29  ;;  %v13124_v62 = vld [vmem:[%s15822_s24 + $0x364] ss:$48 sps:$4 sm:$0xff]   ;;  %v13128_v0 = vld [vmem:[%s15822_s24 + $0x360] ss:$48 sps:$4 sm:$0xff]   ;;  %v13162_v28 = vld [vmem:[%s15822_s24 + $0x12c] ss:$48 sps:$4 sm:$0xff]  }
 0x276   : > { %v13126_v63 = vld [vmem:[%s15822_s24 + $0x964] ss:$48 sps:$4 sm:$0xff]   ;;  %v13129_v1 = vld [vmem:[%s15822_s24 + $0x960] ss:$48 sps:$4 sm:$0xff]   ;;  %v13165_v29 = vld [vmem:[%s15822_s24 + $0x72c] ss:$48 sps:$4 sm:$0xff]  }
 0x277   : > { %3851 = vmatpush1.bf16.msra.mxu0 %v13086_v30  ;;  %v13130_v2 = vld [vmem:[%s15822_s24 + $0x304] ss:$48 sps:$4 sm:$0xff]   ;;  %v13134_v4 = vld [vmem:[%s15822_s24 + $0x300] ss:$48 sps:$4 sm:$0xff]   ;;  %v13160_v30 = vld [vmem:[%s15822_s24 + $0x128] ss:$48 sps:$4 sm:$0xff]  }
 0x278   : > { %3904 = vmatpush1.bf16.msra.mxu1 %v13087_v31  ;;  %3852 = vmatprep.subr.bf16.mxu0 %v13088_v32  ;;  %v13132_v3 = vld [vmem:[%s15822_s24 + $0x904] ss:$48 sps:$4 sm:$0xff]   ;;  %v13135_v5 = vld [vmem:[%s15822_s24 + $0x900] ss:$48 sps:$4 sm:$0xff]   ;;  %v13163_v31 = vld [vmem:[%s15822_s24 + $0x728] ss:$48 sps:$4 sm:$0xff]  }
 0x279   : > { %3905 = vmatprep.subr.bf16.mxu1 %v13090_v33  ;;  %v1444_v6 = vld [vmem:[%s18286_s9] sm:$0xff]  ;;  %v1446_v8 = vld [vmem:[%s18286_s9 + $0x10] sm:$0xff]  ;;  %v13168_v32 = vld [vmem:[%s15822_s24 + $0xcc] ss:$48 sps:$4 sm:$0xff]  }
 0x27a   : > { %v1448_v7 = vld [vmem:[%s18286_s9 + $0x20] sm:$0xff]  ;;  %v1450_v9 = vld [vmem:[%s18286_s9 + $0x30] sm:$0xff]  ;;  %v13171_v33 = vld [vmem:[%s15822_s24 + $0x6cc] ss:$48 sps:$4 sm:$0xff]  }
 0x27b   : > { %3853 = vmatpush2.bf16.msra.mxu0 %v13092_v34  ;;  %v16005_v12 = vpack.c.bf16 %v1448_v7, %v1444_v6  ;;  %v16007_v13 = vpack.c.bf16 %v1450_v9, %v1446_v8  ;;  %v1453_v34 = vld [vmem:[%s18286_s9 + $0x48] sm:$0xff]  ;;  %v1454_v47 = vld [vmem:[%s18286_s9 + $0x50] sm:$0xff] }
 0x27c   : > { %3906 = vmatpush2.bf16.msra.mxu1 %v13093_v35  ;;  %3854 = vmatprep.subr.bf16.mxu0 %v13094_v36  ;;  %v1457_v35 = vld [vmem:[%s18286_s9 + $0x68] sm:$0xff]  ;;  %v1452_v36 = vld [vmem:[%s18286_s9 + $0x40] sm:$0xff]  ;;  %v1458_v48 = vld [vmem:[%s18286_s9 + $0x70] sm:$0xff] }
 0x27d   : > { %3907 = vmatprep.subr.bf16.mxu1 %v13096_v37  ;;  %v16040_v37 = vpack.c.bf16 %v1457_v35, %v1453_v34  ;;  %v16068_v49 = vpack.c.bf16 %v1458_v48, %v1454_v47  ;;  %v13204_v6 = vld [vmem:[%s15822_s24 + $0x48c] ss:$48 sps:$4 sm:$0xff]   ;;  %v13202_v8 = vld [vmem:[%s15822_s24 + $0x488] ss:$48 sps:$4 sm:$0xff]   ;;  %v13238_v34 = vld [vmem:[%s15822_s24 + $0x250] ss:$48 sps:$4 sm:$0xff]  }
 0x27e   : > { %v13207_v7 = vld [vmem:[%s15822_s24 + $0xa8c] ss:$48 sps:$4 sm:$0xff]   ;;  %v13205_v9 = vld [vmem:[%s15822_s24 + $0xa88] ss:$48 sps:$4 sm:$0xff]   ;;  %v13241_v35 = vld [vmem:[%s15822_s24 + $0x850] ss:$48 sps:$4 sm:$0xff]  }
 0x27f   : > { %3855 = vmatpush2.bf16.msra.mxu0 %v13098_v38  ;;  %v1456_v38 = vld [vmem:[%s18286_s9 + $0x60] sm:$0xff] }
 0x280   : > { %3908 = vmatpush2.bf16.msra.mxu1 %v13099_v39  ;;  %3856 = vmatprep.subr.bf16.mxu0 %v13100_v40  ;;  %v1455_v39 = vld [vmem:[%s18286_s9 + $0x58] sm:$0xff]  ;;  %v13258_v47 = vld [vmem:[%s15822_s24 + $0x134] ss:$48 sps:$4 sm:$0xff]  }
 0x281   : > { %3909 = vmatprep.subr.bf16.mxu1 %v13102_v41  ;;  %v1459_v40 = vld [vmem:[%s18286_s9 + $0x78] sm:$0xff]  ;;  %v13261_v48 = vld [vmem:[%s15822_s24 + $0x734] ss:$48 sps:$4 sm:$0xff]  }
 0x282   : > { %v13166_v41 = vld [vmem:[%s15822_s24 + $0xc8] ss:$48 sps:$4 sm:$0xff]  }
 0x283   : > { %3857 = vmatpush2.bf16.msra.mxu0 %v13104_v42  ;;  %v16052_v42 = vpack.c.bf16 %v1456_v38, %v1452_v36  ;;  %v13246_v36 = vld [vmem:[%s15822_s24 + $0x1f4] ss:$48 sps:$4 sm:$0xff]  }
 0x284   : > { %3910 = vmatpush2.bf16.msra.mxu1 %v13105_v43  ;;  %3858 = vmatprep.subr.bf16.mxu0 %v13106_v44  ;;  %v16054_v43 = vpack.c.bf16 %v1459_v40, %v1455_v39  ;;  %v13169_v44 = vld [vmem:[%s15822_s24 + $0x6c8] ss:$48 sps:$4 sm:$0xff]   ;;  %v13249_v38 = vld [vmem:[%s15822_s24 + $0x7f4] ss:$48 sps:$4 sm:$0xff]   ;;  %v13244_v39 = vld [vmem:[%s15822_s24 + $0x1f0] ss:$48 sps:$4 sm:$0xff]  }
 0x285   : > { %3911 = vmatprep.subr.bf16.mxu1 %v13108_v45  ;;  %v13174_v45 = vld [vmem:[%s15822_s24 + $0x6c] ss:$48 sps:$4 sm:$0xff]   ;;  %v13247_v40 = vld [vmem:[%s15822_s24 + $0x7f0] ss:$48 sps:$4 sm:$0xff]  }
 0x287   : > { %3859 = vmatpush2.bf16.msra.mxu0 %v13110_v50  ;;  %v13172_v50 = vld [vmem:[%s15822_s24 + $0x68] ss:$48 sps:$4 sm:$0xff]  }
 0x288   : > { %3912 = vmatpush2.bf16.msra.mxu1 %v13111_v51  ;;  %3860 = vmatprep.subr.bf16.mxu0 %v13112_v52  ;;  %v13175_v51 = vld [vmem:[%s15822_s24 + $0x668] ss:$48 sps:$4 sm:$0xff]   ;;  %v13180_v52 = vld [vmem:[%s15822_s24 + $0xc] ss:$48 sps:$4 sm:$0xff]  }
 0x289   : > { %3913 = vmatprep.subr.bf16.mxu1 %v13114_v55  ;;  %v13183_v55 = vld [vmem:[%s15822_s24 + $0x60c] ss:$48 sps:$4 sm:$0xff]  }
 0x28b   : > { %3861 = vmatpush2.bf16.msra.mxu0 %v13116_v56  ;;  %v13178_v56 = vld [vmem:[%s15822_s24 + $0x8] ss:$48 sps:$4 sm:$0xff]  }
 0x28c   : > { %3914 = vmatpush2.bf16.msra.mxu1 %v13117_v57  ;;  %3862 = vmatprep.subr.bf16.mxu0 %v13118_v58  ;;  %v13181_v57 = vld [vmem:[%s15822_s24 + $0x608] ss:$48 sps:$4 sm:$0xff]   ;;  %v13186_v58 = vld [vmem:[%s15822_s24 + $0x5ac] ss:$48 sps:$4 sm:$0xff]  }
 0x28d   : > { %3915 = vmatprep.subr.bf16.mxu1 %v13120_v59  ;;  %v13189_v59 = vld [vmem:[%s15822_s24 + $0xbac] ss:$48 sps:$4 sm:$0xff]  }
 0x28f   : > { %3863 = vmatpush2.bf16.msra.mxu0 %v13122_v60  ;;  %v13184_v60 = vld [vmem:[%s15822_s24 + $0x5a8] ss:$48 sps:$4 sm:$0xff]  }
 0x290   : > { %3916 = vmatpush2.bf16.msra.mxu1 %v13123_v61  ;;  %3864 = vmatprep.subr.bf16.mxu0 %v13124_v62  ;;  %v13187_v61 = vld [vmem:[%s15822_s24 + $0xba8] ss:$48 sps:$4 sm:$0xff]   ;;  %v13192_v62 = vld [vmem:[%s15822_s24 + $0x54c] ss:$48 sps:$4 sm:$0xff]  }
 0x291   : > { %3917 = vmatprep.subr.bf16.mxu1 %v13126_v63  ;;  %v13195_v63 = vld [vmem:[%s15822_s24 + $0xb4c] ss:$48 sps:$4 sm:$0xff]  }
 0x293   : > { %3865 = vmatpush2.bf16.msra.mxu0 %v13128_v0  ;;  %v13190_v0 = vld [vmem:[%s15822_s24 + $0x548] ss:$48 sps:$4 sm:$0xff]  }
 0x294   : > { %3918 = vmatpush2.bf16.msra.mxu1 %v13129_v1  ;;  %3866 = vmatprep.subr.bf16.mxu0 %v13130_v2  ;;  %v13193_v1 = vld [vmem:[%s15822_s24 + $0xb48] ss:$48 sps:$4 sm:$0xff]   ;;  %v13198_v2 = vld [vmem:[%s15822_s24 + $0x4ec] ss:$48 sps:$4 sm:$0xff]  }
 0x295   : > { %3919 = vmatprep.subr.bf16.mxu1 %v13132_v3  ;;  %v13201_v3 = vld [vmem:[%s15822_s24 + $0xaec] ss:$48 sps:$4 sm:$0xff]  }
 0x297   : > { %3867 = vmatpush2.bf16.msra.mxu0 %v13134_v4  ;;  %v13196_v4 = vld [vmem:[%s15822_s24 + $0x4e8] ss:$48 sps:$4 sm:$0xff]  }
 0x298   : > { %3920 = vmatpush2.bf16.msra.mxu1 %v13135_v5  ;;  %3942 = vmatprep.subr.bf16.mxu0 %v13138_v10  ;;  %v13199_v5 = vld [vmem:[%s15822_s24 + $0xae8] ss:$48 sps:$4 sm:$0xff]   ;;  %v13210_v10 = vld [vmem:[%s15822_s24 + $0x42c] ss:$48 sps:$4 sm:$0xff]  }
 0x299   : > { %3995 = vmatprep.subr.bf16.mxu1 %v13141_v11  ;;  %v13213_v11 = vld [vmem:[%s15822_s24 + $0xa2c] ss:$48 sps:$4 sm:$0xff]  }
 0x29a   : > { %3869 = vmatmul.mubr.bf16.vlgmr.msra.gmra.mxu0 %v16005_v12 }
 0x29b   : > { %3922 = vmatmul.mubr.bf16.vlgmr.msra.gmra.mxu1 %v16007_v13  ;;  %3943 = vmatpush1.bf16.msra.mxu0 %v13136_v14  ;;  %v13208_v14 = vld [vmem:[%s15822_s24 + $0x428] ss:$48 sps:$4 sm:$0xff]  }
 0x29c   : > { %3996 = vmatpush1.bf16.msra.mxu1 %v13139_v15  ;;  %3944 = vmatprep.subr.bf16.mxu0 %v13144_v16  ;;  %v13211_v15 = vld [vmem:[%s15822_s24 + $0xa28] ss:$48 sps:$4 sm:$0xff]   ;;  %v13216_v16 = vld [vmem:[%s15822_s24 + $0x3cc] ss:$48 sps:$4 sm:$0xff]  }
 0x29d   : > { %3997 = vmatprep.subr.bf16.mxu1 %v13147_v17  ;;  %3878 = vmatprep.mubr.bf16.mxu0 %v16040_v37  ;;  %v13219_v17 = vld [vmem:[%s15822_s24 + $0x9cc] ss:$48 sps:$4 sm:$0xff]  }
 0x29e   : > { %3931 = vmatprep.mubr.bf16.mxu1 %v16054_v43 }
 0x29f   : > { %3945 = vmatpush1.bf16.msra.mxu0 %v13142_v18  ;;  %v13214_v18 = vld [vmem:[%s15822_s24 + $0x3c8] ss:$48 sps:$4 sm:$0xff]  }
 0x2a0   : > { %3998 = vmatpush1.bf16.msra.mxu1 %v13145_v19  ;;  %3946 = vmatprep.subr.bf16.mxu0 %v13150_v20  ;;  %v13217_v19 = vld [vmem:[%s15822_s24 + $0x9c8] ss:$48 sps:$4 sm:$0xff]   ;;  %v13222_v20 = vld [vmem:[%s15822_s24 + $0x36c] ss:$48 sps:$4 sm:$0xff]  }
 0x2a1   : > { %3999 = vmatprep.subr.bf16.mxu1 %v13153_v21  ;;  %v13225_v21 = vld [vmem:[%s15822_s24 + $0x96c] ss:$48 sps:$4 sm:$0xff]  }
 0x2a2   : > { %3879 = vmatmul.mubr.bf16.gmra.mxu0 %v16052_v42 }
 0x2a3   : > { %3947 = vmatpush1.bf16.msra.mxu0 %v13148_v22  ;;  %3974 = vmatprep.mubr.bf16.mxu0 %v15970_v53  ;;  %v13220_v22 = vld [vmem:[%s15822_s24 + $0x368] ss:$48 sps:$4 sm:$0xff]  }
 0x2a4   : > { %4000 = vmatpush1.bf16.msra.mxu1 %v13151_v23  ;;  %3948 = vmatprep.subr.bf16.mxu0 %v13156_v24  ;;  %v13223_v23 = vld [vmem:[%s15822_s24 + $0x968] ss:$48 sps:$4 sm:$0xff]   ;;  %v13228_v24 = vld [vmem:[%s15822_s24 + $0x30c] ss:$48 sps:$4 sm:$0xff]  }
 0x2a5   : > { %4001 = vmatprep.subr.bf16.mxu1 %v13159_v25  ;;  %3932 = vmatmul.mubr.bf16.gmra.mxu1 %v16068_v49  ;;  %v13231_v25 = vld [vmem:[%s15822_s24 + $0x90c] ss:$48 sps:$4 sm:$0xff]  }
 0x2a6   : > { %4027 = vmatprep.mubr.bf16.mxu1 %v15972_v54 }
 0x2a7   : > { %3949 = vmatpush1.bf16.msra.mxu0 %v13154_v26  ;;  %v13226_v26 = vld [vmem:[%s15822_s24 + $0x308] ss:$48 sps:$4 sm:$0xff]  }
 0x2a8   : > { %4002 = vmatpush1.bf16.msra.mxu1 %v13157_v27  ;;  %3950 = vmatprep.subr.bf16.mxu0 %v13162_v28  ;;  %v13229_v27 = vld [vmem:[%s15822_s24 + $0x908] ss:$48 sps:$4 sm:$0xff]   ;;  %v13234_v28 = vld [vmem:[%s15822_s24 + $0x2b4] ss:$48 sps:$4 sm:$0xff]  }
 0x2a9   : > { %4003 = vmatprep.subr.bf16.mxu1 %v13165_v29  ;;  %v13237_v29 = vld [vmem:[%s15822_s24 + $0x8b4] ss:$48 sps:$4 sm:$0xff]  }
 0x2ab   : > { %3951 = vmatpush1.bf16.msra.mxu0 %v13160_v30  ;;  %v13232_v30 = vld [vmem:[%s15822_s24 + $0x2b0] ss:$48 sps:$4 sm:$0xff]  }
 0x2ac   : > { %4004 = vmatpush1.bf16.msra.mxu1 %v13163_v31  ;;  %3952 = vmatprep.subr.bf16.mxu0 %v13168_v32  ;;  %v13235_v31 = vld [vmem:[%s15822_s24 + $0x8b0] ss:$48 sps:$4 sm:$0xff]   ;;  %v13240_v32 = vld [vmem:[%s15822_s24 + $0x254] ss:$48 sps:$4 sm:$0xff]  }
 0x2ad   : > { %4005 = vmatprep.subr.bf16.mxu1 %v13171_v33  ;;  %v13243_v33 = vld [vmem:[%s15822_s24 + $0x854] ss:$48 sps:$4 sm:$0xff]  }
 0x2af   : > { %3953 = vmatpush1.bf16.msra.mxu0 %v13166_v41  ;;  %v13252_v41 = vld [vmem:[%s15822_s24 + $0x194] ss:$48 sps:$4 sm:$0xff]  }
 0x2b0   : > { %4006 = vmatpush1.bf16.msra.mxu1 %v13169_v44  ;;  %3954 = vmatprep.subr.bf16.mxu0 %v13174_v45  ;;  %v13255_v44 = vld [vmem:[%s15822_s24 + $0x794] ss:$48 sps:$4 sm:$0xff]   ;;  %v13250_v45 = vld [vmem:[%s15822_s24 + $0x190] ss:$48 sps:$4 sm:$0xff]  }
 0x2b1   : > { %4007 = vmatprep.subr.bf16.mxu1 %v13177_v46  ;;  %v13253_v46 = vld [vmem:[%s15822_s24 + $0x790] ss:$48 sps:$4 sm:$0xff]  }
 0x2b3   : > { %3955 = vmatpush1.bf16.msra.mxu0 %v13172_v50  ;;  %v13256_v50 = vld [vmem:[%s15822_s24 + $0x130] ss:$48 sps:$4 sm:$0xff]  }
 0x2b4   : > { %4008 = vmatpush1.bf16.msra.mxu1 %v13175_v51  ;;  %3956 = vmatprep.subr.bf16.mxu0 %v13180_v52  ;;  %v13259_v51 = vld [vmem:[%s15822_s24 + $0x730] ss:$48 sps:$4 sm:$0xff]   ;;  %v13264_v52 = vld [vmem:[%s15822_s24 + $0xd4] ss:$48 sps:$4 sm:$0xff]  }
 0x2b5   : > { %4009 = vmatprep.subr.bf16.mxu1 %v13183_v55  ;;  %v13267_v55 = vld [vmem:[%s15822_s24 + $0x6d4] ss:$48 sps:$4 sm:$0xff]  }
 0x2b7   : > { %3957 = vmatpush1.bf16.msra.mxu0 %v13178_v56  ;;  %v13262_v56 = vld [vmem:[%s15822_s24 + $0xd0] ss:$48 sps:$4 sm:$0xff]  }
 0x2b8   : > { %4010 = vmatpush1.bf16.msra.mxu1 %v13181_v57  ;;  %3958 = vmatprep.subr.bf16.mxu0 %v13186_v58  ;;  %v13265_v57 = vld [vmem:[%s15822_s24 + $0x6d0] ss:$48 sps:$4 sm:$0xff]   ;;  %v13270_v58 = vld [vmem:[%s15822_s24 + $0x74] ss:$48 sps:$4 sm:$0xff]  }
 0x2b9   : > { %4011 = vmatprep.subr.bf16.mxu1 %v13189_v59  ;;  %v13273_v59 = vld [vmem:[%s15822_s24 + $0x674] ss:$48 sps:$4 sm:$0xff]  }
 0x2bb   : > { %3959 = vmatpush2.bf16.msra.mxu0 %v13184_v60  ;;  %v13268_v60 = vld [vmem:[%s15822_s24 + $0x70] ss:$48 sps:$4 sm:$0xff]  }
 0x2bc   : > { %4012 = vmatpush2.bf16.msra.mxu1 %v13187_v61  ;;  %3960 = vmatprep.subr.bf16.mxu0 %v13192_v62  ;;  %v13271_v61 = vld [vmem:[%s15822_s24 + $0x670] ss:$48 sps:$4 sm:$0xff]   ;;  %v13276_v62 = vld [vmem:[%s15822_s24 + $0x14] ss:$48 sps:$4 sm:$0xff]  }
 0x2bd   : > { %4013 = vmatprep.subr.bf16.mxu1 %v13195_v63  ;;  %v13279_v63 = vld [vmem:[%s15822_s24 + $0x614] ss:$48 sps:$4 sm:$0xff]  }
 0x2bf   : > { %3961 = vmatpush2.bf16.msra.mxu0 %v13190_v0  ;;  %v13274_v0 = vld [vmem:[%s15822_s24 + $0x10] ss:$48 sps:$4 sm:$0xff]  }
 0x2c0   : > { %4014 = vmatpush2.bf16.msra.mxu1 %v13193_v1  ;;  %3962 = vmatprep.subr.bf16.mxu0 %v13198_v2  ;;  %v13277_v1 = vld [vmem:[%s15822_s24 + $0x610] ss:$48 sps:$4 sm:$0xff]   ;;  %v13282_v2 = vld [vmem:[%s15822_s24 + $0x5b4] ss:$48 sps:$4 sm:$0xff]  }
 0x2c1   : > { %4015 = vmatprep.subr.bf16.mxu1 %v13201_v3  ;;  %v13285_v3 = vld [vmem:[%s15822_s24 + $0xbb4] ss:$48 sps:$4 sm:$0xff]  }
 0x2c3   : > { %3963 = vmatpush2.bf16.msra.mxu0 %v13196_v4  ;;  %v13280_v4 = vld [vmem:[%s15822_s24 + $0x5b0] ss:$48 sps:$4 sm:$0xff]  }
 0x2c4   : > { %4016 = vmatpush2.bf16.msra.mxu1 %v13199_v5  ;;  %3964 = vmatprep.subr.bf16.mxu0 %v13204_v6  ;;  %v13283_v5 = vld [vmem:[%s15822_s24 + $0xbb0] ss:$48 sps:$4 sm:$0xff]   ;;  %v13288_v6 = vld [vmem:[%s15822_s24 + $0x554] ss:$48 sps:$4 sm:$0xff]  }
 0x2c5   : > { %4017 = vmatprep.subr.bf16.mxu1 %v13207_v7  ;;  %v13291_v7 = vld [vmem:[%s15822_s24 + $0xb54] ss:$48 sps:$4 sm:$0xff]  }
 0x2c7   : > { %3965 = vmatpush2.bf16.msra.mxu0 %v13202_v8  ;;  %v13286_v8 = vld [vmem:[%s15822_s24 + $0x550] ss:$48 sps:$4 sm:$0xff]  }
 0x2c8   : > { %4018 = vmatpush2.bf16.msra.mxu1 %v13205_v9  ;;  %3966 = vmatprep.subr.bf16.mxu0 %v13210_v10  ;;  %v13289_v9 = vld [vmem:[%s15822_s24 + $0xb50] ss:$48 sps:$4 sm:$0xff]   ;;  %v13294_v10 = vld [vmem:[%s15822_s24 + $0x4f4] ss:$48 sps:$4 sm:$0xff]  }
 0x2c9   : > { %4019 = vmatprep.subr.bf16.mxu1 %v13213_v11  ;;  %v13297_v11 = vld [vmem:[%s15822_s24 + $0xaf4] ss:$48 sps:$4 sm:$0xff]  }
 0x2cb   : > { %3967 = vmatpush2.bf16.msra.mxu0 %v13208_v14  ;;  %v13292_v14 = vld [vmem:[%s15822_s24 + $0x4f0] ss:$48 sps:$4 sm:$0xff]  }
 0x2cc   : > { %4020 = vmatpush2.bf16.msra.mxu1 %v13211_v15  ;;  %3968 = vmatprep.subr.bf16.mxu0 %v13216_v16  ;;  %v13295_v15 = vld [vmem:[%s15822_s24 + $0xaf0] ss:$48 sps:$4 sm:$0xff]   ;;  %v13300_v16 = vld [vmem:[%s15822_s24 + $0x494] ss:$48 sps:$4 sm:$0xff]  }
 0x2cd   : > { %4021 = vmatprep.subr.bf16.mxu1 %v13219_v17  ;;  %v13303_v17 = vld [vmem:[%s15822_s24 + $0xa94] ss:$48 sps:$4 sm:$0xff]  }
 0x2cf   : > { %3969 = vmatpush2.bf16.msra.mxu0 %v13214_v18  ;;  %v13298_v18 = vld [vmem:[%s15822_s24 + $0x490] ss:$48 sps:$4 sm:$0xff]  }
 0x2d0   : > { %4022 = vmatpush2.bf16.msra.mxu1 %v13217_v19  ;;  %3970 = vmatprep.subr.bf16.mxu0 %v13222_v20  ;;  %v13301_v19 = vld [vmem:[%s15822_s24 + $0xa90] ss:$48 sps:$4 sm:$0xff]   ;;  %v13306_v20 = vld [vmem:[%s15822_s24 + $0x434] ss:$48 sps:$4 sm:$0xff]  }
 0x2d1   : > { %4023 = vmatprep.subr.bf16.mxu1 %v13225_v21  ;;  %v13309_v21 = vld [vmem:[%s15822_s24 + $0xa34] ss:$48 sps:$4 sm:$0xff]  }
 0x2d3   : > { %3971 = vmatpush2.bf16.msra.mxu0 %v13220_v22  ;;  %v13304_v22 = vld [vmem:[%s15822_s24 + $0x430] ss:$48 sps:$4 sm:$0xff]  }
 0x2d4   : > { %4024 = vmatpush2.bf16.msra.mxu1 %v13223_v23  ;;  %3972 = vmatprep.subr.bf16.mxu0 %v13228_v24  ;;  %v13307_v23 = vld [vmem:[%s15822_s24 + $0xa30] ss:$48 sps:$4 sm:$0xff]   ;;  %v13312_v24 = vld [vmem:[%s15822_s24 + $0x3d4] ss:$48 sps:$4 sm:$0xff]  }
 0x2d5   : > { %4025 = vmatprep.subr.bf16.mxu1 %v13231_v25  ;;  %v13315_v25 = vld [vmem:[%s15822_s24 + $0x9d4] ss:$48 sps:$4 sm:$0xff]  }
 0x2d7   : > { %3973 = vmatpush2.bf16.msra.mxu0 %v13226_v26  ;;  %v13310_v26 = vld [vmem:[%s15822_s24 + $0x3d0] ss:$48 sps:$4 sm:$0xff]  }
 0x2d8   : > { %4026 = vmatpush2.bf16.msra.mxu1 %v13229_v27  ;;  %4048 = vmatprep.subr.bf16.mxu0 %v13234_v28  ;;  %v13313_v27 = vld [vmem:[%s15822_s24 + $0x9d0] ss:$48 sps:$4 sm:$0xff]   ;;  %v13318_v28 = vld [vmem:[%s15822_s24 + $0x374] ss:$48 sps:$4 sm:$0xff]  }
 0x2d9   : > { %4101 = vmatprep.subr.bf16.mxu1 %v13237_v29  ;;  %v13321_v29 = vld [vmem:[%s15822_s24 + $0x974] ss:$48 sps:$4 sm:$0xff]  }
 0x2da   : > { %3975 = vmatmul.mubr.bf16.vlgmr.msra.gmra.mxu0 %v16005_v12 }
 0x2db   : > { %4028 = vmatmul.mubr.bf16.vlgmr.msra.gmra.mxu1 %v16007_v13  ;;  %4049 = vmatpush1.bf16.msra.mxu0 %v13232_v30  ;;  %v13316_v30 = vld [vmem:[%s15822_s24 + $0x370] ss:$48 sps:$4 sm:$0xff]  }
 0x2dc   : > { %4102 = vmatpush1.bf16.msra.mxu1 %v13235_v31  ;;  %4050 = vmatprep.subr.bf16.mxu0 %v13240_v32  ;;  %v13319_v31 = vld [vmem:[%s15822_s24 + $0x970] ss:$48 sps:$4 sm:$0xff]   ;;  %v13324_v32 = vld [vmem:[%s15822_s24 + $0x314] ss:$48 sps:$4 sm:$0xff]  }
 0x2dd   : > { %4103 = vmatprep.subr.bf16.mxu1 %v13243_v33  ;;  %3984 = vmatprep.mubr.bf16.mxu0 %v16040_v37  ;;  %v13327_v33 = vld [vmem:[%s15822_s24 + $0x914] ss:$48 sps:$4 sm:$0xff]  }
 0x2de   : > { %4037 = vmatprep.mubr.bf16.mxu1 %v16054_v43 }
 0x2df   : > { %4051 = vmatpush1.bf16.msra.mxu0 %v13238_v34  ;;  %v13322_v34 = vld [vmem:[%s15822_s24 + $0x310] ss:$48 sps:$4 sm:$0xff]  }
 0x2e0   : > { %4104 = vmatpush1.bf16.msra.mxu1 %v13241_v35  ;;  %4052 = vmatprep.subr.bf16.mxu0 %v13246_v36  ;;  %v13325_v35 = vld [vmem:[%s15822_s24 + $0x910] ss:$48 sps:$4 sm:$0xff]   ;;  %v13330_v36 = vld [vmem:[%s15822_s24 + $0x2bc] ss:$48 sps:$4 sm:$0xff]  }
 0x2e1   : > { %4105 = vmatprep.subr.bf16.mxu1 %v13249_v38  ;;  %v13333_v38 = vld [vmem:[%s15822_s24 + $0x8bc] ss:$48 sps:$4 sm:$0xff]  }
 0x2e2   : > { %3985 = vmatmul.mubr.bf16.gmra.mxu0 %v16052_v42 }
 0x2e3   : > { %4038 = vmatmul.mubr.bf16.gmra.mxu1 %v16068_v49  ;;  %4053 = vmatpush1.bf16.msra.mxu0 %v13244_v39  ;;  %v13328_v39 = vld [vmem:[%s15822_s24 + $0x2b8] ss:$48 sps:$4 sm:$0xff]  }
 0x2e4   : > { %4106 = vmatpush1.bf16.msra.mxu1 %v13247_v40  ;;  %4054 = vmatprep.subr.bf16.mxu0 %v13252_v41  ;;  %v13331_v40 = vld [vmem:[%s15822_s24 + $0x8b8] ss:$48 sps:$4 sm:$0xff]   ;;  %v13336_v41 = vld [vmem:[%s15822_s24 + $0x25c] ss:$48 sps:$4 sm:$0xff]  }
 0x2e5   : > { %4107 = vmatprep.subr.bf16.mxu1 %v13255_v44  ;;  %4080 = vmatprep.mubr.bf16.mxu0 %v15970_v53  ;;  %v13339_v44 = vld [vmem:[%s15822_s24 + $0x85c] ss:$48 sps:$4 sm:$0xff]  }
 0x2e6   : > { %4133 = vmatprep.mubr.bf16.mxu1 %v15972_v54 }
 0x2e7   : > { %4055 = vmatpush1.bf16.msra.mxu0 %v13250_v45  ;;  %v13334_v45 = vld [vmem:[%s15822_s24 + $0x258] ss:$48 sps:$4 sm:$0xff]  }
 0x2e8   : > { %4108 = vmatpush1.bf16.msra.mxu1 %v13253_v46  ;;  %4056 = vmatprep.subr.bf16.mxu0 %v13258_v47  ;;  %v13337_v46 = vld [vmem:[%s15822_s24 + $0x858] ss:$48 sps:$4 sm:$0xff]   ;;  %v13342_v47 = vld [vmem:[%s15822_s24 + $0x1fc] ss:$48 sps:$4 sm:$0xff]  }
 0x2e9   : > { %4109 = vmatprep.subr.bf16.mxu1 %v13261_v48  ;;  %v13345_v48 = vld [vmem:[%s15822_s24 + $0x7fc] ss:$48 sps:$4 sm:$0xff]  }
 0x2eb   : > { %4057 = vmatpush1.bf16.msra.mxu0 %v13256_v50  ;;  %v13340_v50 = vld [vmem:[%s15822_s24 + $0x1f8] ss:$48 sps:$4 sm:$0xff]  }
 0x2ec   : > { %4110 = vmatpush1.bf16.msra.mxu1 %v13259_v51  ;;  %4058 = vmatprep.subr.bf16.mxu0 %v13264_v52  ;;  %v13343_v51 = vld [vmem:[%s15822_s24 + $0x7f8] ss:$48 sps:$4 sm:$0xff]   ;;  %v13348_v52 = vld [vmem:[%s15822_s24 + $0x19c] ss:$48 sps:$4 sm:$0xff]  }
 0x2ed   : > { %4111 = vmatprep.subr.bf16.mxu1 %v13267_v55  ;;  %v13351_v55 = vld [vmem:[%s15822_s24 + $0x79c] ss:$48 sps:$4 sm:$0xff]  }
 0x2ef   : > { %4059 = vmatpush1.bf16.msra.mxu0 %v13262_v56  ;;  %v13346_v56 = vld [vmem:[%s15822_s24 + $0x198] ss:$48 sps:$4 sm:$0xff]  }
 0x2f0   : > { %4112 = vmatpush1.bf16.msra.mxu1 %v13265_v57  ;;  %4060 = vmatprep.subr.bf16.mxu0 %v13270_v58  ;;  %v13349_v57 = vld [vmem:[%s15822_s24 + $0x798] ss:$48 sps:$4 sm:$0xff]   ;;  %v13354_v58 = vld [vmem:[%s15822_s24 + $0x13c] ss:$48 sps:$4 sm:$0xff]  }
 0x2f1   : > { %4113 = vmatprep.subr.bf16.mxu1 %v13273_v59  ;;  %v13357_v59 = vld [vmem:[%s15822_s24 + $0x73c] ss:$48 sps:$4 sm:$0xff]  }
 0x2f3   : > { %4061 = vmatpush1.bf16.msra.mxu0 %v13268_v60  ;;  %v13352_v60 = vld [vmem:[%s15822_s24 + $0x138] ss:$48 sps:$4 sm:$0xff]  }
 0x2f4   : > { %4114 = vmatpush1.bf16.msra.mxu1 %v13271_v61  ;;  %4062 = vmatprep.subr.bf16.mxu0 %v13276_v62  ;;  %v13355_v61 = vld [vmem:[%s15822_s24 + $0x738] ss:$48 sps:$4 sm:$0xff]   ;;  %v13360_v62 = vld [vmem:[%s15822_s24 + $0xdc] ss:$48 sps:$4 sm:$0xff]  }
 0x2f5   : > { %4115 = vmatprep.subr.bf16.mxu1 %v13279_v63  ;;  %v13363_v63 = vld [vmem:[%s15822_s24 + $0x6dc] ss:$48 sps:$4 sm:$0xff]  }
 0x2f7   : > { %4063 = vmatpush1.bf16.msra.mxu0 %v13274_v0  ;;  %v13358_v0 = vld [vmem:[%s15822_s24 + $0xd8] ss:$48 sps:$4 sm:$0xff]  }
 0x2f8   : > { %4116 = vmatpush1.bf16.msra.mxu1 %v13277_v1  ;;  %4064 = vmatprep.subr.bf16.mxu0 %v13282_v2  ;;  %v13361_v1 = vld [vmem:[%s15822_s24 + $0x6d8] ss:$48 sps:$4 sm:$0xff]   ;;  %v13366_v2 = vld [vmem:[%s15822_s24 + $0x7c] ss:$48 sps:$4 sm:$0xff]  }
 0x2f9   : > { %4117 = vmatprep.subr.bf16.mxu1 %v13285_v3  ;;  %v13369_v3 = vld [vmem:[%s15822_s24 + $0x67c] ss:$48 sps:$4 sm:$0xff]  }
 0x2fb   : > { %4065 = vmatpush2.bf16.msra.mxu0 %v13280_v4  ;;  %v13364_v4 = vld [vmem:[%s15822_s24 + $0x78] ss:$48 sps:$4 sm:$0xff]  }
 0x2fc   : > { %4118 = vmatpush2.bf16.msra.mxu1 %v13283_v5  ;;  %4066 = vmatprep.subr.bf16.mxu0 %v13288_v6  ;;  %v13367_v5 = vld [vmem:[%s15822_s24 + $0x678] ss:$48 sps:$4 sm:$0xff]   ;;  %v13372_v6 = vld [vmem:[%s15822_s24 + $0x1c] ss:$48 sps:$4 sm:$0xff]  }
 0x2fd   : > { %4119 = vmatprep.subr.bf16.mxu1 %v13291_v7  ;;  %v13375_v7 = vld [vmem:[%s15822_s24 + $0x61c] ss:$48 sps:$4 sm:$0xff]  }
 0x2ff   : > { %4067 = vmatpush2.bf16.msra.mxu0 %v13286_v8  ;;  %v13370_v8 = vld [vmem:[%s15822_s24 + $0x18] ss:$48 sps:$4 sm:$0xff]  }
 0x300   : > { %4120 = vmatpush2.bf16.msra.mxu1 %v13289_v9  ;;  %4068 = vmatprep.subr.bf16.mxu0 %v13294_v10  ;;  %v13373_v9 = vld [vmem:[%s15822_s24 + $0x618] ss:$48 sps:$4 sm:$0xff]   ;;  %v13378_v10 = vld [vmem:[%s15822_s24 + $0x5bc] ss:$48 sps:$4 sm:$0xff]  }
 0x301   : > { %4121 = vmatprep.subr.bf16.mxu1 %v13297_v11  ;;  %v13381_v11 = vld [vmem:[%s15822_s24 + $0xbbc] ss:$48 sps:$4 sm:$0xff]  }
 0x303   : > { %4069 = vmatpush2.bf16.msra.mxu0 %v13292_v14  ;;  %v13376_v14 = vld [vmem:[%s15822_s24 + $0x5b8] ss:$48 sps:$4 sm:$0xff]  }
 0x304   : > { %4122 = vmatpush2.bf16.msra.mxu1 %v13295_v15  ;;  %4070 = vmatprep.subr.bf16.mxu0 %v13300_v16  ;;  %v13379_v15 = vld [vmem:[%s15822_s24 + $0xbb8] ss:$48 sps:$4 sm:$0xff]   ;;  %v13384_v16 = vld [vmem:[%s15822_s24 + $0x55c] ss:$48 sps:$4 sm:$0xff]  }
 0x305   : > { %4123 = vmatprep.subr.bf16.mxu1 %v13303_v17  ;;  %v13387_v17 = vld [vmem:[%s15822_s24 + $0xb5c] ss:$48 sps:$4 sm:$0xff]  }
 0x307   : > { %4071 = vmatpush2.bf16.msra.mxu0 %v13298_v18  ;;  %v13382_v18 = vld [vmem:[%s15822_s24 + $0x558] ss:$48 sps:$4 sm:$0xff]  }
 0x308   : > { %4124 = vmatpush2.bf16.msra.mxu1 %v13301_v19  ;;  %4072 = vmatprep.subr.bf16.mxu0 %v13306_v20  ;;  %v13385_v19 = vld [vmem:[%s15822_s24 + $0xb58] ss:$48 sps:$4 sm:$0xff]   ;;  %v13390_v20 = vld [vmem:[%s15822_s24 + $0x4fc] ss:$48 sps:$4 sm:$0xff]  }
 0x309   : > { %4125 = vmatprep.subr.bf16.mxu1 %v13309_v21  ;;  %v13393_v21 = vld [vmem:[%s15822_s24 + $0xafc] ss:$48 sps:$4 sm:$0xff]  }
 0x30b   : > { %4073 = vmatpush2.bf16.msra.mxu0 %v13304_v22  ;;  %v13388_v22 = vld [vmem:[%s15822_s24 + $0x4f8] ss:$48 sps:$4 sm:$0xff]  }
 0x30c   : > { %4126 = vmatpush2.bf16.msra.mxu1 %v13307_v23  ;;  %4074 = vmatprep.subr.bf16.mxu0 %v13312_v24  ;;  %v13391_v23 = vld [vmem:[%s15822_s24 + $0xaf8] ss:$48 sps:$4 sm:$0xff]   ;;  %v13396_v24 = vld [vmem:[%s15822_s24 + $0x49c] ss:$48 sps:$4 sm:$0xff]  }
 0x30d   : > { %4127 = vmatprep.subr.bf16.mxu1 %v13315_v25  ;;  %v13399_v25 = vld [vmem:[%s15822_s24 + $0xa9c] ss:$48 sps:$4 sm:$0xff]  }
 0x30f   : > { %4075 = vmatpush2.bf16.msra.mxu0 %v13310_v26  ;;  %v13394_v26 = vld [vmem:[%s15822_s24 + $0x498] ss:$48 sps:$4 sm:$0xff]  }
 0x310   : > { %4128 = vmatpush2.bf16.msra.mxu1 %v13313_v27  ;;  %4076 = vmatprep.subr.bf16.mxu0 %v13318_v28  ;;  %v13397_v27 = vld [vmem:[%s15822_s24 + $0xa98] ss:$48 sps:$4 sm:$0xff]   ;;  %v13402_v28 = vld [vmem:[%s15822_s24 + $0x43c] ss:$48 sps:$4 sm:$0xff]  }
 0x311   : > { %4129 = vmatprep.subr.bf16.mxu1 %v13321_v29  ;;  %v13405_v29 = vld [vmem:[%s15822_s24 + $0xa3c] ss:$48 sps:$4 sm:$0xff]  }
 0x313   : > { %4077 = vmatpush2.bf16.msra.mxu0 %v13316_v30  ;;  %v13400_v30 = vld [vmem:[%s15822_s24 + $0x438] ss:$48 sps:$4 sm:$0xff]  }
 0x314   : > { %4130 = vmatpush2.bf16.msra.mxu1 %v13319_v31  ;;  %4078 = vmatprep.subr.bf16.mxu0 %v13324_v32  ;;  %v13403_v31 = vld [vmem:[%s15822_s24 + $0xa38] ss:$48 sps:$4 sm:$0xff]   ;;  %v13408_v32 = vld [vmem:[%s15822_s24 + $0x3dc] ss:$48 sps:$4 sm:$0xff]  }
 0x315   : > { %4131 = vmatprep.subr.bf16.mxu1 %v13327_v33  ;;  %v13411_v33 = vld [vmem:[%s15822_s24 + $0x9dc] ss:$48 sps:$4 sm:$0xff]  }
 0x317   : > { %4079 = vmatpush2.bf16.msra.mxu0 %v13322_v34  ;;  %v13406_v34 = vld [vmem:[%s15822_s24 + $0x3d8] ss:$48 sps:$4 sm:$0xff]  }
 0x318   : > { %4132 = vmatpush2.bf16.msra.mxu1 %v13325_v35  ;;  %4154 = vmatprep.subr.bf16.mxu0 %v13330_v36  ;;  %v13409_v35 = vld [vmem:[%s15822_s24 + $0x9d8] ss:$48 sps:$4 sm:$0xff]   ;;  %v13414_v36 = vld [vmem:[%s15822_s24 + $0x37c] ss:$48 sps:$4 sm:$0xff]  }
 0x319   : > { %4207 = vmatprep.subr.bf16.mxu1 %v13333_v38  ;;  %v13417_v38 = vld [vmem:[%s15822_s24 + $0x97c] ss:$48 sps:$4 sm:$0xff]  }
 0x31a   : > { %4081 = vmatmul.mubr.bf16.vlgmr.msra.gmra.mxu0 %v16005_v12 }
 0x31b   : > { %4134 = vmatmul.mubr.bf16.vlgmr.msra.gmra.mxu1 %v16007_v13  ;;  %4155 = vmatpush1.bf16.msra.mxu0 %v13328_v39  ;;  %v13412_v39 = vld [vmem:[%s15822_s24 + $0x378] ss:$48 sps:$4 sm:$0xff]  }
 0x31c   : > { %4208 = vmatpush1.bf16.msra.mxu1 %v13331_v40  ;;  %4156 = vmatprep.subr.bf16.mxu0 %v13336_v41  ;;  %v13415_v40 = vld [vmem:[%s15822_s24 + $0x978] ss:$48 sps:$4 sm:$0xff]   ;;  %v13420_v41 = vld [vmem:[%s15822_s24 + $0x31c] ss:$48 sps:$4 sm:$0xff]  }
 0x31d   : > { %4209 = vmatprep.subr.bf16.mxu1 %v13339_v44  ;;  %4090 = vmatprep.mubr.bf16.mxu0 %v16040_v37  ;;  %v13423_v44 = vld [vmem:[%s15822_s24 + $0x91c] ss:$48 sps:$4 sm:$0xff]  }
 0x31e   : > { %4143 = vmatprep.mubr.bf16.mxu1 %v16054_v43 }
 0x31f   : > { %4157 = vmatpush1.bf16.msra.mxu0 %v13334_v45  ;;  %v13418_v45 = vld [vmem:[%s15822_s24 + $0x318] ss:$48 sps:$4 sm:$0xff]  }
 0x320   : > { %4210 = vmatpush1.bf16.msra.mxu1 %v13337_v46  ;;  %4158 = vmatprep.subr.bf16.mxu0 %v13342_v47  ;;  %v13421_v46 = vld [vmem:[%s15822_s24 + $0x918] ss:$48 sps:$4 sm:$0xff]   ;;  %v13426_v47 = vld [vmem:[%s15822_s24 + $0x2c4] ss:$48 sps:$4 sm:$0xff]  }
 0x321   : > { %4211 = vmatprep.subr.bf16.mxu1 %v13345_v48  ;;  %v13429_v48 = vld [vmem:[%s15822_s24 + $0x8c4] ss:$48 sps:$4 sm:$0xff]  }
 0x322   : > { %4091 = vmatmul.mubr.bf16.gmra.mxu0 %v16052_v42 }
 0x323   : > { %4144 = vmatmul.mubr.bf16.gmra.mxu1 %v16068_v49  ;;  %4159 = vmatpush1.bf16.msra.mxu0 %v13340_v50  ;;  %v13424_v50 = vld [vmem:[%s15822_s24 + $0x2c0] ss:$48 sps:$4 sm:$0xff]  }
 0x324   : > { %4212 = vmatpush1.bf16.msra.mxu1 %v13343_v51  ;;  %4160 = vmatprep.subr.bf16.mxu0 %v13348_v52  ;;  %v13427_v51 = vld [vmem:[%s15822_s24 + $0x8c0] ss:$48 sps:$4 sm:$0xff]   ;;  %v13432_v52 = vld [vmem:[%s15822_s24 + $0x264] ss:$48 sps:$4 sm:$0xff]  }
 0x325   : > { %4213 = vmatprep.subr.bf16.mxu1 %v13351_v55  ;;  %4186 = vmatprep.mubr.bf16.mxu0 %v15970_v53  ;;  %v13435_v55 = vld [vmem:[%s15822_s24 + $0x864] ss:$48 sps:$4 sm:$0xff]  }
 0x326   : > { %4239 = vmatprep.mubr.bf16.mxu1 %v15972_v54 }
 0x327   : > { %4161 = vmatpush1.bf16.msra.mxu0 %v13346_v56  ;;  %v13430_v56 = vld [vmem:[%s15822_s24 + $0x260] ss:$48 sps:$4 sm:$0xff]  }
 0x328   : > { %4214 = vmatpush1.bf16.msra.mxu1 %v13349_v57  ;;  %4162 = vmatprep.subr.bf16.mxu0 %v13354_v58  ;;  %v13433_v57 = vld [vmem:[%s15822_s24 + $0x860] ss:$48 sps:$4 sm:$0xff]   ;;  %v13438_v58 = vld [vmem:[%s15822_s24 + $0x204] ss:$48 sps:$4 sm:$0xff]  }
 0x329   : > { %4215 = vmatprep.subr.bf16.mxu1 %v13357_v59  ;;  %v13441_v59 = vld [vmem:[%s15822_s24 + $0x804] ss:$48 sps:$4 sm:$0xff]  }
 0x32b   : > { %4163 = vmatpush1.bf16.msra.mxu0 %v13352_v60  ;;  %v13436_v60 = vld [vmem:[%s15822_s24 + $0x200] ss:$48 sps:$4 sm:$0xff]  }
 0x32c   : > { %4216 = vmatpush1.bf16.msra.mxu1 %v13355_v61  ;;  %4164 = vmatprep.subr.bf16.mxu0 %v13360_v62  ;;  %v13439_v61 = vld [vmem:[%s15822_s24 + $0x800] ss:$48 sps:$4 sm:$0xff]   ;;  %v13444_v62 = vld [vmem:[%s15822_s24 + $0x1a4] ss:$48 sps:$4 sm:$0xff]  }
 0x32d   : > { %4217 = vmatprep.subr.bf16.mxu1 %v13363_v63  ;;  %v13447_v63 = vld [vmem:[%s15822_s24 + $0x7a4] ss:$48 sps:$4 sm:$0xff]  }
 0x32f   : > { %4165 = vmatpush1.bf16.msra.mxu0 %v13358_v0 }
 0x330   : > { %4218 = vmatpush1.bf16.msra.mxu1 %v13361_v1  ;;  %4166 = vmatprep.subr.bf16.mxu0 %v13366_v2  ;;  %v1856_v1 = vlaneseq  ;;  %v13442_v2 = vld [vmem:[%s15822_s24 + $0x1a0] ss:$48 sps:$4 sm:$0xff]  }
 0x331   : > { %4219 = vmatprep.subr.bf16.mxu1 %v13369_v3  ;;  %v13445_v3 = vld [vmem:[%s15822_s24 + $0x7a0] ss:$48 sps:$4 sm:$0xff]  }
 0x333   : > { %4167 = vmatpush1.bf16.msra.mxu0 %v13364_v4  ;;  %v13450_v4 = vld [vmem:[%s15822_s24 + $0x144] ss:$48 sps:$4 sm:$0xff]  }
 0x334   : > { %4220 = vmatpush1.bf16.msra.mxu1 %v13367_v5  ;;  %4168 = vmatprep.subr.bf16.mxu0 %v13372_v6  ;;  %v13453_v5 = vld [vmem:[%s15822_s24 + $0x744] ss:$48 sps:$4 sm:$0xff]  }
 0x335   : > { %4221 = vmatprep.subr.bf16.mxu1 %v13375_v7 }
 0x337   : > { %4169 = vmatpush1.bf16.msra.mxu0 %v13370_v8  ;;  %v16285_v8 = vshrl.u32 %v1856_v1, 7  ;;  %v13487_v1 = vld [vmem:[%s15822_s24 + $0xb00] ss:$48 sps:$4 sm:$0xff]  }
 0x338   : > { %4222 = vmatpush1.bf16.msra.mxu1 %v13373_v9  ;;  %4170 = vmatprep.subr.bf16.mxu0 %v13378_v10  ;;  %v13448_v9 = vld [vmem:[%s15822_s24 + $0x140] ss:$48 sps:$4 sm:$0xff]  }
 0x339   : > { %4223 = vmatprep.subr.bf16.mxu1 %v13381_v11  ;;  %v13451_v10 = vld [vmem:[%s15822_s24 + $0x740] ss:$48 sps:$4 sm:$0xff]   ;;  %v13456_v11 = vld [vmem:[%s15822_s24 + $0xe4] ss:$48 sps:$4 sm:$0xff]  }
 0x33b   : > { %4171 = vmatpush2.bf16.msra.mxu0 %v13376_v14  ;;  %v13459_v14 = vld [vmem:[%s15822_s24 + $0x6e4] ss:$48 sps:$4 sm:$0xff]  }
 0x33c   : > { %4224 = vmatpush2.bf16.msra.mxu1 %v13379_v15  ;;  %4172 = vmatprep.subr.bf16.mxu0 %v13384_v16  ;;  %v16294_v15 = vld [vmem:[%s15833_s19] sm:$0xff] }
 0x33d   : > { %4225 = vmatprep.subr.bf16.mxu1 %v13387_v17 }
 0x33f   : > { %4173 = vmatpush2.bf16.msra.mxu0 %v13382_v18  ;;  %v16301_v18 = vsub.s32 0, %v16285_v8 }
 0x340   : > { %4226 = vmatpush2.bf16.msra.mxu1 %v13385_v19  ;;  %4174 = vmatprep.subr.bf16.mxu0 %v13390_v20  ;;  %v13454_v19 = vld [vmem:[%s15822_s24 + $0xe0] ss:$48 sps:$4 sm:$0xff]  }
 0x341   : > { %4227 = vmatprep.subr.bf16.mxu1 %v13393_v21  ;;  %18287 = vst [vmem:[#allocation47_spill] sm:$0xff] %v16301_v18  ;;  %v13457_v20 = vld [vmem:[%s15822_s24 + $0x6e0] ss:$48 sps:$4 sm:$0xff]   ;;  %v16306_v21 = vsub.s32 1, %v16285_v8 }
 0x343   : > { %4175 = vmatpush2.bf16.msra.mxu0 %v13388_v22  ;;  %18288 = vst [vmem:[#allocation48_spill] sm:$0xff] %v16306_v21  ;;  %v13462_v22 = vld [vmem:[%s15822_s24 + $0x84] ss:$48 sps:$4 sm:$0xff]  }
 0x344   : > { %4228 = vmatpush2.bf16.msra.mxu1 %v13391_v23  ;;  %4176 = vmatprep.subr.bf16.mxu0 %v13396_v24  ;;  %v13465_v23 = vld [vmem:[%s15822_s24 + $0x684] ss:$48 sps:$4 sm:$0xff]  }
 0x345   : > { %4229 = vmatprep.subr.bf16.mxu1 %v13399_v25 }
 0x347   : > { %4177 = vmatpush2.bf16.msra.mxu0 %v13394_v26  ;;  %v16316_v26 = vrot.slane %v16294_v15, %v16301_v18 }
 0x348   : > { %4230 = vmatpush2.bf16.msra.mxu1 %v13397_v27  ;;  %4178 = vmatprep.subr.bf16.mxu0 %v13402_v28  ;;  %v13460_v27 = vld [vmem:[%s15822_s24 + $0x80] ss:$48 sps:$4 sm:$0xff]  }
 0x349   : > { %4231 = vmatprep.subr.bf16.mxu1 %v13405_v29  ;;  %v13463_v28 = vld [vmem:[%s15822_s24 + $0x680] ss:$48 sps:$4 sm:$0xff]  }
 0x34b   : > { %4179 = vmatpush2.bf16.msra.mxu0 %v13400_v30  ;;  %v16322_v30 = vrot.slane %v16294_v15, %v16306_v21 }
 0x34c   : > { %4232 = vmatpush2.bf16.msra.mxu1 %v13403_v31  ;;  %4180 = vmatprep.subr.bf16.mxu0 %v13408_v32  ;;  %v13468_v31 = vld [vmem:[%s15822_s24 + $0x24] ss:$48 sps:$4 sm:$0xff]  }
 0x34d   : > { %4233 = vmatprep.subr.bf16.mxu1 %v13411_v33  ;;  %v13471_v32 = vld [vmem:[%s15822_s24 + $0x624] ss:$48 sps:$4 sm:$0xff]  }
 0x34f   : > { %4181 = vmatpush2.bf16.msra.mxu0 %v13406_v34 }
 0x350   : > { %4234 = vmatpush2.bf16.msra.mxu1 %v13409_v35  ;;  %4182 = vmatprep.subr.bf16.mxu0 %v13414_v36 }
 0x351   : > { %4235 = vmatprep.subr.bf16.mxu1 %v13417_v38  ;;  %v13466_v38 = vld [vmem:[%s15822_s24 + $0x20] ss:$48 sps:$4 sm:$0xff]  }
 0x353   : > { %4183 = vmatpush2.bf16.msra.mxu0 %v13412_v39  ;;  %v13469_v39 = vld [vmem:[%s15822_s24 + $0x620] ss:$48 sps:$4 sm:$0xff]  }
 0x354   : > { %4236 = vmatpush2.bf16.msra.mxu1 %v13415_v40  ;;  %4184 = vmatprep.subr.bf16.mxu0 %v13420_v41 }
 0x355   : > { %4237 = vmatprep.subr.bf16.mxu1 %v13423_v44  ;;  %v13474_v44 = vld [vmem:[%s15822_s24 + $0x5c4] ss:$48 sps:$4 sm:$0xff]  }
 0x357   : > { %4185 = vmatpush2.bf16.msra.mxu0 %v13418_v45  ;;  %v13477_v45 = vld [vmem:[%s15822_s24 + $0xbc4] ss:$48 sps:$4 sm:$0xff]  }
 0x358   : > { %4238 = vmatpush2.bf16.msra.mxu1 %v13421_v46  ;;  %4260 = vmatprep.subr.bf16.mxu0 %v13426_v47 }
 0x359   : > { %4313 = vmatprep.subr.bf16.mxu1 %v13429_v48 }
 0x35a   : > { %4187 = vmatmul.mubr.bf16.vlgmr.msra.gmra.mxu0 %v16005_v12  ;;  %v16273_v0 = vpop.f32.mrf.mxu0 }
 0x35b   : > { %4240 = vmatmul.mubr.bf16.vlgmr.msra.gmra.mxu1 %v16007_v13  ;;  %4261 = vmatpush1.bf16.msra.mxu0 %v13424_v50  ;;  %v16281_v6 = vpop.f32.mrf.mxu1 }
 0x35c   : > { %4314 = vmatpush1.bf16.msra.mxu1 %v13427_v51  ;;  %4262 = vmatprep.subr.bf16.mxu0 %v13432_v52  ;;  %v16283_v7 = vpop.f32.mrf.mxu0  ;;  %v13472_v51 = vld [vmem:[%s15822_s24 + $0x5c0] ss:$48 sps:$4 sm:$0xff]  }
 0x35d   : > { %4315 = vmatprep.subr.bf16.mxu1 %v13435_v55  ;;  %4196 = vmatprep.mubr.bf16.mxu0 %v16040_v37  ;;  %v16296_v16 = vpop.f32.mrf.mxu1  ;;  %v13475_v52 = vld [vmem:[%s15822_s24 + $0xbc0] ss:$48 sps:$4 sm:$0xff]  }
 0x35e   : > { %4249 = vmatprep.mubr.bf16.mxu1 %v16054_v43  ;;  %v16298_v17 = vpop.f32.mrf.mxu0 }
 0x35f   : > { %4263 = vmatpush1.bf16.msra.mxu0 %v13430_v56  ;;  %v16310_v24 = vpop.f32.mrf.mxu1  ;;  %v13480_v56 = vld [vmem:[%s15822_s24 + $0x564] ss:$48 sps:$4 sm:$0xff]  }
 0x360   : > { %4316 = vmatpush1.bf16.msra.mxu1 %v13433_v57  ;;  %4264 = vmatprep.subr.bf16.mxu0 %v13438_v58  ;;  %v16312_v25 = vpop.f32.mrf.mxu0  ;;  %v13483_v57 = vld [vmem:[%s15822_s24 + $0xb64] ss:$48 sps:$4 sm:$0xff]  }
 0x361   : > { %4317 = vmatprep.subr.bf16.mxu1 %v13441_v59  ;;  %v16327_v34 = vpop.f32.mrf.mxu1  ;;  %v13478_v59 = vld [vmem:[%s15822_s24 + $0x560] ss:$48 sps:$4 sm:$0xff]  }
 0x362   : > { %4197 = vmatmul.mubr.bf16.gmra.mxu0 %v16052_v42  ;;  %v3880_v29 = vpop.f32.mrf.mxu0 }
 0x363   : > { %4250 = vmatmul.mubr.bf16.gmra.mxu1 %v16068_v49  ;;  %4265 = vmatpush1.bf16.msra.mxu0 %v13436_v60  ;;  %v3881_v33 = vadd.f32 %v3880_v29, %v16316_v26  ;;  %v13481_v60 = vld [vmem:[%s15822_s24 + $0xb60] ss:$48 sps:$4 sm:$0xff]  }
 0x364   : > { %4318 = vmatpush1.bf16.msra.mxu1 %v13439_v61  ;;  %4266 = vmatprep.subr.bf16.mxu0 %v13444_v62  ;;  %v3882_v35 = vpop.f32.mrf.mxu0  ;;  %v13486_v61 = vld [vmem:[%s15822_s24 + $0x504] ss:$48 sps:$4 sm:$0xff]   ;;  %v13508_v29 = vld [vmem:[%s15822_s24 + $0x380] ss:$48 sps:$4 sm:$0xff]  }
 0x365   : > { %4319 = vmatprep.subr.bf16.mxu1 %v13447_v63  ;;  %4292 = vmatprep.mubr.bf16.mxu0 %v15970_v53  ;;  %v3883_v36 = vadd.f32 %v3882_v35, %v16322_v30  ;;  %v3933_v40 = vpop.f32.mrf.mxu1  ;;  %v13489_v62 = vld [vmem:[%s15822_s24 + $0xb04] ss:$48 sps:$4 sm:$0xff]   ;;  %v13484_v63 = vld [vmem:[%s15822_s24 + $0x500] ss:$48 sps:$4 sm:$0xff]  }
 0x366   : > { %4345 = vmatprep.mubr.bf16.mxu1 %v15972_v54  ;;  %v3884_v41 = vpop.f32.mrf.mxu0  ;;  %v16334_v46 = vadd.f32 %v3933_v40, %v3881_v33  ;;  %v13519_v33 = vld [vmem:[%s15822_s24 + $0x924] ss:$48 sps:$4 sm:$0xff]   ;;  %v13514_v35 = vld [vmem:[%s15822_s24 + $0x320] ss:$48 sps:$4 sm:$0xff]   ;;  %v16374_v40 = vsub.s32 2, %v16285_v8 }
 0x367   : > { %4267 = vmatpush1.bf16.msra.mxu0 %v13442_v2  ;;  %v3885_v47 = vadd.f32 %v3884_v41, %v16316_v26  ;;  %v3935_v48 = vpop.f32.mrf.mxu1  ;;  %v13492_v2 = vld [vmem:[%s15822_s24 + $0x4a4] ss:$48 sps:$4 sm:$0xff]   ;;  %v13520_v41 = vld [vmem:[%s15822_s24 + $0x2c8] ss:$48 sps:$4 sm:$0xff]  }
 0x368   : > { %4320 = vmatpush1.bf16.msra.mxu1 %v13445_v3  ;;  %4268 = vmatprep.subr.bf16.mxu0 %v13450_v4  ;;  %v16337_v50 = vadd.f32 %v3935_v48, %v3883_v36  ;;  %v13495_v3 = vld [vmem:[%s15822_s24 + $0xaa4] ss:$48 sps:$4 sm:$0xff]   ;;  %v13490_v4 = vld [vmem:[%s15822_s24 + $0x4a0] ss:$48 sps:$4 sm:$0xff]   ;;  %18289 = vst [vmem:[#allocation49_spill] sm:$0xff] %v16374_v40 }
 0x369   : > { %4321 = vmatprep.subr.bf16.mxu1 %v13453_v5  ;;  %v3937_v55 = vpop.f32.mrf.mxu1  ;;  %v13493_v5 = vld [vmem:[%s15822_s24 + $0xaa0] ss:$48 sps:$4 sm:$0xff]   ;;  %v13531_v48 = vld [vmem:[%s15822_s24 + $0x86c] ss:$48 sps:$4 sm:$0xff]  }
 0x36a   : > { %v16343_v58 = vadd.f32 %v3937_v55, %v3885_v47  ;;  %v13517_v36 = vld [vmem:[%s15822_s24 + $0x920] ss:$48 sps:$4 sm:$0xff]   ;;  %v13528_v47 = vld [vmem:[%s15822_s24 + $0x26c] ss:$48 sps:$4 sm:$0xff]  }
 0x36b   : > { %4269 = vmatpush1.bf16.msra.mxu0 %v13448_v9  ;;  %v13498_v9 = vld [vmem:[%s15822_s24 + $0x444] ss:$48 sps:$4 sm:$0xff]   ;;  %v16389_v55 = vpop.f32.mrf.mxu1 }
 0x36c   : > { %4322 = vmatpush1.bf16.msra.mxu1 %v13451_v10  ;;  %4270 = vmatprep.subr.bf16.mxu0 %v13456_v11  ;;  %v13501_v10 = vld [vmem:[%s15822_s24 + $0xa44] ss:$48 sps:$4 sm:$0xff]   ;;  %v13496_v11 = vld [vmem:[%s15822_s24 + $0x440] ss:$48 sps:$4 sm:$0xff]  }
 0x36d   : > { %4323 = vmatprep.subr.bf16.mxu1 %v13459_v14  ;;  %v13499_v14 = vld [vmem:[%s15822_s24 + $0xa40] ss:$48 sps:$4 sm:$0xff]  }
 0x36f   : > { %4271 = vmatpush1.bf16.msra.mxu0 %v13454_v19  ;;  %v13504_v19 = vld [vmem:[%s15822_s24 + $0x3e4] ss:$48 sps:$4 sm:$0xff]  }
 0x370   : > { %4324 = vmatpush1.bf16.msra.mxu1 %v13457_v20  ;;  %4272 = vmatprep.subr.bf16.mxu0 %v13462_v22  ;;  %v13507_v20 = vld [vmem:[%s15822_s24 + $0x9e4] ss:$48 sps:$4 sm:$0xff]   ;;  %v13502_v22 = vld [vmem:[%s15822_s24 + $0x3e0] ss:$48 sps:$4 sm:$0xff]  }
 0x371   : > { %4325 = vmatprep.subr.bf16.mxu1 %v13465_v23  ;;  %v13505_v23 = vld [vmem:[%s15822_s24 + $0x9e0] ss:$48 sps:$4 sm:$0xff]  }
 0x373   : > { %4273 = vmatpush1.bf16.msra.mxu0 %v13460_v27  ;;  %v13510_v27 = vld [vmem:[%s15822_s24 + $0x384] ss:$48 sps:$4 sm:$0xff]  }
 0x374   : > { %4326 = vmatpush1.bf16.msra.mxu1 %v13463_v28  ;;  %4274 = vmatprep.subr.bf16.mxu0 %v13468_v31  ;;  %v13513_v28 = vld [vmem:[%s15822_s24 + $0x984] ss:$48 sps:$4 sm:$0xff]   ;;  %v13511_v31 = vld [vmem:[%s15822_s24 + $0x980] ss:$48 sps:$4 sm:$0xff]  }
 0x375   : > { %4327 = vmatprep.subr.bf16.mxu1 %v13471_v32  ;;  %v13516_v32 = vld [vmem:[%s15822_s24 + $0x324] ss:$48 sps:$4 sm:$0xff]  }
 0x377   : > { %4275 = vmatpush1.bf16.msra.mxu0 %v13466_v38  ;;  %v13522_v38 = vld [vmem:[%s15822_s24 + $0x2cc] ss:$48 sps:$4 sm:$0xff]  }
 0x378   : > { %4328 = vmatpush1.bf16.msra.mxu1 %v13469_v39  ;;  %4276 = vmatprep.subr.bf16.mxu0 %v13474_v44  ;;  %v13525_v39 = vld [vmem:[%s15822_s24 + $0x8cc] ss:$48 sps:$4 sm:$0xff]   ;;  %v16378_v44 = vsub.s32 3, %v16285_v8 }
 0x379   : > { %4329 = vmatprep.subr.bf16.mxu1 %v13477_v45  ;;  %v13523_v45 = vld [vmem:[%s15822_s24 + $0x8c8] ss:$48 sps:$4 sm:$0xff]  }
 0x37a   : > { %18290 = vst [vmem:[#allocation50_spill] sm:$0xff] %v16378_v44 }
 0x37b   : > { %4277 = vmatpush2.bf16.msra.mxu0 %v13472_v51  ;;  %v16385_v51 = vrot.slane %v16294_v15, %v16374_v40 }
 0x37c   : > { %4330 = vmatpush2.bf16.msra.mxu1 %v13475_v52  ;;  %4278 = vmatprep.subr.bf16.mxu0 %v13480_v56  ;;  %v16387_v52 = vpop.f32.mrf.mxu0  ;;  %v16393_v56 = vrot.slane %v16294_v15, %v16378_v44 }
 0x37d   : > { %4331 = vmatprep.subr.bf16.mxu1 %v13483_v57  ;;  %v13526_v57 = vld [vmem:[%s15822_s24 + $0x268] ss:$48 sps:$4 sm:$0xff]  }
 0x37f   : > { %4279 = vmatpush2.bf16.msra.mxu0 %v13478_v59  ;;  %v13529_v59 = vld [vmem:[%s15822_s24 + $0x868] ss:$48 sps:$4 sm:$0xff]  }
 0x380   : > { %4332 = vmatpush2.bf16.msra.mxu1 %v13481_v60  ;;  %4280 = vmatprep.subr.bf16.mxu0 %v13486_v61 }
 0x381   : > { %4333 = vmatprep.subr.bf16.mxu1 %v13489_v62  ;;  %v13534_v62 = vld [vmem:[%s15822_s24 + $0x20c] ss:$48 sps:$4 sm:$0xff]  }
 0x383   : > { %4281 = vmatpush2.bf16.msra.mxu0 %v13484_v63  ;;  %v13537_v63 = vld [vmem:[%s15822_s24 + $0x80c] ss:$48 sps:$4 sm:$0xff]  }
 0x384   : > { %4334 = vmatpush2.bf16.msra.mxu1 %v13487_v1  ;;  %4282 = vmatprep.subr.bf16.mxu0 %v13492_v2 }
 0x385   : > { %4335 = vmatprep.subr.bf16.mxu1 %v13495_v3 }
 0x387   : > { %4283 = vmatpush2.bf16.msra.mxu0 %v13490_v4 }
 0x388   : > { %4336 = vmatpush2.bf16.msra.mxu1 %v13493_v5  ;;  %4284 = vmatprep.subr.bf16.mxu0 %v13498_v9  ;;  %v13532_v5 = vld [vmem:[%s15822_s24 + $0x208] ss:$48 sps:$4 sm:$0xff]  }
 0x389   : > { %4337 = vmatprep.subr.bf16.mxu1 %v13501_v10  ;;  %v13535_v9 = vld [vmem:[%s15822_s24 + $0x808] ss:$48 sps:$4 sm:$0xff]  }
 0x38b   : > { %4285 = vmatpush2.bf16.msra.mxu0 %v13496_v11 }
 0x38c   : > { %4338 = vmatpush2.bf16.msra.mxu1 %v13499_v14  ;;  %4286 = vmatprep.subr.bf16.mxu0 %v13504_v19  ;;  %v13540_v14 = vld [vmem:[%s15822_s24 + $0x1ac] ss:$48 sps:$4 sm:$0xff]  }
 0x38d   : > { %4339 = vmatprep.subr.bf16.mxu1 %v13507_v20  ;;  %v13543_v19 = vld [vmem:[%s15822_s24 + $0x7ac] ss:$48 sps:$4 sm:$0xff]  }
 0x38f   : > { %4287 = vmatpush2.bf16.msra.mxu0 %v13502_v22 }
 0x390   : > { %4340 = vmatpush2.bf16.msra.mxu1 %v13505_v23  ;;  %4288 = vmatprep.subr.bf16.mxu0 %v13510_v27 }
 0x391   : > { %4341 = vmatprep.subr.bf16.mxu1 %v13513_v28 }
 0x393   : > { %4289 = vmatpush2.bf16.msra.mxu0 %v13508_v29  ;;  %v13538_v29 = vld [vmem:[%s15822_s24 + $0x1a8] ss:$48 sps:$4 sm:$0xff]  }
 0x394   : > { %4342 = vmatpush2.bf16.msra.mxu1 %v13511_v31  ;;  %4290 = vmatprep.subr.bf16.mxu0 %v13516_v32  ;;  %v13541_v31 = vld [vmem:[%s15822_s24 + $0x7a8] ss:$48 sps:$4 sm:$0xff]   ;;  %v13546_v32 = vld [vmem:[%s15822_s24 + $0x14c] ss:$48 sps:$4 sm:$0xff]  }
 0x395   : > { %4343 = vmatprep.subr.bf16.mxu1 %v13519_v33  ;;  %v13549_v33 = vld [vmem:[%s15822_s24 + $0x74c] ss:$48 sps:$4 sm:$0xff]  }
 0x397   : > { %4291 = vmatpush2.bf16.msra.mxu0 %v13514_v35 }
 0x398   : > { %4344 = vmatpush2.bf16.msra.mxu1 %v13517_v36  ;;  %4366 = vmatprep.subr.bf16.mxu0 %v13522_v38 }
 0x399   : > { %4419 = vmatprep.subr.bf16.mxu1 %v13525_v39 }
 0x39a   : > { %v3976_v60 = vpop.f32.mrf.mxu0  ;;  %4293 = vmatmul.mubr.bf16.vlgmr.msra.gmra.mxu0 %v16005_v12 }
 0x39b   : > { %v4029_v61 = vpop.f32.mrf.mxu1  ;;  %4346 = vmatmul.mubr.bf16.vlgmr.msra.gmra.mxu1 %v16007_v13  ;;  %v3977_v1 = vadd.f32 %v3976_v60, %v16385_v51  ;;  %4367 = vmatpush1.bf16.msra.mxu0 %v13520_v41  ;;  %v13555_v60 = vld [vmem:[%s15822_s24 + $0x6ec] ss:$48 sps:$4 sm:$0xff]  }
 0x39c   : > { %4420 = vmatpush1.bf16.msra.mxu1 %v13523_v45  ;;  %v3978_v15 = vpop.f32.mrf.mxu0  ;;  %4368 = vmatprep.subr.bf16.mxu0 %v13528_v47  ;;  %v13544_v45 = vld [vmem:[%s15822_s24 + $0x148] ss:$48 sps:$4 sm:$0xff]  }
 0x39d   : > { %v4031_v2 = vpop.f32.mrf.mxu1  ;;  %4421 = vmatprep.subr.bf16.mxu1 %v13531_v48  ;;  %v16402_v3 = vadd.f32 %v4029_v61, %v3977_v1  ;;  %v3979_v4 = vadd.f32 %v3978_v15, %v16393_v56  ;;  %4302 = vmatprep.mubr.bf16.mxu0 %v16040_v37  ;;  %v13547_v47 = vld [vmem:[%s15822_s24 + $0x748] ss:$48 sps:$4 sm:$0xff]  }
 0x39e   : > { %4355 = vmatprep.mubr.bf16.mxu1 %v16054_v43  ;;  %v3980_v10 = vpop.f32.mrf.mxu0  ;;  %v13553_v15 = vld [vmem:[%s15822_s24 + $0x6e8] ss:$48 sps:$4 sm:$0xff]  }
 0x39f   : > { %v4033_v11 = vpop.f32.mrf.mxu1  ;;  %v16411_v20 = vadd.f32 %v4031_v2, %v3979_v4  ;;  %v3981_v22 = vadd.f32 %v3980_v10, %v16385_v51  ;;  %4369 = vmatpush1.bf16.msra.mxu0 %v13526_v57  ;;  %v13558_v2 = vld [vmem:[%s15822_s24 + $0x8c] ss:$48 sps:$4 sm:$0xff]  }
 0x3a0   : > { %4422 = vmatpush1.bf16.msra.mxu1 %v13529_v59  ;;  %v16414_v23 = vpop.f32.mrf.mxu0  ;;  %4370 = vmatprep.subr.bf16.mxu0 %v13534_v62  ;;  %v13552_v59 = vld [vmem:[%s15822_s24 + $0xec] ss:$48 sps:$4 sm:$0xff]  }
 0x3a1   : > { %v16416_v27 = vpop.f32.mrf.mxu1  ;;  %4423 = vmatprep.subr.bf16.mxu1 %v13537_v63  ;;  %v16418_v28 = vadd.f32 %v4033_v11, %v3981_v22  ;;  %v13561_v4 = vld [vmem:[%s15822_s24 + $0x68c] ss:$48 sps:$4 sm:$0xff]   ;;  %v13562_v11 = vld [vmem:[%s15822_s24 + $0x28] ss:$48 sps:$4 sm:$0xff]  }
 0x3a2   : > { %v3986_v35 = vpop.f32.mrf.mxu0  ;;  %4303 = vmatmul.mubr.bf16.gmra.mxu0 %v16052_v42  ;;  %v13567_v10 = vld [vmem:[%s15822_s24 + $0x62c] ss:$48 sps:$4 sm:$0xff]  }
 0x3a3   : > { %v4039_v36 = vpop.f32.mrf.mxu1  ;;  %4356 = vmatmul.mubr.bf16.gmra.mxu1 %v16068_v49  ;;  %4371 = vmatpush1.bf16.msra.mxu0 %v13532_v5  ;;  %v3987_v38 = vadd.f32 %v3986_v35, %v16385_v51  ;;  %v13559_v5 = vld [vmem:[%s15822_s24 + $0x688] ss:$48 sps:$4 sm:$0xff]   ;;  %v13573_v22 = vld [vmem:[%s15822_s24 + $0xbcc] ss:$48 sps:$4 sm:$0xff]  }
 0x3a4   : > { %4424 = vmatpush1.bf16.msra.mxu1 %v13535_v9  ;;  %4372 = vmatprep.subr.bf16.mxu0 %v13540_v14  ;;  %v3988_v39 = vpop.f32.mrf.mxu0  ;;  %v13564_v9 = vld [vmem:[%s15822_s24 + $0x2c] ss:$48 sps:$4 sm:$0xff]   ;;  %v13565_v14 = vld [vmem:[%s15822_s24 + $0x628] ss:$48 sps:$4 sm:$0xff]  }
 0x3a5   : > { %4425 = vmatprep.subr.bf16.mxu1 %v13543_v19  ;;  %v4041_v41 = vpop.f32.mrf.mxu1  ;;  %v3989_v48 = vadd.f32 %v3988_v39, %v16393_v56  ;;  %v16430_v57 = vadd.f32 %v4039_v36, %v3987_v38  ;;  %4398 = vmatprep.mubr.bf16.mxu0 %v15970_v53  ;;  %v13550_v53 = vld [vmem:[%s15822_s24 + $0xe8] ss:$48 sps:$4 sm:$0xff]   ;;  %v13570_v19 = vld [vmem:[%s15822_s24 + $0x5cc] ss:$48 sps:$4 sm:$0xff]  }
 0x3a6   : > { %4451 = vmatprep.mubr.bf16.mxu1 %v15972_v54  ;;  %v3990_v61 = vpop.f32.mrf.mxu0  ;;  %v13574_v35 = vld [vmem:[%s15822_s24 + $0x568] ss:$48 sps:$4 sm:$0xff]   ;;  %v13582_v38 = vld [vmem:[%s15822_s24 + $0x50c] ss:$48 sps:$4 sm:$0xff]  }
 0x3a7   : > { %4373 = vmatpush1.bf16.msra.mxu0 %v13538_v29  ;;  %v3991_v62 = vadd.f32 %v3990_v61, %v16385_v51  ;;  %v16437_v63 = vadd.f32 %v4041_v41, %v3989_v48  ;;  %v4043_v1 = vpop.f32.mrf.mxu1  ;;  %v13556_v51 = vld [vmem:[%s15822_s24 + $0x88] ss:$48 sps:$4 sm:$0xff]   ;;  %v13585_v39 = vld [vmem:[%s15822_s24 + $0xb0c] ss:$48 sps:$4 sm:$0xff]  }
 0x3a8   : > { %4426 = vmatpush1.bf16.msra.mxu1 %v13541_v31  ;;  %4374 = vmatprep.subr.bf16.mxu0 %v13546_v32  ;;  %v13568_v29 = vld [vmem:[%s15822_s24 + $0x5c8] ss:$48 sps:$4 sm:$0xff]   ;;  %v13576_v32 = vld [vmem:[%s15822_s24 + $0x56c] ss:$48 sps:$4 sm:$0xff]  }
 0x3a9   : > { %4427 = vmatprep.subr.bf16.mxu1 %v13549_v33  ;;  %v16441_v54 = vadd.f32 %v4043_v1, %v3991_v62  ;;  %v13571_v31 = vld [vmem:[%s15822_s24 + $0xbc8] ss:$48 sps:$4 sm:$0xff]   ;;  %v13579_v33 = vld [vmem:[%s15822_s24 + $0xb6c] ss:$48 sps:$4 sm:$0xff]  }
 0x3aa   : > { %v13577_v36 = vld [vmem:[%s15822_s24 + $0xb68] ss:$48 sps:$4 sm:$0xff]   ;;  %v13591_v48 = vld [vmem:[%s15822_s24 + $0xaac] ss:$48 sps:$4 sm:$0xff]  }
 0x3ab   : > { %4375 = vmatpush1.bf16.msra.mxu0 %v13544_v45  ;;  %v13580_v41 = vld [vmem:[%s15822_s24 + $0x508] ss:$48 sps:$4 sm:$0xff]   ;;  %v13594_v61 = vld [vmem:[%s15822_s24 + $0x44c] ss:$48 sps:$4 sm:$0xff]  }
 0x3ac   : > { %4428 = vmatpush1.bf16.msra.mxu1 %v13547_v47  ;;  %4376 = vmatprep.subr.bf16.mxu0 %v13552_v59  ;;  %v13583_v45 = vld [vmem:[%s15822_s24 + $0xb08] ss:$48 sps:$4 sm:$0xff]   ;;  %v13588_v47 = vld [vmem:[%s15822_s24 + $0x4ac] ss:$48 sps:$4 sm:$0xff]  }
 0x3ad   : > { %4429 = vmatprep.subr.bf16.mxu1 %v13555_v60  ;;  %v13586_v59 = vld [vmem:[%s15822_s24 + $0x4a8] ss:$48 sps:$4 sm:$0xff]   ;;  %v13597_v62 = vld [vmem:[%s15822_s24 + $0xa4c] ss:$48 sps:$4 sm:$0xff]  }
 0x3ae   : > { %v13589_v60 = vld [vmem:[%s15822_s24 + $0xaa8] ss:$48 sps:$4 sm:$0xff]  }
 0x3af   : > { %4377 = vmatpush1.bf16.msra.mxu0 %v13550_v53  ;;  %v13592_v1 = vld [vmem:[%s15822_s24 + $0x448] ss:$48 sps:$4 sm:$0xff]  }
 0x3b0   : > { %4430 = vmatpush1.bf16.msra.mxu1 %v13553_v15  ;;  %4378 = vmatprep.subr.bf16.mxu0 %v13558_v2  ;;  %v13595_v53 = vld [vmem:[%s15822_s24 + $0xa48] ss:$48 sps:$4 sm:$0xff]   ;;  %v13600_v15 = vld [vmem:[%s15822_s24 + $0x3ec] ss:$48 sps:$4 sm:$0xff]  }
 0x3b1   : > { %4431 = vmatprep.subr.bf16.mxu1 %v13561_v4  ;;  %v13603_v2 = vld [vmem:[%s15822_s24 + $0x9ec] ss:$48 sps:$4 sm:$0xff]   ;;  %v13598_v4 = vld [vmem:[%s15822_s24 + $0x3e8] ss:$48 sps:$4 sm:$0xff]  }
 0x3b3   : > { %4379 = vmatpush1.bf16.msra.mxu0 %v13556_v51  ;;  %v13601_v51 = vld [vmem:[%s15822_s24 + $0x9e8] ss:$48 sps:$4 sm:$0xff]  }
 0x3b4   : > { %4432 = vmatpush1.bf16.msra.mxu1 %v13559_v5  ;;  %4380 = vmatprep.subr.bf16.mxu0 %v13564_v9  ;;  %v13606_v5 = vld [vmem:[%s15822_s24 + $0x38c] ss:$48 sps:$4 sm:$0xff]  }
 0x3b5   : > { %4433 = vmatprep.subr.bf16.mxu1 %v13567_v10  ;;  %v13609_v9 = vld [vmem:[%s15822_s24 + $0x98c] ss:$48 sps:$4 sm:$0xff]   ;;  %v13604_v10 = vld [vmem:[%s15822_s24 + $0x388] ss:$48 sps:$4 sm:$0xff]  }
 0x3b7   : > { %4381 = vmatpush1.bf16.msra.mxu0 %v13562_v11  ;;  %v13607_v11 = vld [vmem:[%s15822_s24 + $0x988] ss:$48 sps:$4 sm:$0xff]  }
 0x3b8   : > { %4434 = vmatpush1.bf16.msra.mxu1 %v13565_v14  ;;  %4382 = vmatprep.subr.bf16.mxu0 %v13570_v19  ;;  %v13612_v14 = vld [vmem:[%s15822_s24 + $0x32c] ss:$48 sps:$4 sm:$0xff]  }
 0x3b9   : > { %4435 = vmatprep.subr.bf16.mxu1 %v13573_v22  ;;  %v13615_v19 = vld [vmem:[%s15822_s24 + $0x92c] ss:$48 sps:$4 sm:$0xff]   ;;  %v13610_v22 = vld [vmem:[%s15822_s24 + $0x328] ss:$48 sps:$4 sm:$0xff]  }
 0x3bb   : > { %4383 = vmatpush2.bf16.msra.mxu0 %v13568_v29  ;;  %v13613_v29 = vld [vmem:[%s15822_s24 + $0x928] ss:$48 sps:$4 sm:$0xff]   ;;  %s1262_s24 = scalar_lea.vmem [#allocation30], %s15818_s22 }
 0x3bc   : > { %4436 = vmatpush2.bf16.msra.mxu1 %v13571_v31  ;;  %4384 = vmatprep.subr.bf16.mxu0 %v13576_v32  ;;  %v1874_v31 = vsub.s32 4, %v16285_v8  ;;  %v16484_v32 = vpop.f32.mrf.mxu0 }
 0x3bd   : > { %4437 = vmatprep.subr.bf16.mxu1 %v13579_v33  ;;  %v16486_v33 = vpop.f32.mrf.mxu1 }
 0x3bf   : > { %4385 = vmatpush2.bf16.msra.mxu0 %v13574_v35  ;;  %v3871_v35 = vadd.f32 %v16273_v0, %v16316_v26 }
 0x3c0   : > { %4438 = vmatpush2.bf16.msra.mxu1 %v13577_v36  ;;  %4386 = vmatprep.subr.bf16.mxu0 %v13582_v38 }
 0x3c1   : > { %4439 = vmatprep.subr.bf16.mxu1 %v13585_v39  ;;  %v14512_v39 = vld [vmem:[%s15833_s19] sm:$0xff] }
 0x3c3   : > { %4387 = vmatpush2.bf16.msra.mxu0 %v13580_v41  ;;  %v1875_v41 = vrot.slane %v14512_v39, %v1874_v31 }
 0x3c4   : > { %4440 = vmatpush2.bf16.msra.mxu1 %v13583_v45  ;;  %4388 = vmatprep.subr.bf16.mxu0 %v13588_v47 }
 0x3c5   : > { %4441 = vmatprep.subr.bf16.mxu1 %v13591_v48  ;;  %v3924_v48 = vadd.f32 %v16281_v6, %v3871_v35 }
 0x3c7   : > { %4389 = vmatpush2.bf16.msra.mxu0 %v13586_v59  ;;  %v1878_v59 = vsub.s32 5, %v16285_v8 }
 0x3c8   : > { %4442 = vmatpush2.bf16.msra.mxu1 %v13589_v60  ;;  %4390 = vmatprep.subr.bf16.mxu0 %v13594_v61 }
 0x3c9   : > { %4443 = vmatprep.subr.bf16.mxu1 %v13597_v62 }
 0x3cb   : > { %4391 = vmatpush2.bf16.msra.mxu0 %v13592_v1 }
 0x3cc   : > { %4444 = vmatpush2.bf16.msra.mxu1 %v13595_v53  ;;  %4392 = vmatprep.subr.bf16.mxu0 %v13600_v15  ;;  %v4472_v53 = vmul.f32 0.088388346, %v3924_v48  ;;  %v16499_v15 = vrot.slane %v14512_v39, %v1878_v59  ;;  %v1886_v48 = vsub.s32 7, %v16285_v8 }
 0x3cd   : > { %4445 = vmatprep.subr.bf16.mxu1 %v13603_v2 }
 0x3cf   : > { %4393 = vmatpush2.bf16.msra.mxu0 %v13598_v4 }
 0x3d0   : > { %4446 = vmatpush2.bf16.msra.mxu1 %v13601_v51  ;;  %4394 = vmatprep.subr.bf16.mxu0 %v13606_v5 }
 0x3d1   : > { %4447 = vmatprep.subr.bf16.mxu1 %v13609_v9 }
 0x3d3   : > { %4395 = vmatpush2.bf16.msra.mxu0 %v13604_v10 }
 0x3d4   : > { %4448 = vmatpush2.bf16.msra.mxu1 %v13607_v11  ;;  %4396 = vmatprep.subr.bf16.mxu0 %v13612_v14 }
 0x3d5   : > { %4449 = vmatprep.subr.bf16.mxu1 %v13615_v19 }
 0x3d7   : > { %4397 = vmatpush2.bf16.msra.mxu0 %v13610_v22 }
 0x3d8   : > { %4450 = vmatpush2.bf16.msra.mxu1 %v13613_v29 }
 0x3da   : > { %v4082_v36 = vpop.f32.mrf.mxu0  ;;  %4399 = vmatmul.mubr.bf16.vlgmr.msra.gmra.mxu0 %v16005_v12 }
 0x3db   : > { %v4135_v38 = vpop.f32.mrf.mxu1  ;;  %4452 = vmatmul.mubr.bf16.vlgmr.msra.gmra.mxu1 %v16007_v13  ;;  %4408 = vmatprep.mubr.bf16.mxu0 %v16040_v37  ;;  %v4083_v61 = vadd.f32 %v4082_v36, %v1875_v41  ;;  %v3875_v13 = vadd.f32 %v16298_v17, %v16316_v26 }
 0x3dc   : > { %4461 = vmatprep.mubr.bf16.mxu1 %v16054_v43  ;;  %v4084_v45 = vpop.f32.mrf.mxu0  ;;  %v3873_v43 = vadd.f32 %v16283_v7, %v16322_v30 }
 0x3dd   : > { %v4137_v47 = vpop.f32.mrf.mxu1  ;;  %v4136_v4 = vadd.f32 %v4135_v38, %v4083_v61  ;;  %v3928_v9 = vadd.f32 %v16310_v24, %v3875_v13  ;;  %v4085_v11 = vadd.f32 %v4084_v45, %v16499_v15  ;;  %v3877_v24 = vadd.f32 %v16312_v25, %v16322_v30 }
 0x3de   : > { %v4086_v60 = vpop.f32.mrf.mxu0  ;;  %v1882_v45 = vsub.s32 6, %v16285_v8 }
 0x3df   : > { %v4139_v0 = vpop.f32.mrf.mxu1  ;;  %v4087_v62 = vadd.f32 %v4086_v60, %v1875_v41  ;;  %v4473_v31 = vmul.f32 0.088388346, %v3928_v9  ;;  %v4138_v38 = vadd.f32 %v4137_v47, %v4085_v11 }
 0x3e0   : > { %v4088_v1 = vpop.f32.mrf.mxu0  ;;  %v1883_v59 = vrot.slane %v14512_v39, %v1882_v45 }
 0x3e1   : > { %v4141_v12 = vpop.f32.mrf.mxu1  ;;  %v4140_v37 = vadd.f32 %v4139_v0, %v4087_v62  ;;  %v4089_v51 = vadd.f32 %v4088_v1, %v16499_v15  ;;  %v16525_v0 = vrot.slane %v14512_v39, %v1886_v48 }
 0x3e2   : > { %4409 = vmatmul.mubr.bf16.gmra.mxu0 %v16052_v42  ;;  %v4092_v6 = vpop.f32.mrf.mxu0  ;;  %v3926_v42 = vadd.f32 %v16296_v16, %v3873_v43  ;;  %v3930_v16 = vadd.f32 %v16327_v34, %v3877_v24 }
 0x3e3   : > { %4462 = vmatmul.mubr.bf16.gmra.mxu1 %v16068_v49  ;;  %v4145_v2 = vpop.f32.mrf.mxu1  ;;  %12841 = vmatprep.subr.mxu0 %v4140_v37  ;;  %v4093_v5 = vadd.f32 %v4092_v6, %v1875_v41  ;;  %v4142_v14 = vadd.f32 %v4141_v12, %v4089_v51 }
 0x3e4   : > { %12845 = vmatprep.mubr.f32.mxu0 %v4472_v53  ;;  %12842 = vmatpush3.xpose.msra.mxu0 %v4140_v37  ;;  %v4094_v17 = vpop.f32.mrf.mxu0  ;;  %v4653_v36 = vmul.f32 0.088388346, %v3926_v42 }
 0x3e5   : > { %v4147_v26 = vpop.f32.mrf.mxu1  ;;  %12843 = vmatprep.subr.mxu0 %v4136_v4  ;;  %v4095_v7 = vadd.f32 %v4094_v17, %v16499_v15  ;;  %v16508_v10 = vadd.f32 %v4145_v2, %v4093_v5 }
 0x3e6   : > { %v4096_v49 = vpop.f32.mrf.mxu0 }
 0x3e7   : > { %v4097_v19 = vadd.f32 %v4096_v49, %v1875_v41  ;;  %v16512_v22 = vadd.f32 %v4147_v26, %v4095_v7  ;;  %v4149_v29 = vpop.f32.mrf.mxu1  ;;  %v4654_v41 = vmul.f32 0.088388346, %v3930_v16 }
 0x3e8   : > { %12844 = vmatpush3.xpose.msra.mxu0 %v4136_v4  ;;  %v16521_v25 = vpop.f32.mrf.mxu0 }
 0x3e9   : > { %12855 = vmatprep.subr.mxu0 %v4142_v14  ;;  %v16516_v35 = vadd.f32 %v4149_v29, %v4097_v19  ;;  %v16523_v60 = vpop.f32.mrf.mxu1 }
 0x3eb   : > { %12846 = vmatmul.mubr.f32.vlgmr.msra.gmra.mxu0 %v4473_v31 }
 0x3ec   : > { %12856 = vmatpush3.xpose.msra.mxu0 %v4142_v14  ;;  %12859 = vmatprep.mubr.f32.mxu0 %v4653_v36 }
 0x3ed   : > { %12857 = vmatprep.subr.mxu0 %v4138_v38 }
 0x3f0   : > { %12858 = vmatpush3.xpose.msra.mxu0 %v4138_v38  ;;  %v1853_v38 = vld [vmem:[%s15833_s19 + $0x8] sm:$0xf] }
 0x3f1   : > { %v1895_v16 = vrot.slane %v1853_v38, %v16306_v21  ;;  %v1891_v48 = vrot.slane %v1853_v38, %v16301_v18 }
 0x3f3   : > { %12860 = vmatmul.mubr.f32.vlgmr.msra.gmra.mxu0 %v4654_v41 }
 0x41a   : > { %v4188_v47 = vpop.f32.mrf.mxu0 }
 0x41b   : > { %v4241_v61 = vpop.f32.mrf.mxu1  ;;  %v4189_v62 = vadd.f32 %v4188_v47, %v1883_v59 }
 0x41c   : > { %v4190_v1 = vpop.f32.mrf.mxu0 }
 0x41d   : > { %v4243_v34 = vpop.f32.mrf.mxu1  ;;  %v4191_v12 = vadd.f32 %v4190_v1, %v16525_v0  ;;  %v16528_v53 = vadd.f32 %v4241_v61, %v4189_v62 }
 0x41e   : > { %v4192_v13 = vpop.f32.mrf.mxu0 }
 0x41f   : > { %v4245_v37 = vpop.f32.mrf.mxu1  ;;  %v4193_v43 = vadd.f32 %v4192_v13, %v1883_v59  ;;  %v16530_v8 = vadd.f32 %v4243_v34, %v4191_v12 }
 0x420   : > { %v16532_v6 = vpop.f32.mrf.mxu0 }
 0x421   : > { %v16534_v2 = vpop.f32.mrf.mxu1  ;;  %v16536_v39 = vadd.f32 %v4245_v37, %v4193_v43 }
 0x422   : > { %v4198_v4 = vpop.f32.mrf.mxu0 }
 0x423   : > { %v4251_v51 = vpop.f32.mrf.mxu1  ;;  %v4199_v5 = vadd.f32 %v4198_v4, %v1883_v59 }
 0x424   : > { %v4200_v17 = vpop.f32.mrf.mxu0 }
 0x425   : > { %v4253_v26 = vpop.f32.mrf.mxu1  ;;  %v4201_v9 = vadd.f32 %v4200_v17, %v16525_v0  ;;  %v16539_v7 = vadd.f32 %v4251_v51, %v4199_v5 }
 0x426   : > { %v4202_v42 = vpop.f32.mrf.mxu0 }
 0x427   : > { %v4255_v49 = vpop.f32.mrf.mxu1  ;;  %v4203_v11 = vadd.f32 %v4202_v42, %v1883_v59  ;;  %v16541_v14 = vadd.f32 %v4253_v26, %v4201_v9 }
 0x428   : > { %v4204_v19 = vpop.f32.mrf.mxu0 }
 0x429   : > { %v4257_v29 = vpop.f32.mrf.mxu1  ;;  %v4205_v31 = vadd.f32 %v4204_v19, %v16525_v0  ;;  %v16544_v24 = vadd.f32 %v4255_v49, %v4203_v11 }
 0x42b   : > { %v16546_v36 = vadd.f32 %v4257_v29, %v4205_v31 }
 0x45a   : > { %v4294_v41 = vpop.f32.mrf.mxu0 }
 0x45b   : > { %v4347_v45 = vpop.f32.mrf.mxu1  ;;  %v4295_v34 = vadd.f32 %v4294_v41, %v1891_v48 }
 0x45c   : > { %v4296_v47 = vpop.f32.mrf.mxu0 }
 0x45d   : > { %v4349_v61 = vpop.f32.mrf.mxu1  ;;  %v4297_v59 = vadd.f32 %v4296_v47, %v1895_v16  ;;  %v4348_v26 = vadd.f32 %v4347_v45, %v4295_v34 }
 0x45e   : > { %v4298_v62 = vpop.f32.mrf.mxu0 }
 0x45f   : > { %v4351_v1 = vpop.f32.mrf.mxu1  ;;  %v4299_v12 = vadd.f32 %v4298_v62, %v1891_v48  ;;  %v16551_v13 = vadd.f32 %v4349_v61, %v4297_v59 }
 0x460   : > { %v4300_v37 = vpop.f32.mrf.mxu0 }
 0x461   : > { %v4353_v43 = vpop.f32.mrf.mxu1  ;;  %v4352_v4 = vadd.f32 %v4351_v1, %v4299_v12  ;;  %v4301_v51 = vadd.f32 %v4300_v37, %v1895_v16  ;;  %v16565_v12 = vrot.slane %v1853_v38, %v16378_v44 }
 0x462   : > { %v4304_v5 = vpop.f32.mrf.mxu0 }
 0x463   : > { %v4357_v17 = vpop.f32.mrf.mxu1  ;;  %12848 = vmatprep.subr.mxu1 %v4352_v4  ;;  %v4305_v9 = vadd.f32 %v4304_v5, %v1891_v48  ;;  %v16553_v11 = vadd.f32 %v4353_v43, %v4301_v51 }
 0x464   : > { %12849 = vmatpush3.msra.mxu1 %v4352_v4  ;;  %v4306_v42 = vpop.f32.mrf.mxu0  ;;  %v1899_v4 = vrot.slane %v1853_v38, %v16374_v40 }
 0x465   : > { %v4359_v49 = vpop.f32.mrf.mxu1  ;;  %12850 = vmatprep.subr.mxu1 %v4348_v26  ;;  %v4307_v19 = vadd.f32 %v4306_v42, %v1895_v16  ;;  %v16555_v29 = vadd.f32 %v4357_v17, %v4305_v9 }
 0x466   : > { %12851 = vmatpush3.msra.mxu1 %v4348_v26  ;;  %v4308_v31 = vpop.f32.mrf.mxu0 }
 0x467   : > { %v4361_v41 = vpop.f32.mrf.mxu1  ;;  %12862 = vmatprep.subr.mxu1 %v16553_v11  ;;  %v4309_v47 = vadd.f32 %v4308_v31, %v1891_v48  ;;  %v16558_v61 = vadd.f32 %v4359_v49, %v4307_v19  ;;  %v4195_v31 = vadd.f32 %v16532_v6, %v16525_v0 }
 0x468   : > { %v4310_v45 = vpop.f32.mrf.mxu0 }
 0x469   : > { %v4363_v59 = vpop.f32.mrf.mxu1  ;;  %v4311_v62 = vadd.f32 %v4310_v45, %v1895_v16  ;;  %v16560_v1 = vadd.f32 %v4361_v41, %v4309_v47 }
 0x46b   : > { %v16562_v34 = vadd.f32 %v4363_v59, %v4311_v62 }
 0x49a   : > { %v4400_v37 = vpop.f32.mrf.mxu0 }
 0x49b   : > { %v4453_v43 = vpop.f32.mrf.mxu1  ;;  %v4401_v9 = vadd.f32 %v4400_v37, %v1899_v4  ;;  %v16578_v37 = vadd.f32 %v16534_v2, %v4195_v31 }
 0x49c   : > { %v4402_v51 = vpop.f32.mrf.mxu0 }
 0x49d   : > { %v4455_v5 = vpop.f32.mrf.mxu1  ;;  %v4403_v48 = vadd.f32 %v4402_v51, %v16565_v12  ;;  %v4454_v45 = vadd.f32 %v4453_v43, %v4401_v9 }
 0x49e   : > { %v4404_v17 = vpop.f32.mrf.mxu0 }
 0x49f   : > { %v4457_v26 = vpop.f32.mrf.mxu1  ;;  %v4405_v42 = vadd.f32 %v4404_v17, %v1899_v4  ;;  %v16569_v16 = vadd.f32 %v4455_v5, %v4403_v48 }
 0x4a0   : > { %v16571_v49 = vpop.f32.mrf.mxu0 }
 0x4a1   : > { %v16573_v19 = vpop.f32.mrf.mxu1  ;;  %v4458_v41 = vadd.f32 %v4457_v26, %v4405_v42 }
 0x4a2   : > { %v4410_v47 = vpop.f32.mrf.mxu0 }
 0x4a3   : > { %v4463_v38 = vpop.f32.mrf.mxu1  ;;  %v4411_v59 = vadd.f32 %v4410_v47, %v1899_v4  ;;  %12876 = vmatprep.subr.mxu0 %v4458_v41 }
 0x4a4   : > { %12877 = vmatpush3.msra.mxu0 %v4458_v41  ;;  %v4412_v62 = vpop.f32.mrf.mxu0 }
 0x4a5   : > { %v4465_v51 = vpop.f32.mrf.mxu1  ;;  %v4413_v5 = vadd.f32 %v4412_v62, %v16565_v12  ;;  %12878 = vmatprep.subr.mxu0 %v4454_v45  ;;  %v16581_v48 = vadd.f32 %v4463_v38, %v4411_v59 }
 0x4a6   : > { %12879 = vmatpush3.msra.mxu0 %v4454_v45  ;;  %v4414_v17 = vpop.f32.mrf.mxu0 }
 0x4a7   : > { %v4467_v0 = vpop.f32.mrf.mxu1  ;;  %v4415_v6 = vadd.f32 %v4414_v17, %v1899_v4  ;;  %12883 = vmatprep.subr.mxu0 %v16578_v37  ;;  %v16584_v43 = vadd.f32 %v4465_v51, %v4413_v5 }
 0x4a8   : > { %v4416_v26 = vpop.f32.mrf.mxu0 }
 0x4a9   : > { %v16587_v9 = vadd.f32 %v4416_v26, %v16565_v12  ;;  %v16589_v42 = vadd.f32 %v4467_v0, %v4415_v6 }
 0x4ab   : > { %v12847_v2 = vpop.f32.mrf.mxu0 }
 0x4ac   : > { %v4553_v47 = vsel %vm4549_vm0, %v12847_v2, -inf }
 0x4ad   : > { %v4540_v31 = vpop.f32.mrf.mxu0 }
 0x4ae   : > { %v4550_v41 = vsel %vm4549_vm0, %v4540_v31, -inf }
 0x4af   : > { %4551 = vmax.xlane.f32.xlu0 %v4550_v41 }
 0x4b3   : > { %v12861_v38 = vpop.f32.mrf.mxu0  ;;  %4554 = vmax.xlane.f32.xlu0 %v4553_v47 }
 0x4b4   : > { %v4733_v59 = vsel %vm4549_vm0, %v12861_v38, -inf }
 0x4b5   : > { %v4721_v4 = vpop.f32.mrf.mxu0 }
 0x4b6   : > { %v4730_v45 = vsel %vm4549_vm0, %v4721_v4, -inf }
 0x4b7   : > { %4731 = vmax.xlane.f32.xlu1 %v4730_v45 }
 0x4bb   : > { %4734 = vmax.xlane.f32.xlu1 %v4733_v59 }
 0x538   : > { %v4552_v62 = vpop.xlane.xlu0 %4551 }
 0x539   : > { %v4556_v51 = vsub.f32 %v4540_v31, %v4552_v62 }
 0x53b   : > { %v4558_v5 = vmul.f32 1.442695, %v4556_v51 }
 0x53c   : > { %v4555_v17 = vpop.xlane.xlu0 %4554 }
 0x53d   : > { %14416 = vpow2.f32 %v4558_v5  ;;  %v4557_v0 = vsub.f32 %v12847_v2, %v4555_v17 }
 0x53f   : > { %v4560_v6 = vmul.f32 1.442695, %v4557_v0 }
 0x540   : > { %v4732_v26 = vpop.xlane.xlu1 %4731 }
 0x541   : > { %14418 = vpow2.f32 %v4560_v6  ;;  %v4736_v41 = vsub.f32 %v4721_v4, %v4732_v26 }
 0x543   : > { %v4738_v44 = vmul.f32 1.442695, %v4736_v41 }
 0x544   : > { %v4735_v40 = vpop.xlane.xlu1 %4734 }
 0x545   : > { %14420 = vpow2.f32 %v4738_v44  ;;  %v4737_v47 = vsub.f32 %v12861_v38, %v4735_v40 }
 0x547   : > { %v4740_v18 = vmul.f32 1.442695, %v4737_v47 }
 0x549   : > { %14422 = vpow2.f32 %v4740_v18 }
 0x54a   : > { %v14417_v45 = vpop.eup %14416 }
 0x54b   : > { %v4562_v21 = vsel %vm4549_vm0, %v14417_v45, 0.0 }
 0x54c   : > { %4563 = vadd.xlane.f32.xlu0 %v4562_v21 }
 0x54e   : > { %v14419_v59 = vpop.eup %14418 }
 0x54f   : > { %v4565_v31 = vsel %vm4549_vm0, %v14419_v59, 0.0 }
 0x550   : > { %4566 = vadd.xlane.f32.xlu1 %v4565_v31 }
 0x552   : > { %v14421_v62 = vpop.eup %14420 }
 0x553   : > { %v4742_v2 = vsel %vm4549_vm0, %v14421_v62, 0.0 }
 0x554   : > { %4743 = vadd.xlane.f32.xlu0 %v4742_v2 }
 0x556   : > { %v14423_v51 = vpop.eup %14422 }
 0x557   : > { %v4745_v4 = vsel %vm4549_vm0, %v14423_v51, 0.0 }
 0x558   : > { %4746 = vadd.xlane.f32.xlu1 %v4745_v4 }
 0x5d5   : > { %v4564_v44 = vpop.xlane.xlu0 %4563 }
 0x5d6   : > { %14424 = vrcp.f32 %v4564_v44 }
 0x5d9   : > { %v4567_v40 = vpop.xlane.xlu1 %4566 }
 0x5da   : > { %14426 = vrcp.f32 %v4567_v40 }
 0x5dd   : > { %v4744_v18 = vpop.xlane.xlu0 %4743 }
 0x5de   : > { %14428 = vrcp.f32 %v4744_v18 }
 0x5e1   : > { %v4747_v38 = vpop.xlane.xlu1 %4746 }
 0x5e2   : > { %14430 = vrcp.f32 %v4747_v38 }
 0x5e3   : > { %v14425_v21 = vpop.eup %14424 }
 0x5e4   : > { %v4570_v5 = vmul.f32 %v14425_v21, %v14417_v45  ;;  %v4833_v45 = vmul.f32 0.088388346, %v16402_v3  ;;  %v16618_v3 = vpop.f32.mrf.mxu1 }
 0x5e6   : > { %12852 = vmatprep.mubr.msk.f32.mxu1 %vm4549_vm0, %v4570_v5 }
 0x5e7   : > { %v14427_v17 = vpop.eup %14426 }
 0x5e8   : > { %v4571_v0 = vmul.f32 %v14427_v17, %v14419_v59  ;;  %v4407_v59 = vadd.f32 %v16571_v49, %v16565_v12 }
 0x5ea   : > { %12853 = vmatmul.mubr.msk.f32.vlgmr.msra.gmra.mxu1 %vm4549_vm0, %v4571_v0 }
 0x5eb   : > { %v14429_v6 = vpop.eup %14428  ;;  %12863 = vmatpush3.msra.mxu1 %v16553_v11  ;;  %v4834_v11 = vmul.f32 0.088388346, %v16418_v28 }
 0x5ec   : > { %12864 = vmatprep.subr.mxu1 %v16551_v13  ;;  %v4750_v26 = vmul.f32 %v14429_v6, %v14421_v62 }
 0x5ed   : > { %12865 = vmatpush3.msra.mxu1 %v16551_v13  ;;  %v4460_v13 = vadd.f32 %v16573_v19, %v4407_v59  ;;  %v3983_v59 = vadd.f32 %v16414_v23, %v16393_v56  ;;  %v4099_v23 = vadd.f32 %v16521_v25, %v16499_v15 }
 0x5ee   : > { %12869 = vmatprep.subr.mxu1 %v16536_v39  ;;  %12866 = vmatprep.mubr.msk.f32.mxu1 %vm4549_vm0, %v4750_v26 }
 0x5ef   : > { %v14431_v41 = vpop.eup %14430 }
 0x5f0   : > { %v4751_v47 = vmul.f32 %v14431_v41, %v14423_v51 }
 0x5f2   : > { %12867 = vmatmul.mubr.msk.f32.vlgmr.msra.gmra.mxu1 %vm4549_vm0, %v4751_v47 }
 0x5f3   : > { %12870 = vmatpush3.xpose.msra.mxu1 %v16536_v39  ;;  %12873 = vmatprep.mubr.f32.mxu1 %v4833_v45 }
 0x5f4   : > { %12871 = vmatprep.subr.mxu1 %v16528_v53 }
 0x5f7   : > { %12872 = vmatpush3.xpose.msra.mxu1 %v16528_v53 }
 0x5f8   : > { %12890 = vmatprep.subr.mxu1 %v4460_v13 }
 0x5fa   : > { %12874 = vmatmul.mubr.f32.vlgmr.msra.gmra.mxu1 %v4834_v11  ;;  %v5013_v11 = vmul.f32 0.088388346, %v16411_v20  ;;  %v16642_v20 = vadd.f32 %v16523_v60, %v4099_v23 }
 0x5fb   : > { %12891 = vmatpush3.msra.mxu1 %v4460_v13 }
 0x5fc   : > { %12892 = vmatprep.subr.mxu1 %v16569_v16 }
 0x5fd   : > { %12893 = vmatpush3.msra.mxu1 %v16569_v16 }
 0x5fe   : > { %12897 = vmatprep.subr.mxu1 %v16516_v35 }
 0x6aa   : > { %v12854_v39 = vpop.f32.mrf.mxu1 }
 0x6ac   : > { %v4644_v12 = vpop.f32.mrf.mxu1 }
 0x6ad   : > { %v16620_v49 = vpack.c.bf16 %v12854_v39, %v4644_v12  ;;  %v4036_v39 = vadd.f32 %v16416_v27, %v3983_v59 }
 0x6af   : > { %v5014_v12 = vmul.f32 0.088388346, %v4036_v39 }
 0x6b2   : > { %v12868_v19 = vpop.f32.mrf.mxu1 }
 0x6b4   : > { %v4824_v31 = vpop.f32.mrf.mxu1 }
 0x6b5   : > { %v16622_v53 = vpack.c.bf16 %v12868_v19, %v4824_v31 }
 0x6ba   : > { %v12875_v28 = vpop.f32.mrf.mxu1 }
 0x6bb   : > { %v4913_v62 = vsel %vm4549_vm0, %v12875_v28, -inf }
 0x6bc   : > { %4914 = vmax.xlane.f32.xlu1 %v4913_v62  ;;  %v4901_v2 = vpop.f32.mrf.mxu1 }
 0x6bd   : > { %v4910_v51 = vsel %vm4549_vm0, %v4901_v2, -inf }
 0x6be   : > { %4911 = vmax.xlane.f32.xlu0 %v4910_v51 }
 0x745   : > { %v4915_v16 = vpop.xlane.xlu1 %4914 }
 0x746   : > { %v4917_v4 = vsub.f32 %v12875_v28, %v4915_v16 }
 0x747   : > { %v4912_v44 = vpop.xlane.xlu0 %4911 }
 0x748   : > { %v4920_v40 = vmul.f32 1.442695, %v4917_v4  ;;  %v4916_v18 = vsub.f32 %v4901_v2, %v4912_v44 }
 0x74a   : > { %14432 = vpow2.f32 %v4920_v40  ;;  %v4918_v38 = vmul.f32 1.442695, %v4916_v18 }
 0x74c   : > { %14434 = vpow2.f32 %v4918_v38 }
 0x757   : > { %v14433_v21 = vpop.eup %14432 }
 0x758   : > { %v4925_v5 = vsel %vm4549_vm0, %v14433_v21, 0.0 }
 0x759   : > { %v14435_v17 = vpop.eup %14434  ;;  %4926 = vadd.xlane.f32.xlu1 %v4925_v5 }
 0x75a   : > { %v4922_v0 = vsel %vm4549_vm0, %v14435_v17, 0.0 }
 0x75b   : > { %4923 = vadd.xlane.f32.xlu0 %v4922_v0  ;;  %v5193_v0 = vmul.f32 0.088388346, %v16334_v46 }
 0x7e2   : > { %v4927_v6 = vpop.xlane.xlu1 %4926 }
 0x7e3   : > { %14436 = vrcp.f32 %v4927_v6  ;;  %v5194_v6 = vmul.f32 0.088388346, %v16343_v58 }
 0x7e4   : > { %v4924_v26 = vpop.xlane.xlu0 %4923 }
 0x7e5   : > { %14438 = vrcp.f32 %v4924_v26 }
 0x7f0   : > { %v14437_v41 = vpop.eup %14436 }
 0x7f1   : > { %v4931_v13 = vmul.f32 %v14437_v41, %v14433_v21 }
 0x7f2   : > { %v14439_v47 = vpop.eup %14438 }
 0x7f3   : > { %v4930_v45 = vmul.f32 %v14439_v47, %v14435_v17 }
 0x7f5   : > { %12880 = vmatprep.mubr.msk.f32.mxu0 %vm4549_vm0, %v4930_v45 }
 0x7f6   : > { %12881 = vmatmul.mubr.msk.f32.vlgmr.msra.gmra.mxu0 %vm4549_vm0, %v4931_v13 }
 0x7f7   : > { %12884 = vmatpush3.xpose.msra.mxu0 %v16578_v37  ;;  %12887 = vmatprep.mubr.f32.mxu0 %v5013_v11 }
 0x7f8   : > { %12885 = vmatprep.subr.mxu0 %v16530_v8 }
 0x7fb   : > { %12886 = vmatpush3.xpose.msra.mxu0 %v16530_v8 }
 0x7fc   : > { %12904 = vmatprep.subr.mxu0 %v16560_v1 }
 0x7fe   : > { %12888 = vmatmul.mubr.f32.vlgmr.msra.gmra.mxu0 %v5014_v12 }
 0x7ff   : > { %12905 = vmatpush3.msra.mxu0 %v16560_v1 }
 0x800   : > { %12906 = vmatprep.subr.mxu0 %v16555_v29 }
 0x801   : > { %12907 = vmatpush3.msra.mxu0 %v16555_v29 }
 0x802   : > { %12911 = vmatprep.subr.mxu0 %v16642_v20 }
 0x8b6   : > { %v12882_v27 = vpop.f32.mrf.mxu0 }
 0x8b8   : > { %v5004_v8 = vpop.f32.mrf.mxu0 }
 0x8b9   : > { %v16647_v37 = vpack.c.bf16 %v12882_v27, %v5004_v8 }
 0x8be   : > { %v12889_v19 = vpop.f32.mrf.mxu0 }
 0x8bf   : > { %v5093_v15 = vsel %vm4549_vm0, %v12889_v19, -inf }
 0x8c0   : > { %5094 = vmax.xlane.f32.xlu1 %v5093_v15  ;;  %v5081_v25 = vpop.f32.mrf.mxu0 }
 0x8c1   : > { %v5090_v1 = vsel %vm4549_vm0, %v5081_v25, -inf }
 0x8c2   : > { %5091 = vmax.xlane.f32.xlu0 %v5090_v1 }
 0x949   : > { %v5095_v60 = vpop.xlane.xlu1 %5094 }
 0x94a   : > { %v5097_v31 = vsub.f32 %v12889_v19, %v5095_v60  ;;  %v3887_v60 = vadd.f32 %v16387_v52, %v16322_v30 }
 0x94b   : > { %v5092_v28 = vpop.xlane.xlu0 %5091 }
 0x94c   : > { %v5100_v62 = vmul.f32 1.442695, %v5097_v31  ;;  %v5096_v2 = vsub.f32 %v5081_v25, %v5092_v28  ;;  %v5373_v28 = vmul.f32 0.088388346, %v16337_v50 }
 0x94e   : > { %14440 = vpow2.f32 %v5100_v62  ;;  %v5098_v29 = vmul.f32 1.442695, %v5096_v2  ;;  %v3940_v62 = vadd.f32 %v16389_v55, %v3887_v60 }
 0x950   : > { %14442 = vpow2.f32 %v5098_v29  ;;  %v5374_v2 = vmul.f32 0.088388346, %v3940_v62  ;;  %v13618_v62 = vld [vmem:[%s15846_s26 + $0x2e4] ss:$16 sps:$4 sm:$0xff]  }
 0x95b   : > { %v14441_v51 = vpop.eup %14440 }
 0x95c   : > { %v5105_v16 = vsel %vm4549_vm0, %v14441_v51, 0.0 }
 0x95d   : > { %v14443_v4 = vpop.eup %14442  ;;  %5106 = vadd.xlane.f32.xlu1 %v5105_v16 }
 0x95e   : > { %v5102_v44 = vsel %vm4549_vm0, %v14443_v4, 0.0 }
 0x95f   : > { %5103 = vadd.xlane.f32.xlu0 %v5102_v44 }
 0x9e6   : > { %v5107_v40 = vpop.xlane.xlu1 %5106 }
 0x9e7   : > { %14444 = vrcp.f32 %v5107_v40 }
 0x9e8   : > { %v5104_v18 = vpop.xlane.xlu0 %5103 }
 0x9e9   : > { %14446 = vrcp.f32 %v5104_v18 }
 0x9f4   : > { %v14445_v38 = vpop.eup %14444 }
 0x9f5   : > { %v5111_v17 = vmul.f32 %v14445_v38, %v14441_v51 }
 0x9f6   : > { %v14447_v21 = vpop.eup %14446 }
 0x9f7   : > { %v5110_v5 = vmul.f32 %v14447_v21, %v14443_v4 }
 0x9f9   : > { %12894 = vmatprep.mubr.msk.f32.mxu1 %vm4549_vm0, %v5110_v5 }
 0x9fa   : > { %12895 = vmatmul.mubr.msk.f32.vlgmr.msra.gmra.mxu1 %vm4549_vm0, %v5111_v17 }
 0x9fb   : > { %12898 = vmatpush3.xpose.msra.mxu1 %v16516_v35  ;;  %12901 = vmatprep.mubr.f32.mxu1 %v5193_v0 }
 0x9fc   : > { %12899 = vmatprep.subr.mxu1 %v16508_v10 }
 0x9ff   : > { %12900 = vmatpush3.xpose.msra.mxu1 %v16508_v10 }
 0xa00   : > { %12918 = vmatprep.subr.mxu1 %v16562_v34 }
 0xa02   : > { %12902 = vmatmul.mubr.f32.vlgmr.msra.gmra.mxu1 %v5194_v6 }
 0xa03   : > { %12919 = vmatpush3.msra.mxu1 %v16562_v34 }
 0xa04   : > { %12920 = vmatprep.subr.mxu1 %v16558_v61 }
 0xa05   : > { %12921 = vmatpush3.msra.mxu1 %v16558_v61 }
 0xa06   : > { %12925 = vmatprep.subr.mxu1 %v16544_v24 }
 0xaba   : > { %v12896_v46 = vpop.f32.mrf.mxu1 }
 0xabc   : > { %v5184_v35 = vpop.f32.mrf.mxu1 }
 0xabd   : > { %v16665_v26 = vpack.c.bf16 %v12896_v46, %v5184_v35 }
 0xac2   : > { %v12903_v41 = vpop.f32.mrf.mxu1 }
 0xac3   : > { %v5273_v10 = vsel %vm4549_vm0, %v12903_v41, -inf }
 0xac4   : > { %5274 = vmax.xlane.f32.xlu1 %v5273_v10  ;;  %v5261_v58 = vpop.f32.mrf.mxu1  ;;  %v4470_v10 = vadd.f32 %v16618_v3, %v16587_v9 }
 0xac5   : > { %v5270_v47 = vsel %vm4549_vm0, %v5261_v58, -inf }
 0xac6   : > { %5271 = vmax.xlane.f32.xlu0 %v5270_v47 }
 0xb4d   : > { %v5275_v45 = vpop.xlane.xlu1 %5274 }
 0xb4e   : > { %v5277_v34 = vsub.f32 %v12903_v41, %v5275_v45  ;;  %v5553_v41 = vmul.f32 0.088388346, %v16430_v57 }
 0xb4f   : > { %v5272_v59 = vpop.xlane.xlu0 %5271 }
 0xb50   : > { %v5280_v13 = vmul.f32 1.442695, %v5277_v34  ;;  %v5276_v11 = vsub.f32 %v5261_v58, %v5272_v59  ;;  %v5554_v58 = vmul.f32 0.088388346, %v16441_v54 }
 0xb52   : > { %14448 = vpow2.f32 %v5280_v13  ;;  %v5278_v61 = vmul.f32 1.442695, %v5276_v11 }
 0xb54   : > { %14450 = vpow2.f32 %v5278_v61 }
 0xb5f   : > { %v14449_v39 = vpop.eup %14448 }
 0xb60   : > { %v5285_v12 = vsel %vm4549_vm0, %v14449_v39, 0.0 }
 0xb61   : > { %v14451_v23 = vpop.eup %14450  ;;  %5286 = vadd.xlane.f32.xlu1 %v5285_v12 }
 0xb62   : > { %v5282_v27 = vsel %vm4549_vm0, %v14451_v23, 0.0 }
 0xb63   : > { %5283 = vadd.xlane.f32.xlu0 %v5282_v27 }
 0xbea   : > { %v5287_v8 = vpop.xlane.xlu1 %5286 }
 0xbeb   : > { %14452 = vrcp.f32 %v5287_v8 }
 0xbec   : > { %v5284_v19 = vpop.xlane.xlu0 %5283 }
 0xbed   : > { %14454 = vrcp.f32 %v5284_v19 }
 0xbf8   : > { %v14453_v15 = vpop.eup %14452 }
 0xbf9   : > { %v5291_v31 = vmul.f32 %v14453_v15, %v14449_v39 }
 0xbfa   : > { %v14455_v25 = vpop.eup %14454 }
 0xbfb   : > { %v5290_v1 = vmul.f32 %v14455_v25, %v14451_v23 }
 0xbfd   : > { %12908 = vmatprep.mubr.msk.f32.mxu0 %vm4549_vm0, %v5290_v1  ;;  %v3993_v1 = vadd.f32 %v16484_v32, %v16393_v56  ;;  %v13616_v56 = vld [vmem:[%s15846_s26 + $0x2e0] ss:$16 sps:$4 sm:$0xff]   ;;  %v13621_v32 = vld [vmem:[%s15846_s26 + $0x2c4] ss:$16 sps:$4 sm:$0xff]  }
 0xbfe   : > { %12909 = vmatmul.mubr.msk.f32.vlgmr.msra.gmra.mxu0 %vm4549_vm0, %v5291_v31  ;;  %v5733_v31 = vmul.f32 0.088388346, %v16437_v63 }
 0xbff   : > { %12912 = vmatpush3.xpose.msra.mxu0 %v16642_v20  ;;  %12915 = vmatprep.mubr.f32.mxu0 %v5373_v28  ;;  %v4046_v28 = vadd.f32 %v16486_v33, %v3993_v1  ;;  %v13624_v33 = vld [vmem:[%s15846_s26 + $0x2a4] ss:$16 sps:$4 sm:$0xff]  }
 0xc00   : > { %12913 = vmatprep.subr.mxu0 %v16512_v22 }
 0xc01   : > { %v5734_v63 = vmul.f32 0.088388346, %v4046_v28 }
 0xc03   : > { %12914 = vmatpush3.xpose.msra.mxu0 %v16512_v22 }
 0xc04   : > { %12932 = vmatprep.subr.mxu0 %v16589_v42 }
 0xc06   : > { %12916 = vmatmul.mubr.f32.vlgmr.msra.gmra.mxu0 %v5374_v2  ;;  %v13622_v2 = vld [vmem:[%s15846_s26 + $0x2a0] ss:$16 sps:$4 sm:$0xff]  }
 0xc07   : > { %12933 = vmatpush3.msra.mxu0 %v16589_v42 }
 0xc08   : > { %12934 = vmatprep.subr.mxu0 %v16581_v48 }
 0xc09   : > { %12935 = vmatpush3.msra.mxu0 %v16581_v48 }
 0xc0a   : > { %12939 = vmatprep.subr.mxu0 %v16546_v36 }
 0xcbe   : > { %v12910_v30 = vpop.f32.mrf.mxu0 }
 0xcc0   : > { %v5364_v50 = vpop.f32.mrf.mxu0 }
 0xcc1   : > { %v16685_v52 = vpack.c.bf16 %v12910_v30, %v5364_v50  ;;  %v13625_v30 = vld [vmem:[%s15846_s26 + $0x280] ss:$16 sps:$4 sm:$0xff]   ;;  %v13630_v50 = vld [vmem:[%s15846_s26 + $0x264] ss:$16 sps:$4 sm:$0xff]  }
 0xcc6   : > { %v12917_v55 = vpop.f32.mrf.mxu0 }
 0xcc7   : > { %v5453_v20 = vsel %vm4549_vm0, %v12917_v55, -inf }
 0xcc8   : > { %5454 = vmax.xlane.f32.xlu1 %v5453_v20  ;;  %v5441_v22 = vpop.f32.mrf.mxu0  ;;  %v13633_v20 = vld [vmem:[%s15846_s26 + $0x244] ss:$16 sps:$4 sm:$0xff]  }
 0xcc9   : > { %v5450_v29 = vsel %vm4549_vm0, %v5441_v22, -inf }
 0xcca   : > { %5451 = vmax.xlane.f32.xlu0 %v5450_v29  ;;  %v13636_v29 = vld [vmem:[%s15846_s26 + $0x224] ss:$16 sps:$4 sm:$0xff]  }
 0xd51   : > { %v5455_v51 = vpop.xlane.xlu1 %5454 }
 0xd52   : > { %v5457_v42 = vsub.f32 %v12917_v55, %v5455_v51  ;;  %v13628_v55 = vld [vmem:[%s15846_s26 + $0x260] ss:$16 sps:$4 sm:$0xff]  }
 0xd53   : > { %v5452_v16 = vpop.xlane.xlu0 %5451  ;;  %v13634_v51 = vld [vmem:[%s15846_s26 + $0x220] ss:$16 sps:$4 sm:$0xff]  }
 0xd54   : > { %v5460_v4 = vmul.f32 1.442695, %v5457_v42  ;;  %v5456_v44 = vsub.f32 %v5441_v22, %v5452_v16  ;;  %v13631_v22 = vld [vmem:[%s15846_s26 + $0x240] ss:$16 sps:$4 sm:$0xff]   ;;  %v13639_v42 = vld [vmem:[%s15846_s26 + $0x204] ss:$16 sps:$4 sm:$0xff]  }
 0xd55   : > { %v13637_v16 = vld [vmem:[%s15846_s26 + $0x200] ss:$16 sps:$4 sm:$0xff]  }
 0xd56   : > { %14456 = vpow2.f32 %v5460_v4  ;;  %v5458_v48 = vmul.f32 1.442695, %v5456_v44  ;;  %v13642_v4 = vld [vmem:[%s15846_s26 + $0x3e4] ss:$16 sps:$4 sm:$0xff]   ;;  %v13640_v44 = vld [vmem:[%s15846_s26 + $0x3e0] ss:$16 sps:$4 sm:$0xff]  }
 0xd58   : > { %14458 = vpow2.f32 %v5458_v48  ;;  %v13645_v48 = vld [vmem:[%s15846_s26 + $0x3c4] ss:$16 sps:$4 sm:$0xff]  }
 0xd63   : > { %v14457_v40 = vpop.eup %14456 }
 0xd64   : > { %v5465_v18 = vsel %vm4549_vm0, %v14457_v40, 0.0 }
 0xd65   : > { %v14459_v38 = vpop.eup %14458  ;;  %5466 = vadd.xlane.f32.xlu1 %v5465_v18  ;;  %v13648_v18 = vld [vmem:[%s15846_s26 + $0x3a4] ss:$16 sps:$4 sm:$0xff]  }
 0xd66   : > { %v5462_v21 = vsel %vm4549_vm0, %v14459_v38, 0.0 }
 0xd67   : > { %5463 = vadd.xlane.f32.xlu0 %v5462_v21  ;;  %v13651_v21 = vld [vmem:[%s15846_s26 + $0x384] ss:$16 sps:$4 sm:$0xff]  }
 0xdee   : > { %v5467_v5 = vpop.xlane.xlu1 %5466 }
 0xdef   : > { %14460 = vrcp.f32 %v5467_v5  ;;  %v13649_v5 = vld [vmem:[%s15846_s26 + $0x380] ss:$16 sps:$4 sm:$0xff]  }
 0xdf0   : > { %v5464_v17 = vpop.xlane.xlu0 %5463 }
 0xdf1   : > { %14462 = vrcp.f32 %v5464_v17  ;;  %v13654_v17 = vld [vmem:[%s15846_s26 + $0x364] ss:$16 sps:$4 sm:$0xff]  }
 0xdfc   : > { %v14461_v0 = vpop.eup %14460 }
 0xdfd   : > { %v5471_v35 = vmul.f32 %v14461_v0, %v14457_v40  ;;  %v13643_v40 = vld [vmem:[%s15846_s26 + $0x3c0] ss:$16 sps:$4 sm:$0xff]  }
 0xdfe   : > { %v14463_v6 = vpop.eup %14462  ;;  %v13652_v0 = vld [vmem:[%s15846_s26 + $0x360] ss:$16 sps:$4 sm:$0xff]  }
 0xdff   : > { %v5470_v46 = vmul.f32 %v14463_v6, %v14459_v38  ;;  %v13646_v38 = vld [vmem:[%s15846_s26 + $0x3a0] ss:$16 sps:$4 sm:$0xff]   ;;  %v13657_v6 = vld [vmem:[%s15846_s26 + $0x344] ss:$16 sps:$4 sm:$0xff]  }
 0xe01   : > { %12922 = vmatprep.mubr.msk.f32.mxu1 %vm4549_vm0, %v5470_v46  ;;  %v13655_v46 = vld [vmem:[%s15846_s26 + $0x340] ss:$16 sps:$4 sm:$0xff]  }
 0xe02   : > { %12923 = vmatmul.mubr.msk.f32.vlgmr.msra.gmra.mxu1 %vm4549_vm0, %v5471_v35  ;;  %v13660_v35 = vld [vmem:[%s15846_s26 + $0x324] ss:$16 sps:$4 sm:$0xff]  }
 0xe03   : > { %12926 = vmatpush3.xpose.msra.mxu1 %v16544_v24  ;;  %12929 = vmatprep.mubr.f32.mxu1 %v5553_v41  ;;  %v13658_v41 = vld [vmem:[%s15846_s26 + $0x320] ss:$16 sps:$4 sm:$0xff]  }
 0xe04   : > { %12927 = vmatprep.subr.mxu1 %v16539_v7 }
 0xe07   : > { %12928 = vmatpush3.xpose.msra.mxu1 %v16539_v7 }
 0xe08   : > { %12946 = vmatprep.subr.mxu1 %v4470_v10 }
 0xe0a   : > { %12930 = vmatmul.mubr.f32.vlgmr.msra.gmra.mxu1 %v5554_v58  ;;  %v13661_v58 = vld [vmem:[%s15846_s26 + $0x300] ss:$16 sps:$4 sm:$0xff]  }
 0xe0b   : > { %12947 = vmatpush3.msra.mxu1 %v4470_v10  ;;  %v13663_v10 = vld [vmem:[%s15846_s26 + $0x304] ss:$16 sps:$4 sm:$0xff]  }
 0xe0c   : > { %12948 = vmatprep.subr.mxu1 %v16584_v43 }
 0xe0d   : > { %12949 = vmatpush3.msra.mxu1 %v16584_v43 }
 0xec2   : > { %v12924_v57 = vpop.f32.mrf.mxu1 }
 0xec4   : > { %v5544_v47 = vpop.f32.mrf.mxu1 }
 0xec5   : > { %v16702_v24 = vpack.c.bf16 %v12924_v57, %v5544_v47 }
 0xeca   : > { %v12931_v45 = vpop.f32.mrf.mxu1 }
 0xecb   : > { %v5633_v34 = vsel %vm4549_vm0, %v12931_v45, -inf }
 0xecc   : > { %5634 = vmax.xlane.f32.xlu1 %v5633_v34  ;;  %v5621_v9 = vpop.f32.mrf.mxu1 }
 0xecd   : > { %v5630_v7 = vsel %vm4549_vm0, %v5621_v9, -inf }
 0xece   : > { %5631 = vmax.xlane.f32.xlu0 %v5630_v7 }
 0xf55   : > { %v5635_v54 = vpop.xlane.xlu1 %5634 }
 0xf56   : > { %v5637_v3 = vsub.f32 %v12931_v45, %v5635_v54 }
 0xf57   : > { %v5632_v59 = vpop.xlane.xlu0 %5631 }
 0xf58   : > { %v5640_v13 = vmul.f32 1.442695, %v5637_v3  ;;  %v5636_v11 = vsub.f32 %v5621_v9, %v5632_v59 }
 0xf5a   : > { %14464 = vpow2.f32 %v5640_v13  ;;  %v5638_v61 = vmul.f32 1.442695, %v5636_v11 }
 0xf5c   : > { %14466 = vpow2.f32 %v5638_v61 }
 0xf67   : > { %v14465_v43 = vpop.eup %14464 }
 0xf68   : > { %v5645_v39 = vsel %vm4549_vm0, %v14465_v43, 0.0 }
 0xf69   : > { %v14467_v12 = vpop.eup %14466  ;;  %5646 = vadd.xlane.f32.xlu1 %v5645_v39 }
 0xf6a   : > { %v5642_v23 = vsel %vm4549_vm0, %v14467_v12, 0.0 }
 0xf6b   : > { %5643 = vadd.xlane.f32.xlu0 %v5642_v23 }
 0xff2   : > { %v5647_v27 = vpop.xlane.xlu1 %5646 }
 0xff3   : > { %14468 = vrcp.f32 %v5647_v27 }
 0xff4   : > { %v5644_v8 = vpop.xlane.xlu0 %5643 }
 0xff5   : > { %14470 = vrcp.f32 %v5644_v8  ;;  %v13666_v8 = vld [vmem:[%s15846_s26 + $0xe4] ss:$16 sps:$4 sm:$0xff]  }
 0xff6   : > { %6711 = vmatprep.subr.bf16.mxu1 %v13666_v8  ;;  %v13708_v8 = vld [vmem:[%s15846_s26 + $0x124] ss:$16 sps:$4 sm:$0xff]  }
0x1000   : > { %v14469_v19 = vpop.eup %14468 }
0x1001   : > { %v5651_v60 = vmul.f32 %v14469_v19, %v14465_v43 }
0x1002   : > { %v14471_v15 = vpop.eup %14470 }
0x1003   : > { %v5650_v25 = vmul.f32 %v14471_v15, %v14467_v12 }
0x1005   : > { %12936 = vmatprep.mubr.msk.f32.mxu0 %vm4549_vm0, %v5650_v25 }
0x1006   : > { %12937 = vmatmul.mubr.msk.f32.vlgmr.msra.gmra.mxu0 %vm4549_vm0, %v5651_v60 }
0x1007   : > { %12940 = vmatpush3.xpose.msra.mxu0 %v16546_v36  ;;  %12943 = vmatprep.mubr.f32.mxu0 %v5733_v31  ;;  %v13619_v36 = vld [vmem:[%s15846_s26 + $0x2c0] ss:$16 sps:$4 sm:$0xff]  }
0x1008   : > { %12941 = vmatprep.subr.mxu0 %v16541_v14  ;;  %v13664_v31 = vld [vmem:[%s15846_s26 + $0xe0] ss:$16 sps:$4 sm:$0xff]  }
0x100b   : > { %12942 = vmatpush3.xpose.msra.mxu0 %v16541_v14  ;;  %v13627_v14 = vld [vmem:[%s15846_s26 + $0x284] ss:$16 sps:$4 sm:$0xff]  }
0x100c   : > { %6764 = vmatprep.subr.bf16.mxu0 %v13618_v62  ;;  %v13669_v62 = vld [vmem:[%s15846_s26 + $0xc4] ss:$16 sps:$4 sm:$0xff]  }
0x100e   : > { %12944 = vmatmul.mubr.f32.vlgmr.msra.gmra.mxu0 %v5734_v63  ;;  %v13672_v63 = vld [vmem:[%s15846_s26 + $0xa4] ss:$16 sps:$4 sm:$0xff]  }
0x100f   : > { %6765 = vmatpush1.bf16.msra.mxu0 %v13616_v56  ;;  %6796 = vmatprep.mubr.bf16.mxu0 %v16665_v26  ;;  %v13667_v56 = vld [vmem:[%s15846_s26 + $0xc0] ss:$16 sps:$4 sm:$0xff]  }
0x1010   : > { %6766 = vmatprep.subr.bf16.mxu0 %v13621_v32  ;;  %v13670_v32 = vld [vmem:[%s15846_s26 + $0xa0] ss:$16 sps:$4 sm:$0xff]  }
0x1013   : > { %6767 = vmatpush1.bf16.msra.mxu0 %v13619_v36  ;;  %v13675_v36 = vld [vmem:[%s15846_s26 + $0x84] ss:$16 sps:$4 sm:$0xff]  }
0x1014   : > { %6768 = vmatprep.subr.bf16.mxu0 %v13624_v33  ;;  %v13760_v33 = vld [vmem:[%s15846_s26 + $0x2e8] ss:$16 sps:$4 sm:$0xff]  }
0x1017   : > { %6769 = vmatpush1.bf16.msra.mxu0 %v13622_v2  ;;  %v13762_v2 = vld [vmem:[%s15846_s26 + $0x2ec] ss:$16 sps:$4 sm:$0xff]  }
0x1018   : > { %6770 = vmatprep.subr.bf16.mxu0 %v13627_v14  ;;  %v13673_v14 = vld [vmem:[%s15846_s26 + $0x80] ss:$16 sps:$4 sm:$0xff]  }
0x101b   : > { %6771 = vmatpush1.bf16.msra.mxu0 %v13625_v30  ;;  %v13765_v30 = vld [vmem:[%s15846_s26 + $0x2cc] ss:$16 sps:$4 sm:$0xff]  }
0x101c   : > { %6772 = vmatprep.subr.bf16.mxu0 %v13630_v50  ;;  %v13678_v50 = vld [vmem:[%s15846_s26 + $0x64] ss:$16 sps:$4 sm:$0xff]  }
0x101f   : > { %6773 = vmatpush1.bf16.msra.mxu0 %v13628_v55  ;;  %v13763_v55 = vld [vmem:[%s15846_s26 + $0x2c8] ss:$16 sps:$4 sm:$0xff]  }
0x1020   : > { %6774 = vmatprep.subr.bf16.mxu0 %v13633_v20  ;;  %v13768_v20 = vld [vmem:[%s15846_s26 + $0x2ac] ss:$16 sps:$4 sm:$0xff]  }
0x1023   : > { %6775 = vmatpush1.bf16.msra.mxu0 %v13631_v22  ;;  %v13676_v22 = vld [vmem:[%s15846_s26 + $0x60] ss:$16 sps:$4 sm:$0xff]  }
0x1024   : > { %6776 = vmatprep.subr.bf16.mxu0 %v13636_v29  ;;  %v13681_v29 = vld [vmem:[%s15846_s26 + $0x44] ss:$16 sps:$4 sm:$0xff]  }
0x1027   : > { %6777 = vmatpush1.bf16.msra.mxu0 %v13634_v51  ;;  %v13766_v51 = vld [vmem:[%s15846_s26 + $0x2a8] ss:$16 sps:$4 sm:$0xff]  }
0x1028   : > { %6778 = vmatprep.subr.bf16.mxu0 %v13639_v42  ;;  %v13771_v42 = vld [vmem:[%s15846_s26 + $0x28c] ss:$16 sps:$4 sm:$0xff]  }
0x102b   : > { %6779 = vmatpush1.bf16.msra.mxu0 %v13637_v16  ;;  %v13679_v16 = vld [vmem:[%s15846_s26 + $0x40] ss:$16 sps:$4 sm:$0xff]  }
0x102c   : > { %6780 = vmatprep.subr.bf16.mxu0 %v13642_v4  ;;  %v13684_v4 = vld [vmem:[%s15846_s26 + $0x24] ss:$16 sps:$4 sm:$0xff]  }
0x102f   : > { %6781 = vmatpush2.bf16.msra.mxu0 %v13640_v44  ;;  %v13769_v44 = vld [vmem:[%s15846_s26 + $0x288] ss:$16 sps:$4 sm:$0xff]  }
0x1030   : > { %6782 = vmatprep.subr.bf16.mxu0 %v13645_v48  ;;  %v13774_v48 = vld [vmem:[%s15846_s26 + $0x26c] ss:$16 sps:$4 sm:$0xff]  }
0x1033   : > { %6783 = vmatpush2.bf16.msra.mxu0 %v13643_v40  ;;  %v13682_v40 = vld [vmem:[%s15846_s26 + $0x20] ss:$16 sps:$4 sm:$0xff]  }
0x1034   : > { %6784 = vmatprep.subr.bf16.mxu0 %v13648_v18  ;;  %v13687_v18 = vld [vmem:[%s15846_s26 + $0x4] ss:$16 sps:$4 sm:$0xff]  }
0x1037   : > { %6785 = vmatpush2.bf16.msra.mxu0 %v13646_v38  ;;  %v13772_v38 = vld [vmem:[%s15846_s26 + $0x268] ss:$16 sps:$4 sm:$0xff]  }
0x1038   : > { %6786 = vmatprep.subr.bf16.mxu0 %v13651_v21  ;;  %v13777_v21 = vld [vmem:[%s15846_s26 + $0x24c] ss:$16 sps:$4 sm:$0xff]  }
0x103b   : > { %6787 = vmatpush2.bf16.msra.mxu0 %v13649_v5  ;;  %v13685_v5 = vld [vmem:[%s15846_s26] ss:$16 sps:$4 sm:$0xff]  }
0x103c   : > { %6788 = vmatprep.subr.bf16.mxu0 %v13654_v17  ;;  %v13690_v17 = vld [vmem:[%s15846_s26 + $0x1e4] ss:$16 sps:$4 sm:$0xff]  }
0x103f   : > { %6789 = vmatpush2.bf16.msra.mxu0 %v13652_v0  ;;  %v13775_v0 = vld [vmem:[%s15846_s26 + $0x248] ss:$16 sps:$4 sm:$0xff]  }
0x1040   : > { %6790 = vmatprep.subr.bf16.mxu0 %v13657_v6  ;;  %v13780_v6 = vld [vmem:[%s15846_s26 + $0x22c] ss:$16 sps:$4 sm:$0xff]  }
0x1043   : > { %6791 = vmatpush2.bf16.msra.mxu0 %v13655_v46  ;;  %v13688_v46 = vld [vmem:[%s15846_s26 + $0x1e0] ss:$16 sps:$4 sm:$0xff]  }
0x1044   : > { %6792 = vmatprep.subr.bf16.mxu0 %v13660_v35  ;;  %v13693_v35 = vld [vmem:[%s15846_s26 + $0x1c4] ss:$16 sps:$4 sm:$0xff]  }
0x1047   : > { %6793 = vmatpush2.bf16.msra.mxu0 %v13658_v41  ;;  %v13778_v41 = vld [vmem:[%s15846_s26 + $0x228] ss:$16 sps:$4 sm:$0xff]  }
0x1048   : > { %6794 = vmatprep.subr.bf16.mxu0 %v13663_v10  ;;  %v13783_v10 = vld [vmem:[%s15846_s26 + $0x20c] ss:$16 sps:$4 sm:$0xff]  }
0x104b   : > { %6795 = vmatpush2.bf16.msra.mxu0 %v13661_v58  ;;  %v13691_v58 = vld [vmem:[%s15846_s26 + $0x1c0] ss:$16 sps:$4 sm:$0xff]  }
0x104c   : > { %6870 = vmatprep.subr.bf16.mxu0 %v13762_v2  ;;  %v13718_v2 = vld [vmem:[%s15846_s26 + $0xa8] ss:$16 sps:$4 sm:$0xff]  }
0x104e   : > { %6797 = vmatmul.mubr.bf16.vlgmr.msra.gmra.mxu0 %v16647_v37 }
0x104f   : > { %6871 = vmatpush1.bf16.msra.mxu0 %v13760_v33  ;;  %v13799_v33 = vld [vmem:[%s15846_s26 + $0x348] ss:$16 sps:$4 sm:$0xff]  }
0x1050   : > { %6872 = vmatprep.subr.bf16.mxu0 %v13765_v30  ;;  %v13723_v30 = vld [vmem:[%s15846_s26 + $0x8c] ss:$16 sps:$4 sm:$0xff]  }
0x1053   : > { %6873 = vmatpush1.bf16.msra.mxu0 %v13763_v55  ;;  %v13807_v55 = vld [vmem:[%s15846_s26 + $0x30c] ss:$16 sps:$4 sm:$0xff]  }
0x1054   : > { %6874 = vmatprep.subr.bf16.mxu0 %v13768_v20  ;;  %v13805_v20 = vld [vmem:[%s15846_s26 + $0x308] ss:$16 sps:$4 sm:$0xff]  }
0x1057   : > { %6875 = vmatpush1.bf16.msra.mxu0 %v13766_v51  ;;  %v13724_v51 = vld [vmem:[%s15846_s26 + $0x68] ss:$16 sps:$4 sm:$0xff]  }
0x1058   : > { %6876 = vmatprep.subr.bf16.mxu0 %v13771_v42  ;;  %v13729_v42 = vld [vmem:[%s15846_s26 + $0x4c] ss:$16 sps:$4 sm:$0xff]  }
0x105b   : > { %6877 = vmatpush1.bf16.msra.mxu0 %v13769_v44  ;;  %v13735_v44 = vld [vmem:[%s15846_s26 + $0xc] ss:$16 sps:$4 sm:$0xff]  }
0x105c   : > { %6878 = vmatprep.subr.bf16.mxu0 %v13774_v48  ;;  %v13733_v48 = vld [vmem:[%s15846_s26 + $0x8] ss:$16 sps:$4 sm:$0xff]  }
0x105f   : > { %6879 = vmatpush1.bf16.msra.mxu0 %v13772_v38  ;;  %v13741_v38 = vld [vmem:[%s15846_s26 + $0x1cc] ss:$16 sps:$4 sm:$0xff]  }
0x1060   : > { %6880 = vmatprep.subr.bf16.mxu0 %v13777_v21  ;;  %v13739_v21 = vld [vmem:[%s15846_s26 + $0x1c8] ss:$16 sps:$4 sm:$0xff]  }
0x1063   : > { %6881 = vmatpush1.bf16.msra.mxu0 %v13775_v0  ;;  %v13747_v0 = vld [vmem:[%s15846_s26 + $0x18c] ss:$16 sps:$4 sm:$0xff]  }
0x1064   : > { %6882 = vmatprep.subr.bf16.mxu0 %v13780_v6  ;;  %v13745_v6 = vld [vmem:[%s15846_s26 + $0x188] ss:$16 sps:$4 sm:$0xff]  }
0x1067   : > { %6883 = vmatpush1.bf16.msra.mxu0 %v13778_v41  ;;  %v13753_v41 = vld [vmem:[%s15846_s26 + $0x14c] ss:$16 sps:$4 sm:$0xff]  }
0x1068   : > { %6884 = vmatprep.subr.bf16.mxu0 %v13783_v10  ;;  %v13751_v10 = vld [vmem:[%s15846_s26 + $0x148] ss:$16 sps:$4 sm:$0xff]  }
0x10c6   : > { %v12938_v57 = vpop.f32.mrf.mxu0 }
0x10c8   : > { %v5724_v47 = vpop.f32.mrf.mxu0 }
0x10c9   : > { %v16751_v45 = vpack.c.bf16 %v12938_v57, %v5724_v47  ;;  %v13696_v57 = vld [vmem:[%s15846_s26 + $0x1a4] ss:$16 sps:$4 sm:$0xff]   ;;  %v13781_v47 = vld [vmem:[%s15846_s26 + $0x208] ss:$16 sps:$4 sm:$0xff]  }
0x10ca   : > { %6885 = vmatpush1.bf16.msra.mxu0 %v13781_v47  ;;  %v13759_v47 = vld [vmem:[%s15846_s26 + $0x10c] ss:$16 sps:$4 sm:$0xff]  }
0x10ce   : > { %v12945_v34 = vpop.f32.mrf.mxu0 }
0x10cf   : > { %v5813_v9 = vsel %vm4549_vm0, %v12945_v34, -inf }
0x10d0   : > { %5814 = vmax.xlane.f32.xlu1 %v5813_v9  ;;  %v5801_v7 = vpop.f32.mrf.mxu0  ;;  %v13694_v9 = vld [vmem:[%s15846_s26 + $0x1a0] ss:$16 sps:$4 sm:$0xff]  }
0x10d1   : > { %v5810_v54 = vsel %vm4549_vm0, %v5801_v7, -inf }
0x10d2   : > { %5811 = vmax.xlane.f32.xlu0 %v5810_v54  ;;  %v13784_v54 = vld [vmem:[%s15846_s26 + $0x3e8] ss:$16 sps:$4 sm:$0xff]  }
0x1159   : > { %v5815_v3 = vpop.xlane.xlu1 %5814 }
0x115a   : > { %v5817_v59 = vsub.f32 %v12945_v34, %v5815_v3  ;;  %v13786_v34 = vld [vmem:[%s15846_s26 + $0x3ec] ss:$16 sps:$4 sm:$0xff]  }
0x115b   : > { %v5812_v13 = vpop.xlane.xlu0 %5811  ;;  %6886 = vmatprep.subr.bf16.mxu0 %v13786_v34  ;;  %v13789_v3 = vld [vmem:[%s15846_s26 + $0x3cc] ss:$16 sps:$4 sm:$0xff]   ;;  %v13757_v34 = vld [vmem:[%s15846_s26 + $0x108] ss:$16 sps:$4 sm:$0xff]  }
0x115c   : > { %v5820_v11 = vmul.f32 1.442695, %v5817_v59  ;;  %v5816_v61 = vsub.f32 %v5801_v7, %v5812_v13  ;;  %v13699_v7 = vld [vmem:[%s15846_s26 + $0x184] ss:$16 sps:$4 sm:$0xff]   ;;  %v13697_v59 = vld [vmem:[%s15846_s26 + $0x180] ss:$16 sps:$4 sm:$0xff]   ;;  %6887 = vmatpush2.bf16.msra.mxu0 %v13784_v54 }
0x115d   : > { %v13702_v13 = vld [vmem:[%s15846_s26 + $0x164] ss:$16 sps:$4 sm:$0xff]   ;;  %6888 = vmatprep.subr.bf16.mxu0 %v13789_v3 }
0x115e   : > { %14472 = vpow2.f32 %v5820_v11  ;;  %v5818_v43 = vmul.f32 1.442695, %v5816_v61  ;;  %v13787_v11 = vld [vmem:[%s15846_s26 + $0x3c8] ss:$16 sps:$4 sm:$0xff]   ;;  %v13792_v61 = vld [vmem:[%s15846_s26 + $0x3ac] ss:$16 sps:$4 sm:$0xff]  }
0x1160   : > { %14474 = vpow2.f32 %v5818_v43  ;;  %v13700_v43 = vld [vmem:[%s15846_s26 + $0x160] ss:$16 sps:$4 sm:$0xff]   ;;  %6889 = vmatpush2.bf16.msra.mxu0 %v13787_v11 }
0x1161   : > { %6890 = vmatprep.subr.bf16.mxu0 %v13792_v61  ;;  %v6798_v61 = vpop.f32.mrf.mxu0 }
0x116b   : > { %v14473_v39 = vpop.eup %14472 }
0x116c   : > { %v5825_v12 = vsel %vm4549_vm0, %v14473_v39, 0.0 }
0x116d   : > { %v14475_v23 = vpop.eup %14474  ;;  %5826 = vadd.xlane.f32.xlu1 %v5825_v12  ;;  %v13790_v12 = vld [vmem:[%s15846_s26 + $0x3a8] ss:$16 sps:$4 sm:$0xff]  }
0x116e   : > { %v5822_v27 = vsel %vm4549_vm0, %v14475_v23, 0.0  ;;  %6891 = vmatpush2.bf16.msra.mxu0 %v13790_v12  ;;  %v6800_v12 = vpop.f32.mrf.mxu0 }
0x116f   : > { %5823 = vadd.xlane.f32.xlu0 %v5822_v27  ;;  %v13703_v27 = vld [vmem:[%s15846_s26 + $0x140] ss:$16 sps:$4 sm:$0xff]  }
0x11f6   : > { %v5827_v19 = vpop.xlane.xlu1 %5826 }
0x11f7   : > { %14476 = vrcp.f32 %v5827_v19  ;;  %v13793_v19 = vld [vmem:[%s15846_s26 + $0x388] ss:$16 sps:$4 sm:$0xff]  }
0x11f8   : > { %v5824_v15 = vpop.xlane.xlu0 %5823 }
0x11f9   : > { %14478 = vrcp.f32 %v5824_v15  ;;  %v13798_v15 = vld [vmem:[%s15846_s26 + $0x36c] ss:$16 sps:$4 sm:$0xff]  }
0x1204   : > { %v14477_v25 = vpop.eup %14476 }
0x1205   : > { %v5831_v28 = vmul.f32 %v14477_v25, %v14473_v39  ;;  %v13705_v39 = vld [vmem:[%s15846_s26 + $0x144] ss:$16 sps:$4 sm:$0xff]   ;;  %v13706_v25 = vld [vmem:[%s15846_s26 + $0x120] ss:$16 sps:$4 sm:$0xff]  }
0x1206   : > { %v14479_v1 = vpop.eup %14478 }
0x1207   : > { %v5830_v60 = vmul.f32 %v14479_v1, %v14475_v23  ;;  %v13795_v23 = vld [vmem:[%s15846_s26 + $0x38c] ss:$16 sps:$4 sm:$0xff]   ;;  %v13711_v1 = vld [vmem:[%s15846_s26 + $0x104] ss:$16 sps:$4 sm:$0xff]  }
0x1208   : > { %6892 = vmatprep.subr.bf16.mxu0 %v13795_v23 }
0x1209   : > { %12950 = vmatprep.mubr.msk.f32.mxu1 %vm4549_vm0, %v5830_v60  ;;  %6893 = vmatpush2.bf16.msra.mxu0 %v13793_v19  ;;  %v13796_v60 = vld [vmem:[%s15846_s26 + $0x368] ss:$16 sps:$4 sm:$0xff]  }
0x120a   : > { %12951 = vmatmul.mubr.msk.f32.vlgmr.msra.gmra.mxu1 %vm4549_vm0, %v5831_v28  ;;  %6894 = vmatprep.subr.bf16.mxu0 %v13798_v15  ;;  %v13714_v28 = vld [vmem:[%s15846_s26 + $0xec] ss:$16 sps:$4 sm:$0xff]   ;;  %v18292_v19 = vld [vmem:[#allocation47_spill] sm:$0xff] }
0x120b   : > { %6712 = vmatpush1.bf16.msra.mxu1 %v13664_v31  ;;  %6743 = vmatprep.mubr.bf16.mxu1 %v16622_v53  ;;  %v13709_v31 = vld [vmem:[%s15846_s26 + $0x100] ss:$16 sps:$4 sm:$0xff]  }
0x120c   : > { %6713 = vmatprep.subr.bf16.mxu1 %v13669_v62  ;;  %v13712_v62 = vld [vmem:[%s15846_s26 + $0xe8] ss:$16 sps:$4 sm:$0xff]  }
0x120d   : > { %6895 = vmatpush2.bf16.msra.mxu0 %v13796_v60 }
0x120f   : > { %6714 = vmatpush1.bf16.msra.mxu1 %v13667_v56  ;;  %v13717_v56 = vld [vmem:[%s15846_s26 + $0xcc] ss:$16 sps:$4 sm:$0xff]  }
0x1210   : > { %6715 = vmatprep.subr.bf16.mxu1 %v13672_v63  ;;  %v13715_v63 = vld [vmem:[%s15846_s26 + $0xc8] ss:$16 sps:$4 sm:$0xff]  }
0x1213   : > { %6716 = vmatpush1.bf16.msra.mxu1 %v13670_v32  ;;  %v13801_v32 = vld [vmem:[%s15846_s26 + $0x34c] ss:$16 sps:$4 sm:$0xff]  }
0x1214   : > { %6717 = vmatprep.subr.bf16.mxu1 %v13675_v36  ;;  %v13720_v36 = vld [vmem:[%s15846_s26 + $0xac] ss:$16 sps:$4 sm:$0xff]   ;;  %6896 = vmatprep.subr.bf16.mxu0 %v13801_v32  ;;  %v18293_v32 = vld [vmem:[#allocation49_spill] sm:$0xff] }
0x1215   : > { %6897 = vmatpush2.bf16.msra.mxu0 %v13799_v33 }
0x1217   : > { %6718 = vmatpush1.bf16.msra.mxu1 %v13673_v14  ;;  %v13804_v14 = vld [vmem:[%s15846_s26 + $0x32c] ss:$16 sps:$4 sm:$0xff]  }
0x1218   : > { %6719 = vmatprep.subr.bf16.mxu1 %v13678_v50  ;;  %v13802_v50 = vld [vmem:[%s15846_s26 + $0x328] ss:$16 sps:$4 sm:$0xff]   ;;  %6898 = vmatprep.subr.bf16.mxu0 %v13804_v14 }
0x1219   : > { %6899 = vmatpush2.bf16.msra.mxu0 %v13802_v50 }
0x121a   : > { %6900 = vmatprep.subr.bf16.mxu0 %v13807_v55 }
0x121b   : > { %6720 = vmatpush1.bf16.msra.mxu1 %v13676_v22  ;;  %v13721_v22 = vld [vmem:[%s15846_s26 + $0x88] ss:$16 sps:$4 sm:$0xff]  }
0x121c   : > { %6721 = vmatprep.subr.bf16.mxu1 %v13681_v29  ;;  %v13726_v29 = vld [vmem:[%s15846_s26 + $0x6c] ss:$16 sps:$4 sm:$0xff]  }
0x121d   : > { %6901 = vmatpush2.bf16.msra.mxu0 %v13805_v20 }
0x121f   : > { %6722 = vmatpush1.bf16.msra.mxu1 %v13679_v16  ;;  %v13727_v16 = vld [vmem:[%s15846_s26 + $0x48] ss:$16 sps:$4 sm:$0xff]  }
0x1220   : > { %6723 = vmatprep.subr.bf16.mxu1 %v13684_v4  ;;  %v13732_v4 = vld [vmem:[%s15846_s26 + $0x2c] ss:$16 sps:$4 sm:$0xff]  }
0x1223   : > { %6724 = vmatpush1.bf16.msra.mxu1 %v13682_v40  ;;  %v13738_v40 = vld [vmem:[%s15846_s26 + $0x1ec] ss:$16 sps:$4 sm:$0xff]  }
0x1224   : > { %6725 = vmatprep.subr.bf16.mxu1 %v13687_v18  ;;  %v13736_v18 = vld [vmem:[%s15846_s26 + $0x1e8] ss:$16 sps:$4 sm:$0xff]  }
0x1227   : > { %6726 = vmatpush1.bf16.msra.mxu1 %v13685_v5  ;;  %v13744_v5 = vld [vmem:[%s15846_s26 + $0x1ac] ss:$16 sps:$4 sm:$0xff]  }
0x1228   : > { %6727 = vmatprep.subr.bf16.mxu1 %v13690_v17  ;;  %v13742_v17 = vld [vmem:[%s15846_s26 + $0x1a8] ss:$16 sps:$4 sm:$0xff]  }
0x122b   : > { %6728 = vmatpush2.bf16.msra.mxu1 %v13688_v46  ;;  %v13750_v46 = vld [vmem:[%s15846_s26 + $0x16c] ss:$16 sps:$4 sm:$0xff]  }
0x122c   : > { %6729 = vmatprep.subr.bf16.mxu1 %v13693_v35  ;;  %v13748_v35 = vld [vmem:[%s15846_s26 + $0x168] ss:$16 sps:$4 sm:$0xff]  }
0x122f   : > { %6730 = vmatpush2.bf16.msra.mxu1 %v13691_v58  ;;  %v13756_v58 = vld [vmem:[%s15846_s26 + $0x12c] ss:$16 sps:$4 sm:$0xff]  }
0x1230   : > { %6731 = vmatprep.subr.bf16.mxu1 %v13696_v57  ;;  %v13754_v57 = vld [vmem:[%s15846_s26 + $0x128] ss:$16 sps:$4 sm:$0xff]  }
0x1233   : > { %6732 = vmatpush2.bf16.msra.mxu1 %v13694_v9 }
0x1234   : > { %6733 = vmatprep.subr.bf16.mxu1 %v13699_v7 }
0x1237   : > { %6734 = vmatpush2.bf16.msra.mxu1 %v13697_v59 }
0x1238   : > { %6735 = vmatprep.subr.bf16.mxu1 %v13702_v13 }
0x123b   : > { %6736 = vmatpush2.bf16.msra.mxu1 %v13700_v43 }
0x123c   : > { %6737 = vmatprep.subr.bf16.mxu1 %v13705_v39 }
0x123f   : > { %6738 = vmatpush2.bf16.msra.mxu1 %v13703_v27  ;;  %v6802_v27 = vpop.f32.mrf.mxu0 }
0x1240   : > { %6739 = vmatprep.subr.bf16.mxu1 %v13708_v8 }
0x1243   : > { %6740 = vmatpush2.bf16.msra.mxu1 %v13706_v25  ;;  %v6804_v25 = vpop.f32.mrf.mxu0 }
0x1244   : > { %6741 = vmatprep.subr.bf16.mxu1 %v13711_v1 }
0x1247   : > { %6742 = vmatpush2.bf16.msra.mxu1 %v13709_v31 }
0x1248   : > { %6817 = vmatprep.subr.bf16.mxu1 %v13714_v28 }
0x124a   : > { %6744 = vmatmul.mubr.bf16.vlgmr.msra.gmra.mxu1 %v16620_v49 }
0x124b   : > { %6753 = vmatprep.mubr.bf16.mxu1 %v16702_v24  ;;  %6818 = vmatpush1.bf16.msra.mxu1 %v13712_v62 }
0x124c   : > { %6819 = vmatprep.subr.bf16.mxu1 %v13717_v56 }
0x124f   : > { %6820 = vmatpush1.bf16.msra.mxu1 %v13715_v63 }
0x1250   : > { %6821 = vmatprep.subr.bf16.mxu1 %v13720_v36 }
0x1252   : > { %6754 = vmatmul.mubr.bf16.gmra.mxu1 %v16685_v52 }
0x1253   : > { %6822 = vmatpush1.bf16.msra.mxu1 %v13718_v2  ;;  %6849 = vmatprep.mubr.bf16.mxu1 %v16622_v53  ;;  %v13730_v53 = vld [vmem:[%s15846_s26 + $0x28] ss:$16 sps:$4 sm:$0xff]   ;;  %s18303_s26 = sld [smem:[#allocation68_spill]] }
0x1254   : > { %6823 = vmatprep.subr.bf16.mxu1 %v13723_v30  ;;  %v18294_v30 = vld [vmem:[#allocation50_spill] sm:$0xff] }
0x1257   : > { %6824 = vmatpush1.bf16.msra.mxu1 %v13721_v22 }
0x1258   : > { %6825 = vmatprep.subr.bf16.mxu1 %v13726_v29  ;;  %v14513_v29 = vld [vmem:[%s18286_s9 + $0x8] sm:$0xff] }
0x125b   : > { %6826 = vmatpush1.bf16.msra.mxu1 %v13724_v51 }
0x125c   : > { %6827 = vmatprep.subr.bf16.mxu1 %v13729_v42 }
0x125f   : > { %6828 = vmatpush1.bf16.msra.mxu1 %v13727_v16 }
0x1260   : > { %6829 = vmatprep.subr.bf16.mxu1 %v13732_v4 }
0x1263   : > { %6830 = vmatpush1.bf16.msra.mxu1 %v13730_v53 }
0x1264   : > { %6831 = vmatprep.subr.bf16.mxu1 %v13735_v44  ;;  %v14514_v44 = vld [vmem:[%s18286_s9] sm:$0xff] }
0x1267   : > { %6832 = vmatpush1.bf16.msra.mxu1 %v13733_v48 }
0x1268   : > { %6833 = vmatprep.subr.bf16.mxu1 %v13738_v40 }
0x126b   : > { %6834 = vmatpush2.bf16.msra.mxu1 %v13736_v18 }
0x126c   : > { %6835 = vmatprep.subr.bf16.mxu1 %v13741_v38 }
0x126f   : > { %6836 = vmatpush2.bf16.msra.mxu1 %v13739_v21  ;;  %v14515_v21 = vld [vmem:[%s18286_s9 + $0x28] sm:$0xff] }
0x1270   : > { %6837 = vmatprep.subr.bf16.mxu1 %v13744_v5 }
0x1273   : > { %6838 = vmatpush2.bf16.msra.mxu1 %v13742_v17 }
0x1274   : > { %6839 = vmatprep.subr.bf16.mxu1 %v13747_v0 }
0x1277   : > { %6840 = vmatpush2.bf16.msra.mxu1 %v13745_v6 }
0x1278   : > { %6841 = vmatprep.subr.bf16.mxu1 %v13750_v46 }
0x127b   : > { %6842 = vmatpush2.bf16.msra.mxu1 %v13748_v35  ;;  %v14516_v35 = vld [vmem:[%s18286_s9 + $0x10] sm:$0xff] }
0x127c   : > { %6843 = vmatprep.subr.bf16.mxu1 %v13753_v41 }
0x127f   : > { %6844 = vmatpush2.bf16.msra.mxu1 %v13751_v10 }
0x1280   : > { %6845 = vmatprep.subr.bf16.mxu1 %v13756_v58 }
0x1283   : > { %6846 = vmatpush2.bf16.msra.mxu1 %v13754_v57  ;;  %v14517_v57 = vld [vmem:[%s18286_s9 + $0x20] sm:$0xff] }
0x1284   : > { %6847 = vmatprep.subr.bf16.mxu1 %v13759_v47 }
0x1287   : > { %6848 = vmatpush2.bf16.msra.mxu1 %v13757_v34 }
0x128a   : > { %6850 = vmatmul.mubr.bf16.vlgmr.msra.gmra.mxu1 %v16620_v49 }
0x128b   : > { %6859 = vmatprep.mubr.bf16.mxu1 %v16702_v24 }
0x1292   : > { %6860 = vmatmul.mubr.bf16.gmra.mxu1 %v16685_v52 }
0x12ca   : > { %v12952_v9 = vpop.f32.mrf.mxu1 }
0x12cc   : > { %v5904_v7 = vpop.f32.mrf.mxu1 }
0x12cd   : > { %v5920_v54 = vpack.c.bf16 %v12952_v9, %v5904_v7 }
0x12cf   : > { %6806 = vmatprep.mubr.bf16.mxu0 %v5920_v54 }
0x12d0   : > { %6807 = vmatmul.mubr.bf16.gmra.mxu0 %v16751_v45 }
0x12d1   : > { %6902 = vmatprep.mubr.bf16.mxu0 %v16665_v26  ;;  %v6049_v26 = vld [vmem:[%s1128_s16] sm:$0xf]  ;;  %s1437_s16 = scalar_lea.vmem %s18303_s26, %s18310_s27 }
0x12d2   : > { %v6054_v15 = vrot.slane %v6049_v26, %v18292_v19  ;;  %v6062_v36 = vrot.slane %v6049_v26, %v18293_v32  ;;  %v16873_v50 = vrot.slane %v6049_v26, %v18294_v30 }
0x12d8   : > { %6903 = vmatmul.mubr.bf16.vlgmr.msra.gmra.mxu0 %v16647_v37  ;;  %v18291_v37 = vld [vmem:[#allocation48_spill] sm:$0xff] }
0x12d9   : > { %6912 = vmatprep.mubr.bf16.mxu0 %v5920_v54  ;;  %v6058_v8 = vrot.slane %v6049_v26, %v18291_v37  ;;  %v14520_v26 = vld [vmem:[%s18286_s9 + $0x30] sm:$0xff] }
0x12e0   : > { %6913 = vmatmul.mubr.bf16.gmra.mxu0 %v16751_v45 }
0x130a   : > { %v6745_v3 = vpop.f32.mrf.mxu1 }
0x130b   : > { %v6746_v31 = vadd.f32 %v6745_v3, %v6054_v15 }
0x130c   : > { %v6747_v49 = vpop.f32.mrf.mxu1 }
0x130d   : > { %v6748_v1 = vadd.f32 %v6747_v49, %v6058_v8  ;;  %v6799_v14 = vadd.f32 %v6798_v61, %v6746_v31  ;;  %v14518_v49 = vld [vmem:[%s18286_s9 + $0x18] sm:$0xff] }
0x130e   : > { %v6749_v59 = vpop.f32.mrf.mxu1 }
0x130f   : > { %v6801_v63 = vadd.f32 %v6800_v12, %v6748_v1  ;;  %v6750_v33 = vadd.f32 %v6749_v59, %v6054_v15  ;;  %v16883_v48 = vadd.f32 %v14514_v44, %v6799_v14  ;;  %v14525_v44 = vld [vmem:[%s18286_s9 + $0x60] sm:$0xff] }
0x1310   : > { %v6751_v24 = vpop.f32.mrf.mxu1 }
0x1311   : > { %v6752_v62 = vadd.f32 %v6751_v24, %v6058_v8  ;;  %v16878_v51 = vadd.f32 %v14513_v29, %v6801_v63  ;;  %v6803_v16 = vadd.f32 %v6802_v27, %v6750_v33  ;;  %v14524_v29 = vld [vmem:[%s18286_s9 + $0x50] sm:$0xff] }
0x1312   : > { %v6755_v13 = vpop.f32.mrf.mxu1 }
0x1313   : > { %v6805_v20 = vadd.f32 %v6804_v25, %v6752_v62  ;;  %v6756_v17 = vadd.f32 %v6755_v13, %v6054_v15  ;;  %v6941_v58 = vadd.f32 %v16878_v51, %v16883_v48  ;;  %v16901_v47 = vadd.f32 %v14517_v57, %v6803_v16  ;;  %v14521_v25 = vld [vmem:[%s18286_s9 + $0x40] sm:$0xff]  ;;  %v14522_v62 = vld [vmem:[%s18286_s9 + $0x38] sm:$0xff] }
0x1314   : > { %v6757_v52 = vpop.f32.mrf.mxu1 }
0x1315   : > { %v6758_v4 = vadd.f32 %v6757_v52, %v6058_v8  ;;  %v16889_v5 = vadd.f32 %v14515_v21, %v6805_v20 }
0x1316   : > { %v6759_v11 = vpop.f32.mrf.mxu1 }
0x1317   : > { %v6760_v52 = vadd.f32 %v6759_v11, %v6054_v15 }
0x1318   : > { %v6761_v43 = vpop.f32.mrf.mxu1 }
0x1319   : > { %v6762_v34 = vadd.f32 %v6761_v43, %v6058_v8  ;;  %v14519_v43 = vld [vmem:[%s18286_s9 + $0x48] sm:$0xff] }
0x134a   : > { %v6851_v39 = vpop.f32.mrf.mxu1 }
0x134b   : > { %v6852_v42 = vadd.f32 %v6851_v39, %v6062_v36 }
0x134c   : > { %v6853_v23 = vpop.f32.mrf.mxu1 }
0x134d   : > { %v6854_v40 = vadd.f32 %v6853_v23, %v16873_v50  ;;  %v6946_v23 = vadd.f32 %v16889_v5, %v16901_v47 }
0x134e   : > { %v6855_v45 = vpop.f32.mrf.mxu1 }
0x134f   : > { %v6856_v46 = vadd.f32 %v6855_v45, %v6062_v36 }
0x1350   : > { %v6857_v28 = vpop.f32.mrf.mxu1 }
0x1351   : > { %v6858_v54 = vadd.f32 %v6857_v28, %v16873_v50 }
0x1352   : > { %v6861_v55 = vpop.f32.mrf.mxu1 }
0x1353   : > { %v6862_v61 = vadd.f32 %v6861_v55, %v6062_v36 }
0x1354   : > { %v6863_v18 = vpop.f32.mrf.mxu1 }
0x1355   : > { %v6864_v15 = vadd.f32 %v6863_v18, %v16873_v50  ;;  %v14526_v18 = vld [vmem:[%s18286_s9 + $0x58] sm:$0xff] }
0x1356   : > { %v6865_v3 = vpop.f32.mrf.mxu1 }
0x1357   : > { %v6866_v14 = vadd.f32 %v6865_v3, %v6062_v36  ;;  %v13811_v3 = vld [vmem:[%s15862_s18 + $0x2e0] ss:$16 sps:$4 sm:$0xff]  }
0x1358   : > { %v6867_v31 = vpop.f32.mrf.mxu1 }
0x1359   : > { %v6868_v36 = vadd.f32 %v6867_v31, %v16873_v50  ;;  %v13832_v31 = vld [vmem:[%s15862_s18 + $0x60] ss:$16 sps:$4 sm:$0xff]  }
0x1390   : > { %v6808_v60 = vpop.f32.mrf.mxu0 }
0x1391   : > { %v6809_v9 = vadd.f32 %v6808_v60, %v6756_v17 }
0x1392   : > { %v6810_v56 = vpop.f32.mrf.mxu0 }
0x1393   : > { %v6811_v0 = vadd.f32 %v6810_v56, %v6758_v4  ;;  %v16927_v1 = vadd.f32 %v14521_v25, %v6809_v9  ;;  %v13834_v25 = vld [vmem:[%s15862_s18 + $0x64] ss:$16 sps:$4 sm:$0xff]  }
0x1394   : > { %v6812_v2 = vpop.f32.mrf.mxu0 }
0x1395   : > { %v16913_v39 = vadd.f32 %v14519_v43, %v6811_v0  ;;  %v6813_v28 = vadd.f32 %v6812_v2, %v6760_v52  ;;  %v13814_v52 = vld [vmem:[%s15862_s18 + $0xc0] ss:$16 sps:$4 sm:$0xff]   ;;  %v13822_v43 = vld [vmem:[%s15862_s18 + $0xa4] ss:$16 sps:$4 sm:$0xff]  }
0x1396   : > { %v6814_v22 = vpop.f32.mrf.mxu0 }
0x1397   : > { %v6815_v27 = vadd.f32 %v6814_v22, %v6762_v34  ;;  %v6951_v55 = vadd.f32 %v16913_v39, %v16927_v1  ;;  %v14523_v22 = vld [vmem:[%s18286_s9 + $0x68] sm:$0xff] }
0x1398   : > { %v6904_v53 = vpop.f32.mrf.mxu0 }
0x1399   : > { %v6905_v38 = vadd.f32 %v6904_v53, %v6852_v42  ;;  %v16940_v2 = vadd.f32 %v14523_v22, %v6815_v27  ;;  %v13823_v27 = vld [vmem:[%s15862_s18 + $0x2a0] ss:$16 sps:$4 sm:$0xff]  }
0x139a   : > { %v6906_v6 = vpop.f32.mrf.mxu0  ;;  %v13844_v22 = vld [vmem:[%s15862_s18 + $0x20] ss:$16 sps:$4 sm:$0xff]  }
0x139b   : > { %v16894_v41 = vadd.f32 %v14516_v35, %v6905_v38  ;;  %v6907_v10 = vadd.f32 %v6906_v6, %v6854_v40  ;;  %v16952_v40 = vadd.f32 %v14525_v44, %v6813_v28  ;;  %v14527_v6 = vld [vmem:[%s18286_s9 + $0x70] sm:$0xff] }
0x139c   : > { %v6908_v7 = vpop.f32.mrf.mxu0  ;;  %v13835_v28 = vld [vmem:[%s15862_s18 + $0x260] ss:$16 sps:$4 sm:$0xff]   ;;  %v13858_v44 = vld [vmem:[%s15862_s18 + $0x1e4] ss:$16 sps:$4 sm:$0xff]  }
0x139d   : > { %v16907_v59 = vadd.f32 %v14518_v49, %v6907_v10  ;;  %v6909_v24 = vadd.f32 %v6908_v7, %v6856_v46  ;;  %v6942_v13 = vadd.f32 %v6941_v58, %v16894_v41  ;;  %v6956_v0 = vadd.f32 %v16940_v2, %v16952_v40  ;;  %v14528_v58 = vld [vmem:[%s18286_s9 + $0x78] sm:$0xff]  ;;  %v13808_v7 = vld [vmem:[%s15862_s18 + $0xe0] ss:$16 sps:$4 sm:$0xff]   ;;  %v13813_v49 = vld [vmem:[%s15862_s18 + $0x2e4] ss:$16 sps:$4 sm:$0xff]  }
0x139e   : > { %v6910_v12 = vpop.f32.mrf.mxu0  ;;  %7971 = vmatprep.subr.bf16.mxu0 %v13813_v49 }
0x139f   : > { %v16920_v8 = vadd.f32 %v14520_v26, %v6909_v24  ;;  %v6911_v45 = vadd.f32 %v6910_v12, %v6858_v54  ;;  %v6943_v11 = vadd.f32 %v6942_v13, %v16907_v59  ;;  %v13810_v54 = vld [vmem:[%s15862_s18 + $0xe4] ss:$16 sps:$4 sm:$0xff]   ;;  %7972 = vmatpush1.bf16.msra.mxu0 %v13811_v3 }
0x13a0   : > { %v6914_v60 = vpop.f32.mrf.mxu0  ;;  %v13816_v24 = vld [vmem:[%s15862_s18 + $0xc4] ss:$16 sps:$4 sm:$0xff]   ;;  %7918 = vmatprep.subr.bf16.mxu1 %v13810_v54 }
0x13a1   : > { %v16932_v56 = vadd.f32 %v14522_v62, %v6911_v45  ;;  %v6915_v63 = vadd.f32 %v6914_v60, %v6862_v61  ;;  %6944 = vadd.xlane.f32.xlu0 %v6943_v11  ;;  %v6947_v33 = vadd.f32 %v6946_v23, %v16920_v8  ;;  %v13819_v13 = vld [vmem:[%s15862_s18 + $0x2c4] ss:$16 sps:$4 sm:$0xff]   ;;  %7919 = vmatpush1.bf16.msra.mxu1 %v13808_v7  ;;  %v13817_v61 = vld [vmem:[%s15862_s18 + $0x2c0] ss:$16 sps:$4 sm:$0xff]  }
0x13a2   : > { %v6916_v20 = vpop.f32.mrf.mxu0  ;;  %7920 = vmatprep.subr.bf16.mxu1 %v13816_v24  ;;  %7973 = vmatprep.subr.bf16.mxu0 %v13819_v13  ;;  %v13825_v12 = vld [vmem:[%s15862_s18 + $0x2a4] ss:$16 sps:$4 sm:$0xff]   ;;  %v13820_v23 = vld [vmem:[%s15862_s18 + $0xa0] ss:$16 sps:$4 sm:$0xff]  }
0x13a3   : > { %v16945_v42 = vadd.f32 %v14524_v29, %v6915_v63  ;;  %v6917_v16 = vadd.f32 %v6916_v20, %v6864_v15  ;;  %v6948_v4 = vadd.f32 %v6947_v33, %v16932_v56  ;;  %7974 = vmatpush1.bf16.msra.mxu0 %v13817_v61  ;;  %v13828_v26 = vld [vmem:[%s15862_s18 + $0x84] ss:$16 sps:$4 sm:$0xff]   ;;  %v13826_v11 = vld [vmem:[%s15862_s18 + $0x80] ss:$16 sps:$4 sm:$0xff]  }
0x13a4   : > { %v6918_v53 = vpop.f32.mrf.mxu0  ;;  %7975 = vmatprep.subr.bf16.mxu0 %v13825_v12  ;;  %v13831_v45 = vld [vmem:[%s15862_s18 + $0x284] ss:$16 sps:$4 sm:$0xff]   ;;  %v13829_v15 = vld [vmem:[%s15862_s18 + $0x280] ss:$16 sps:$4 sm:$0xff]  }
0x13a5   : > { %v16957_v38 = vadd.f32 %v14526_v18, %v6917_v16  ;;  %v6919_v21 = vadd.f32 %v6918_v53, %v6866_v14  ;;  %6949 = vadd.xlane.f32.xlu1 %v6948_v4  ;;  %v6952_v50 = vadd.f32 %v6951_v55, %v16945_v42  ;;  %7921 = vmatpush1.bf16.msra.mxu1 %v13814_v52  ;;  %v13837_v60 = vld [vmem:[%s15862_s18 + $0x264] ss:$16 sps:$4 sm:$0xff]   ;;  %v13838_v33 = vld [vmem:[%s15862_s18 + $0x40] ss:$16 sps:$4 sm:$0xff]  }
0x13a6   : > { %v6920_v17 = vpop.f32.mrf.mxu0  ;;  %7922 = vmatprep.subr.bf16.mxu1 %v13822_v43  ;;  %v13840_v62 = vld [vmem:[%s15862_s18 + $0x44] ss:$16 sps:$4 sm:$0xff]   ;;  %v13841_v14 = vld [vmem:[%s15862_s18 + $0x240] ss:$16 sps:$4 sm:$0xff]  }
0x13a7   : > { %v16965_v46 = vadd.f32 %v14527_v6, %v6919_v21  ;;  %v6921_v35 = vadd.f32 %v6920_v17, %v6868_v36  ;;  %v6953_v10 = vadd.f32 %v6952_v50, %v16957_v38  ;;  %7976 = vmatpush1.bf16.msra.mxu0 %v13823_v27  ;;  %v13843_v63 = vld [vmem:[%s15862_s18 + $0x244] ss:$16 sps:$4 sm:$0xff]   ;;  %v13847_v29 = vld [vmem:[%s15862_s18 + $0x220] ss:$16 sps:$4 sm:$0xff]  }
0x13a8   : > { %7977 = vmatprep.subr.bf16.mxu0 %v13831_v45  ;;  %v13846_v55 = vld [vmem:[%s15862_s18 + $0x24] ss:$16 sps:$4 sm:$0xff]   ;;  %v13850_v36 = vld [vmem:[%s15862_s18] ss:$16 sps:$4 sm:$0xff]  }
0x13a9   : > { %v16971_v57 = vadd.f32 %v14528_v58, %v6921_v35  ;;  %6954 = vadd.xlane.f32.xlu0 %v6953_v10  ;;  %v6957_v34 = vadd.f32 %v6956_v0, %v16965_v46  ;;  %7923 = vmatpush1.bf16.msra.mxu1 %v13820_v23  ;;  %v13849_v20 = vld [vmem:[%s15862_s18 + $0x224] ss:$16 sps:$4 sm:$0xff]   ;;  %v13853_v53 = vld [vmem:[%s15862_s18 + $0x200] ss:$16 sps:$4 sm:$0xff]  }
0x13aa   : > { %7924 = vmatprep.subr.bf16.mxu1 %v13828_v26  ;;  %v13852_v16 = vld [vmem:[%s15862_s18 + $0x4] ss:$16 sps:$4 sm:$0xff]   ;;  %v13856_v21 = vld [vmem:[%s15862_s18 + $0x1e0] ss:$16 sps:$4 sm:$0xff]  }
0x13ab   : > { %v6958_v9 = vadd.f32 %v6957_v34, %v16971_v57  ;;  %7978 = vmatpush1.bf16.msra.mxu0 %v13829_v15  ;;  %v13855_v4 = vld [vmem:[%s15862_s18 + $0x204] ss:$16 sps:$4 sm:$0xff]   ;;  %v13859_v50 = vld [vmem:[%s15862_s18 + $0x3e0] ss:$16 sps:$4 sm:$0xff]  }
0x13ac   : > { %7979 = vmatprep.subr.bf16.mxu0 %v13837_v60  ;;  %v13861_v18 = vld [vmem:[%s15862_s18 + $0x3e4] ss:$16 sps:$4 sm:$0xff]  }
0x13ad   : > { %6959 = vadd.xlane.f32.xlu1 %v6958_v9  ;;  %7925 = vmatpush1.bf16.msra.mxu1 %v13826_v11 }
0x13ae   : > { %7926 = vmatprep.subr.bf16.mxu1 %v13834_v25 }
0x13af   : > { %7980 = vmatpush1.bf16.msra.mxu0 %v13835_v28 }
0x13b0   : > { %7981 = vmatprep.subr.bf16.mxu0 %v13843_v63 }
0x13b1   : > { %7927 = vmatpush1.bf16.msra.mxu1 %v13832_v31 }
0x13b2   : > { %7928 = vmatprep.subr.bf16.mxu1 %v13840_v62 }
0x13b3   : > { %7982 = vmatpush1.bf16.msra.mxu0 %v13841_v14 }
0x13b4   : > { %7983 = vmatprep.subr.bf16.mxu0 %v13849_v20 }
0x13b5   : > { %7929 = vmatpush1.bf16.msra.mxu1 %v13838_v33 }
0x13b6   : > { %7930 = vmatprep.subr.bf16.mxu1 %v13846_v55 }
0x13b7   : > { %7984 = vmatpush1.bf16.msra.mxu0 %v13847_v29 }
0x13b8   : > { %7985 = vmatprep.subr.bf16.mxu0 %v13855_v4  ;;  %v13867_v4 = vld [vmem:[%s15862_s18 + $0x3c4] ss:$16 sps:$4 sm:$0xff]  }
0x13b9   : > { %7931 = vmatpush1.bf16.msra.mxu1 %v13844_v22 }
0x13ba   : > { %7932 = vmatprep.subr.bf16.mxu1 %v13852_v16  ;;  %v13864_v16 = vld [vmem:[%s15862_s18 + $0x1c4] ss:$16 sps:$4 sm:$0xff]  }
0x13bb   : > { %7986 = vmatpush1.bf16.msra.mxu0 %v13853_v53  ;;  %v13865_v53 = vld [vmem:[%s15862_s18 + $0x3c0] ss:$16 sps:$4 sm:$0xff]  }
0x13bc   : > { %7987 = vmatprep.subr.bf16.mxu0 %v13861_v18  ;;  %v13873_v18 = vld [vmem:[%s15862_s18 + $0x3a4] ss:$16 sps:$4 sm:$0xff]  }
0x13bd   : > { %7933 = vmatpush1.bf16.msra.mxu1 %v13850_v36  ;;  %v13862_v36 = vld [vmem:[%s15862_s18 + $0x1c0] ss:$16 sps:$4 sm:$0xff]  }
0x13be   : > { %7934 = vmatprep.subr.bf16.mxu1 %v13858_v44  ;;  %v13870_v44 = vld [vmem:[%s15862_s18 + $0x1a4] ss:$16 sps:$4 sm:$0xff]  }
0x13bf   : > { %7988 = vmatpush2.bf16.msra.mxu0 %v13859_v50  ;;  %v13871_v50 = vld [vmem:[%s15862_s18 + $0x3a0] ss:$16 sps:$4 sm:$0xff]  }
0x13c0   : > { %7989 = vmatprep.subr.bf16.mxu0 %v13867_v4 }
0x13c1   : > { %7935 = vmatpush2.bf16.msra.mxu1 %v13856_v21  ;;  %v13868_v21 = vld [vmem:[%s15862_s18 + $0x1a0] ss:$16 sps:$4 sm:$0xff]  }
0x13c2   : > { %7936 = vmatprep.subr.bf16.mxu1 %v13864_v16 }
0x13c3   : > { %7990 = vmatpush2.bf16.msra.mxu0 %v13865_v53 }
0x13c4   : > { %7991 = vmatprep.subr.bf16.mxu0 %v13873_v18 }
0x13c5   : > { %7937 = vmatpush2.bf16.msra.mxu1 %v13862_v36  ;;  %v6940_v36 = vld [vmem:[%s1146_s12] sm:$0xf]  ;;  %s18296_s12 = scalar_lea.vmem [#allocation21], %s15843_s5 }
0x13c6   : > { %7938 = vmatprep.subr.bf16.mxu1 %v13870_v44 }
0x13c7   : > { %7992 = vmatpush2.bf16.msra.mxu0 %v13871_v50 }
0x13c9   : > { %7939 = vmatpush2.bf16.msra.mxu1 %v13868_v21 }
0x142a   : > { %v6945_v17 = vpop.xlane.xlu0 %6944 }
0x142b   : > { %v6962_v0 = vmul.f32 0.001953125, %v6945_v17  ;;  %v13876_v17 = vld [vmem:[%s15862_s18 + $0x184] ss:$16 sps:$4 sm:$0xff]  }
0x142c   : > { %7940 = vmatprep.subr.bf16.mxu1 %v13876_v17 }
0x142d   : > { %v17012_v6 = vsub.f32 %v16883_v48, %v6962_v0  ;;  %v17015_v35 = vsub.f32 %v16878_v51, %v6962_v0  ;;  %v17018_v10 = vsub.f32 %v16894_v41, %v6962_v0  ;;  %v17021_v34 = vsub.f32 %v16907_v59, %v6962_v0  ;;  %v13879_v0 = vld [vmem:[%s15862_s18 + $0x384] ss:$16 sps:$4 sm:$0xff]  }
0x142e   : > { %v6950_v58 = vpop.xlane.xlu1 %6949  ;;  %7993 = vmatprep.subr.bf16.mxu0 %v13879_v0 }
0x142f   : > { %v6963_v9 = vmul.f32 0.001953125, %v6950_v58  ;;  %v6982_v7 = vmul.f32 %v17012_v6, %v17012_v6  ;;  %v6983_v54 = vmul.f32 %v17015_v35, %v17015_v35  ;;  %v6984_v48 = vmul.f32 %v17018_v10, %v17018_v10  ;;  %v13874_v58 = vld [vmem:[%s15862_s18 + $0x180] ss:$16 sps:$4 sm:$0xff]  }
0x1430   : > { %v6985_v24 = vmul.f32 %v17021_v34, %v17021_v34  ;;  %7941 = vmatpush2.bf16.msra.mxu1 %v13874_v58  ;;  %v7091_v58 = vrot.slane %v6940_v36, %v18291_v37 }
0x1431   : > { %v17030_v51 = vsub.f32 %v16901_v47, %v6963_v9  ;;  %v17033_v41 = vsub.f32 %v16889_v5, %v6963_v9  ;;  %v6998_v3 = vadd.f32 %v6983_v54, %v6982_v7  ;;  %v17036_v59 = vsub.f32 %v16920_v8, %v6963_v9  ;;  %v13882_v7 = vld [vmem:[%s15862_s18 + $0x164] ss:$16 sps:$4 sm:$0xff]  }
0x1432   : > { %v6955_v49 = vpop.xlane.xlu0 %6954  ;;  %v17041_v13 = vsub.f32 %v16932_v56, %v6963_v9  ;;  %v13877_v9 = vld [vmem:[%s15862_s18 + $0x380] ss:$16 sps:$4 sm:$0xff]   ;;  %v13885_v54 = vld [vmem:[%s15862_s18 + $0x364] ss:$16 sps:$4 sm:$0xff]   ;;  %7942 = vmatprep.subr.bf16.mxu1 %v13882_v7  ;;  %v7099_v7 = vrot.slane %v6940_v36, %v18294_v30 }
0x1433   : > { %v6964_v52 = vmul.f32 0.001953125, %v6955_v49  ;;  %v6999_v61 = vadd.f32 %v6998_v3, %v6984_v48  ;;  %v6986_v47 = vmul.f32 %v17030_v51, %v17030_v51  ;;  %v6987_v5 = vmul.f32 %v17033_v41, %v17033_v41  ;;  %7994 = vmatpush2.bf16.msra.mxu0 %v13877_v9  ;;  %v13880_v48 = vld [vmem:[%s15862_s18 + $0x160] ss:$16 sps:$4 sm:$0xff]  }
0x1434   : > { %v6988_v43 = vmul.f32 %v17036_v59, %v17036_v59  ;;  %v6989_v26 = vmul.f32 %v17041_v13, %v17041_v13  ;;  %v13883_v3 = vld [vmem:[%s15862_s18 + $0x360] ss:$16 sps:$4 sm:$0xff]   ;;  %7995 = vmatprep.subr.bf16.mxu0 %v13885_v54  ;;  %7943 = vmatpush2.bf16.msra.mxu1 %v13880_v48 }
0x1435   : > { %v17050_v8 = vsub.f32 %v16927_v1, %v6964_v52  ;;  %v17053_v12 = vsub.f32 %v16913_v39, %v6964_v52  ;;  %v7000_v23 = vadd.f32 %v6999_v61, %v6985_v24  ;;  %v7003_v56 = vadd.f32 %v6987_v5, %v6986_v47  ;;  %v13886_v49 = vld [vmem:[%s15862_s18 + $0x140] ss:$16 sps:$4 sm:$0xff]   ;;  %v13888_v24 = vld [vmem:[%s15862_s18 + $0x144] ss:$16 sps:$4 sm:$0xff]  }
0x1436   : > { %v6960_v27 = vpop.xlane.xlu1 %6959  ;;  %v17058_v45 = vsub.f32 %v16945_v42, %v6964_v52  ;;  %v17061_v11 = vsub.f32 %v16957_v38, %v6964_v52  ;;  %v13889_v52 = vld [vmem:[%s15862_s18 + $0x340] ss:$16 sps:$4 sm:$0xff]   ;;  %v13891_v61 = vld [vmem:[%s15862_s18 + $0x344] ss:$16 sps:$4 sm:$0xff]   ;;  %7944 = vmatprep.subr.bf16.mxu1 %v13888_v24 }
0x1437   : > { %v6965_v15 = vmul.f32 0.001953125, %v6960_v27  ;;  %7001 = vadd.xlane.f32.xlu0 %v7000_v23  ;;  %v7004_v25 = vadd.f32 %v7003_v56, %v6988_v43  ;;  %v6990_v1 = vmul.f32 %v17050_v8, %v17050_v8  ;;  %v6991_v39 = vmul.f32 %v17053_v12, %v17053_v12  ;;  %7996 = vmatpush2.bf16.msra.mxu0 %v13883_v3  ;;  %v13894_v47 = vld [vmem:[%s15862_s18 + $0x124] ss:$16 sps:$4 sm:$0xff]   ;;  %v13892_v43 = vld [vmem:[%s15862_s18 + $0x120] ss:$16 sps:$4 sm:$0xff]  }
0x1438   : > { %v6992_v60 = vmul.f32 %v17058_v45, %v17058_v45  ;;  %v6993_v62 = vmul.f32 %v17061_v11, %v17061_v11  ;;  %v13897_v5 = vld [vmem:[%s15862_s18 + $0x324] ss:$16 sps:$4 sm:$0xff]   ;;  %7997 = vmatprep.subr.bf16.mxu0 %v13891_v61  ;;  %7945 = vmatpush2.bf16.msra.mxu1 %v13886_v49  ;;  %v13895_v23 = vld [vmem:[%s15862_s18 + $0x320] ss:$16 sps:$4 sm:$0xff]   ;;  %v7087_v3 = vrot.slane %v6940_v36, %v18292_v19 }
0x1439   : > { %v17070_v31 = vsub.f32 %v16952_v40, %v6965_v15  ;;  %v17073_v42 = vsub.f32 %v16940_v2, %v6965_v15  ;;  %v7005_v38 = vadd.f32 %v7004_v25, %v6989_v26  ;;  %v7008_v28 = vadd.f32 %v6991_v39, %v6990_v1  ;;  %7946 = vmatprep.subr.bf16.mxu1 %v13894_v47  ;;  %v13900_v56 = vld [vmem:[%s15862_s18 + $0x104] ss:$16 sps:$4 sm:$0xff]   ;;  %v13898_v26 = vld [vmem:[%s15862_s18 + $0x100] ss:$16 sps:$4 sm:$0xff]   ;;  %v13906_v25 = vld [vmem:[%s15862_s18 + $0xec] ss:$16 sps:$4 sm:$0xff]  }
0x143a   : > { %v17078_v63 = vsub.f32 %v16965_v46, %v6965_v15  ;;  %v17081_v40 = vsub.f32 %v16971_v57, %v6965_v15  ;;  %v13903_v27 = vld [vmem:[%s15862_s18 + $0x304] ss:$16 sps:$4 sm:$0xff]   ;;  %v13901_v15 = vld [vmem:[%s15862_s18 + $0x300] ss:$16 sps:$4 sm:$0xff]   ;;  %v13909_v1 = vld [vmem:[%s15862_s18 + $0x2ec] ss:$16 sps:$4 sm:$0xff]  }
0x143b   : > { %7006 = vadd.xlane.f32.xlu1 %v7005_v38  ;;  %v7009_v33 = vadd.f32 %v7008_v28, %v6992_v60  ;;  %v6994_v2 = vmul.f32 %v17070_v31, %v17070_v31  ;;  %v6995_v14 = vmul.f32 %v17073_v42, %v17073_v42  ;;  %7998 = vmatpush2.bf16.msra.mxu0 %v13889_v52 }
0x143c   : > { %v6996_v20 = vmul.f32 %v17078_v63, %v17078_v63  ;;  %v6997_v57 = vmul.f32 %v17081_v40, %v17081_v40  ;;  %7999 = vmatprep.subr.bf16.mxu0 %v13897_v5  ;;  %7947 = vmatpush2.bf16.msra.mxu1 %v13892_v43 }
0x143d   : > { %v7010_v55 = vadd.f32 %v7009_v33, %v6993_v62  ;;  %v7013_v46 = vadd.f32 %v6995_v14, %v6994_v2  ;;  %7948 = vmatprep.subr.bf16.mxu1 %v13900_v56 }
0x143f   : > { %7011 = vadd.xlane.f32.xlu0 %v7010_v55  ;;  %v7014_v22 = vadd.f32 %v7013_v46, %v6996_v20  ;;  %8000 = vmatpush2.bf16.msra.mxu0 %v13895_v23 }
0x1440   : > { %8001 = vmatprep.subr.bf16.mxu0 %v13903_v27  ;;  %7949 = vmatpush2.bf16.msra.mxu1 %v13898_v26 }
0x1441   : > { %v7015_v29 = vadd.f32 %v7014_v22, %v6997_v57  ;;  %8024 = vmatprep.subr.bf16.mxu1 %v13906_v25  ;;  %v6939_v57 = vld [vmem:[%s1137_s7] sm:$0xf]  ;;  %s18295_s7 = scalar_lea.vmem [#allocation19], %s15843_s5 }
0x1442   : > { %v17127_v16 = vrot.slane %v6939_v57, %v18294_v30  ;;  %v17132_v53 = vrot.slane %v6939_v57, %v18292_v19  ;;  %v17135_v44 = vrot.slane %v6939_v57, %v18293_v32 }
0x1443   : > { %7016 = vadd.xlane.f32.xlu1 %v7015_v29  ;;  %8002 = vmatpush2.bf16.msra.mxu0 %v13901_v15  ;;  %v17124_v29 = vrot.slane %v6939_v57, %v18291_v37 }
0x1444   : > { %8077 = vmatprep.subr.bf16.mxu0 %v13909_v1 }
0x14c0   : > { %v7002_v39 = vpop.xlane.xlu0 %7001 }
0x14c1   : > { %v7018_v60 = vmul.f32 0.001953125, %v7002_v39 }
0x14c3   : > { %v7022_v38 = vadd.f32 1e-05, %v7018_v60 }
0x14c4   : > { %v7007_v28 = vpop.xlane.xlu1 %7006 }
0x14c5   : > { %14480 = vrsqrt.f32 %v7022_v38  ;;  %v7019_v62 = vmul.f32 0.001953125, %v7007_v28  ;;  %v13904_v28 = vld [vmem:[%s15862_s18 + $0xe8] ss:$16 sps:$4 sm:$0xff]  }
0x14c7   : > { %v7023_v33 = vadd.f32 1e-05, %v7019_v62  ;;  %v13907_v62 = vld [vmem:[%s15862_s18 + $0x2e8] ss:$16 sps:$4 sm:$0xff]  }
0x14c8   : > { %v7012_v2 = vpop.xlane.xlu0 %7011 }
0x14c9   : > { %14482 = vrsqrt.f32 %v7023_v33  ;;  %v7020_v14 = vmul.f32 0.001953125, %v7012_v2 }
0x14cb   : > { %v7024_v55 = vadd.f32 1e-05, %v7020_v14 }
0x14cc   : > { %v7017_v20 = vpop.xlane.xlu1 %7016 }
0x14cd   : > { %14484 = vrsqrt.f32 %v7024_v55  ;;  %v7021_v46 = vmul.f32 0.001953125, %v7017_v20 }
0x14cf   : > { %v7025_v22 = vadd.f32 1e-05, %v7021_v46 }
0x14d1   : > { %14486 = vrsqrt.f32 %v7025_v22 }
0x14d2   : > { %v14481_v4 = vpop.eup %14480 }
0x14d3   : > { %v7031_v18 = vmul.f32 %v14481_v4, %v17015_v35  ;;  %v7033_v21 = vmul.f32 %v14481_v4, %v17021_v34  ;;  %v7030_v50 = vmul.f32 %v14481_v4, %v17012_v6  ;;  %v7032_v17 = vmul.f32 %v14481_v4, %v17018_v10  ;;  %v13910_v4 = vld [vmem:[%s15862_s18 + $0xc8] ss:$16 sps:$4 sm:$0xff]  }
0x14d4   : > { %v17149_v34 = vrot.slane %v6940_v36, %v18293_v32 }
0x14d5   : > { %v7068_v0 = vmul.f32 %v17124_v29, %v7031_v18  ;;  %v7070_v9 = vmul.f32 %v17127_v16, %v7033_v21  ;;  %v7067_v48 = vmul.f32 %v17132_v53, %v7030_v50  ;;  %v7069_v35 = vmul.f32 %v17135_v44, %v7032_v17  ;;  %v13921_v50 = vld [vmem:[%s15862_s18 + $0x2ac] ss:$16 sps:$4 sm:$0xff]  }
0x14d6   : > { %v14483_v54 = vpop.eup %14482 }
0x14d7   : > { %v7035_v6 = vmul.f32 %v14483_v54, %v17033_v41  ;;  %v7037_v10 = vmul.f32 %v14483_v54, %v17041_v13  ;;  %v7034_v49 = vmul.f32 %v14483_v54, %v17030_v51  ;;  %v7036_v24 = vmul.f32 %v14483_v54, %v17036_v59 }
0x14d8   : > { %v17156_v61 = vadd.f32 %v7091_v58, %v7068_v0  ;;  %v17159_v5 = vadd.f32 %v7099_v7, %v7070_v9  ;;  %v17162_v41 = vadd.f32 %v7087_v3, %v7067_v48  ;;  %v17166_v51 = vadd.f32 %v17149_v34, %v7069_v35 }
0x14d9   : > { %v7072_v52 = vmul.f32 %v17124_v29, %v7035_v6  ;;  %v7074_v47 = vmul.f32 %v17127_v16, %v7037_v10  ;;  %v7071_v23 = vmul.f32 %v17132_v53, %v7034_v49  ;;  %v7073_v13 = vmul.f32 %v17135_v44, %v7036_v24  ;;  %v13927_v10 = vld [vmem:[%s15862_s18 + $0x28c] ss:$16 sps:$4 sm:$0xff]   ;;  %v13922_v49 = vld [vmem:[%s15862_s18 + $0x88] ss:$16 sps:$4 sm:$0xff]  }
0x14da   : > { %v14485_v43 = vpop.eup %14484  ;;  %v13925_v24 = vld [vmem:[%s15862_s18 + $0x288] ss:$16 sps:$4 sm:$0xff]  }
0x14db   : > { %v17168_v59 = vadd.f32 %v7091_v58, %v7072_v52  ;;  %v17170_v56 = vadd.f32 %v7099_v7, %v7074_v47  ;;  %v7039_v27 = vmul.f32 %v14485_v43, %v17053_v12  ;;  %v7041_v26 = vmul.f32 %v14485_v43, %v17061_v11  ;;  %v13930_v52 = vld [vmem:[%s15862_s18 + $0x6c] ss:$16 sps:$4 sm:$0xff]  }
0x14dc   : > { %v17174_v15 = vadd.f32 %v7087_v3, %v7071_v23  ;;  %v17177_v25 = vadd.f32 %v17149_v34, %v7073_v13  ;;  %v7038_v1 = vmul.f32 %v14485_v43, %v17050_v8  ;;  %v7040_v39 = vmul.f32 %v14485_v43, %v17058_v45  ;;  %v13912_v8 = vld [vmem:[%s15862_s18 + $0xcc] ss:$16 sps:$4 sm:$0xff]   ;;  %v13928_v43 = vld [vmem:[%s15862_s18 + $0x68] ss:$16 sps:$4 sm:$0xff]  }
0x14dd   : > { %v7121_v60 = vpack.c.bf16 %v17168_v59, %v17156_v61  ;;  %v7123_v38 = vpack.c.bf16 %v17170_v56, %v17159_v5  ;;  %v13915_v45 = vld [vmem:[%s15862_s18 + $0x2cc] ss:$16 sps:$4 sm:$0xff]   ;;  %v7076_v2 = vmul.f32 %v17124_v29, %v7039_v27  ;;  %v7078_v20 = vmul.f32 %v17127_v16, %v7041_v26  ;;  %v13931_v23 = vld [vmem:[%s15862_s18 + $0x268] ss:$16 sps:$4 sm:$0xff]  }
0x14de   : > { %v14487_v12 = vpop.eup %14486  ;;  %v17189_v11 = vpack.c.bf16 %v17174_v15, %v17162_v41  ;;  %v17193_v33 = vpack.c.bf16 %v17177_v25, %v17166_v51  ;;  %v7075_v57 = vmul.f32 %v17132_v53, %v7038_v1  ;;  %v7077_v22 = vmul.f32 %v17135_v44, %v7040_v39  ;;  %v13933_v47 = vld [vmem:[%s15862_s18 + $0x26c] ss:$16 sps:$4 sm:$0xff]   ;;  %v13934_v26 = vld [vmem:[%s15862_s18 + $0x48] ss:$16 sps:$4 sm:$0xff]  }
0x14df   : > { %7950 = vmatprep.mubr.bf16.mxu1 %v7121_v60  ;;  %8003 = vmatprep.mubr.bf16.mxu0 %v7123_v38  ;;  %v7043_v14 = vmul.f32 %v14487_v12, %v17073_v42  ;;  %v7045_v55 = vmul.f32 %v14487_v12, %v17081_v40  ;;  %v7042_v46 = vmul.f32 %v14487_v12, %v17070_v31  ;;  %v13913_v42 = vld [vmem:[%s15862_s18 + $0x2c8] ss:$16 sps:$4 sm:$0xff]   ;;  %v13918_v31 = vld [vmem:[%s15862_s18 + $0xac] ss:$16 sps:$4 sm:$0xff]  }
0x14e0   : > { %7951 = vmatmul.mubr.bf16.vlgmr.msra.gmra.mxu1 %v17189_v11  ;;  %8004 = vmatmul.mubr.bf16.vlgmr.msra.gmra.mxu0 %v17193_v33  ;;  %v7044_v18 = vmul.f32 %v14487_v12, %v17078_v63  ;;  %v17211_v21 = vadd.f32 %v7091_v58, %v7076_v2  ;;  %v17218_v9 = vadd.f32 %v7099_v7, %v7078_v20  ;;  %v13936_v13 = vld [vmem:[%s15862_s18 + $0x4c] ss:$16 sps:$4 sm:$0xff]   ;;  %v13937_v1 = vld [vmem:[%s15862_s18 + $0x248] ss:$16 sps:$4 sm:$0xff]  }
0x14e1   : > { %8025 = vmatpush1.bf16.msra.mxu1 %v13904_v28  ;;  %8078 = vmatpush1.bf16.msra.mxu0 %v13907_v62  ;;  %v7080_v40 = vmul.f32 %v17124_v29, %v7043_v14  ;;  %v7082_v36 = vmul.f32 %v17127_v16, %v7045_v55  ;;  %v7079_v17 = vmul.f32 %v17132_v53, %v7042_v46  ;;  %v13939_v27 = vld [vmem:[%s15862_s18 + $0x24c] ss:$16 sps:$4 sm:$0xff]   ;;  %v13943_v28 = vld [vmem:[%s15862_s18 + $0x228] ss:$16 sps:$4 sm:$0xff]  }
0x14e2   : > { %8026 = vmatprep.subr.bf16.mxu1 %v13912_v8  ;;  %8079 = vmatprep.subr.bf16.mxu0 %v13915_v45  ;;  %v7081_v29 = vmul.f32 %v17135_v44, %v7044_v18  ;;  %v17223_v16 = vadd.f32 %v7087_v3, %v7075_v57  ;;  %v17228_v48 = vadd.f32 %v17149_v34, %v7077_v22  ;;  %v13916_v44 = vld [vmem:[%s15862_s18 + $0xa8] ss:$16 sps:$4 sm:$0xff]   ;;  %v13942_v39 = vld [vmem:[%s15862_s18 + $0x2c] ss:$16 sps:$4 sm:$0xff]  }
0x14e3   : > { %v17216_v0 = vadd.f32 %v7091_v58, %v7080_v40  ;;  %v17220_v54 = vadd.f32 %v7099_v7, %v7082_v36  ;;  %v17225_v63 = vadd.f32 %v7087_v3, %v7079_v17  ;;  %v13919_v3 = vld [vmem:[%s15862_s18 + $0x2a8] ss:$16 sps:$4 sm:$0xff]   ;;  %v13948_v62 = vld [vmem:[%s15862_s18 + $0xc] ss:$16 sps:$4 sm:$0xff]  }
0x14e4   : > { %v17240_v7 = vadd.f32 %v17149_v34, %v7081_v29  ;;  %v13924_v34 = vld [vmem:[%s15862_s18 + $0x8c] ss:$16 sps:$4 sm:$0xff]   ;;  %v13946_v8 = vld [vmem:[%s15862_s18 + $0x8] ss:$16 sps:$4 sm:$0xff]  }
0x14e5   : > { %8027 = vmatpush1.bf16.msra.mxu1 %v13910_v4  ;;  %8080 = vmatpush1.bf16.msra.mxu0 %v13913_v42  ;;  %v17232_v53 = vpack.c.bf16 %v17216_v0, %v17211_v21  ;;  %v17236_v58 = vpack.c.bf16 %v17220_v54, %v17218_v9  ;;  %v17245_v35 = vpack.c.bf16 %v17225_v63, %v17223_v16  ;;  %v13951_v12 = vld [vmem:[%s15862_s18 + $0x20c] ss:$16 sps:$4 sm:$0xff]   ;;  %v13949_v45 = vld [vmem:[%s15862_s18 + $0x208] ss:$16 sps:$4 sm:$0xff]  }
0x14e6   : > { %8028 = vmatprep.subr.bf16.mxu1 %v13918_v31  ;;  %8081 = vmatprep.subr.bf16.mxu0 %v13921_v50  ;;  %v17251_v6 = vpack.c.bf16 %v17240_v7, %v17228_v48  ;;  %v13954_v2 = vld [vmem:[%s15862_s18 + $0x1ec] ss:$16 sps:$4 sm:$0xff]   ;;  %v13952_v55 = vld [vmem:[%s15862_s18 + $0x1e8] ss:$16 sps:$4 sm:$0xff]  }
0x14e7   : > { %7960 = vmatprep.mubr.bf16.mxu1 %v17232_v53  ;;  %8013 = vmatprep.mubr.bf16.mxu0 %v17236_v58  ;;  %v13957_v14 = vld [vmem:[%s15862_s18 + $0x3ec] ss:$16 sps:$4 sm:$0xff]   ;;  %v13955_v20 = vld [vmem:[%s15862_s18 + $0x3e8] ss:$16 sps:$4 sm:$0xff]  }
0x14e8   : > { %7961 = vmatmul.mubr.bf16.gmra.mxu1 %v17245_v35  ;;  %8014 = vmatmul.mubr.bf16.gmra.mxu0 %v17251_v6  ;;  %v13960_v46 = vld [vmem:[%s15862_s18 + $0x1cc] ss:$16 sps:$4 sm:$0xff]   ;;  %v13958_v22 = vld [vmem:[%s15862_s18 + $0x1c8] ss:$16 sps:$4 sm:$0xff]  }
0x14e9   : > { %8029 = vmatpush1.bf16.msra.mxu1 %v13916_v44  ;;  %8082 = vmatpush1.bf16.msra.mxu0 %v13919_v3  ;;  %v13963_v57 = vld [vmem:[%s15862_s18 + $0x3cc] ss:$16 sps:$4 sm:$0xff]   ;;  %v13961_v4 = vld [vmem:[%s15862_s18 + $0x3c8] ss:$16 sps:$4 sm:$0xff]  }
0x14ea   : > { %8056 = vmatprep.mubr.bf16.mxu1 %v7121_v60  ;;  %8109 = vmatprep.mubr.bf16.mxu0 %v7123_v38  ;;  %v13945_v60 = vld [vmem:[%s15862_s18 + $0x22c] ss:$16 sps:$4 sm:$0xff]   ;;  %v13940_v38 = vld [vmem:[%s15862_s18 + $0x28] ss:$16 sps:$4 sm:$0xff]  }
0x14eb   : > { %8030 = vmatprep.subr.bf16.mxu1 %v13924_v34  ;;  %8083 = vmatprep.subr.bf16.mxu0 %v13927_v10  ;;  %v13966_v42 = vld [vmem:[%s15862_s18 + $0x1ac] ss:$16 sps:$4 sm:$0xff]   ;;  %v13964_v36 = vld [vmem:[%s15862_s18 + $0x1a8] ss:$16 sps:$4 sm:$0xff]  }
0x14ec   : > { %v13969_v40 = vld [vmem:[%s15862_s18 + $0x3ac] ss:$16 sps:$4 sm:$0xff]   ;;  %v13967_v18 = vld [vmem:[%s15862_s18 + $0x3a8] ss:$16 sps:$4 sm:$0xff]  }
0x14ed   : > { %8031 = vmatpush1.bf16.msra.mxu1 %v13922_v49  ;;  %8084 = vmatpush1.bf16.msra.mxu0 %v13925_v24  ;;  %v13972_v31 = vld [vmem:[%s15862_s18 + $0x18c] ss:$16 sps:$4 sm:$0xff]   ;;  %v13970_v17 = vld [vmem:[%s15862_s18 + $0x188] ss:$16 sps:$4 sm:$0xff]  }
0x14ee   : > { %8032 = vmatprep.subr.bf16.mxu1 %v13930_v52  ;;  %8085 = vmatprep.subr.bf16.mxu0 %v13933_v47  ;;  %v13975_v50 = vld [vmem:[%s15862_s18 + $0x38c] ss:$16 sps:$4 sm:$0xff]   ;;  %v13973_v29 = vld [vmem:[%s15862_s18 + $0x388] ss:$16 sps:$4 sm:$0xff]  }
0x14ef   : > { %v13978_v44 = vld [vmem:[%s15862_s18 + $0x16c] ss:$16 sps:$4 sm:$0xff]   ;;  %v13976_v34 = vld [vmem:[%s15862_s18 + $0x168] ss:$16 sps:$4 sm:$0xff]  }
0x14f0   : > { %v13981_v3 = vld [vmem:[%s15862_s18 + $0x36c] ss:$16 sps:$4 sm:$0xff]   ;;  %v13979_v10 = vld [vmem:[%s15862_s18 + $0x368] ss:$16 sps:$4 sm:$0xff]  }
0x14f1   : > { %8033 = vmatpush1.bf16.msra.mxu1 %v13928_v43  ;;  %8086 = vmatpush1.bf16.msra.mxu0 %v13931_v23  ;;  %v13984_v49 = vld [vmem:[%s15862_s18 + $0x14c] ss:$16 sps:$4 sm:$0xff]   ;;  %v13982_v52 = vld [vmem:[%s15862_s18 + $0x148] ss:$16 sps:$4 sm:$0xff]  }
0x14f2   : > { %8034 = vmatprep.subr.bf16.mxu1 %v13936_v13  ;;  %8087 = vmatprep.subr.bf16.mxu0 %v13939_v27  ;;  %v13987_v24 = vld [vmem:[%s15862_s18 + $0x34c] ss:$16 sps:$4 sm:$0xff]   ;;  %v13985_v47 = vld [vmem:[%s15862_s18 + $0x348] ss:$16 sps:$4 sm:$0xff]  }
0x14f3   : > { %v13990_v43 = vld [vmem:[%s15862_s18 + $0x12c] ss:$16 sps:$4 sm:$0xff]   ;;  %v13988_v13 = vld [vmem:[%s15862_s18 + $0x128] ss:$16 sps:$4 sm:$0xff]  }
0x14f4   : > { %v13993_v23 = vld [vmem:[%s15862_s18 + $0x32c] ss:$16 sps:$4 sm:$0xff]   ;;  %v13991_v27 = vld [vmem:[%s15862_s18 + $0x328] ss:$16 sps:$4 sm:$0xff]  }
0x14f5   : > { %8035 = vmatpush1.bf16.msra.mxu1 %v13934_v26  ;;  %8088 = vmatpush1.bf16.msra.mxu0 %v13937_v1  ;;  %v13996_v26 = vld [vmem:[%s15862_s18 + $0x10c] ss:$16 sps:$4 sm:$0xff]  }
0x14f6   : > { %8036 = vmatprep.subr.bf16.mxu1 %v13942_v39  ;;  %8089 = vmatprep.subr.bf16.mxu0 %v13945_v60  ;;  %v13999_v1 = vld [vmem:[%s15862_s18 + $0x30c] ss:$16 sps:$4 sm:$0xff]   ;;  %v13994_v39 = vld [vmem:[%s15862_s18 + $0x108] ss:$16 sps:$4 sm:$0xff]  }
0x14f7   : > { %v13997_v60 = vld [vmem:[%s15862_s18 + $0x308] ss:$16 sps:$4 sm:$0xff]   ;;  %s18297_s18 = scalar_lea.vmem [#allocation22], %s15843_s5 }
0x14f9   : > { %8037 = vmatpush1.bf16.msra.mxu1 %v13940_v38  ;;  %8090 = vmatpush1.bf16.msra.mxu0 %v13943_v28  ;;  %v14002_v38 = vld [vmem:[%s15871_s14 + $0xe4] ss:$16 sps:$4 sm:$0xff]   ;;  %v14000_v28 = vld [vmem:[%s15871_s14 + $0xe0] ss:$16 sps:$4 sm:$0xff]  }
0x14fa   : > { %8038 = vmatprep.subr.bf16.mxu1 %v13948_v62  ;;  %8091 = vmatprep.subr.bf16.mxu0 %v13951_v12  ;;  %v14005_v62 = vld [vmem:[%s15871_s14 + $0xc4] ss:$16 sps:$4 sm:$0xff]   ;;  %v14003_v12 = vld [vmem:[%s15871_s14 + $0xc0] ss:$16 sps:$4 sm:$0xff]  }
0x14fd   : > { %8039 = vmatpush1.bf16.msra.mxu1 %v13946_v8  ;;  %8092 = vmatpush1.bf16.msra.mxu0 %v13949_v45  ;;  %v14008_v8 = vld [vmem:[%s15871_s14 + $0xa4] ss:$16 sps:$4 sm:$0xff]   ;;  %v14006_v45 = vld [vmem:[%s15871_s14 + $0xa0] ss:$16 sps:$4 sm:$0xff]  }
0x14fe   : > { %8040 = vmatprep.subr.bf16.mxu1 %v13954_v2  ;;  %8093 = vmatprep.subr.bf16.mxu0 %v13957_v14  ;;  %v14017_v2 = vld [vmem:[%s15871_s14 + $0x44] ss:$16 sps:$4 sm:$0xff]  }
0x14ff   : > { %v14050_v14 = vld [vmem:[%s15871_s14 + $0x2e4] ss:$16 sps:$4 sm:$0xff]  }
0x1501   : > { %8041 = vmatpush2.bf16.msra.mxu1 %v13952_v55  ;;  %8094 = vmatpush2.bf16.msra.mxu0 %v13955_v20  ;;  %v14048_v55 = vld [vmem:[%s15871_s14 + $0x2e0] ss:$16 sps:$4 sm:$0xff]   ;;  %v14056_v20 = vld [vmem:[%s15871_s14 + $0x2c4] ss:$16 sps:$4 sm:$0xff]  }
0x1502   : > { %8042 = vmatprep.subr.bf16.mxu1 %v13960_v46  ;;  %8095 = vmatprep.subr.bf16.mxu0 %v13963_v57  ;;  %v14054_v46 = vld [vmem:[%s15871_s14 + $0x2c0] ss:$16 sps:$4 sm:$0xff]   ;;  %v14062_v57 = vld [vmem:[%s15871_s14 + $0x2a4] ss:$16 sps:$4 sm:$0xff]  }
0x1505   : > { %8043 = vmatpush2.bf16.msra.mxu1 %v13958_v22  ;;  %8096 = vmatpush2.bf16.msra.mxu0 %v13961_v4  ;;  %v14018_v22 = vld [vmem:[%s15871_s14 + $0x20] ss:$16 sps:$4 sm:$0xff]  }
0x1506   : > { %8044 = vmatprep.subr.bf16.mxu1 %v13966_v42  ;;  %8097 = vmatprep.subr.bf16.mxu0 %v13969_v40  ;;  %v14060_v4 = vld [vmem:[%s15871_s14 + $0x2a0] ss:$16 sps:$4 sm:$0xff]   ;;  %v14023_v42 = vld [vmem:[%s15871_s14 + $0x4] ss:$16 sps:$4 sm:$0xff]  }
0x1507   : > { %v14068_v40 = vld [vmem:[%s15871_s14 + $0x284] ss:$16 sps:$4 sm:$0xff]  }
0x1509   : > { %8045 = vmatpush2.bf16.msra.mxu1 %v13964_v36  ;;  %8098 = vmatpush2.bf16.msra.mxu0 %v13967_v18  ;;  %v14021_v36 = vld [vmem:[%s15871_s14] ss:$16 sps:$4 sm:$0xff]  }
0x150a   : > { %8046 = vmatprep.subr.bf16.mxu1 %v13972_v31  ;;  %8099 = vmatprep.subr.bf16.mxu0 %v13975_v50  ;;  %v14066_v18 = vld [vmem:[%s15871_s14 + $0x280] ss:$16 sps:$4 sm:$0xff]   ;;  %v14026_v31 = vld [vmem:[%s15871_s14 + $0x1e4] ss:$16 sps:$4 sm:$0xff]  }
0x150b   : > { %v14074_v50 = vld [vmem:[%s15871_s14 + $0x264] ss:$16 sps:$4 sm:$0xff]  }
0x150d   : > { %8047 = vmatpush2.bf16.msra.mxu1 %v13970_v17  ;;  %8100 = vmatpush2.bf16.msra.mxu0 %v13973_v29  ;;  %v14024_v17 = vld [vmem:[%s15871_s14 + $0x1e0] ss:$16 sps:$4 sm:$0xff]  }
0x150e   : > { %8048 = vmatprep.subr.bf16.mxu1 %v13978_v44  ;;  %8101 = vmatprep.subr.bf16.mxu0 %v13981_v3  ;;  %v14072_v29 = vld [vmem:[%s15871_s14 + $0x260] ss:$16 sps:$4 sm:$0xff]   ;;  %v14029_v44 = vld [vmem:[%s15871_s14 + $0x1c4] ss:$16 sps:$4 sm:$0xff]  }
0x150f   : > { %v14080_v3 = vld [vmem:[%s15871_s14 + $0x244] ss:$16 sps:$4 sm:$0xff]  }
0x1511   : > { %8049 = vmatpush2.bf16.msra.mxu1 %v13976_v34  ;;  %8102 = vmatpush2.bf16.msra.mxu0 %v13979_v10  ;;  %v14027_v34 = vld [vmem:[%s15871_s14 + $0x1c0] ss:$16 sps:$4 sm:$0xff]  }
0x1512   : > { %8050 = vmatprep.subr.bf16.mxu1 %v13984_v49  ;;  %8103 = vmatprep.subr.bf16.mxu0 %v13987_v24  ;;  %v14078_v10 = vld [vmem:[%s15871_s14 + $0x240] ss:$16 sps:$4 sm:$0xff]   ;;  %v14032_v49 = vld [vmem:[%s15871_s14 + $0x1a4] ss:$16 sps:$4 sm:$0xff]  }
0x1513   : > { %v14086_v24 = vld [vmem:[%s15871_s14 + $0x224] ss:$16 sps:$4 sm:$0xff]  }
0x1515   : > { %8051 = vmatpush2.bf16.msra.mxu1 %v13982_v52  ;;  %8104 = vmatpush2.bf16.msra.mxu0 %v13985_v47  ;;  %v14030_v52 = vld [vmem:[%s15871_s14 + $0x1a0] ss:$16 sps:$4 sm:$0xff]  }
0x1516   : > { %8052 = vmatprep.subr.bf16.mxu1 %v13990_v43  ;;  %8105 = vmatprep.subr.bf16.mxu0 %v13993_v23  ;;  %v14084_v47 = vld [vmem:[%s15871_s14 + $0x220] ss:$16 sps:$4 sm:$0xff]   ;;  %v14035_v43 = vld [vmem:[%s15871_s14 + $0x184] ss:$16 sps:$4 sm:$0xff]  }
0x1517   : > { %v14092_v23 = vld [vmem:[%s15871_s14 + $0x204] ss:$16 sps:$4 sm:$0xff]  }
0x1519   : > { %8053 = vmatpush2.bf16.msra.mxu1 %v13988_v13  ;;  %8106 = vmatpush2.bf16.msra.mxu0 %v13991_v27  ;;  %v14033_v13 = vld [vmem:[%s15871_s14 + $0x180] ss:$16 sps:$4 sm:$0xff]  }
0x151a   : > { %8054 = vmatprep.subr.bf16.mxu1 %v13996_v26  ;;  %8107 = vmatprep.subr.bf16.mxu0 %v13999_v1  ;;  %v14090_v27 = vld [vmem:[%s15871_s14 + $0x200] ss:$16 sps:$4 sm:$0xff]   ;;  %v14038_v26 = vld [vmem:[%s15871_s14 + $0x164] ss:$16 sps:$4 sm:$0xff]  }
0x151b   : > { %v14098_v1 = vld [vmem:[%s15871_s14 + $0x3e4] ss:$16 sps:$4 sm:$0xff]  }
0x151d   : > { %8055 = vmatpush2.bf16.msra.mxu1 %v13994_v39  ;;  %8108 = vmatpush2.bf16.msra.mxu0 %v13997_v60  ;;  %v14036_v39 = vld [vmem:[%s15871_s14 + $0x160] ss:$16 sps:$4 sm:$0xff]  }
0x151e   : > { %8944 = vmatprep.subr.bf16.mxu1 %v14002_v38  ;;  %8997 = vmatprep.subr.bf16.mxu0 %v14050_v14  ;;  %v14096_v60 = vld [vmem:[%s15871_s14 + $0x3e0] ss:$16 sps:$4 sm:$0xff]   ;;  %v14041_v38 = vld [vmem:[%s15871_s14 + $0x144] ss:$16 sps:$4 sm:$0xff]  }
0x151f   : > { %v14114_v14 = vld [vmem:[%s15871_s14 + $0x380] ss:$16 sps:$4 sm:$0xff]  }
0x1520   : > { %8057 = vmatmul.mubr.bf16.vlgmr.msra.gmra.mxu1 %v17189_v11  ;;  %8110 = vmatmul.mubr.bf16.vlgmr.msra.gmra.mxu0 %v17193_v33  ;;  %v14011_v11 = vld [vmem:[%s15871_s14 + $0x84] ss:$16 sps:$4 sm:$0xff]   ;;  %v14009_v33 = vld [vmem:[%s15871_s14 + $0x80] ss:$16 sps:$4 sm:$0xff]  }
0x1521   : > { %8066 = vmatprep.mubr.bf16.mxu1 %v17232_v53  ;;  %8119 = vmatprep.mubr.bf16.mxu0 %v17236_v58  ;;  %v14014_v53 = vld [vmem:[%s15871_s14 + $0x64] ss:$16 sps:$4 sm:$0xff]   ;;  %v14012_v58 = vld [vmem:[%s15871_s14 + $0x60] ss:$16 sps:$4 sm:$0xff]  }
0x1522   : > { %8945 = vmatpush1.bf16.msra.mxu1 %v14000_v28  ;;  %8998 = vmatpush1.bf16.msra.mxu0 %v14048_v55  ;;  %v14104_v28 = vld [vmem:[%s15871_s14 + $0x3c4] ss:$16 sps:$4 sm:$0xff]   ;;  %v14053_v55 = vld [vmem:[%s15871_s14 + $0xec] ss:$16 sps:$4 sm:$0xff]  }
0x1523   : > { %8946 = vmatprep.subr.bf16.mxu1 %v14005_v62  ;;  %8999 = vmatprep.subr.bf16.mxu0 %v14056_v20  ;;  %v14039_v62 = vld [vmem:[%s15871_s14 + $0x140] ss:$16 sps:$4 sm:$0xff]   ;;  %v14128_v20 = vld [vmem:[%s15871_s14 + $0x344] ss:$16 sps:$4 sm:$0xff]  }
0x1526   : > { %8947 = vmatpush1.bf16.msra.mxu1 %v14003_v12  ;;  %9000 = vmatpush1.bf16.msra.mxu0 %v14054_v46  ;;  %v14102_v12 = vld [vmem:[%s15871_s14 + $0x3c0] ss:$16 sps:$4 sm:$0xff]  }
0x1527   : > { %8948 = vmatprep.subr.bf16.mxu1 %v14008_v8  ;;  %9001 = vmatprep.subr.bf16.mxu0 %v14062_v57  ;;  %v14044_v8 = vld [vmem:[%s15871_s14 + $0x124] ss:$16 sps:$4 sm:$0xff]   ;;  %v14126_v46 = vld [vmem:[%s15871_s14 + $0x340] ss:$16 sps:$4 sm:$0xff]  }
0x1528   : > { %8067 = vmatmul.mubr.bf16.gmra.mxu1 %v17245_v35  ;;  %8120 = vmatmul.mubr.bf16.gmra.mxu0 %v17251_v6  ;;  %v14015_v35 = vld [vmem:[%s15871_s14 + $0x40] ss:$16 sps:$4 sm:$0xff]   ;;  %v14020_v6 = vld [vmem:[%s15871_s14 + $0x24] ss:$16 sps:$4 sm:$0xff]  }
0x1529   : > { %v14134_v57 = vld [vmem:[%s15871_s14 + $0x324] ss:$16 sps:$4 sm:$0xff]  }
0x152a   : > { %8949 = vmatpush1.bf16.msra.mxu1 %v14006_v45  ;;  %9002 = vmatpush1.bf16.msra.mxu0 %v14060_v4  ;;  %v14110_v45 = vld [vmem:[%s15871_s14 + $0x3a4] ss:$16 sps:$4 sm:$0xff]  }
0x152b   : > { %8950 = vmatprep.subr.bf16.mxu1 %v14011_v11  ;;  %9003 = vmatprep.subr.bf16.mxu0 %v14068_v40  ;;  %v14042_v11 = vld [vmem:[%s15871_s14 + $0x120] ss:$16 sps:$4 sm:$0xff]   ;;  %v14140_v4 = vld [vmem:[%s15871_s14 + $0x304] ss:$16 sps:$4 sm:$0xff]   ;;  %v14146_v40 = vld [vmem:[%s15871_s14 + $0x2ec] ss:$16 sps:$4 sm:$0xff]  }
0x152e   : > { %8951 = vmatpush1.bf16.msra.mxu1 %v14009_v33  ;;  %9004 = vmatpush1.bf16.msra.mxu0 %v14066_v18  ;;  %v14108_v33 = vld [vmem:[%s15871_s14 + $0x3a0] ss:$16 sps:$4 sm:$0xff]  }
0x152f   : > { %8952 = vmatprep.subr.bf16.mxu1 %v14014_v53  ;;  %9005 = vmatprep.subr.bf16.mxu0 %v14074_v50  ;;  %v14047_v53 = vld [vmem:[%s15871_s14 + $0x104] ss:$16 sps:$4 sm:$0xff]  }
0x1532   : > { %8953 = vmatpush1.bf16.msra.mxu1 %v14012_v58  ;;  %9006 = vmatpush1.bf16.msra.mxu0 %v14072_v29  ;;  %v14116_v58 = vld [vmem:[%s15871_s14 + $0x384] ss:$16 sps:$4 sm:$0xff]  }
0x1533   : > { %8954 = vmatprep.subr.bf16.mxu1 %v14017_v2  ;;  %9007 = vmatprep.subr.bf16.mxu0 %v14080_v3  ;;  %v14045_v2 = vld [vmem:[%s15871_s14 + $0x100] ss:$16 sps:$4 sm:$0xff]  }
0x1536   : > { %8955 = vmatpush1.bf16.msra.mxu1 %v14015_v35  ;;  %9008 = vmatpush1.bf16.msra.mxu0 %v14078_v10  ;;  %v14122_v35 = vld [vmem:[%s15871_s14 + $0x364] ss:$16 sps:$4 sm:$0xff]  }
0x1537   : > { %8956 = vmatprep.subr.bf16.mxu1 %v14020_v6  ;;  %9009 = vmatprep.subr.bf16.mxu0 %v14086_v24  ;;  %v14120_v6 = vld [vmem:[%s15871_s14 + $0x360] ss:$16 sps:$4 sm:$0xff]  }
0x153a   : > { %8957 = vmatpush1.bf16.msra.mxu1 %v14018_v22  ;;  %9010 = vmatpush1.bf16.msra.mxu0 %v14084_v47  ;;  %v14132_v22 = vld [vmem:[%s15871_s14 + $0x320] ss:$16 sps:$4 sm:$0xff]  }
0x153b   : > { %8958 = vmatprep.subr.bf16.mxu1 %v14023_v42  ;;  %9011 = vmatprep.subr.bf16.mxu0 %v14092_v23  ;;  %v14138_v42 = vld [vmem:[%s15871_s14 + $0x300] ss:$16 sps:$4 sm:$0xff]  }
0x153e   : > { %8959 = vmatpush1.bf16.msra.mxu1 %v14021_v36  ;;  %9012 = vmatpush1.bf16.msra.mxu0 %v14090_v27  ;;  %v17381_v36 = vld [vmem:[%s1164_s8] sm:$0xf]  ;;  %s18298_s8 = scalar_lea.vmem [#allocation25], %s15843_s5  ;;  %s11747_s5 = sshll.u32 %s18310_s27, 2 }
0x153f   : > { %8960 = vmatprep.subr.bf16.mxu1 %v14026_v31  ;;  %9013 = vmatprep.subr.bf16.mxu0 %v14098_v1  ;;  %v7265_v18 = vrot.slane %v17381_v36, %v18291_v37  ;;  %v7261_v31 = vrot.slane %v17381_v36, %v18292_v19  ;;  %s1434_s4 = scalar_lea.vmem %s18302_s3, %s11747_s5 }
0x1542   : > { %8961 = vmatpush2.bf16.msra.mxu1 %v14024_v17  ;;  %9014 = vmatpush2.bf16.msra.mxu0 %v14096_v60 }
0x1543   : > { %8962 = vmatprep.subr.bf16.mxu1 %v14029_v44  ;;  %9015 = vmatprep.subr.bf16.mxu0 %v14104_v28 }
0x1546   : > { %8963 = vmatpush2.bf16.msra.mxu1 %v14027_v34  ;;  %9016 = vmatpush2.bf16.msra.mxu0 %v14102_v12 }
0x1547   : > { %8964 = vmatprep.subr.bf16.mxu1 %v14032_v49  ;;  %9017 = vmatprep.subr.bf16.mxu0 %v14110_v45 }
0x154a   : > { %8965 = vmatpush2.bf16.msra.mxu1 %v14030_v52  ;;  %9018 = vmatpush2.bf16.msra.mxu0 %v14108_v33 }
0x154b   : > { %8966 = vmatprep.subr.bf16.mxu1 %v14035_v43  ;;  %9019 = vmatprep.subr.bf16.mxu0 %v14116_v58 }
0x154e   : > { %8967 = vmatpush2.bf16.msra.mxu1 %v14033_v13  ;;  %9020 = vmatpush2.bf16.msra.mxu0 %v14114_v14  ;;  %v14051_v14 = vld [vmem:[%s15871_s14 + $0xe8] ss:$16 sps:$4 sm:$0xff]  }
0x154f   : > { %8968 = vmatprep.subr.bf16.mxu1 %v14038_v26  ;;  %9021 = vmatprep.subr.bf16.mxu0 %v14122_v35 }
0x1552   : > { %8969 = vmatpush2.bf16.msra.mxu1 %v14036_v39  ;;  %9022 = vmatpush2.bf16.msra.mxu0 %v14120_v6  ;;  %v14059_v6 = vld [vmem:[%s15871_s14 + $0xcc] ss:$16 sps:$4 sm:$0xff]  }
0x1553   : > { %8970 = vmatprep.subr.bf16.mxu1 %v14041_v38  ;;  %9023 = vmatprep.subr.bf16.mxu0 %v14128_v20 }
0x1556   : > { %8971 = vmatpush2.bf16.msra.mxu1 %v14039_v62  ;;  %9024 = vmatpush2.bf16.msra.mxu0 %v14126_v46 }
0x1557   : > { %8972 = vmatprep.subr.bf16.mxu1 %v14044_v8  ;;  %9025 = vmatprep.subr.bf16.mxu0 %v14134_v57 }
0x155a   : > { %8973 = vmatpush2.bf16.msra.mxu1 %v14042_v11  ;;  %9026 = vmatpush2.bf16.msra.mxu0 %v14132_v22 }
0x155b   : > { %8974 = vmatprep.subr.bf16.mxu1 %v14047_v53  ;;  %9027 = vmatprep.subr.bf16.mxu0 %v14140_v4 }
0x155e   : > { %8975 = vmatpush2.bf16.msra.mxu1 %v14045_v2  ;;  %9028 = vmatpush2.bf16.msra.mxu0 %v14138_v42 }
0x155f   : > { %9050 = vmatprep.subr.bf16.mxu1 %v14053_v55  ;;  %9103 = vmatprep.subr.bf16.mxu0 %v14146_v40  ;;  %v14057_v40 = vld [vmem:[%s15871_s14 + $0xc8] ss:$16 sps:$4 sm:$0xff]  }
0x15a0   : > { %v7952_v50 = vpop.f32.mrf.mxu1  ;;  %v8005_v17 = vpop.f32.mrf.mxu0 }
0x15a1   : > { %v7953_v34 = vadd.f32 %v7952_v50, %v7261_v31  ;;  %v14065_v50 = vld [vmem:[%s15871_s14 + $0xac] ss:$16 sps:$4 sm:$0xff]  }
0x15a2   : > { %v7954_v29 = vpop.f32.mrf.mxu1  ;;  %v8007_v44 = vpop.f32.mrf.mxu0 }
0x15a3   : > { %v7955_v3 = vadd.f32 %v7954_v29, %v7265_v18  ;;  %v8006_v27 = vadd.f32 %v8005_v17, %v7953_v34 }
0x15a4   : > { %v7956_v10 = vpop.f32.mrf.mxu1  ;;  %v8009_v49 = vpop.f32.mrf.mxu0 }
0x15a5   : > { %v7957_v24 = vadd.f32 %v7956_v10, %v7261_v31  ;;  %v8008_v43 = vadd.f32 %v8007_v44, %v7955_v3  ;;  %v8130_v45 = vmax.f32 %v8006_v27, 0.0  ;;  %v14063_v3 = vld [vmem:[%s15871_s14 + $0xa8] ss:$16 sps:$4 sm:$0xff]   ;;  %v14071_v10 = vld [vmem:[%s15871_s14 + $0x8c] ss:$16 sps:$4 sm:$0xff]  }
0x15a6   : > { %v7958_v52 = vpop.f32.mrf.mxu1  ;;  %v8011_v47 = vpop.f32.mrf.mxu0  ;;  %v14095_v27 = vld [vmem:[%s15871_s14 + $0xc] ss:$16 sps:$4 sm:$0xff]  }
0x15a7   : > { %v8010_v23 = vadd.f32 %v8009_v49, %v7957_v24  ;;  %v7959_v13 = vadd.f32 %v7958_v52, %v7265_v18  ;;  %v8131_v28 = vmax.f32 %v8008_v43, 0.0  ;;  %v14069_v49 = vld [vmem:[%s15871_s14 + $0x88] ss:$16 sps:$4 sm:$0xff]   ;;  %v14077_v24 = vld [vmem:[%s15871_s14 + $0x6c] ss:$16 sps:$4 sm:$0xff]  }
0x15a8   : > { %v7962_v26 = vpop.f32.mrf.mxu1  ;;  %v8015_v39 = vpop.f32.mrf.mxu0  ;;  %v14075_v52 = vld [vmem:[%s15871_s14 + $0x68] ss:$16 sps:$4 sm:$0xff]  }
0x15a9   : > { %v8012_v1 = vadd.f32 %v8011_v47, %v7959_v13  ;;  %v8134_v60 = vmax.f32 %v8010_v23, 0.0  ;;  %v7963_v11 = vadd.f32 %v7962_v26, %v7261_v31  ;;  %v14083_v47 = vld [vmem:[%s15871_s14 + $0x4c] ss:$16 sps:$4 sm:$0xff]   ;;  %v14081_v43 = vld [vmem:[%s15871_s14 + $0x48] ss:$16 sps:$4 sm:$0xff]  }
0x15aa   : > { %v7964_v38 = vpop.f32.mrf.mxu1  ;;  %v8017_v8 = vpop.f32.mrf.mxu0  ;;  %v14089_v23 = vld [vmem:[%s15871_s14 + $0x2c] ss:$16 sps:$4 sm:$0xff]   ;;  %v14087_v13 = vld [vmem:[%s15871_s14 + $0x28] ss:$16 sps:$4 sm:$0xff]  }
0x15ab   : > { %v8135_v62 = vmax.f32 %v8012_v1, 0.0  ;;  %v7965_v12 = vadd.f32 %v7964_v38, %v7265_v18  ;;  %v17388_v55 = vpack.c.bf16 %v8134_v60, %v8130_v45  ;;  %v8016_v22 = vadd.f32 %v8015_v39, %v7963_v11  ;;  %v14093_v26 = vld [vmem:[%s15871_s14 + $0x8] ss:$16 sps:$4 sm:$0xff]   ;;  %v14101_v1 = vld [vmem:[%s15871_s14 + $0x1ec] ss:$16 sps:$4 sm:$0xff]  }
0x15ac   : > { %v7966_v33 = vpop.f32.mrf.mxu1  ;;  %v8019_v2 = vpop.f32.mrf.mxu0  ;;  %v14099_v39 = vld [vmem:[%s15871_s14 + $0x1e8] ss:$16 sps:$4 sm:$0xff]   ;;  %v14107_v60 = vld [vmem:[%s15871_s14 + $0x1cc] ss:$16 sps:$4 sm:$0xff]  }
0x15ad   : > { %v8147_v53 = vpack.c.bf16 %v8135_v62, %v8131_v28  ;;  %v7967_v58 = vadd.f32 %v7966_v33, %v7261_v31  ;;  %v8018_v20 = vadd.f32 %v8017_v8, %v7965_v12  ;;  %v8138_v44 = vmax.f32 %v8016_v22, 0.0  ;;  %v14105_v38 = vld [vmem:[%s15871_s14 + $0x1c8] ss:$16 sps:$4 sm:$0xff]   ;;  %v14113_v28 = vld [vmem:[%s15871_s14 + $0x1ac] ss:$16 sps:$4 sm:$0xff]  }
0x15ae   : > { %v7968_v35 = vpop.f32.mrf.mxu1  ;;  %v8021_v4 = vpop.f32.mrf.mxu0  ;;  %v14111_v62 = vld [vmem:[%s15871_s14 + $0x1a8] ss:$16 sps:$4 sm:$0xff]   ;;  %v14119_v12 = vld [vmem:[%s15871_s14 + $0x18c] ss:$16 sps:$4 sm:$0xff]  }
0x15af   : > { %v8020_v46 = vadd.f32 %v8019_v2, %v7967_v58  ;;  %v7969_v57 = vadd.f32 %v7968_v35, %v7265_v18  ;;  %8976 = vmatprep.mubr.bf16.mxu1 %v8147_v53  ;;  %v8139_v17 = vmax.f32 %v8018_v20, 0.0  ;;  %v14117_v8 = vld [vmem:[%s15871_s14 + $0x188] ss:$16 sps:$4 sm:$0xff]   ;;  %v14125_v45 = vld [vmem:[%s15871_s14 + $0x16c] ss:$16 sps:$4 sm:$0xff]   ;;  %v7269_v58 = vrot.slane %v17381_v36, %v18293_v32 }
0x15b0   : > { %8977 = vmatmul.mubr.bf16.vlgmr.msra.gmra.mxu1 %v17388_v55  ;;  %v14123_v11 = vld [vmem:[%s15871_s14 + $0x168] ss:$16 sps:$4 sm:$0xff]   ;;  %v14131_v33 = vld [vmem:[%s15871_s14 + $0x14c] ss:$16 sps:$4 sm:$0xff]  }
0x15b1   : > { %v8022_v42 = vadd.f32 %v8021_v4, %v7969_v57  ;;  %9051 = vmatpush1.bf16.msra.mxu1 %v14051_v14  ;;  %v8142_v31 = vmax.f32 %v8020_v46, 0.0  ;;  %v14129_v35 = vld [vmem:[%s15871_s14 + $0x148] ss:$16 sps:$4 sm:$0xff]   ;;  %v14137_v20 = vld [vmem:[%s15871_s14 + $0x12c] ss:$16 sps:$4 sm:$0xff]  }
0x15b2   : > { %9052 = vmatprep.subr.bf16.mxu1 %v14059_v6 }
0x15b3   : > { %v8143_v29 = vmax.f32 %v8022_v42, 0.0  ;;  %v17397_v34 = vpack.c.bf16 %v8142_v31, %v8138_v44  ;;  %v14135_v31 = vld [vmem:[%s15871_s14 + $0x128] ss:$16 sps:$4 sm:$0xff]  }
0x15b5   : > { %v17394_v18 = vpack.c.bf16 %v8143_v29, %v8139_v17  ;;  %9053 = vmatpush1.bf16.msra.mxu1 %v14057_v40 }
0x15b6   : > { %9054 = vmatprep.subr.bf16.mxu1 %v14065_v50 }
0x15b7   : > { %8986 = vmatprep.mubr.bf16.mxu1 %v17394_v18 }
0x15b8   : > { %8987 = vmatmul.mubr.bf16.gmra.mxu1 %v17397_v34 }
0x15b9   : > { %9055 = vmatpush1.bf16.msra.mxu1 %v14063_v3  ;;  %9082 = vmatprep.mubr.bf16.mxu1 %v8147_v53  ;;  %v7273_v53 = vrot.slane %v17381_v36, %v18294_v30  ;;  %v14143_v36 = vld [vmem:[%s15871_s14 + $0x10c] ss:$16 sps:$4 sm:$0xff]  }
0x15ba   : > { %9056 = vmatprep.subr.bf16.mxu1 %v14071_v10 }
0x15bd   : > { %9057 = vmatpush1.bf16.msra.mxu1 %v14069_v49 }
0x15be   : > { %9058 = vmatprep.subr.bf16.mxu1 %v14077_v24 }
0x15c1   : > { %9059 = vmatpush1.bf16.msra.mxu1 %v14075_v52 }
0x15c2   : > { %9060 = vmatprep.subr.bf16.mxu1 %v14083_v47  ;;  %v14141_v47 = vld [vmem:[%s15871_s14 + $0x108] ss:$16 sps:$4 sm:$0xff]  }
0x15c5   : > { %9061 = vmatpush1.bf16.msra.mxu1 %v14081_v43 }
0x15c6   : > { %9062 = vmatprep.subr.bf16.mxu1 %v14089_v23 }
0x15c9   : > { %9063 = vmatpush1.bf16.msra.mxu1 %v14087_v13 }
0x15ca   : > { %9064 = vmatprep.subr.bf16.mxu1 %v14095_v27 }
0x15cd   : > { %9065 = vmatpush1.bf16.msra.mxu1 %v14093_v26 }
0x15ce   : > { %9066 = vmatprep.subr.bf16.mxu1 %v14101_v1 }
0x15d1   : > { %9067 = vmatpush2.bf16.msra.mxu1 %v14099_v39 }
0x15d2   : > { %9068 = vmatprep.subr.bf16.mxu1 %v14107_v60 }
0x15d5   : > { %9069 = vmatpush2.bf16.msra.mxu1 %v14105_v38 }
0x15d6   : > { %9070 = vmatprep.subr.bf16.mxu1 %v14113_v28 }
0x15d9   : > { %9071 = vmatpush2.bf16.msra.mxu1 %v14111_v62 }
0x15da   : > { %9072 = vmatprep.subr.bf16.mxu1 %v14119_v12 }
0x15dd   : > { %9073 = vmatpush2.bf16.msra.mxu1 %v14117_v8  ;;  %v14144_v8 = vld [vmem:[%s15871_s14 + $0x2e8] ss:$16 sps:$4 sm:$0xff]  }
0x15de   : > { %9074 = vmatprep.subr.bf16.mxu1 %v14125_v45 }
0x15e0   : > { %v8058_v2 = vpop.f32.mrf.mxu1  ;;  %v8111_v14 = vpop.f32.mrf.mxu0 }
0x15e1   : > { %9075 = vmatpush2.bf16.msra.mxu1 %v14123_v11  ;;  %v8059_v22 = vadd.f32 %v8058_v2, %v7269_v58 }
0x15e2   : > { %v8060_v6 = vpop.f32.mrf.mxu1  ;;  %9076 = vmatprep.subr.bf16.mxu1 %v14131_v33  ;;  %v8113_v57 = vpop.f32.mrf.mxu0  ;;  %v14149_v33 = vld [vmem:[%s15871_s14 + $0x2cc] ss:$16 sps:$4 sm:$0xff]  }
0x15e3   : > { %v8061_v46 = vadd.f32 %v8060_v6, %v7273_v53  ;;  %v8112_v10 = vadd.f32 %v8111_v14, %v8059_v22  ;;  %v14152_v22 = vld [vmem:[%s15871_s14 + $0x2ac] ss:$16 sps:$4 sm:$0xff]  }
0x15e4   : > { %v8062_v4 = vpop.f32.mrf.mxu1  ;;  %v8115_v40 = vpop.f32.mrf.mxu0 }
0x15e5   : > { %v8063_v42 = vadd.f32 %v8062_v4, %v7269_v58  ;;  %9077 = vmatpush2.bf16.msra.mxu1 %v14129_v35  ;;  %v8114_v17 = vadd.f32 %v8113_v57, %v8061_v46  ;;  %v8132_v39 = vmax.f32 %v8112_v10, 0.0  ;;  %v14147_v46 = vld [vmem:[%s15871_s14 + $0x2c8] ss:$16 sps:$4 sm:$0xff]   ;;  %v14167_v10 = vld [vmem:[%s15871_s14 + $0x20c] ss:$16 sps:$4 sm:$0xff]  }
0x15e6   : > { %v8064_v50 = vpop.f32.mrf.mxu1  ;;  %9078 = vmatprep.subr.bf16.mxu1 %v14137_v20  ;;  %v8117_v3 = vpop.f32.mrf.mxu0 }
0x15e7   : > { %v8116_v29 = vadd.f32 %v8115_v40, %v8063_v42  ;;  %v8065_v44 = vadd.f32 %v8064_v50, %v7273_v53  ;;  %v8133_v13 = vmax.f32 %v8114_v17, 0.0  ;;  %v14155_v50 = vld [vmem:[%s15871_s14 + $0x28c] ss:$16 sps:$4 sm:$0xff]   ;;  %v14156_v17 = vld [vmem:[%s15871_s14 + $0x268] ss:$16 sps:$4 sm:$0xff]  }
0x15e8   : > { %v8068_v49 = vpop.f32.mrf.mxu1  ;;  %v8121_v52 = vpop.f32.mrf.mxu0 }
0x15e9   : > { %v8118_v24 = vadd.f32 %v8117_v3, %v8065_v44  ;;  %9079 = vmatpush2.bf16.msra.mxu1 %v14135_v31  ;;  %v8136_v43 = vmax.f32 %v8116_v29, 0.0  ;;  %v8069_v60 = vadd.f32 %v8068_v49, %v7269_v58  ;;  %v14150_v31 = vld [vmem:[%s15871_s14 + $0x2a8] ss:$16 sps:$4 sm:$0xff]   ;;  %v14161_v29 = vld [vmem:[%s15871_s14 + $0x24c] ss:$16 sps:$4 sm:$0xff]  }
0x15ea   : > { %v8070_v23 = vpop.f32.mrf.mxu1  ;;  %9080 = vmatprep.subr.bf16.mxu1 %v14143_v36  ;;  %v8123_v1 = vpop.f32.mrf.mxu0  ;;  %v14158_v36 = vld [vmem:[%s15871_s14 + $0x26c] ss:$16 sps:$4 sm:$0xff]   ;;  %v14159_v44 = vld [vmem:[%s15871_s14 + $0x248] ss:$16 sps:$4 sm:$0xff]  }
0x15eb   : > { %v8137_v27 = vmax.f32 %v8118_v24, 0.0  ;;  %v8071_v26 = vadd.f32 %v8070_v23, %v7273_v53  ;;  %v17432_v45 = vpack.c.bf16 %v8136_v43, %v8132_v39  ;;  %v8122_v6 = vadd.f32 %v8121_v52, %v8069_v60  ;;  %v14164_v3 = vld [vmem:[%s15871_s14 + $0x22c] ss:$16 sps:$4 sm:$0xff]   ;;  %v14165_v49 = vld [vmem:[%s15871_s14 + $0x208] ss:$16 sps:$4 sm:$0xff]  }
0x15ec   : > { %v8072_v38 = vpop.f32.mrf.mxu1  ;;  %v8125_v12 = vpop.f32.mrf.mxu0  ;;  %v14170_v24 = vld [vmem:[%s15871_s14 + $0x3ec] ss:$16 sps:$4 sm:$0xff]   ;;  %v14168_v52 = vld [vmem:[%s15871_s14 + $0x3e8] ss:$16 sps:$4 sm:$0xff]  }
0x15ed   : > { %v8149_v28 = vpack.c.bf16 %v8137_v27, %v8133_v13  ;;  %v8073_v62 = vadd.f32 %v8072_v38, %v7269_v58  ;;  %9081 = vmatpush2.bf16.msra.mxu1 %v14141_v47  ;;  %v8124_v2 = vadd.f32 %v8123_v1, %v8071_v26  ;;  %v8140_v42 = vmax.f32 %v8122_v6, 0.0  ;;  %v14173_v47 = vld [vmem:[%s15871_s14 + $0x3cc] ss:$16 sps:$4 sm:$0xff]   ;;  %v14171_v43 = vld [vmem:[%s15871_s14 + $0x3c8] ss:$16 sps:$4 sm:$0xff]  }
0x15ee   : > { %v8074_v11 = vpop.f32.mrf.mxu1  ;;  %v8127_v20 = vpop.f32.mrf.mxu0  ;;  %v14176_v23 = vld [vmem:[%s15871_s14 + $0x3ac] ss:$16 sps:$4 sm:$0xff]   ;;  %v14174_v13 = vld [vmem:[%s15871_s14 + $0x3a8] ss:$16 sps:$4 sm:$0xff]  }
0x15ef   : > { %v8126_v14 = vadd.f32 %v8125_v12, %v8073_v62  ;;  %v8075_v35 = vadd.f32 %v8074_v11, %v7273_v53  ;;  %9029 = vmatprep.mubr.bf16.mxu0 %v8149_v28  ;;  %v8141_v4 = vmax.f32 %v8124_v2, 0.0  ;;  %v14179_v27 = vld [vmem:[%s15871_s14 + $0x38c] ss:$16 sps:$4 sm:$0xff]   ;;  %v14177_v26 = vld [vmem:[%s15871_s14 + $0x388] ss:$16 sps:$4 sm:$0xff]  }
0x15f0   : > { %9030 = vmatmul.mubr.bf16.vlgmr.msra.gmra.mxu0 %v17432_v45  ;;  %9083 = vmatmul.mubr.bf16.vlgmr.msra.gmra.mxu1 %v17388_v55  ;;  %v14182_v1 = vld [vmem:[%s15871_s14 + $0x36c] ss:$16 sps:$4 sm:$0xff]   ;;  %v14180_v39 = vld [vmem:[%s15871_s14 + $0x368] ss:$16 sps:$4 sm:$0xff]  }
0x15f1   : > { %v8128_v58 = vadd.f32 %v8127_v20, %v8075_v35  ;;  %9104 = vmatpush1.bf16.msra.mxu0 %v14144_v8  ;;  %9092 = vmatprep.mubr.bf16.mxu1 %v17394_v18  ;;  %v8144_v57 = vmax.f32 %v8126_v14, 0.0  ;;  %v14153_v18 = vld [vmem:[%s15871_s14 + $0x288] ss:$16 sps:$4 sm:$0xff]   ;;  %v14185_v60 = vld [vmem:[%s15871_s14 + $0x34c] ss:$16 sps:$4 sm:$0xff]  }
0x15f2   : > { %9105 = vmatprep.subr.bf16.mxu0 %v14149_v33  ;;  %v14183_v38 = vld [vmem:[%s15871_s14 + $0x348] ss:$16 sps:$4 sm:$0xff]   ;;  %v14191_v12 = vld [vmem:[%s15871_s14 + $0x30c] ss:$16 sps:$4 sm:$0xff]  }
0x15f3   : > { %v8145_v53 = vmax.f32 %v8128_v58, 0.0  ;;  %v8152_v55 = vpack.c.bf16 %v8144_v57, %v8140_v42  ;;  %v14186_v62 = vld [vmem:[%s15871_s14 + $0x328] ss:$16 sps:$4 sm:$0xff]  }
0x15f4   : > { %v14189_v8 = vld [vmem:[%s15871_s14 + $0x308] ss:$16 sps:$4 sm:$0xff]  }
0x15f5   : > { %v8153_v40 = vpack.c.bf16 %v8145_v53, %v8141_v4  ;;  %9106 = vmatpush1.bf16.msra.mxu0 %v14147_v46 }
0x15f6   : > { %9107 = vmatprep.subr.bf16.mxu0 %v14152_v22 }
0x15f7   : > { %9039 = vmatprep.mubr.bf16.mxu0 %v8153_v40 }
0x15f8   : > { %9040 = vmatmul.mubr.bf16.gmra.mxu0 %v8152_v55  ;;  %9093 = vmatmul.mubr.bf16.gmra.mxu1 %v17397_v34  ;;  %v14162_v34 = vld [vmem:[%s15871_s14 + $0x228] ss:$16 sps:$4 sm:$0xff]  }
0x15f9   : > { %9108 = vmatpush1.bf16.msra.mxu0 %v14150_v31  ;;  %9135 = vmatprep.mubr.bf16.mxu0 %v8149_v28  ;;  %v14188_v28 = vld [vmem:[%s15871_s14 + $0x32c] ss:$16 sps:$4 sm:$0xff]   ;;  %s12716_s14 = sshll.u32 %s18310_s27, 8 }
0x15fa   : > { %9109 = vmatprep.subr.bf16.mxu0 %v14155_v50 }
0x15fd   : > { %9110 = vmatpush1.bf16.msra.mxu0 %v14153_v18 }
0x15fe   : > { %9111 = vmatprep.subr.bf16.mxu0 %v14158_v36 }
0x1601   : > { %9112 = vmatpush1.bf16.msra.mxu0 %v14156_v17 }
0x1602   : > { %9113 = vmatprep.subr.bf16.mxu0 %v14161_v29 }
0x1605   : > { %9114 = vmatpush1.bf16.msra.mxu0 %v14159_v44 }
0x1606   : > { %9115 = vmatprep.subr.bf16.mxu0 %v14164_v3 }
0x1609   : > { %9116 = vmatpush1.bf16.msra.mxu0 %v14162_v34 }
0x160a   : > { %9117 = vmatprep.subr.bf16.mxu0 %v14167_v10 }
0x160d   : > { %9118 = vmatpush1.bf16.msra.mxu0 %v14165_v49 }
0x160e   : > { %9119 = vmatprep.subr.bf16.mxu0 %v14170_v24 }
0x1611   : > { %9120 = vmatpush2.bf16.msra.mxu0 %v14168_v52 }
0x1612   : > { %9121 = vmatprep.subr.bf16.mxu0 %v14173_v47 }
0x1615   : > { %9122 = vmatpush2.bf16.msra.mxu0 %v14171_v43 }
0x1616   : > { %9123 = vmatprep.subr.bf16.mxu0 %v14176_v23 }
0x1619   : > { %9124 = vmatpush2.bf16.msra.mxu0 %v14174_v13 }
0x161a   : > { %9125 = vmatprep.subr.bf16.mxu0 %v14179_v27 }
0x161d   : > { %9126 = vmatpush2.bf16.msra.mxu0 %v14177_v26 }
0x161e   : > { %9127 = vmatprep.subr.bf16.mxu0 %v14182_v1 }
0x1621   : > { %9128 = vmatpush2.bf16.msra.mxu0 %v14180_v39 }
0x1622   : > { %9129 = vmatprep.subr.bf16.mxu0 %v14185_v60 }
0x1625   : > { %9130 = vmatpush2.bf16.msra.mxu0 %v14183_v38 }
0x1626   : > { %9131 = vmatprep.subr.bf16.mxu0 %v14188_v28 }
0x1629   : > { %9132 = vmatpush2.bf16.msra.mxu0 %v14186_v62 }
0x162a   : > { %9133 = vmatprep.subr.bf16.mxu0 %v14191_v12 }
0x162d   : > { %9134 = vmatpush2.bf16.msra.mxu0 %v14189_v8 }
0x1630   : > { %9136 = vmatmul.mubr.bf16.vlgmr.msra.gmra.mxu0 %v17432_v45  ;;  %v8282_v45 = vld [vmem:[%s1182_s2] sm:$0xf] }
0x1631   : > { %9145 = vmatprep.mubr.bf16.mxu0 %v8153_v40  ;;  %v8291_v40 = vrot.slane %v8282_v45, %v18291_v37  ;;  %v8287_v18 = vrot.slane %v8282_v45, %v18292_v19  ;;  %v8295_v3 = vrot.slane %v8282_v45, %v18293_v32  ;;  %v8299_v24 = vrot.slane %v8282_v45, %v18294_v30 }
0x1638   : > { %9146 = vmatmul.mubr.bf16.gmra.mxu0 %v8152_v55 }
0x1670   : > { %v8978_v11 = vpop.f32.mrf.mxu1 }
0x1671   : > { %v8979_v44 = vadd.f32 %v8978_v11, %v8287_v18 }
0x1672   : > { %v8980_v33 = vpop.f32.mrf.mxu1 }
0x1673   : > { %v8981_v36 = vadd.f32 %v8980_v33, %v8291_v40 }
0x1674   : > { %v8982_v2 = vpop.f32.mrf.mxu1 }
0x1675   : > { %v8983_v52 = vadd.f32 %v8982_v2, %v8287_v18 }
0x1676   : > { %v8984_v14 = vpop.f32.mrf.mxu1 }
0x1677   : > { %v8985_v10 = vadd.f32 %v8984_v14, %v8291_v40 }
0x1678   : > { %v8988_v35 = vpop.f32.mrf.mxu1 }
0x1679   : > { %v8989_v62 = vadd.f32 %v8988_v35, %v8287_v18 }
0x167a   : > { %v8990_v20 = vpop.f32.mrf.mxu1 }
0x167b   : > { %v8991_v26 = vadd.f32 %v8990_v20, %v8291_v40 }
0x167c   : > { %v8992_v46 = vpop.f32.mrf.mxu1 }
0x167e   : > { %v8994_v22 = vpop.f32.mrf.mxu1 }
0x167f   : > { %v8995_v20 = vadd.f32 %v8994_v22, %v8291_v40 }
0x16b0   : > { %v9031_v6 = vpop.f32.mrf.mxu0  ;;  %v9084_v4 = vpop.f32.mrf.mxu1 }
0x16b1   : > { %v9032_v49 = vadd.f32 %v9031_v6, %v8979_v44  ;;  %v9085_v13 = vadd.f32 %v9084_v4, %v8295_v3 }
0x16b2   : > { %v9033_v58 = vpop.f32.mrf.mxu0  ;;  %v9086_v42 = vpop.f32.mrf.mxu1 }
0x16b3   : > { %v9034_v34 = vadd.f32 %v9033_v58, %v8981_v36  ;;  %v17479_v60 = vadd.f32 %v9032_v49, %v17162_v41  ;;  %v9087_v38 = vadd.f32 %v9086_v42, %v8299_v24  ;;  %v8993_v42 = vadd.f32 %v8992_v46, %v8287_v18 }
0x16b4   : > { %v9035_v57 = vpop.f32.mrf.mxu0  ;;  %v9088_v55 = vpop.f32.mrf.mxu1 }
0x16b5   : > { %v17476_v27 = vadd.f32 %v9034_v34, %v17156_v61  ;;  %v9036_v1 = vadd.f32 %v9035_v57, %v8983_v52  ;;  %v9089_v61 = vadd.f32 %v9088_v55, %v8295_v3 }
0x16b6   : > { %v9037_v53 = vpop.f32.mrf.mxu0  ;;  %v9090_v17 = vpop.f32.mrf.mxu1 }
0x16b7   : > { %v9038_v47 = vadd.f32 %v9037_v53, %v8985_v10  ;;  %v9174_v2 = vadd.f32 %v17476_v27, %v17479_v60  ;;  %v9160_v41 = vadd.f32 %v9036_v1, %v17174_v15  ;;  %v9091_v4 = vadd.f32 %v9090_v17, %v8299_v24 }
0x16b8   : > { %v9041_v31 = vpop.f32.mrf.mxu0  ;;  %v9094_v43 = vpop.f32.mrf.mxu1 }
0x16b9   : > { %v17482_v12 = vadd.f32 %v9038_v47, %v17168_v59  ;;  %v9042_v58 = vadd.f32 %v9041_v31, %v8989_v62 }
0x16ba   : > { %v9043_v50 = vpop.f32.mrf.mxu0  ;;  %v9096_v11 = vpop.f32.mrf.mxu1 }
0x16bb   : > { %v9044_v8 = vadd.f32 %v9043_v50, %v8991_v26  ;;  %v9179_v45 = vadd.f32 %v17482_v12, %v9160_v41  ;;  %v9095_v50 = vadd.f32 %v9094_v43, %v8295_v3  ;;  %v9164_v40 = vadd.f32 %v9042_v58, %v17223_v16 }
0x16bc   : > { %v9045_v29 = vpop.f32.mrf.mxu0  ;;  %v9098_v55 = vpop.f32.mrf.mxu1  ;;  %v9097_v34 = vadd.f32 %v9096_v11, %v8299_v24 }
0x16bd   : > { %v17491_v36 = vadd.f32 %v9044_v8, %v17211_v21  ;;  %v9046_v17 = vadd.f32 %v9045_v29, %v8993_v42  ;;  %v9099_v49 = vadd.f32 %v9098_v55, %v8295_v3 }
0x16be   : > { %v9047_v23 = vpop.f32.mrf.mxu0  ;;  %v9100_v52 = vpop.f32.mrf.mxu1 }
0x16bf   : > { %v9048_v44 = vadd.f32 %v9047_v23, %v8995_v20  ;;  %v9184_v21 = vadd.f32 %v17491_v36, %v9164_v40  ;;  %v9168_v16 = vadd.f32 %v9046_v17, %v17225_v63  ;;  %v9101_v26 = vadd.f32 %v9100_v52, %v8299_v24 }
0x16c1   : > { %v9169_v43 = vadd.f32 %v9048_v44, %v17216_v0 }
0x16f0   : > { %v9137_v39 = vpop.f32.mrf.mxu0 }
0x16f1   : > { %v9138_v28 = vadd.f32 %v9137_v39, %v9085_v13 }
0x16f2   : > { %v9139_v33 = vpop.f32.mrf.mxu0 }
0x16f3   : > { %v9158_v14 = vadd.f32 %v9138_v28, %v17166_v51  ;;  %v9140_v6 = vadd.f32 %v9139_v33, %v9087_v38  ;;  %v9189_v28 = vadd.f32 %v9169_v43, %v9168_v16 }
0x16f4   : > { %v9141_v57 = vpop.f32.mrf.mxu0 }
0x16f5   : > { %v9159_v35 = vadd.f32 %v9140_v6, %v17159_v5  ;;  %v9142_v59 = vadd.f32 %v9141_v57, %v9089_v61  ;;  %v9175_v53 = vadd.f32 %v9174_v2, %v9158_v14 }
0x16f6   : > { %v9143_v51 = vpop.f32.mrf.mxu0 }
0x16f7   : > { %v9162_v22 = vadd.f32 %v9142_v59, %v17177_v25  ;;  %v9144_v15 = vadd.f32 %v9143_v51, %v9091_v4  ;;  %v9176_v31 = vadd.f32 %v9175_v53, %v9159_v35 }
0x16f8   : > { %v9147_v5 = vpop.f32.mrf.mxu0 }
0x16f9   : > { %v9163_v46 = vadd.f32 %v9144_v15, %v17170_v56  ;;  %v9148_v18 = vadd.f32 %v9147_v5, %v9095_v50  ;;  %9177 = vadd.xlane.f32.xlu0 %v9176_v31  ;;  %v9180_v10 = vadd.f32 %v9179_v45, %v9162_v22 }
0x16fa   : > { %v9149_v47 = vpop.f32.mrf.mxu0 }
0x16fb   : > { %v9166_v25 = vadd.f32 %v9148_v18, %v17228_v48  ;;  %v9150_v23 = vadd.f32 %v9149_v47, %v9097_v34  ;;  %v9181_v13 = vadd.f32 %v9180_v10, %v9163_v46 }
0x16fc   : > { %v9151_v29 = vpop.f32.mrf.mxu0 }
0x16fd   : > { %v9167_v56 = vadd.f32 %v9150_v23, %v17218_v9  ;;  %v9152_v1 = vadd.f32 %v9151_v29, %v9099_v49  ;;  %9182 = vadd.xlane.f32.xlu1 %v9181_v13  ;;  %v9185_v39 = vadd.f32 %v9184_v21, %v9166_v25 }
0x16fe   : > { %v9153_v38 = vpop.f32.mrf.mxu0 }
0x16ff   : > { %v9170_v3 = vadd.f32 %v9152_v1, %v17240_v7  ;;  %v9154_v62 = vadd.f32 %v9153_v38, %v9101_v26  ;;  %v9186_v8 = vadd.f32 %v9185_v39, %v9167_v56 }
0x1701   : > { %v9171_v0 = vadd.f32 %v9154_v62, %v17220_v54  ;;  %9187 = vadd.xlane.f32.xlu0 %v9186_v8  ;;  %v9190_v48 = vadd.f32 %v9189_v28, %v9170_v3 }
0x1703   : > { %v9191_v11 = vadd.f32 %v9190_v48, %v9171_v0 }
0x1705   : > { %9192 = vadd.xlane.f32.xlu1 %v9191_v11 }
0x1782   : > { %v9178_v63 = vpop.xlane.xlu0 %9177 }
0x1783   : > { %v9194_v33 = vmul.f32 0.001953125, %v9178_v63 }
0x1785   : > { %v17504_v24 = vsub.f32 %v17479_v60, %v9194_v33  ;;  %v17507_v9 = vsub.f32 %v17476_v27, %v9194_v33  ;;  %v17509_v2 = vsub.f32 %v9158_v14, %v9194_v33  ;;  %v17511_v7 = vsub.f32 %v9159_v35, %v9194_v33 }
0x1786   : > { %v9183_v61 = vpop.xlane.xlu1 %9182 }
0x1787   : > { %v9195_v6 = vmul.f32 0.001953125, %v9183_v61  ;;  %v9214_v54 = vmul.f32 %v17504_v24, %v17504_v24  ;;  %v9215_v20 = vmul.f32 %v17507_v9, %v17507_v9  ;;  %v9216_v58 = vmul.f32 %v17509_v2, %v17509_v2 }
0x1788   : > { %v9217_v35 = vmul.f32 %v17511_v7, %v17511_v7 }
0x1789   : > { %v17519_v60 = vsub.f32 %v9160_v41, %v9195_v6  ;;  %v17522_v27 = vsub.f32 %v17482_v12, %v9195_v6  ;;  %v9230_v14 = vadd.f32 %v9215_v20, %v9214_v54  ;;  %v17524_v57 = vsub.f32 %v9162_v22, %v9195_v6  ;;  %v9173_v20 = vld [vmem:[%s18295_s7] sm:$0xf] }
0x178a   : > { %v9188_v4 = vpop.xlane.xlu0 %9187  ;;  %v17528_v59 = vsub.f32 %v9163_v46, %v9195_v6  ;;  %v9172_v6 = vld [vmem:[%s1191_s21] sm:$0xf] }
0x178b   : > { %v9196_v53 = vmul.f32 0.001953125, %v9188_v4  ;;  %v9231_v42 = vadd.f32 %v9230_v14, %v9216_v58  ;;  %v9218_v45 = vmul.f32 %v17519_v60, %v17519_v60  ;;  %v9219_v41 = vmul.f32 %v17522_v27, %v17522_v27 }
0x178c   : > { %v9220_v12 = vmul.f32 %v17524_v57, %v17524_v57  ;;  %v9221_v15 = vmul.f32 %v17528_v59, %v17528_v59  ;;  %v9282_v58 = vrot.slane %v9172_v6, %v18292_v19  ;;  %v9286_v14 = vrot.slane %v9172_v6, %v18291_v37 }
0x178d   : > { %v17536_v50 = vsub.f32 %v9164_v40, %v9196_v53  ;;  %v17539_v55 = vsub.f32 %v17491_v36, %v9196_v53  ;;  %v9232_v51 = vadd.f32 %v9231_v42, %v9217_v35  ;;  %v9235_v44 = vadd.f32 %v9219_v41, %v9218_v45 }
0x178e   : > { %v9193_v22 = vpop.xlane.xlu1 %9192  ;;  %v17543_v31 = vsub.f32 %v9166_v25, %v9196_v53  ;;  %v17545_v17 = vsub.f32 %v9167_v56, %v9196_v53  ;;  %v9290_v4 = vrot.slane %v9172_v6, %v18293_v32  ;;  %v9294_v53 = vrot.slane %v9172_v6, %v18294_v30 }
0x178f   : > { %v9197_v5 = vmul.f32 0.001953125, %v9193_v22  ;;  %9233 = vadd.xlane.f32.xlu0 %v9232_v51  ;;  %v9236_v34 = vadd.f32 %v9235_v44, %v9220_v12  ;;  %v9222_v40 = vmul.f32 %v17536_v50, %v17536_v50  ;;  %v9223_v36 = vmul.f32 %v17539_v55, %v17539_v55 }
0x1790   : > { %v9224_v46 = vmul.f32 %v17543_v31, %v17543_v31  ;;  %v9225_v52 = vmul.f32 %v17545_v17, %v17545_v17  ;;  %v9319_v42 = vrot.slane %v9173_v20, %v18292_v19  ;;  %v9323_v45 = vrot.slane %v9173_v20, %v18291_v37 }
0x1791   : > { %v17553_v18 = vsub.f32 %v9168_v16, %v9197_v5  ;;  %v17555_v10 = vsub.f32 %v9169_v43, %v9197_v5  ;;  %v9237_v21 = vadd.f32 %v9236_v34, %v9221_v15  ;;  %v9240_v49 = vadd.f32 %v9223_v36, %v9222_v40 }
0x1792   : > { %v17559_v47 = vsub.f32 %v9170_v3, %v9197_v5  ;;  %v17561_v23 = vsub.f32 %v9171_v0, %v9197_v5  ;;  %v9327_v34 = vrot.slane %v9173_v20, %v18293_v32 }
0x1793   : > { %9238 = vadd.xlane.f32.xlu1 %v9237_v21  ;;  %v9241_v25 = vadd.f32 %v9240_v49, %v9224_v46  ;;  %v9226_v13 = vmul.f32 %v17553_v18, %v17553_v18  ;;  %v9227_v16 = vmul.f32 %v17555_v10, %v17555_v10  ;;  %v9331_v46 = vrot.slane %v9173_v20, %v18294_v30 }
0x1794   : > { %v9228_v43 = vmul.f32 %v17559_v47, %v17559_v47  ;;  %v9229_v56 = vmul.f32 %v17561_v23, %v17561_v23 }
0x1795   : > { %v9242_v29 = vadd.f32 %v9241_v25, %v9225_v52  ;;  %v9245_v26 = vadd.f32 %v9227_v16, %v9226_v13 }
0x1797   : > { %9243 = vadd.xlane.f32.xlu0 %v9242_v29  ;;  %v9246_v1 = vadd.f32 %v9245_v26, %v9228_v43 }
0x1799   : > { %v9247_v39 = vadd.f32 %v9246_v1, %v9229_v56 }
0x179b   : > { %9248 = vadd.xlane.f32.xlu1 %v9247_v39 }
0x1818   : > { %v9234_v38 = vpop.xlane.xlu0 %9233 }
0x1819   : > { %v9250_v28 = vmul.f32 0.001953125, %v9234_v38 }
0x181b   : > { %v9254_v3 = vadd.f32 1e-05, %v9250_v28 }
0x181c   : > { %v9239_v62 = vpop.xlane.xlu1 %9238 }
0x181d   : > { %14488 = vrsqrt.f32 %v9254_v3  ;;  %v9251_v8 = vmul.f32 0.001953125, %v9239_v62 }
0x181f   : > { %v9255_v0 = vadd.f32 1e-05, %v9251_v8 }
0x1820   : > { %v9244_v48 = vpop.xlane.xlu0 %9243 }
0x1821   : > { %14490 = vrsqrt.f32 %v9255_v0  ;;  %v9252_v11 = vmul.f32 0.001953125, %v9244_v48 }
0x1823   : > { %v9256_v63 = vadd.f32 1e-05, %v9252_v11 }
0x1824   : > { %v9249_v33 = vpop.xlane.xlu1 %9248 }
0x1825   : > { %14492 = vrsqrt.f32 %v9256_v63  ;;  %v9253_v61 = vmul.f32 0.001953125, %v9249_v33 }
0x1827   : > { %v9257_v54 = vadd.f32 1e-05, %v9253_v61 }
0x1829   : > { %14494 = vrsqrt.f32 %v9257_v54 }
0x182a   : > { %v14489_v35 = vpop.eup %14488 }
0x182b   : > { %v9262_v41 = vmul.f32 %v14489_v35, %v17504_v24  ;;  %v9263_v12 = vmul.f32 %v14489_v35, %v17507_v9  ;;  %v9264_v51 = vmul.f32 %v14489_v35, %v17509_v2  ;;  %v9265_v44 = vmul.f32 %v14489_v35, %v17511_v7 }
0x182d   : > { %v9299_v22 = vmul.f32 %v9282_v58, %v9262_v41  ;;  %v9300_v15 = vmul.f32 %v9286_v14, %v9263_v12  ;;  %v9301_v5 = vmul.f32 %v9290_v4, %v9264_v51  ;;  %v9302_v36 = vmul.f32 %v9294_v53, %v9265_v44 }
0x182e   : > { %v14491_v40 = vpop.eup %14490 }
0x182f   : > { %v17587_v21 = vadd.f32 %v9319_v42, %v9299_v22  ;;  %v17589_v49 = vadd.f32 %v9323_v45, %v9300_v15  ;;  %v9266_v24 = vmul.f32 %v14491_v40, %v17519_v60  ;;  %v9267_v9 = vmul.f32 %v14491_v40, %v17522_v27 }
0x1830   : > { %v9268_v2 = vmul.f32 %v14491_v40, %v17524_v57  ;;  %v9269_v7 = vmul.f32 %v14491_v40, %v17528_v59  ;;  %v17595_v52 = vadd.f32 %v9327_v34, %v9301_v5  ;;  %v17599_v16 = vadd.f32 %v9331_v46, %v9302_v36  ;;  %v14194_v5 = vld [vmem:[%s15894_s6 + $0xe4] ss:$16 sps:$4 sm:$0xff]  }
0x1831   : > { %v9354_v25 = vadd.f32 %v17589_v49, %v17587_v21  ;;  %v9303_v29 = vmul.f32 %v9282_v58, %v9266_v24  ;;  %v9304_v43 = vmul.f32 %v9286_v14, %v9267_v9  ;;  %v14197_v40 = vld [vmem:[%s15894_s6 + $0x2e4] ss:$16 sps:$4 sm:$0xff]   ;;  %10330 = vmatprep.subr.bf16.mxu1 %v14194_v5  ;;  %v14201_v9 = vld [vmem:[%s15894_s6 + $0x2c0] ss:$16 sps:$4 sm:$0xff]  }
0x1832   : > { %v14493_v13 = vpop.eup %14492  ;;  %v9305_v26 = vmul.f32 %v9290_v4, %v9268_v2  ;;  %v9306_v59 = vmul.f32 %v9294_v53, %v9269_v7  ;;  %v14200_v36 = vld [vmem:[%s15894_s6 + $0xc4] ss:$16 sps:$4 sm:$0xff]   ;;  %10383 = vmatprep.subr.bf16.mxu0 %v14197_v40 }
0x1833   : > { %v9355_v56 = vadd.f32 %v9354_v25, %v17595_v52  ;;  %v9270_v60 = vmul.f32 %v14493_v13, %v17536_v50  ;;  %v9271_v27 = vmul.f32 %v14493_v13, %v17539_v55  ;;  %v9272_v57 = vmul.f32 %v14493_v13, %v17543_v31  ;;  %v14203_v24 = vld [vmem:[%s15894_s6 + $0x2c4] ss:$16 sps:$4 sm:$0xff]   ;;  %v14204_v25 = vld [vmem:[%s15894_s6 + $0xa0] ss:$16 sps:$4 sm:$0xff]  }
0x1834   : > { %v17605_v1 = vadd.f32 %v9319_v42, %v9303_v29  ;;  %v17607_v39 = vadd.f32 %v9323_v45, %v9304_v43  ;;  %v9273_v28 = vmul.f32 %v14493_v13, %v17545_v17  ;;  %v17611_v0 = vadd.f32 %v9327_v34, %v9305_v26  ;;  %v14206_v2 = vld [vmem:[%s15894_s6 + $0xa4] ss:$16 sps:$4 sm:$0xff]   ;;  %v14207_v13 = vld [vmem:[%s15894_s6 + $0x2a0] ss:$16 sps:$4 sm:$0xff]  }
0x1835   : > { %v9356_v38 = vadd.f32 %v9355_v56, %v17599_v16  ;;  %v9307_v3 = vmul.f32 %v9282_v58, %v9270_v60  ;;  %v9308_v62 = vmul.f32 %v9286_v14, %v9271_v27  ;;  %v9309_v55 = vmul.f32 %v9290_v4, %v9272_v57  ;;  %v14209_v7 = vld [vmem:[%s15894_s6 + $0x2a4] ss:$16 sps:$4 sm:$0xff]   ;;  %v14210_v26 = vld [vmem:[%s15894_s6 + $0x80] ss:$16 sps:$4 sm:$0xff]  }
0x1836   : > { %v14495_v8 = vpop.eup %14494  ;;  %v9359_v50 = vadd.f32 %v17607_v39, %v17605_v1  ;;  %v9310_v31 = vmul.f32 %v9294_v53, %v9273_v28  ;;  %v17620_v33 = vadd.f32 %v9331_v46, %v9306_v59  ;;  %v14212_v29 = vld [vmem:[%s15894_s6 + $0x84] ss:$16 sps:$4 sm:$0xff]   ;;  %v14213_v56 = vld [vmem:[%s15894_s6 + $0x280] ss:$16 sps:$4 sm:$0xff]  }
0x1837   : > { %9357 = vadd.xlane.f32.xlu0 %v9356_v38  ;;  %v17615_v48 = vadd.f32 %v9319_v42, %v9307_v3  ;;  %v17617_v11 = vadd.f32 %v9323_v45, %v9308_v62  ;;  %v9274_v63 = vmul.f32 %v14495_v8, %v17553_v18  ;;  %v9275_v61 = vmul.f32 %v14495_v8, %v17555_v10  ;;  %v14215_v43 = vld [vmem:[%s15894_s6 + $0x284] ss:$16 sps:$4 sm:$0xff]   ;;  %v14216_v57 = vld [vmem:[%s15894_s6 + $0x60] ss:$16 sps:$4 sm:$0xff]  }
0x1838   : > { %v9360_v17 = vadd.f32 %v9359_v50, %v17611_v0  ;;  %v9276_v6 = vmul.f32 %v14495_v8, %v17559_v47  ;;  %v17625_v54 = vadd.f32 %v9327_v34, %v9309_v55  ;;  %v9277_v35 = vmul.f32 %v14495_v8, %v17561_v23  ;;  %v14218_v60 = vld [vmem:[%s15894_s6 + $0x64] ss:$16 sps:$4 sm:$0xff]   ;;  %v14219_v59 = vld [vmem:[%s15894_s6 + $0x260] ss:$16 sps:$4 sm:$0xff]  }
0x1839   : > { %v9364_v20 = vadd.f32 %v17617_v11, %v17615_v48  ;;  %v9311_v41 = vmul.f32 %v9282_v58, %v9274_v63  ;;  %v9312_v51 = vmul.f32 %v9286_v14, %v9275_v61  ;;  %v17631_v44 = vadd.f32 %v9331_v46, %v9310_v31  ;;  %v14221_v27 = vld [vmem:[%s15894_s6 + $0x264] ss:$16 sps:$4 sm:$0xff]   ;;  %v14222_v3 = vld [vmem:[%s15894_s6 + $0x40] ss:$16 sps:$4 sm:$0xff]  }
0x183a   : > { %v9361_v12 = vadd.f32 %v9360_v17, %v17620_v33  ;;  %v9313_v18 = vmul.f32 %v9290_v4, %v9276_v6  ;;  %v9314_v22 = vmul.f32 %v9294_v53, %v9277_v35  ;;  %v14224_v38 = vld [vmem:[%s15894_s6 + $0x44] ss:$16 sps:$4 sm:$0xff]   ;;  %v14225_v62 = vld [vmem:[%s15894_s6 + $0x240] ss:$16 sps:$4 sm:$0xff]  }
0x183b   : > { %v9365_v10 = vadd.f32 %v9364_v20, %v17625_v54  ;;  %v17634_v47 = vadd.f32 %v9319_v42, %v9311_v41  ;;  %v17636_v23 = vadd.f32 %v9323_v45, %v9312_v51  ;;  %v14192_v45 = vld [vmem:[%s15894_s6 + $0xe0] ss:$16 sps:$4 sm:$0xff]   ;;  %v14227_v28 = vld [vmem:[%s15894_s6 + $0x244] ss:$16 sps:$4 sm:$0xff]  }
0x183c   : > { %9362 = vadd.xlane.f32.xlu1 %v9361_v12  ;;  %v17639_v14 = vadd.f32 %v9327_v34, %v9313_v18  ;;  %v17643_v15 = vadd.f32 %v9331_v46, %v9314_v22  ;;  %v14195_v34 = vld [vmem:[%s15894_s6 + $0x2e0] ss:$16 sps:$4 sm:$0xff]   ;;  %10331 = vmatpush1.bf16.msra.mxu1 %v14192_v45  ;;  %v14230_v8 = vld [vmem:[%s15894_s6 + $0x24] ss:$16 sps:$4 sm:$0xff]  }
0x183d   : > { %v9366_v58 = vadd.f32 %v9365_v10, %v17631_v44  ;;  %v9369_v4 = vadd.f32 %v17636_v23, %v17634_v47  ;;  %v14198_v46 = vld [vmem:[%s15894_s6 + $0xc0] ss:$16 sps:$4 sm:$0xff]   ;;  %10384 = vmatpush1.bf16.msra.mxu0 %v14195_v34  ;;  %10332 = vmatprep.subr.bf16.mxu1 %v14200_v36  ;;  %v14233_v50 = vld [vmem:[%s15894_s6 + $0x224] ss:$16 sps:$4 sm:$0xff]  }
0x183e   : > { %10385 = vmatprep.subr.bf16.mxu0 %v14203_v24  ;;  %v14228_v55 = vld [vmem:[%s15894_s6 + $0x20] ss:$16 sps:$4 sm:$0xff]   ;;  %v14236_v63 = vld [vmem:[%s15894_s6 + $0x4] ss:$16 sps:$4 sm:$0xff]  }
0x183f   : > { %9367 = vadd.xlane.f32.xlu0 %v9366_v58  ;;  %v9370_v42 = vadd.f32 %v9369_v4, %v17639_v14  ;;  %v14231_v31 = vld [vmem:[%s15894_s6 + $0x220] ss:$16 sps:$4 sm:$0xff]   ;;  %v14239_v17 = vld [vmem:[%s15894_s6 + $0x204] ss:$16 sps:$4 sm:$0xff]  }
0x1840   : > { %10333 = vmatpush1.bf16.msra.mxu1 %v14198_v46  ;;  %v14234_v61 = vld [vmem:[%s15894_s6] ss:$16 sps:$4 sm:$0xff]   ;;  %v14242_v20 = vld [vmem:[%s15894_s6 + $0x1e4] ss:$16 sps:$4 sm:$0xff]  }
0x1841   : > { %v9371_v53 = vadd.f32 %v9370_v42, %v17643_v15  ;;  %10386 = vmatpush1.bf16.msra.mxu0 %v14201_v9  ;;  %10334 = vmatprep.subr.bf16.mxu1 %v14206_v2  ;;  %v14237_v6 = vld [vmem:[%s15894_s6 + $0x200] ss:$16 sps:$4 sm:$0xff]   ;;  %v14245_v35 = vld [vmem:[%s15894_s6 + $0x3e4] ss:$16 sps:$4 sm:$0xff]  }
0x1842   : > { %10387 = vmatprep.subr.bf16.mxu0 %v14209_v7  ;;  %v14240_v41 = vld [vmem:[%s15894_s6 + $0x1e0] ss:$16 sps:$4 sm:$0xff]  }
0x1843   : > { %9372 = vadd.xlane.f32.xlu1 %v9371_v53  ;;  %v14243_v12 = vld [vmem:[%s15894_s6 + $0x3e0] ss:$16 sps:$4 sm:$0xff]  }
0x1844   : > { %10335 = vmatpush1.bf16.msra.mxu1 %v14204_v25 }
0x1845   : > { %10388 = vmatpush1.bf16.msra.mxu0 %v14207_v13  ;;  %10336 = vmatprep.subr.bf16.mxu1 %v14212_v29 }
0x1846   : > { %10389 = vmatprep.subr.bf16.mxu0 %v14215_v43 }
0x1848   : > { %10337 = vmatpush1.bf16.msra.mxu1 %v14210_v26 }
0x1849   : > { %10390 = vmatpush1.bf16.msra.mxu0 %v14213_v56  ;;  %10338 = vmatprep.subr.bf16.mxu1 %v14218_v60 }
0x184a   : > { %10391 = vmatprep.subr.bf16.mxu0 %v14221_v27 }
0x184c   : > { %10339 = vmatpush1.bf16.msra.mxu1 %v14216_v57 }
0x184d   : > { %10392 = vmatpush1.bf16.msra.mxu0 %v14219_v59  ;;  %10340 = vmatprep.subr.bf16.mxu1 %v14224_v38 }
0x184e   : > { %10393 = vmatprep.subr.bf16.mxu0 %v14227_v28 }
0x1850   : > { %10341 = vmatpush1.bf16.msra.mxu1 %v14222_v3 }
0x1851   : > { %10394 = vmatpush1.bf16.msra.mxu0 %v14225_v62  ;;  %10342 = vmatprep.subr.bf16.mxu1 %v14230_v8 }
0x1852   : > { %10395 = vmatprep.subr.bf16.mxu0 %v14233_v50 }
0x1854   : > { %10343 = vmatpush1.bf16.msra.mxu1 %v14228_v55 }
0x1855   : > { %10396 = vmatpush1.bf16.msra.mxu0 %v14231_v31  ;;  %10344 = vmatprep.subr.bf16.mxu1 %v14236_v63  ;;  %v14248_v63 = vld [vmem:[%s15894_s6 + $0x1c4] ss:$16 sps:$4 sm:$0xff]  }
0x1856   : > { %10397 = vmatprep.subr.bf16.mxu0 %v14239_v17  ;;  %v14251_v17 = vld [vmem:[%s15894_s6 + $0x3c4] ss:$16 sps:$4 sm:$0xff]  }
0x1858   : > { %10345 = vmatpush1.bf16.msra.mxu1 %v14234_v61  ;;  %v14246_v61 = vld [vmem:[%s15894_s6 + $0x1c0] ss:$16 sps:$4 sm:$0xff]  }
0x1859   : > { %10398 = vmatpush1.bf16.msra.mxu0 %v14237_v6  ;;  %10346 = vmatprep.subr.bf16.mxu1 %v14242_v20  ;;  %v14249_v6 = vld [vmem:[%s15894_s6 + $0x3c0] ss:$16 sps:$4 sm:$0xff]   ;;  %v14254_v20 = vld [vmem:[%s15894_s6 + $0x1a4] ss:$16 sps:$4 sm:$0xff]  }
0x185a   : > { %10399 = vmatprep.subr.bf16.mxu0 %v14245_v35  ;;  %v14257_v35 = vld [vmem:[%s15894_s6 + $0x3a4] ss:$16 sps:$4 sm:$0xff]  }
0x185c   : > { %10347 = vmatpush2.bf16.msra.mxu1 %v14240_v41  ;;  %v14252_v41 = vld [vmem:[%s15894_s6 + $0x1a0] ss:$16 sps:$4 sm:$0xff]  }
0x185d   : > { %10400 = vmatpush2.bf16.msra.mxu0 %v14243_v12  ;;  %10348 = vmatprep.subr.bf16.mxu1 %v14248_v63  ;;  %v14255_v12 = vld [vmem:[%s15894_s6 + $0x3a0] ss:$16 sps:$4 sm:$0xff]  }
0x185e   : > { %10401 = vmatprep.subr.bf16.mxu0 %v14251_v17 }
0x1860   : > { %10349 = vmatpush2.bf16.msra.mxu1 %v14246_v61 }
0x1861   : > { %10402 = vmatpush2.bf16.msra.mxu0 %v14249_v6  ;;  %10350 = vmatprep.subr.bf16.mxu1 %v14254_v20 }
0x1862   : > { %10403 = vmatprep.subr.bf16.mxu0 %v14257_v35 }
0x1864   : > { %10351 = vmatpush2.bf16.msra.mxu1 %v14252_v41 }
0x1865   : > { %10404 = vmatpush2.bf16.msra.mxu0 %v14255_v12 }
0x18c0   : > { %v9358_v51 = vpop.xlane.xlu0 %9357 }
0x18c1   : > { %v9374_v18 = vmul.f32 0.001953125, %v9358_v51  ;;  %v14260_v51 = vld [vmem:[%s15894_s6 + $0x184] ss:$16 sps:$4 sm:$0xff]  }
0x18c2   : > { %10352 = vmatprep.subr.bf16.mxu1 %v14260_v51 }
0x18c3   : > { %v17684_v10 = vsub.f32 %v17587_v21, %v9374_v18  ;;  %v17687_v22 = vsub.f32 %v17589_v49, %v9374_v18  ;;  %v17690_v58 = vsub.f32 %v17595_v52, %v9374_v18  ;;  %v17693_v42 = vsub.f32 %v17599_v16, %v9374_v18  ;;  %v14263_v18 = vld [vmem:[%s15894_s6 + $0x384] ss:$16 sps:$4 sm:$0xff]  }
0x18c4   : > { %10405 = vmatprep.subr.bf16.mxu0 %v14263_v18 }
0x18c5   : > { %v9363_v4 = vpop.xlane.xlu1 %9362  ;;  %v9394_v53 = vmul.f32 %v17684_v10, %v17684_v10  ;;  %v9395_v45 = vmul.f32 %v17687_v22, %v17687_v22  ;;  %v9396_v21 = vmul.f32 %v17690_v58, %v17690_v58  ;;  %v9397_v24 = vmul.f32 %v17693_v42, %v17693_v42 }
0x18c6   : > { %v9375_v5 = vmul.f32 0.001953125, %v9363_v4  ;;  %v14258_v4 = vld [vmem:[%s15894_s6 + $0x180] ss:$16 sps:$4 sm:$0xff]  }
0x18c7   : > { %v9410_v34 = vadd.f32 %v9395_v45, %v9394_v53  ;;  %v14261_v53 = vld [vmem:[%s15894_s6 + $0x380] ss:$16 sps:$4 sm:$0xff]   ;;  %10353 = vmatpush2.bf16.msra.mxu1 %v14258_v4  ;;  %v14266_v45 = vld [vmem:[%s15894_s6 + $0x164] ss:$16 sps:$4 sm:$0xff]  }
0x18c8   : > { %v17702_v49 = vsub.f32 %v17605_v1, %v9375_v5  ;;  %v17705_v52 = vsub.f32 %v17607_v39, %v9375_v5  ;;  %v9368_v40 = vpop.xlane.xlu0 %9367  ;;  %v17708_v16 = vsub.f32 %v17611_v0, %v9375_v5  ;;  %v17713_v9 = vsub.f32 %v17620_v33, %v9375_v5  ;;  %10406 = vmatpush2.bf16.msra.mxu0 %v14261_v53  ;;  %v14269_v5 = vld [vmem:[%s15894_s6 + $0x364] ss:$16 sps:$4 sm:$0xff]  }
0x18c9   : > { %v9376_v36 = vmul.f32 0.001953125, %v9368_v40  ;;  %v9411_v46 = vadd.f32 %v9410_v34, %v9396_v21  ;;  %v14264_v21 = vld [vmem:[%s15894_s6 + $0x160] ss:$16 sps:$4 sm:$0xff]   ;;  %10354 = vmatprep.subr.bf16.mxu1 %v14266_v45  ;;  %10407 = vmatprep.subr.bf16.mxu0 %v14269_v5 }
0x18ca   : > { %v9398_v2 = vmul.f32 %v17702_v49, %v17702_v49  ;;  %v9399_v1 = vmul.f32 %v17705_v52, %v17705_v52  ;;  %v9400_v33 = vmul.f32 %v17708_v16, %v17708_v16  ;;  %v14267_v34 = vld [vmem:[%s15894_s6 + $0x360] ss:$16 sps:$4 sm:$0xff]  }
0x18cb   : > { %v17720_v39 = vsub.f32 %v17615_v48, %v9376_v36  ;;  %v17723_v0 = vsub.f32 %v17617_v11, %v9376_v36  ;;  %v9412_v7 = vadd.f32 %v9411_v46, %v9397_v24  ;;  %v17726_v25 = vsub.f32 %v17625_v54, %v9376_v36  ;;  %10355 = vmatpush2.bf16.msra.mxu1 %v14264_v21  ;;  %v14270_v40 = vld [vmem:[%s15894_s6 + $0x140] ss:$16 sps:$4 sm:$0xff]   ;;  %v14275_v46 = vld [vmem:[%s15894_s6 + $0x344] ss:$16 sps:$4 sm:$0xff]  }
0x18cc   : > { %v9415_v13 = vadd.f32 %v9399_v1, %v9398_v2  ;;  %v9373_v29 = vpop.xlane.xlu1 %9372  ;;  %v17731_v43 = vsub.f32 %v17631_v44, %v9376_v36  ;;  %v9401_v54 = vmul.f32 %v17713_v9, %v17713_v9  ;;  %10408 = vmatpush2.bf16.msra.mxu0 %v14267_v34  ;;  %v14272_v36 = vld [vmem:[%s15894_s6 + $0x144] ss:$16 sps:$4 sm:$0xff]   ;;  %v14273_v24 = vld [vmem:[%s15894_s6 + $0x340] ss:$16 sps:$4 sm:$0xff]  }
0x18cd   : > { %9413 = vadd.xlane.f32.xlu0 %v9412_v7  ;;  %v9402_v48 = vmul.f32 %v17720_v39, %v17720_v39  ;;  %v9403_v11 = vmul.f32 %v17723_v0, %v17723_v0  ;;  %v9377_v26 = vmul.f32 0.001953125, %v9373_v29  ;;  %v9404_v60 = vmul.f32 %v17726_v25, %v17726_v25  ;;  %v14278_v2 = vld [vmem:[%s15894_s6 + $0x124] ss:$16 sps:$4 sm:$0xff]   ;;  %10356 = vmatprep.subr.bf16.mxu1 %v14272_v36  ;;  %v14276_v7 = vld [vmem:[%s15894_s6 + $0x120] ss:$16 sps:$4 sm:$0xff]  }
0x18ce   : > { %v9416_v56 = vadd.f32 %v9415_v13, %v9400_v33  ;;  %v9405_v28 = vmul.f32 %v17731_v43, %v17731_v43  ;;  %v14281_v1 = vld [vmem:[%s15894_s6 + $0x324] ss:$16 sps:$4 sm:$0xff]   ;;  %10409 = vmatprep.subr.bf16.mxu0 %v14275_v46  ;;  %v14279_v33 = vld [vmem:[%s15894_s6 + $0x320] ss:$16 sps:$4 sm:$0xff]  }
0x18cf   : > { %v9420_v27 = vadd.f32 %v9403_v11, %v9402_v48  ;;  %v17742_v57 = vsub.f32 %v17634_v47, %v9377_v26  ;;  %v17745_v44 = vsub.f32 %v17636_v23, %v9377_v26  ;;  %v17748_v38 = vsub.f32 %v17639_v14, %v9377_v26  ;;  %10357 = vmatpush2.bf16.msra.mxu1 %v14270_v40  ;;  %v14284_v13 = vld [vmem:[%s15894_s6 + $0x104] ss:$16 sps:$4 sm:$0xff]   ;;  %v14282_v48 = vld [vmem:[%s15894_s6 + $0x100] ss:$16 sps:$4 sm:$0xff]  }
0x18d0   : > { %v9417_v59 = vadd.f32 %v9416_v56, %v9401_v54  ;;  %v17753_v62 = vsub.f32 %v17643_v15, %v9377_v26  ;;  %10410 = vmatpush2.bf16.msra.mxu0 %v14273_v24  ;;  %10358 = vmatprep.subr.bf16.mxu1 %v14278_v2  ;;  %v14287_v29 = vld [vmem:[%s15894_s6 + $0x304] ss:$16 sps:$4 sm:$0xff]   ;;  %v14285_v11 = vld [vmem:[%s15894_s6 + $0x300] ss:$16 sps:$4 sm:$0xff]   ;;  %v14290_v26 = vld [vmem:[%s15894_s6 + $0xec] ss:$16 sps:$4 sm:$0xff]  }
0x18d1   : > { %v9421_v3 = vadd.f32 %v9420_v27, %v9404_v60  ;;  %v9406_v47 = vmul.f32 %v17742_v57, %v17742_v57  ;;  %v9407_v23 = vmul.f32 %v17745_v44, %v17745_v44  ;;  %v9408_v14 = vmul.f32 %v17748_v38, %v17748_v38  ;;  %10411 = vmatprep.subr.bf16.mxu0 %v14281_v1  ;;  %v14293_v54 = vld [vmem:[%s15894_s6 + $0x2ec] ss:$16 sps:$4 sm:$0xff]  }
0x18d2   : > { %9418 = vadd.xlane.f32.xlu1 %v9417_v59  ;;  %v9409_v15 = vmul.f32 %v17753_v62, %v17753_v62 }
0x18d3   : > { %v9422_v8 = vadd.f32 %v9421_v3, %v9405_v28  ;;  %v9425_v50 = vadd.f32 %v9407_v23, %v9406_v47  ;;  %10359 = vmatpush2.bf16.msra.mxu1 %v14276_v7 }
0x18d4   : > { %10412 = vmatpush2.bf16.msra.mxu0 %v14279_v33  ;;  %10360 = vmatprep.subr.bf16.mxu1 %v14284_v13 }
0x18d5   : > { %9423 = vadd.xlane.f32.xlu0 %v9422_v8  ;;  %v9426_v55 = vadd.f32 %v9425_v50, %v9408_v14  ;;  %10413 = vmatprep.subr.bf16.mxu0 %v14287_v29 }
0x18d7   : > { %v9427_v31 = vadd.f32 %v9426_v55, %v9409_v15  ;;  %10361 = vmatpush2.bf16.msra.mxu1 %v14282_v48  ;;  %v9352_v15 = vld [vmem:[%s18296_s12] sm:$0xf]  ;;  %s18304_s12 = sld [smem:[#allocation69_spill]] }
0x18d8   : > { %10414 = vmatpush2.bf16.msra.mxu0 %v14285_v11  ;;  %10436 = vmatprep.subr.bf16.mxu1 %v14290_v26  ;;  %v17798_v63 = vrot.slane %v9352_v15, %v18292_v19  ;;  %v17801_v17 = vrot.slane %v9352_v15, %v18291_v37  ;;  %v17804_v61 = vrot.slane %v9352_v15, %v18294_v30 }
0x18d9   : > { %9428 = vadd.xlane.f32.xlu1 %v9427_v31  ;;  %10489 = vmatprep.subr.bf16.mxu0 %v14293_v54  ;;  %v9353_v31 = vld [vmem:[%s18297_s18] sm:$0xf]  ;;  %v17807_v20 = vrot.slane %v9352_v15, %v18293_v32 }
0x18da   : > { %v17814_v18 = vrot.slane %v9353_v31, %v18292_v19  ;;  %v17817_v4 = vrot.slane %v9353_v31, %v18291_v37  ;;  %v9511_v5 = vrot.slane %v9353_v31, %v18294_v30 }
0x18dd   : > { %s1442_s18 = scalar_lea.vmem %s18304_s12, %s12717_s25 }
0x1956   : > { %v9414_v56 = vpop.xlane.xlu0 %9413 }
0x1957   : > { %v9430_v60 = vmul.f32 0.001953125, %v9414_v56 }
0x1959   : > { %v9434_v27 = vadd.f32 1e-05, %v9430_v60 }
0x195b   : > { %14496 = vrsqrt.f32 %v9434_v27  ;;  %v9419_v59 = vpop.xlane.xlu1 %9418 }
0x195c   : > { %v9431_v28 = vmul.f32 0.001953125, %v9419_v59  ;;  %v14288_v59 = vld [vmem:[%s15894_s6 + $0xe8] ss:$16 sps:$4 sm:$0xff]  }
0x195e   : > { %v9435_v3 = vadd.f32 1e-05, %v9431_v28  ;;  %v9424_v47 = vpop.xlane.xlu0 %9423  ;;  %v14291_v28 = vld [vmem:[%s15894_s6 + $0x2e8] ss:$16 sps:$4 sm:$0xff]  }
0x195f   : > { %v9432_v23 = vmul.f32 0.001953125, %v9424_v47  ;;  %v14296_v47 = vld [vmem:[%s15894_s6 + $0xcc] ss:$16 sps:$4 sm:$0xff]  }
0x1960   : > { %14498 = vrsqrt.f32 %v9435_v3 }
0x1961   : > { %v9436_v8 = vadd.f32 1e-05, %v9432_v23 }
0x1962   : > { %v9429_v14 = vpop.xlane.xlu1 %9428 }
0x1963   : > { %14500 = vrsqrt.f32 %v9436_v8  ;;  %v9433_v50 = vmul.f32 0.001953125, %v9429_v14 }
0x1965   : > { %v9437_v55 = vadd.f32 1e-05, %v9433_v50 }
0x1967   : > { %14502 = vrsqrt.f32 %v9437_v55 }
0x1968   : > { %v14497_v6 = vpop.eup %14496 }
0x1969   : > { %v9443_v35 = vmul.f32 %v14497_v6, %v17687_v22  ;;  %v9445_v41 = vmul.f32 %v14497_v6, %v17693_v42  ;;  %v9442_v12 = vmul.f32 %v14497_v6, %v17684_v10  ;;  %v9444_v51 = vmul.f32 %v14497_v6, %v17690_v58  ;;  %v14294_v6 = vld [vmem:[%s15894_s6 + $0xc8] ss:$16 sps:$4 sm:$0xff]  }
0x196a   : > { %v17824_v42 = vrot.slane %v9353_v31, %v18293_v32 }
0x196b   : > { %v9480_v53 = vmul.f32 %v17801_v17, %v9443_v35  ;;  %v9482_v45 = vmul.f32 %v17804_v61, %v9445_v41  ;;  %v9479_v22 = vmul.f32 %v17798_v63, %v9442_v12  ;;  %v9481_v10 = vmul.f32 %v17807_v20, %v9444_v51  ;;  %v14297_v35 = vld [vmem:[%s15894_s6 + $0x2c8] ss:$16 sps:$4 sm:$0xff]   ;;  %v14305_v51 = vld [vmem:[%s15894_s6 + $0x2ac] ss:$16 sps:$4 sm:$0xff]  }
0x196d   : > { %v14499_v21 = vpop.eup %14498  ;;  %v9517_v24 = vadd.f32 %v17817_v4, %v9480_v53  ;;  %v9519_v46 = vadd.f32 %v9511_v5, %v9482_v45  ;;  %v9516_v2 = vadd.f32 %v17814_v18, %v9479_v22 }
0x196e   : > { %v9447_v58 = vmul.f32 %v14499_v21, %v17705_v52  ;;  %v9449_v34 = vmul.f32 %v14499_v21, %v17713_v9  ;;  %v9446_v40 = vmul.f32 %v14499_v21, %v17702_v49  ;;  %v9448_v36 = vmul.f32 %v14499_v21, %v17708_v16 }
0x196f   : > { %v9518_v49 = vadd.f32 %v17824_v42, %v9481_v10 }
0x1970   : > { %v14501_v1 = vpop.eup %14500  ;;  %v9484_v7 = vmul.f32 %v17801_v17, %v9447_v58  ;;  %v9486_v33 = vmul.f32 %v17804_v61, %v9449_v34  ;;  %v9483_v52 = vmul.f32 %v17798_v63, %v9446_v40  ;;  %v9485_v9 = vmul.f32 %v17807_v20, %v9448_v36  ;;  %v14311_v34 = vld [vmem:[%s15894_s6 + $0x28c] ss:$16 sps:$4 sm:$0xff]   ;;  %v14306_v40 = vld [vmem:[%s15894_s6 + $0x88] ss:$16 sps:$4 sm:$0xff]  }
0x1971   : > { %v9451_v16 = vmul.f32 %v14501_v1, %v17723_v0  ;;  %v9453_v13 = vmul.f32 %v14501_v1, %v17731_v43  ;;  %v9450_v29 = vmul.f32 %v14501_v1, %v17720_v39  ;;  %v9452_v56 = vmul.f32 %v14501_v1, %v17726_v25  ;;  %v14299_v39 = vld [vmem:[%s15894_s6 + $0x2cc] ss:$16 sps:$4 sm:$0xff]   ;;  %v14309_v36 = vld [vmem:[%s15894_s6 + $0x288] ss:$16 sps:$4 sm:$0xff]  }
0x1972   : > { %v9521_v48 = vadd.f32 %v17817_v4, %v9484_v7  ;;  %v9523_v11 = vadd.f32 %v9511_v5, %v9486_v33  ;;  %v9520_v26 = vadd.f32 %v17814_v18, %v9483_v52  ;;  %v9522_v54 = vadd.f32 %v17824_v42, %v9485_v9  ;;  %v14315_v1 = vld [vmem:[%s15894_s6 + $0x268] ss:$16 sps:$4 sm:$0xff]   ;;  %v14320_v7 = vld [vmem:[%s15894_s6 + $0x4c] ss:$16 sps:$4 sm:$0xff]  }
0x1973   : > { %v9488_v23 = vmul.f32 %v17801_v17, %v9451_v16  ;;  %v9490_v8 = vmul.f32 %v17804_v61, %v9453_v13  ;;  %v9487_v14 = vmul.f32 %v17798_v63, %v9450_v29  ;;  %v9489_v31 = vmul.f32 %v17807_v20, %v9452_v56  ;;  %v14323_v33 = vld [vmem:[%s15894_s6 + $0x24c] ss:$16 sps:$4 sm:$0xff]   ;;  %v14318_v52 = vld [vmem:[%s15894_s6 + $0x48] ss:$16 sps:$4 sm:$0xff]  }
0x1974   : > { %v9533_v60 = vpack.c.bf16 %v9521_v48, %v9517_v24  ;;  %v9535_v27 = vpack.c.bf16 %v9523_v11, %v9519_v46  ;;  %v17847_v3 = vpack.c.bf16 %v9520_v26, %v9516_v2  ;;  %v17849_v0 = vpack.c.bf16 %v9522_v54, %v9518_v49  ;;  %v14503_v43 = vpop.eup %14502  ;;  %v14314_v24 = vld [vmem:[%s15894_s6 + $0x6c] ss:$16 sps:$4 sm:$0xff]   ;;  %v14312_v2 = vld [vmem:[%s15894_s6 + $0x68] ss:$16 sps:$4 sm:$0xff]  }
0x1975   : > { %v9455_v25 = vmul.f32 %v14503_v43, %v17745_v44  ;;  %v9457_v50 = vmul.f32 %v14503_v43, %v17753_v62  ;;  %v9454_v15 = vmul.f32 %v14503_v43, %v17742_v57  ;;  %v9456_v55 = vmul.f32 %v14503_v43, %v17748_v38  ;;  %v14302_v38 = vld [vmem:[%s15894_s6 + $0xac] ss:$16 sps:$4 sm:$0xff]   ;;  %v14321_v9 = vld [vmem:[%s15894_s6 + $0x248] ss:$16 sps:$4 sm:$0xff]  }
0x1976   : > { %10362 = vmatprep.mubr.bf16.mxu1 %v9533_v60  ;;  %10415 = vmatprep.mubr.bf16.mxu0 %v9535_v27  ;;  %v9525_v41 = vadd.f32 %v17817_v4, %v9488_v23  ;;  %v9527_v12 = vadd.f32 %v9511_v5, %v9490_v8  ;;  %v14317_v46 = vld [vmem:[%s15894_s6 + $0x26c] ss:$16 sps:$4 sm:$0xff]   ;;  %v14324_v13 = vld [vmem:[%s15894_s6 + $0x28] ss:$16 sps:$4 sm:$0xff]  }
0x1977   : > { %10363 = vmatmul.mubr.bf16.vlgmr.msra.gmra.mxu1 %v17847_v3  ;;  %10416 = vmatmul.mubr.bf16.vlgmr.msra.gmra.mxu0 %v17849_v0  ;;  %v9492_v44 = vmul.f32 %v17801_v17, %v9455_v25  ;;  %v9494_v62 = vmul.f32 %v17804_v61, %v9457_v50  ;;  %v9491_v57 = vmul.f32 %v17798_v63, %v9454_v15  ;;  %v14326_v49 = vld [vmem:[%s15894_s6 + $0x2c] ss:$16 sps:$4 sm:$0xff]   ;;  %v14327_v29 = vld [vmem:[%s15894_s6 + $0x228] ss:$16 sps:$4 sm:$0xff]  }
0x1978   : > { %10437 = vmatpush1.bf16.msra.mxu1 %v14288_v59  ;;  %10490 = vmatpush1.bf16.msra.mxu0 %v14291_v28  ;;  %v9493_v53 = vmul.f32 %v17807_v20, %v9456_v55  ;;  %v9524_v17 = vadd.f32 %v17814_v18, %v9487_v14  ;;  %v9526_v63 = vadd.f32 %v17824_v42, %v9489_v31  ;;  %v14300_v20 = vld [vmem:[%s15894_s6 + $0xa8] ss:$16 sps:$4 sm:$0xff]   ;;  %v14329_v16 = vld [vmem:[%s15894_s6 + $0x22c] ss:$16 sps:$4 sm:$0xff]  }
0x1979   : > { %10438 = vmatprep.subr.bf16.mxu1 %v14296_v47  ;;  %10491 = vmatprep.subr.bf16.mxu0 %v14299_v39  ;;  %v9529_v45 = vadd.f32 %v17817_v4, %v9492_v44  ;;  %v9531_v22 = vadd.f32 %v9511_v5, %v9494_v62  ;;  %v9528_v61 = vadd.f32 %v17814_v18, %v9491_v57  ;;  %v14303_v4 = vld [vmem:[%s15894_s6 + $0x2a8] ss:$16 sps:$4 sm:$0xff]   ;;  %v14332_v48 = vld [vmem:[%s15894_s6 + $0xc] ss:$16 sps:$4 sm:$0xff]  }
0x197a   : > { %v9530_v21 = vadd.f32 %v17824_v42, %v9493_v53  ;;  %v14308_v42 = vld [vmem:[%s15894_s6 + $0x8c] ss:$16 sps:$4 sm:$0xff]   ;;  %v14330_v26 = vld [vmem:[%s15894_s6 + $0x8] ss:$16 sps:$4 sm:$0xff]  }
0x197b   : > { %v17877_v10 = vpack.c.bf16 %v9529_v45, %v9525_v41  ;;  %v17879_v58 = vpack.c.bf16 %v9531_v22, %v9527_v12  ;;  %v17883_v5 = vpack.c.bf16 %v9528_v61, %v9524_v17  ;;  %v14335_v11 = vld [vmem:[%s15894_s6 + $0x20c] ss:$16 sps:$4 sm:$0xff]   ;;  %v14333_v54 = vld [vmem:[%s15894_s6 + $0x208] ss:$16 sps:$4 sm:$0xff]  }
0x197c   : > { %10439 = vmatpush1.bf16.msra.mxu1 %v14294_v6  ;;  %10492 = vmatpush1.bf16.msra.mxu0 %v14297_v35  ;;  %v17885_v18 = vpack.c.bf16 %v9530_v21, %v9526_v63  ;;  %v14338_v56 = vld [vmem:[%s15894_s6 + $0x1ec] ss:$16 sps:$4 sm:$0xff]   ;;  %v14339_v59 = vld [vmem:[%s15894_s6 + $0x3e8] ss:$16 sps:$4 sm:$0xff]  }
0x197d   : > { %10440 = vmatprep.subr.bf16.mxu1 %v14302_v38  ;;  %10493 = vmatprep.subr.bf16.mxu0 %v14305_v51  ;;  %v14344_v28 = vld [vmem:[%s15894_s6 + $0x1cc] ss:$16 sps:$4 sm:$0xff]   ;;  %v14342_v47 = vld [vmem:[%s15894_s6 + $0x1c8] ss:$16 sps:$4 sm:$0xff]  }
0x197e   : > { %10372 = vmatprep.mubr.bf16.mxu1 %v17877_v10  ;;  %10425 = vmatprep.mubr.bf16.mxu0 %v17879_v58  ;;  %v14347_v43 = vld [vmem:[%s15894_s6 + $0x3cc] ss:$16 sps:$4 sm:$0xff]   ;;  %v14345_v39 = vld [vmem:[%s15894_s6 + $0x3c8] ss:$16 sps:$4 sm:$0xff]  }
0x197f   : > { %10373 = vmatmul.mubr.bf16.gmra.mxu1 %v17883_v5  ;;  %10426 = vmatmul.mubr.bf16.gmra.mxu0 %v17885_v18  ;;  %v14350_v23 = vld [vmem:[%s15894_s6 + $0x1ac] ss:$16 sps:$4 sm:$0xff]   ;;  %v14348_v14 = vld [vmem:[%s15894_s6 + $0x1a8] ss:$16 sps:$4 sm:$0xff]  }
0x1980   : > { %10441 = vmatpush1.bf16.msra.mxu1 %v14300_v20  ;;  %10494 = vmatpush1.bf16.msra.mxu0 %v14303_v4  ;;  %v14353_v8 = vld [vmem:[%s15894_s6 + $0x3ac] ss:$16 sps:$4 sm:$0xff]   ;;  %v14351_v25 = vld [vmem:[%s15894_s6 + $0x3a8] ss:$16 sps:$4 sm:$0xff]  }
0x1981   : > { %10468 = vmatprep.mubr.bf16.mxu1 %v9533_v60  ;;  %10521 = vmatprep.mubr.bf16.mxu0 %v9535_v27  ;;  %v14341_v60 = vld [vmem:[%s15894_s6 + $0x3ec] ss:$16 sps:$4 sm:$0xff]   ;;  %v14336_v27 = vld [vmem:[%s15894_s6 + $0x1e8] ss:$16 sps:$4 sm:$0xff]  }
0x1982   : > { %10442 = vmatprep.subr.bf16.mxu1 %v14308_v42  ;;  %10495 = vmatprep.subr.bf16.mxu0 %v14311_v34  ;;  %v14356_v50 = vld [vmem:[%s15894_s6 + $0x18c] ss:$16 sps:$4 sm:$0xff]   ;;  %v14354_v55 = vld [vmem:[%s15894_s6 + $0x188] ss:$16 sps:$4 sm:$0xff]  }
0x1983   : > { %v14359_v15 = vld [vmem:[%s15894_s6 + $0x38c] ss:$16 sps:$4 sm:$0xff]   ;;  %v14357_v31 = vld [vmem:[%s15894_s6 + $0x388] ss:$16 sps:$4 sm:$0xff]  }
0x1984   : > { %10443 = vmatpush1.bf16.msra.mxu1 %v14306_v40  ;;  %10496 = vmatpush1.bf16.msra.mxu0 %v14309_v36  ;;  %v14362_v6 = vld [vmem:[%s15894_s6 + $0x16c] ss:$16 sps:$4 sm:$0xff]   ;;  %v14360_v44 = vld [vmem:[%s15894_s6 + $0x168] ss:$16 sps:$4 sm:$0xff]  }
0x1985   : > { %10444 = vmatprep.subr.bf16.mxu1 %v14314_v24  ;;  %10497 = vmatprep.subr.bf16.mxu0 %v14317_v46  ;;  %v14365_v35 = vld [vmem:[%s15894_s6 + $0x36c] ss:$16 sps:$4 sm:$0xff]   ;;  %v14363_v62 = vld [vmem:[%s15894_s6 + $0x368] ss:$16 sps:$4 sm:$0xff]  }
0x1986   : > { %v14368_v57 = vld [vmem:[%s15894_s6 + $0x14c] ss:$16 sps:$4 sm:$0xff]   ;;  %v14366_v12 = vld [vmem:[%s15894_s6 + $0x148] ss:$16 sps:$4 sm:$0xff]  }
0x1987   : > { %v14371_v41 = vld [vmem:[%s15894_s6 + $0x34c] ss:$16 sps:$4 sm:$0xff]   ;;  %v14369_v38 = vld [vmem:[%s15894_s6 + $0x348] ss:$16 sps:$4 sm:$0xff]  }
0x1988   : > { %10445 = vmatpush1.bf16.msra.mxu1 %v14312_v2  ;;  %10498 = vmatpush1.bf16.msra.mxu0 %v14315_v1  ;;  %v14374_v51 = vld [vmem:[%s15894_s6 + $0x12c] ss:$16 sps:$4 sm:$0xff]   ;;  %v14372_v45 = vld [vmem:[%s15894_s6 + $0x128] ss:$16 sps:$4 sm:$0xff]  }
0x1989   : > { %10446 = vmatprep.subr.bf16.mxu1 %v14320_v7  ;;  %10499 = vmatprep.subr.bf16.mxu0 %v14323_v33  ;;  %v14377_v53 = vld [vmem:[%s15894_s6 + $0x32c] ss:$16 sps:$4 sm:$0xff]   ;;  %v14375_v22 = vld [vmem:[%s15894_s6 + $0x328] ss:$16 sps:$4 sm:$0xff]  }
0x198a   : > { %v14380_v17 = vld [vmem:[%s15894_s6 + $0x10c] ss:$16 sps:$4 sm:$0xff]   ;;  %v14378_v63 = vld [vmem:[%s15894_s6 + $0x108] ss:$16 sps:$4 sm:$0xff]  }
0x198b   : > { %v14383_v61 = vld [vmem:[%s15894_s6 + $0x30c] ss:$16 sps:$4 sm:$0xff]   ;;  %v14381_v21 = vld [vmem:[%s15894_s6 + $0x308] ss:$16 sps:$4 sm:$0xff]   ;;  %s18299_s6 = sld [smem:[#allocation66_spill]] }
0x198c   : > { %10447 = vmatpush1.bf16.msra.mxu1 %v14318_v52  ;;  %10500 = vmatpush1.bf16.msra.mxu0 %v14321_v9 }
0x198d   : > { %10448 = vmatprep.subr.bf16.mxu1 %v14326_v49  ;;  %10501 = vmatprep.subr.bf16.mxu0 %v14329_v16 }
0x1990   : > { %10449 = vmatpush1.bf16.msra.mxu1 %v14324_v13  ;;  %10502 = vmatpush1.bf16.msra.mxu0 %v14327_v29 }
0x1991   : > { %10450 = vmatprep.subr.bf16.mxu1 %v14332_v48  ;;  %10503 = vmatprep.subr.bf16.mxu0 %v14335_v11  ;;  %s18039_s28 = scalar_lea.vmem %s18299_s6, %s12716_s14 }
0x1994   : > { %10451 = vmatpush1.bf16.msra.mxu1 %v14330_v26  ;;  %10504 = vmatpush1.bf16.msra.mxu0 %v14333_v54 }
0x1995   : > { %10452 = vmatprep.subr.bf16.mxu1 %v14338_v56  ;;  %10505 = vmatprep.subr.bf16.mxu0 %v14341_v60 }
0x1998   : > { %10453 = vmatpush2.bf16.msra.mxu1 %v14336_v27  ;;  %10506 = vmatpush2.bf16.msra.mxu0 %v14339_v59 }
0x1999   : > { %10454 = vmatprep.subr.bf16.mxu1 %v14344_v28  ;;  %10507 = vmatprep.subr.bf16.mxu0 %v14347_v43 }
0x199c   : > { %10455 = vmatpush2.bf16.msra.mxu1 %v14342_v47  ;;  %10508 = vmatpush2.bf16.msra.mxu0 %v14345_v39 }
0x199d   : > { %10456 = vmatprep.subr.bf16.mxu1 %v14350_v23  ;;  %10509 = vmatprep.subr.bf16.mxu0 %v14353_v8 }
0x19a0   : > { %10457 = vmatpush2.bf16.msra.mxu1 %v14348_v14  ;;  %10510 = vmatpush2.bf16.msra.mxu0 %v14351_v25 }
0x19a1   : > { %10458 = vmatprep.subr.bf16.mxu1 %v14356_v50  ;;  %10511 = vmatprep.subr.bf16.mxu0 %v14359_v15 }
0x19a4   : > { %10459 = vmatpush2.bf16.msra.mxu1 %v14354_v55  ;;  %10512 = vmatpush2.bf16.msra.mxu0 %v14357_v31 }
0x19a5   : > { %10460 = vmatprep.subr.bf16.mxu1 %v14362_v6  ;;  %10513 = vmatprep.subr.bf16.mxu0 %v14365_v35 }
0x19a8   : > { %10461 = vmatpush2.bf16.msra.mxu1 %v14360_v44  ;;  %10514 = vmatpush2.bf16.msra.mxu0 %v14363_v62 }
0x19a9   : > { %10462 = vmatprep.subr.bf16.mxu1 %v14368_v57  ;;  %10515 = vmatprep.subr.bf16.mxu0 %v14371_v41 }
0x19ac   : > { %10463 = vmatpush2.bf16.msra.mxu1 %v14366_v12  ;;  %10516 = vmatpush2.bf16.msra.mxu0 %v14369_v38 }
0x19ad   : > { %10464 = vmatprep.subr.bf16.mxu1 %v14374_v51  ;;  %10517 = vmatprep.subr.bf16.mxu0 %v14377_v53 }
0x19b0   : > { %10465 = vmatpush2.bf16.msra.mxu1 %v14372_v45  ;;  %10518 = vmatpush2.bf16.msra.mxu0 %v14375_v22 }
0x19b1   : > { %10466 = vmatprep.subr.bf16.mxu1 %v14380_v17  ;;  %10519 = vmatprep.subr.bf16.mxu0 %v14383_v61 }
0x19b4   : > { %10467 = vmatpush2.bf16.msra.mxu1 %v14378_v63  ;;  %10520 = vmatpush2.bf16.msra.mxu0 %v14381_v21 }
0x19b7   : > { %10469 = vmatmul.mubr.bf16.vlgmr.msra.gmra.mxu1 %v17847_v3  ;;  %10522 = vmatmul.mubr.bf16.vlgmr.msra.gmra.mxu0 %v17849_v0  ;;  %v9668_v0 = vld [vmem:[%s18298_s8] sm:$0xf] }
0x19b8   : > { %10478 = vmatprep.mubr.bf16.mxu1 %v17877_v10  ;;  %10531 = vmatprep.mubr.bf16.mxu0 %v17879_v58  ;;  %v9677_v58 = vrot.slane %v9668_v0, %v18291_v37  ;;  %v9681_v9 = vrot.slane %v9668_v0, %v18293_v32  ;;  %v9685_v48 = vrot.slane %v9668_v0, %v18294_v30 }
0x19bf   : > { %10479 = vmatmul.mubr.bf16.gmra.mxu1 %v17883_v5  ;;  %10532 = vmatmul.mubr.bf16.gmra.mxu0 %v17885_v18  ;;  %v9673_v5 = vrot.slane %v9668_v0, %v18292_v19 }
0x1a37   : > { %v10364_v20 = vpop.f32.mrf.mxu1  ;;  %v10417_v4 = vpop.f32.mrf.mxu0 }
0x1a38   : > { %v10365_v52 = vadd.f32 %v10364_v20, %v9673_v5 }
0x1a39   : > { %v10366_v42 = vpop.f32.mrf.mxu1  ;;  %v10419_v34 = vpop.f32.mrf.mxu0 }
0x1a3a   : > { %v10367_v33 = vadd.f32 %v10366_v42, %v9677_v58  ;;  %v10418_v56 = vadd.f32 %v10417_v4, %v10365_v52 }
0x1a3b   : > { %v10368_v40 = vpop.f32.mrf.mxu1  ;;  %v10421_v36 = vpop.f32.mrf.mxu0 }
0x1a3c   : > { %v17954_v29 = vadd.f32 %v10419_v34, %v10367_v33  ;;  %v10369_v11 = vadd.f32 %v10368_v40, %v9673_v5 }
0x1a3d   : > { %v10370_v24 = vpop.f32.mrf.mxu1  ;;  %v10423_v46 = vpop.f32.mrf.mxu0 }
0x1a3e   : > { %v10371_v49 = vadd.f32 %v10370_v24, %v9677_v58  ;;  %v10544_v47 = vadd.f32 %v17954_v29, %v10418_v56  ;;  %v10422_v8 = vadd.f32 %v10421_v36, %v10369_v11 }
0x1a3f   : > { %v10374_v3 = vpop.f32.mrf.mxu1  ;;  %v10427_v2 = vpop.f32.mrf.mxu0 }
0x1a40   : > { %v17957_v27 = vadd.f32 %v10423_v46, %v10371_v49  ;;  %v10375_v14 = vadd.f32 %v10374_v3, %v9673_v5 }
0x1a41   : > { %v10376_v1 = vpop.f32.mrf.mxu1  ;;  %v10429_v10 = vpop.f32.mrf.mxu0 }
0x1a42   : > { %v10377_v59 = vadd.f32 %v10376_v1, %v9677_v58  ;;  %v10549_v6 = vadd.f32 %v17957_v27, %v10422_v8  ;;  %v10428_v51 = vadd.f32 %v10427_v2, %v10375_v14 }
0x1a43   : > { %v10378_v7 = vpop.f32.mrf.mxu1  ;;  %v10431_v18 = vpop.f32.mrf.mxu0 }
0x1a44   : > { %v17961_v35 = vadd.f32 %v10429_v10, %v10377_v59  ;;  %v10379_v22 = vadd.f32 %v10378_v7, %v9673_v5 }
0x1a45   : > { %v10380_v16 = vpop.f32.mrf.mxu1  ;;  %v10433_v13 = vpop.f32.mrf.mxu0 }
0x1a46   : > { %v10381_v57 = vadd.f32 %v10380_v16, %v9677_v58  ;;  %v10554_v21 = vadd.f32 %v17961_v35, %v10428_v51  ;;  %v10432_v3 = vadd.f32 %v10431_v18, %v10379_v22 }
0x1a48   : > { %v10434_v42 = vadd.f32 %v10433_v13, %v10381_v57 }
0x1a4a   : > { %v10559_v58 = vadd.f32 %v10434_v42, %v10432_v3 }
0x1a77   : > { %v10470_v26 = vpop.f32.mrf.mxu1  ;;  %v10523_v54 = vpop.f32.mrf.mxu0 }
0x1a78   : > { %v10471_v60 = vadd.f32 %v10470_v26, %v9681_v9 }
0x1a79   : > { %v10472_v28 = vpop.f32.mrf.mxu1  ;;  %v10525_v43 = vpop.f32.mrf.mxu0 }
0x1a7a   : > { %v10524_v39 = vadd.f32 %v10523_v54, %v10471_v60  ;;  %v10473_v23 = vadd.f32 %v10472_v28, %v9685_v48 }
0x1a7b   : > { %v10474_v25 = vpop.f32.mrf.mxu1  ;;  %v10527_v50 = vpop.f32.mrf.mxu0 }
0x1a7c   : > { %v10545_v15 = vadd.f32 %v10544_v47, %v10524_v39  ;;  %v10526_v55 = vadd.f32 %v10525_v43, %v10473_v23  ;;  %v10475_v31 = vadd.f32 %v10474_v25, %v9681_v9 }
0x1a7d   : > { %v10476_v44 = vpop.f32.mrf.mxu1  ;;  %v10529_v62 = vpop.f32.mrf.mxu0 }
0x1a7e   : > { %v10528_v41 = vadd.f32 %v10527_v50, %v10475_v31  ;;  %v10477_v12 = vadd.f32 %v10476_v44, %v9685_v48  ;;  %v10546_v38 = vadd.f32 %v10545_v15, %v10526_v55 }
0x1a7f   : > { %v10480_v53 = vpop.f32.mrf.mxu1  ;;  %v10533_v45 = vpop.f32.mrf.mxu0 }
0x1a80   : > { %v10550_v17 = vadd.f32 %v10549_v6, %v10528_v41  ;;  %v10530_v61 = vadd.f32 %v10529_v62, %v10477_v12  ;;  %v10481_v63 = vadd.f32 %v10480_v53, %v9681_v9  ;;  %10547 = vadd.xlane.f32.xlu0 %v10546_v38 }
0x1a81   : > { %v10482_v20 = vpop.f32.mrf.mxu1  ;;  %v10535_v4 = vpop.f32.mrf.mxu0 }
0x1a82   : > { %v10534_v34 = vadd.f32 %v10533_v45, %v10481_v63  ;;  %v10483_v40 = vadd.f32 %v10482_v20, %v9685_v48  ;;  %v10551_v36 = vadd.f32 %v10550_v17, %v10530_v61 }
0x1a83   : > { %v10484_v24 = vpop.f32.mrf.mxu1  ;;  %v10537_v46 = vpop.f32.mrf.mxu0 }
0x1a84   : > { %v10555_v0 = vadd.f32 %v10554_v21, %v10534_v34  ;;  %v10536_v2 = vadd.f32 %v10535_v4, %v10483_v40  ;;  %v10485_v1 = vadd.f32 %v10484_v24, %v9681_v9  ;;  %10552 = vadd.xlane.f32.xlu1 %v10551_v36 }
0x1a85   : > { %v10486_v10 = vpop.f32.mrf.mxu1  ;;  %v10539_v52 = vpop.f32.mrf.mxu0 }
0x1a86   : > { %v10538_v5 = vadd.f32 %v10537_v46, %v10485_v1  ;;  %v10487_v7 = vadd.f32 %v10486_v10, %v9685_v48  ;;  %v10556_v33 = vadd.f32 %v10555_v0, %v10536_v2 }
0x1a88   : > { %v10560_v49 = vadd.f32 %v10559_v58, %v10538_v5  ;;  %v10540_v16 = vadd.f32 %v10539_v52, %v10487_v7  ;;  %10557 = vadd.xlane.f32.xlu0 %v10556_v33  ;;  %v14384_v58 = vld [vmem:[%s18039_s28 + $0x78] sm:$0xff]   ;;  %v14388_v52 = vld [vmem:[%s18039_s28 + $0x70] sm:$0xff]  }
0x1a89   : > { %12782 = vmatprep.subr.bf16.mxu1 %v14384_v58  ;;  %v14386_v7 = vld [vmem:[%s18039_s28 + $0x38] sm:$0xff]  }
0x1a8a   : > { %v10561_v13 = vadd.f32 %v10560_v49, %v10540_v16  ;;  %v14387_v33 = vld [vmem:[%s18039_s28 + $0xb8] sm:$0xff]   ;;  %12783 = vmatpush3.bf16.msra.mxu1 %v14386_v7  ;;  %v14389_v49 = vld [vmem:[%s18039_s28 + $0xf0] sm:$0xff]  }
0x1a8b   : > { %12784 = vmatprep.subr.bf16.mxu1 %v14388_v52 }
0x1a8c   : > { %10562 = vadd.xlane.f32.xlu1 %v10561_v13  ;;  %v14391_v13 = vld [vmem:[%s18039_s28 + $0xb0] sm:$0xff]  }
0x1b09   : > { %v10548_v11 = vpop.xlane.xlu0 %10547 }
0x1b0a   : > { %v10564_v26 = vmul.f32 0.001953125, %v10548_v11  ;;  %v14392_v11 = vld [vmem:[%s18039_s28 + $0x68] sm:$0xff]  }
0x1b0c   : > { %v17964_v54 = vsub.f32 %v10418_v56, %v10564_v26  ;;  %v17967_v18 = vsub.f32 %v17954_v29, %v10564_v26  ;;  %v17969_v9 = vsub.f32 %v10524_v39, %v10564_v26  ;;  %v17971_v59 = vsub.f32 %v10526_v55, %v10564_v26  ;;  %v14393_v26 = vld [vmem:[%s18039_s28 + $0xe8] sm:$0xff]  }
0x1b0d   : > { %v10553_v60 = vpop.xlane.xlu1 %10552 }
0x1b0e   : > { %v10565_v48 = vmul.f32 0.001953125, %v10553_v60  ;;  %v10584_v28 = vmul.f32 %v17964_v54, %v17964_v54  ;;  %v10585_v43 = vmul.f32 %v17967_v18, %v17967_v18  ;;  %v10586_v47 = vmul.f32 %v17969_v9, %v17969_v9  ;;  %v14394_v60 = vld [vmem:[%s18039_s28 + $0x28] sm:$0xff]  }
0x1b0f   : > { %v10587_v25 = vmul.f32 %v17971_v59, %v17971_v59 }
0x1b10   : > { %v17979_v56 = vsub.f32 %v10422_v8, %v10565_v48  ;;  %v17982_v29 = vsub.f32 %v17957_v27, %v10565_v48  ;;  %v10600_v39 = vadd.f32 %v10585_v43, %v10584_v28  ;;  %v17984_v23 = vsub.f32 %v10528_v41, %v10565_v48  ;;  %v14396_v28 = vld [vmem:[%s18039_s28 + $0x60] sm:$0xff]  }
0x1b11   : > { %v10558_v14 = vpop.xlane.xlu0 %10557  ;;  %v17988_v50 = vsub.f32 %v10530_v61, %v10565_v48  ;;  %v14395_v48 = vld [vmem:[%s18039_s28 + $0xa8] sm:$0xff]   ;;  %v14397_v43 = vld [vmem:[%s18039_s28 + $0xe0] sm:$0xff]  }
0x1b12   : > { %v10566_v15 = vmul.f32 0.001953125, %v10558_v14  ;;  %v10601_v55 = vadd.f32 %v10600_v39, %v10586_v47  ;;  %v10588_v31 = vmul.f32 %v17979_v56, %v17979_v56  ;;  %v10589_v8 = vmul.f32 %v17982_v29, %v17982_v29  ;;  %v14398_v47 = vld [vmem:[%s18039_s28 + $0x20] sm:$0xff]   ;;  %v14400_v14 = vld [vmem:[%s18039_s28 + $0x58] sm:$0xff]  }
0x1b13   : > { %v10590_v27 = vmul.f32 %v17984_v23, %v17984_v23  ;;  %v10591_v12 = vmul.f32 %v17988_v50, %v17988_v50  ;;  %v14399_v39 = vld [vmem:[%s18039_s28 + $0xa0] sm:$0xff]  }
0x1b14   : > { %v17996_v6 = vsub.f32 %v10428_v51, %v10566_v15  ;;  %v17999_v44 = vsub.f32 %v17961_v35, %v10566_v15  ;;  %v10602_v62 = vadd.f32 %v10601_v55, %v10587_v25  ;;  %v10605_v57 = vadd.f32 %v10589_v8, %v10588_v31  ;;  %v14401_v25 = vld [vmem:[%s18039_s28 + $0xd8] sm:$0xff]   ;;  %v14404_v31 = vld [vmem:[%s18039_s28 + $0x50] sm:$0xff]  }
0x1b15   : > { %v10563_v41 = vpop.xlane.xlu1 %10562  ;;  %v18003_v38 = vsub.f32 %v10534_v34, %v10566_v15  ;;  %v18005_v53 = vsub.f32 %v10536_v2, %v10566_v15  ;;  %v14402_v15 = vld [vmem:[%s18039_s28 + $0x18] sm:$0xff]   ;;  %v14405_v8 = vld [vmem:[%s18039_s28 + $0xd0] sm:$0xff]  }
0x1b16   : > { %v10567_v45 = vmul.f32 0.001953125, %v10563_v41  ;;  %10603 = vadd.xlane.f32.xlu0 %v10602_v62  ;;  %v10606_v22 = vadd.f32 %v10605_v57, %v10590_v27  ;;  %v10592_v51 = vmul.f32 %v17996_v6, %v17996_v6  ;;  %v10593_v35 = vmul.f32 %v17999_v44, %v17999_v44  ;;  %v14403_v55 = vld [vmem:[%s18039_s28 + $0x98] sm:$0xff]   ;;  %v14406_v27 = vld [vmem:[%s18039_s28 + $0x10] sm:$0xff]   ;;  %v14408_v57 = vld [vmem:[%s18039_s28 + $0x48] sm:$0xff]  }
0x1b17   : > { %v10594_v17 = vmul.f32 %v18003_v38, %v18003_v38  ;;  %v10595_v4 = vmul.f32 %v18005_v53, %v18005_v53  ;;  %v14407_v62 = vld [vmem:[%s18039_s28 + $0x90] sm:$0xff]   ;;  %v14409_v41 = vld [vmem:[%s18039_s28 + $0xc8] sm:$0xff]  }
0x1b18   : > { %v18013_v61 = vsub.f32 %v10432_v3, %v10567_v45  ;;  %v18015_v63 = vsub.f32 %v10434_v42, %v10567_v45  ;;  %v10607_v21 = vadd.f32 %v10606_v22, %v10591_v12  ;;  %v10610_v20 = vadd.f32 %v10593_v35, %v10592_v51  ;;  %v14410_v12 = vld [vmem:[%s18039_s28 + $0x8] sm:$0xff]   ;;  %v14412_v22 = vld [vmem:[%s18039_s28 + $0x40] sm:$0xff]  }
0x1b19   : > { %v18019_v34 = vsub.f32 %v10538_v5, %v10567_v45  ;;  %v18021_v36 = vsub.f32 %v10540_v16, %v10567_v45  ;;  %v14385_v5 = vld [vmem:[%s18039_s28 + $0xf8] sm:$0xff]   ;;  %v14390_v16 = vld [vmem:[%s18039_s28 + $0x30] sm:$0xff]   ;;  %v14411_v45 = vld [vmem:[%s18039_s28 + $0x88] sm:$0xff]  }
0x1b1a   : > { %10608 = vadd.xlane.f32.xlu1 %v10607_v21  ;;  %v10611_v40 = vadd.f32 %v10610_v20, %v10594_v17  ;;  %v10596_v24 = vmul.f32 %v18013_v61, %v18013_v61  ;;  %v10597_v46 = vmul.f32 %v18015_v63, %v18015_v63  ;;  %12810 = vmatprep.subr.bf16.mxu0 %v14385_v5  ;;  %v14413_v51 = vld [vmem:[%s18039_s28 + $0xc0] sm:$0xff]   ;;  %v10543_v5 = vld [vmem:[%s18301_s29] sm:$0xf] }
0x1b1b   : > { %v10598_v3 = vmul.f32 %v18019_v34, %v18019_v34  ;;  %v10599_v2 = vmul.f32 %v18021_v36, %v18021_v36  ;;  %12811 = vmatpush3.bf16.msra.mxu0 %v14387_v33  ;;  %12785 = vmatpush3.bf16.msra.mxu1 %v14390_v16  ;;  %v14414_v35 = vld [vmem:[%s18039_s28] sm:$0xff]  }
0x1b1c   : > { %v10612_v42 = vadd.f32 %v10611_v40, %v10595_v4  ;;  %v10615_v0 = vadd.f32 %v10597_v46, %v10596_v24  ;;  %12812 = vmatprep.subr.bf16.mxu0 %v14389_v49  ;;  %12786 = vmatprep.subr.bf16.mxu1 %v14392_v11  ;;  %v14415_v17 = vld [vmem:[%s18039_s28 + $0x80] sm:$0xff]   ;;  %v18089_v11 = vrot.slane %v10543_v5, %v18294_v30 }
0x1b1e   : > { %10613 = vadd.xlane.f32.xlu0 %v10612_v42  ;;  %v10616_v1 = vadd.f32 %v10615_v0, %v10598_v3 }
0x1b1f   : > { %12813 = vmatpush3.bf16.msra.mxu0 %v14391_v13  ;;  %12787 = vmatpush3.bf16.msra.mxu1 %v14394_v60  ;;  %v18086_v13 = vrot.slane %v10543_v5, %v18291_v37 }
0x1b20   : > { %v10617_v10 = vadd.f32 %v10616_v1, %v10599_v2  ;;  %12814 = vmatprep.subr.bf16.mxu0 %v14393_v26  ;;  %12788 = vmatprep.subr.bf16.mxu1 %v14396_v28 }
0x1b22   : > { %10618 = vadd.xlane.f32.xlu1 %v10617_v10  ;;  %v10542_v10 = vld [vmem:[%s18300_s1] sm:$0xf] }
0x1b23   : > { %12815 = vmatpush3.bf16.msra.mxu0 %v14395_v48  ;;  %12789 = vmatpush3.bf16.msra.mxu1 %v14398_v47  ;;  %v18078_v7 = vrot.slane %v10542_v10, %v18292_v19  ;;  %v10656_v33 = vrot.slane %v10542_v10, %v18291_v37  ;;  %v18082_v52 = vrot.slane %v10542_v10, %v18293_v32 }
0x1b24   : > { %12816 = vmatprep.subr.bf16.mxu0 %v14397_v43  ;;  %12790 = vmatprep.subr.bf16.mxu1 %v14400_v14  ;;  %v10664_v49 = vrot.slane %v10542_v10, %v18294_v30  ;;  %v18096_v43 = vrot.slane %v10543_v5, %v18292_v19  ;;  %v18099_v47 = vrot.slane %v10543_v5, %v18293_v32 }
0x1b27   : > { %12817 = vmatpush3.bf16.msra.mxu0 %v14399_v39  ;;  %12791 = vmatpush3.bf16.msra.mxu1 %v14402_v15 }
0x1b28   : > { %12818 = vmatprep.subr.bf16.mxu0 %v14401_v25  ;;  %12792 = vmatprep.subr.bf16.mxu1 %v14404_v31 }
0x1b2b   : > { %12819 = vmatpush3.bf16.msra.mxu0 %v14403_v55  ;;  %12793 = vmatpush3.bf16.msra.mxu1 %v14406_v27 }
0x1b2c   : > { %12820 = vmatprep.subr.bf16.mxu0 %v14405_v8  ;;  %12794 = vmatprep.subr.bf16.mxu1 %v14408_v57 }
0x1b2f   : > { %12821 = vmatpush3.bf16.msra.mxu0 %v14407_v62  ;;  %12795 = vmatpush3.bf16.msra.mxu1 %v14410_v12 }
0x1b30   : > { %12822 = vmatprep.subr.bf16.mxu0 %v14409_v41  ;;  %12796 = vmatprep.subr.bf16.mxu1 %v14412_v22 }
0x1b33   : > { %12823 = vmatpush3.bf16.msra.mxu0 %v14411_v45  ;;  %12797 = vmatpush3.bf16.msra.mxu1 %v14414_v35 }
0x1b34   : > { %12824 = vmatprep.subr.bf16.mxu0 %v14413_v51 }
0x1b37   : > { %12825 = vmatpush3.bf16.msra.mxu0 %v14415_v17 }
0x1b9f   : > { %v10604_v21 = vpop.xlane.xlu0 %10603 }
0x1ba0   : > { %v10620_v20 = vmul.f32 0.001953125, %v10604_v21 }
0x1ba2   : > { %v10624_v4 = vadd.f32 1e-05, %v10620_v20 }
0x1ba3   : > { %v10609_v40 = vpop.xlane.xlu1 %10608 }
0x1ba4   : > { %14504 = vrsqrt.f32 %v10624_v4  ;;  %v10621_v24 = vmul.f32 0.001953125, %v10609_v40 }
0x1ba6   : > { %v10625_v46 = vadd.f32 1e-05, %v10621_v24 }
0x1ba7   : > { %v10614_v42 = vpop.xlane.xlu0 %10613 }
0x1ba8   : > { %14506 = vrsqrt.f32 %v10625_v46  ;;  %v10622_v3 = vmul.f32 0.001953125, %v10614_v42 }
0x1baa   : > { %v10626_v0 = vadd.f32 1e-05, %v10622_v3 }
0x1bab   : > { %v10619_v2 = vpop.xlane.xlu1 %10618 }
0x1bac   : > { %14508 = vrsqrt.f32 %v10626_v0  ;;  %v10623_v1 = vmul.f32 0.001953125, %v10619_v2 }
0x1bae   : > { %v10627_v58 = vadd.f32 1e-05, %v10623_v1 }
0x1bb0   : > { %14510 = vrsqrt.f32 %v10627_v58 }
0x1bb1   : > { %v14505_v16 = vpop.eup %14504 }
0x1bb2   : > { %v10633_v26 = vmul.f32 %v14505_v16, %v17967_v18  ;;  %v10635_v60 = vmul.f32 %v14505_v16, %v17971_v59  ;;  %v10632_v48 = vmul.f32 %v14505_v16, %v17964_v54  ;;  %v10634_v28 = vmul.f32 %v14505_v16, %v17969_v9 }
0x1bb4   : > { %v10670_v39 = vmul.f32 %v10656_v33, %v10633_v26  ;;  %v10672_v37 = vmul.f32 %v10664_v49, %v10635_v60  ;;  %v10669_v14 = vmul.f32 %v18078_v7, %v10632_v48  ;;  %v10671_v30 = vmul.f32 %v18082_v52, %v10634_v28 }
0x1bb5   : > { %v14507_v25 = vpop.eup %14506 }
0x1bb6   : > { %v10637_v18 = vmul.f32 %v14507_v25, %v17982_v29  ;;  %v10707_v59 = vadd.f32 %v18086_v13, %v10670_v39  ;;  %v10639_v54 = vmul.f32 %v14507_v25, %v17988_v50  ;;  %v10709_v9 = vadd.f32 %v18089_v11, %v10672_v37 }
0x1bb7   : > { %v10636_v19 = vmul.f32 %v14507_v25, %v17979_v56  ;;  %v10638_v32 = vmul.f32 %v14507_v25, %v17984_v23  ;;  %v10706_v31 = vadd.f32 %v18096_v43, %v10669_v14  ;;  %v10708_v8 = vadd.f32 %v18099_v47, %v10671_v30 }
0x1bb8   : > { %v10674_v15 = vmul.f32 %v10656_v33, %v10637_v18  ;;  %v10676_v55 = vmul.f32 %v10664_v49, %v10639_v54  ;;  %v10723_v62 = vmax.f32 %v10707_v59, 0.0  ;;  %v10725_v57 = vmax.f32 %v10709_v9, 0.0 }
0x1bb9   : > { %v14509_v27 = vpop.eup %14508  ;;  %v10673_v29 = vmul.f32 %v18078_v7, %v10636_v19  ;;  %v10675_v41 = vmul.f32 %v18082_v52, %v10638_v32  ;;  %v10722_v20 = vmax.f32 %v10706_v31, 0.0  ;;  %v10724_v46 = vmax.f32 %v10708_v8, 0.0 }
0x1bba   : > { %v10711_v50 = vadd.f32 %v18086_v13, %v10674_v15  ;;  %v10713_v12 = vadd.f32 %v18089_v11, %v10676_v55  ;;  %v10641_v56 = vmul.f32 %v14509_v27, %v17999_v44  ;;  %v10643_v23 = vmul.f32 %v14509_v27, %v18005_v53  ;;  %v12662_v15 = vld [vmem:[%s1262_s24] ss:$0 sm:$0xff] }
0x1bbb   : > { %v10710_v45 = vadd.f32 %v18096_v43, %v10673_v29  ;;  %v10712_v22 = vadd.f32 %v18099_v47, %v10675_v41  ;;  %v10640_v51 = vmul.f32 %v14509_v27, %v17996_v6  ;;  %v10642_v35 = vmul.f32 %v14509_v27, %v18003_v38 }
0x1bbc   : > { %v10727_v17 = vmax.f32 %v10711_v50, 0.0  ;;  %v10729_v21 = vmax.f32 %v10713_v12, 0.0  ;;  %v10678_v4 = vmul.f32 %v10656_v33, %v10641_v56  ;;  %v10680_v3 = vmul.f32 %v10664_v49, %v10643_v23 }
0x1bbd   : > { %v14511_v40 = vpop.eup %14510  ;;  %v10726_v24 = vmax.f32 %v10710_v45, 0.0  ;;  %v10728_v42 = vmax.f32 %v10712_v22, 0.0  ;;  %v10677_v2 = vmul.f32 %v18078_v7, %v10640_v51  ;;  %v10679_v38 = vmul.f32 %v18082_v52, %v10642_v35 }
0x1bbe   : > { %v10739_v44 = vpack.c.bf16 %v10727_v17, %v10723_v62  ;;  %v10741_v0 = vpack.c.bf16 %v10729_v21, %v10725_v57  ;;  %v10645_v53 = vmul.f32 %v14511_v40, %v18015_v63  ;;  %v10647_v6 = vmul.f32 %v14511_v40, %v18021_v36 }
0x1bbf   : > { %v10738_v1 = vpack.c.bf16 %v10726_v24, %v10722_v20  ;;  %v10740_v10 = vpack.c.bf16 %v10728_v42, %v10724_v46  ;;  %v10715_v5 = vadd.f32 %v18086_v13, %v10678_v4  ;;  %v10644_v16 = vmul.f32 %v14511_v40, %v18013_v61 }
0x1bc0   : > { %11041 = vmatprep.mubr.bf16.mxu1 %v10739_v44  ;;  %11090 = vmatprep.mubr.bf16.mxu0 %v10741_v0  ;;  %v10682_v58 = vmul.f32 %v10656_v33, %v10645_v53  ;;  %v10684_v26 = vmul.f32 %v10664_v49, %v10647_v6  ;;  %v10717_v63 = vadd.f32 %v18089_v11, %v10680_v3 }
0x1bc1   : > { %11042 = vmatmul.mubr.bf16.vlgmr.msra.gmra.mxu1 %v10738_v1  ;;  %11091 = vmatmul.mubr.bf16.vlgmr.msra.gmra.mxu0 %v10740_v10  ;;  %v10646_v60 = vmul.f32 %v14511_v40, %v18019_v34  ;;  %v10681_v36 = vmul.f32 %v18078_v7, %v10644_v16  ;;  %v10714_v28 = vadd.f32 %v18096_v43, %v10677_v2  ;;  %v10731_v61 = vmax.f32 %v10715_v5, 0.0 }
0x1bc2   : > { %v10719_v48 = vadd.f32 %v18086_v13, %v10682_v58  ;;  %v10721_v39 = vadd.f32 %v18089_v11, %v10684_v26  ;;  %v10716_v37 = vadd.f32 %v18099_v47, %v10679_v38  ;;  %v10733_v30 = vmax.f32 %v10717_v63, 0.0  ;;  %v12695_v26 = vld [vmem:[%s1437_s16] ss:$0 sm:$0xff] }
0x1bc3   : > { %v10683_v33 = vmul.f32 %v18082_v52, %v10646_v60  ;;  %v10718_v49 = vadd.f32 %v18096_v43, %v10681_v36  ;;  %v10730_v18 = vmax.f32 %v10714_v28, 0.0  ;;  %v11113_v43 = vld [vmem:[%s1434_s4] sm:$0xf] }
0x1bc4   : > { %v10735_v14 = vmax.f32 %v10719_v48, 0.0  ;;  %v10737_v25 = vmax.f32 %v10721_v39, 0.0  ;;  %v10732_v54 = vmax.f32 %v10716_v37, 0.0  ;;  %12959 = vmatprep.subr.msk.bf16.mxu1 %vm11128_vm1, %v11113_v43 }
0x1bc5   : > { %v10720_v34 = vadd.f32 %v18099_v47, %v10683_v33  ;;  %v10734_v7 = vmax.f32 %v10718_v49, 0.0  ;;  %v11130_v47 = vsel %vm11128_vm1, %v11113_v43, 0 }
0x1bc6   : > { %v10743_v13 = vpack.c.bf16 %v10735_v14, %v10731_v61  ;;  %v10745_v59 = vpack.c.bf16 %v10737_v25, %v10733_v30  ;;  %12954 = vmatpush3.bf16.msra.mxu1 %v11130_v47 }
0x1bc7   : > { %v10736_v9 = vmax.f32 %v10720_v34, 0.0  ;;  %v10742_v52 = vpack.c.bf16 %v10734_v7, %v10730_v18 }
0x1bc8   : > { %11049 = vmatprep.mubr.bf16.mxu1 %v10743_v13  ;;  %11098 = vmatprep.mubr.bf16.mxu0 %v10745_v59 }
0x1bc9   : > { %v10744_v11 = vpack.c.bf16 %v10736_v9, %v10732_v54  ;;  %11050 = vmatmul.mubr.bf16.gmra.mxu1 %v10742_v52 }
0x1bcb   : > { %11099 = vmatmul.mubr.bf16.gmra.mxu0 %v10744_v11 }
0x1c81   : > { %v12798_v19 = vpop.f32.mrf.mxu1  ;;  %v12826_v32 = vpop.f32.mrf.mxu0 }
0x1c83   : > { %v12799_v55 = vpop.f32.mrf.mxu1  ;;  %v12827_v31 = vpop.f32.mrf.mxu0 }
0x1c84   : > { %v12800_v8 = vadd.f32 %v12799_v55, %v12798_v19  ;;  %v12828_v50 = vadd.f32 %v12827_v31, %v12826_v32 }
0x1c85   : > { %v12801_v27 = vpop.f32.mrf.mxu1  ;;  %v12829_v62 = vpop.f32.mrf.mxu0 }
0x1c86   : > { %v11044_v57 = vadd.f32 %v12800_v8, %v12662_v15 }
0x1c87   : > { %v12802_v29 = vpop.f32.mrf.mxu1  ;;  %v12830_v41 = vpop.f32.mrf.mxu0 }
0x1c88   : > { %v12803_v12 = vadd.f32 %v12802_v29, %v12801_v27  ;;  %v11093_v56 = vadd.f32 %v12828_v50, %v11044_v57  ;;  %v12831_v45 = vadd.f32 %v12830_v41, %v12829_v62 }
0x1c89   : > { %v12804_v22 = vpop.f32.mrf.mxu1 }
0x1c8a   : > { %v11047_v23 = vadd.f32 %v12803_v12, %v12662_v15  ;;  %v11107_v4 = vmax.f32 %v11093_v56, 0.0 }
0x1c8b   : > { %v12832_v51 = vpop.f32.mrf.mxu0  ;;  %v12805_v17 = vpop.f32.mrf.mxu1 }
0x1c8c   : > { %v11096_v35 = vadd.f32 %v12831_v45, %v11047_v23  ;;  %v12806_v21 = vadd.f32 %v12805_v17, %v12804_v22 }
0x1c8d   : > { %v12833_v20 = vpop.f32.mrf.mxu0  ;;  %v12807_v24 = vpop.f32.mrf.mxu1 }
0x1c8e   : > { %v11108_v40 = vmax.f32 %v11096_v35, 0.0  ;;  %v11052_v46 = vadd.f32 %v12806_v21, %v12662_v15  ;;  %v12834_v0 = vadd.f32 %v12833_v20, %v12832_v51 }
0x1c8f   : > { %v12835_v42 = vpop.f32.mrf.mxu0  ;;  %v12808_v44 = vpop.f32.mrf.mxu1 }
0x1c90   : > { %v11111_v3 = vpack.c.bf16 %v11108_v40, %v11107_v4  ;;  %v12809_v53 = vadd.f32 %v12808_v44, %v12807_v24  ;;  %v11101_v1 = vadd.f32 %v12834_v0, %v11052_v46 }
0x1c91   : > { %v12836_v2 = vpop.f32.mrf.mxu0 }
0x1c92   : > { %12955 = vmatprep.mubr.msk.bf16.mxu1 %vm11121_vm2, %v11111_v3  ;;  %v11055_v10 = vadd.f32 %v12809_v53, %v12662_v15  ;;  %v12837_v6 = vadd.f32 %v12836_v2, %v12835_v42  ;;  %v11109_v58 = vmax.f32 %v11101_v1, 0.0 }
0x1c94   : > { %v11104_v38 = vadd.f32 %v12837_v6, %v11055_v10 }
0x1c96   : > { %v11110_v5 = vmax.f32 %v11104_v38, 0.0 }
0x1c98   : > { %v11112_v16 = vpack.c.bf16 %v11110_v5, %v11109_v58 }
0x1c9a   : > { %12956 = vmatmul.mubr.msk.bf16.vlgmr.msra.gmra.mxu1 %vm11121_vm2, %v11112_v16 }
0x1d5a   : > { %v12957_v63 = vpop.f32.mrf.mxu1 }
0x1d5b   : > { %v11175_v60 = vadd.f32 %v12957_v63, %v12695_v26 }
0x1d5c   : > { %v11166_v48 = vpop.f32.mrf.mxu1 }
0x1d5d   : > { %v11183_v36 = vmax.f32 %v11175_v60, 0.0  ;;  %v11167_v28 = vadd.f32 %v12695_v26, %v11166_v48 }
0x1d5e   : > { %v12958_v39 = vpop.f32.mrf.mxu1 }
0x1d5f   : > { %11188 = vst.msk [vmem:[%s1442_s18 + $0x10] sm:$0xff] %vm11185_vm3, %v11183_v36  ;;  %v11181_v33 = vmax.f32 %v11167_v28, 0.0  ;;  %v11178_v37 = vadd.f32 %v12958_v39, %v12695_v26 }
0x1d60   : > { %v11169_v61 = vpop.f32.mrf.mxu1 }
0x1d61   : > { %11186 = vst.msk [vmem:[%s1442_s18] sm:$0xff] %vm11185_vm3, %v11181_v33  ;;  %v11184_v14 = vmax.f32 %v11178_v37, 0.0  ;;  %v11170_v49 = vadd.f32 %v12695_v26, %v11169_v61 }
0x1d63   : > { %11189 = vst.msk [vmem:[%s1442_s18 + $0x18] sm:$0xff] %vm11185_vm3, %v11184_v14  ;;  %v11182_v30 = vmax.f32 %v11170_v49, 0.0 }
0x1d65   : > { %11187 = vst.msk [vmem:[%s1442_s18 + $0x8] sm:$0xff] %vm11185_vm3, %v11182_v30 }
0x1d66 PF: > { %s18305_s25 = sld [smem:[#allocation44_spill]] }
0x1d67   : > { %s18306_s4 = sld [smem:[#allocation41_spill]] }
0x1d68   : > { %s18307_s30 = sld [smem:[#allocation42_spill]] }
0x1d69   : > { %s18308_s24 = sld [smem:[#allocation45_spill]] }
0x1d6c   : > { %p60_p6 = scmp.ge.s32.totalorder %s18305_s25, 4  }
0x1d6e   :  { %62 = sbr.rel (!%p60_p6) target bundleno = 41 (0x29), region = 377 }
0x1d73   :  { %11211 = vsyncpa [#allocation3], 1 }
0x1d74   :  { %11213 = vsyncpa [#allocation3 + $0x1], 1 }
0x1d75   :  { %11214 = vsyncpa [#allocation5], 1 }
0x1d76   :  { %11216 = vsyncpa [#allocation5 + $0x1], 1 }
0x1d77   :  { %11217 = vsyncpa [#allocation8], 1 }
0x1d78   :  { %11219 = vsyncpa [#allocation8 + $0x1], 1 }
0x1d79   :  { %11220 = vsyncpa [#allocation11], 1 }
0x1d7a   :  { %11222 = vsyncpa [#allocation11 + $0x1], 1 }
0x1d7b   :  { %11223 = vsyncpa [#allocation14], 1 }
0x1d7c   :  { %11225 = vsyncpa [#allocation14 + $0x1], 1 }
0x1d7d   :  { %11226 = vsyncpa [#allocation17], 1 }
0x1d7e   :  { %11228 = vsyncpa [#allocation17 + $0x1], 1 }
0x1d7f   :  { %11229 = vsyncpa [#allocation20], 1 }
0x1d80   :  { %11231 = vsyncpa [#allocation20 + $0x1], 1 }
0x1d81   :  { %11232 = vsyncpa [#allocation23], 1 }
0x1d82   :  { %11234 = vsyncpa [#allocation23 + $0x1], 1 }
0x1d83   :  { %11235 = vsyncpa [#allocation26], 1 }
0x1d84   :  { %11237 = vsyncpa [#allocation26 + $0x1], 1 }
0x1d85   :  { %11238 = vsyncpa [#allocation29], 1 }
0x1d86   :  { %11240 = vsyncpa [#allocation29 + $0x1], 1 }

</bundles_post_ra>
